<compile_context>
chip_gen: v7x
topology: tpu7x:2x2x1
jax: 0.10.0
libtpu: 0.0.40
codegen_flags: <defaults>
</compile_context>

<pallas_src>
import functools
import math

import numpy as np

import jax
import jax.numpy as jnp
from jax.experimental import pallas as pl
from jax.experimental.pallas import tpu as pltpu

# ----------------------------------------------------------------------------
# Model hyper-parameters (small, shape-consistent with the PyTorch module).
# ----------------------------------------------------------------------------
INTRINSIC_ID_DIM = 64       # intrinsic_id_embedding_dim
STRUCTURE_DIM = 96          # structure_embedding_dim
NUM_TOKENS = 16             # num_tokens (latents)
DEPTH = 2                   # depth
DIM = 128                   # dim
DIM_HEAD = 32               # dim_head
HEADS = 4                   # heads
FF_MULT = 4                 # ff_mult
OUTPUT_DIM = 128            # output_dim
LN_EPS = 1e-5


def _round_up(x, m):
    return ((x + m - 1) // m) * m


ID_IN_PAD = _round_up(INTRINSIC_ID_DIM, 128)        # 128
ID_HID_PAD = _round_up(INTRINSIC_ID_DIM * 2, 128)   # 128
ST_IN_PAD = _round_up(STRUCTURE_DIM, 128)           # 128
ST_HID_PAD = _round_up(STRUCTURE_DIM * 2, 128)      # 256
INNER = HEADS * DIM_HEAD                            # 128


# ----------------------------------------------------------------------------
# Static slab layouts (row offsets are Python constants, closed over by the
# kernel, so all in-kernel slab slices are static).
# ----------------------------------------------------------------------------
def _narrow_layout(depth):
    """128-column bf16 weight slab."""
    off, r = {}, 0

    def take(name, rows):
        nonlocal r
        off[name] = r
        r += rows

    take("pid_w1", ID_IN_PAD)
    take("pid_w2", ID_HID_PAD)
    take("pcl_w2", ST_HID_PAD)
    take("po_w", DIM)
    for l in range(depth):
        for a in range(2):
            take(f"wo_{l}_{a}", INNER)
    for l in range(depth):
        take(f"ff_w2_{l}", DIM * FF_MULT)
    return off, r


def _qkv_layout(depth):
    """(3*INNER)-column bf16 slab: fused [Wq*s | Wk*s | Wv] per attention, plus
    pcl_w1 (occupying the first ST_HID_PAD columns of its row block)."""
    off, r = {}, 0

    def take(name, rows):
        nonlocal r
        off[name] = r
        r += rows

    for l in range(depth):
        for a in range(2):
            take(f"wqkv_{l}_{a}", DIM)
    take("pcl_w1", ST_IN_PAD)
    return off, r


def _smallp_layout(depth):
    """f32 slab (max(DIM, ST_HID_PAD) columns): latents, LN params, biases."""
    off, r = {}, 0

    def take(name, rows=1):
        nonlocal r
        off[name] = r
        r += rows

    take("latents", NUM_TOKENS)
    for name in ("pid_b1", "pid_b2", "pcl_b1", "pcl_b2", "po_b", "no_g", "no_b"):
        take(name)
    for l in range(depth):
        for a in range(2):
            for p in ("ln1_g", "ln1_b", "ln2_g", "ln2_b"):
                take(f"{p}_{l}_{a}")
    for l in range(depth):
        take(f"ff_ln_g_{l}")
        take(f"ff_ln_b_{l}")
    return off, _round_up(r, 8)


# ----------------------------------------------------------------------------
# Fused kernel.  One batch element per grid step.
# ----------------------------------------------------------------------------
def fused_resampler_kernel(id_ref, st_ref, sp_ref, wn_ref, wqkv_ref, wff1_ref,
                           o_ref, *, structure_scale, depth, heads, dim_head,
                           wn_off, wqkv_off, sp_off):
    bf16, f32 = jnp.bfloat16, jnp.float32
    D = DIM
    inner = heads * dim_head
    n_lat = NUM_TOKENS

    # ---- static slab accessors -------------------------------------------
    def vec(name, cols=D):
        r = sp_off[name]
        return sp_ref[r:r + 1, 0:cols]                 # (1, cols) f32

    def wn(name, rows=D):
        r = wn_off[name]
        return wn_ref[r:r + rows, :]                   # (rows, 128) bf16

    # ---- small math helpers -------------------------------------------------
    def layernorm(x, g, b):
        mu = jnp.mean(x, axis=-1, keepdims=True)
        var = jnp.mean(jnp.square(x - mu), axis=-1, keepdims=True)
        return (x - mu) * jax.lax.rsqrt(var + LN_EPS) * g + b

    def gelu(x):
        # torch.nn.GELU() default (exact erf form), in f32.
        return 0.5 * x * (1.0 + jax.lax.erf(x * (1.0 / math.sqrt(2.0))))

    def mm(x_f32, w_bf16):
        # 2D matmul on the MXU: bf16 x bf16 -> f32 accumulation.
        return jnp.dot(x_f32.astype(bf16), w_bf16, preferred_element_type=f32)

    def split_heads(t):
        # (n, heads*dh) f32 -> (heads, n, dh) bf16.  Tiny tensors; built with
        # lane slices + leading-axis stack (no big broadcasts).
        return jnp.stack(
            [t[:, h * dim_head:(h + 1) * dim_head] for h in range(heads)],
            axis=0).astype(bf16)

    def bmm_qk(a, b):      # (H, q, d) x (H, k, d) -> (H, q, k)
        return jax.lax.dot_general(
            a, b, dimension_numbers=(((2,), (2,)), ((0,), (0,))),
            preferred_element_type=f32)

    def bmm_pv(p, v):      # (H, q, k) x (H, k, d) -> (H, q, d)
        return jax.lax.dot_general(
            p, v, dimension_numbers=(((2,), (1,)), ((0,), (0,))),
            preferred_element_type=f32)

    def attention(x_feats, lat, l, a):
        tag = f"{l}_{a}"
        xn = layernorm(x_feats, vec("ln1_g_" + tag), vec("ln1_b_" + tag))
        ln = layernorm(lat, vec("ln2_g_" + tag), vec("ln2_b_" + tag))

        r = wqkv_off["wqkv_" + tag]
        w_qkv = wqkv_ref[r:r + D, :]            # (D, 3*inner) = [Wq*s|Wk*s|Wv]
        w_kv = wqkv_ref[r:r + D, inner:]        # (D, 2*inner) = [Wk*s|Wv]

        qkv_lat = mm(ln, w_qkv)                 # (n_lat, 3*inner) full-lane MXU
        kv_x = mm(xn, w_kv)                     # (n1,   2*inner) full-lane MXU

        qh = split_heads(qkv_lat[:, :inner])            # (H, n_lat, dh)
        klh = split_heads(qkv_lat[:, inner:2 * inner])  # (H, n_lat, dh)
        vlh = split_heads(qkv_lat[:, 2 * inner:])       # (H, n_lat, dh)
        kxh = split_heads(kv_x[:, :inner])              # (H, n1, dh)
        vxh = split_heads(kv_x[:, inner:])              # (H, n1, dh)

        # Scale already folded into Wq / Wk at pack time.
        sx = bmm_qk(qh, kxh)                    # (H, n_lat, n1)
        sl = bmm_qk(qh, klh)                    # (H, n_lat, n_lat)

        # Two-piece softmax over the union of keys (identical to softmax over
        # concat([x, latents])); exp/sum in f32.
        m = jnp.maximum(jnp.max(sx, axis=-1, keepdims=True),
                        jnp.max(sl, axis=-1, keepdims=True))
        px = jnp.exp(sx - m)
        pL = jnp.exp(sl - m)
        inv = pl.reciprocal(jnp.sum(px, axis=-1, keepdims=True)
                            + jnp.sum(pL, axis=-1, keepdims=True), approx=True)

        out = (bmm_pv(px.astype(bf16), vxh)
               + bmm_pv(pL.astype(bf16), vlh)) * inv    # (H, n_lat, dh) f32

        # Concatenate heads along lanes -> single K=128 output projection.
        out2d = jnp.concatenate([out[h] for h in range(heads)], axis=-1)
        return mm(out2d, wn("wo_" + tag))                # (n_lat, D)

    # ---------------- proj_id / proj_clip (Linear -> GELU -> Linear) -------
    ids = id_ref[0]                                    # (n_id, ID_IN_PAD) f32
    sts = st_ref[0]                                    # (n_st, ST_IN_PAD) f32

    id_h = gelu(mm(ids, wn("pid_w1", ID_IN_PAD)) + vec("pid_b1", ID_HID_PAD))
    id_feats = mm(id_h, wn("pid_w2", ID_HID_PAD)) + vec("pid_b2")

    rp = wqkv_off["pcl_w1"]
    st_h = gelu(mm(sts, wqkv_ref[rp:rp + ST_IN_PAD, 0:ST_HID_PAD])
                + vec("pcl_b1", ST_HID_PAD))
    st_feats = mm(st_h, wn("pcl_w2", ST_HID_PAD)) + vec("pcl_b2")

    # ---------------- transformer layers (latents stay on-chip) ------------
    rl = sp_off["latents"]
    lat = sp_ref[rl:rl + n_lat, 0:D]                   # (NUM_TOKENS, D) f32

    for l in range(depth):                             # static unroll
        lat = lat + attention(id_feats, lat, l, 0)
        lat = lat + structure_scale * attention(st_feats, lat, l, 1)
        xn = layernorm(lat, vec(f"ff_ln_g_{l}"), vec(f"ff_ln_b_{l}"))
        h = gelu(mm(xn, wff1_ref[l]))                  # (NUM_TOKENS, D*FF_MULT)
        lat = lat + mm(h, wn(f"ff_w2_{l}", DIM * FF_MULT))

    # ---------------- proj_out + norm_out ----------------------------------
    y = mm(lat, wn("po_w")) + vec("po_b")
    o_ref[0] = layernorm(y, vec("no_g"), vec("no_b")).astype(o_ref.dtype)


# ----------------------------------------------------------------------------
# Parameter packing (once, outside the hot path):
#  - zero-pad 64/96/192 dims to multiples of 128 (lane-dense, exact),
#  - fuse [Wq*scale | Wk*scale | Wv] per attention (scale folded in),
#  - pack all matmul weights into 3 bf16 slabs grouped by column width,
#  - pack latents / LN params / biases into 1 f32 slab.
# ----------------------------------------------------------------------------
def _pad2(w, rows, cols):
    w = np.asarray(w, np.float32)
    return np.pad(w, ((0, rows - w.shape[0]), (0, cols - w.shape[1])))


def pack_params(params, heads=HEADS, dim_head=DIM_HEAD):
    depth = len(params["layers"])
    inner = heads * dim_head
    scale = 1.0 / math.sqrt(math.sqrt(dim_head))
    bf16, f32 = jnp.bfloat16, jnp.float32

    assert ID_HID_PAD == DIM, "proj_id hidden must fit the 128-col slab"
    assert ST_HID_PAD <= 3 * inner, "pcl_w1 must fit the qkv slab width"

    wn_off, wn_rows = _narrow_layout(depth)
    wqkv_off, wqkv_rows = _qkv_layout(depth)
    sp_off, sp_rows = _smallp_layout(depth)

    wn = np.zeros((wn_rows, DIM), np.float32)
    wqkv = np.zeros((wqkv_rows, 3 * inner), np.float32)
    wff1 = np.zeros((depth, DIM, DIM * FF_MULT), np.float32)
    sp = np.zeros((sp_rows, max(DIM, ST_HID_PAD)), np.float32)

    def put(slab, row, arr):
        arr = np.asarray(arr, np.float32)
        slab[row:row + arr.shape[0], :arr.shape[1]] = arr

    def put_vec(name, v, cols=None):
        v = np.asarray(v, np.float32).reshape(1, -1)
        if cols is not None and v.shape[1] < cols:
            v = np.pad(v, ((0, 0), (0, cols - v.shape[1])))
        put(sp, sp_off[name], v)

    pid, pcl = params["proj_id"], params["proj_clip"]
    put(wn, wn_off["pid_w1"], _pad2(pid["w1"], ID_IN_PAD, ID_HID_PAD))
    put(wn, wn_off["pid_w2"], _pad2(pid["w2"], ID_HID_PAD, DIM))
    put(wn, wn_off["pcl_w2"], _pad2(pcl["w2"], ST_HID_PAD, DIM))
    put(wn, wn_off["po_w"], params["proj_out"]["w"])
    put(wqkv, wqkv_off["pcl_w1"], _pad2(pcl["w1"], ST_IN_PAD, ST_HID_PAD))

    put(sp, sp_off["latents"],
        np.asarray(params["latents"], np.float32).reshape(NUM_TOKENS, DIM))
    put_vec("pid_b1", pid["b1"], ID_HID_PAD)
    put_vec("pid_b2", pid["b2"])
    put_vec("pcl_b1", pcl["b1"], ST_HID_PAD)
    put_vec("pcl_b2", pcl["b2"])
    put_vec("po_b", params["proj_out"]["b"])
    put_vec("no_g", params["proj_out"]["ln_g"])
    put_vec("no_b", params["proj_out"]["ln_b"])

    for l, layer in enumerate(params["layers"]):
        for a, name in enumerate(("attn1", "attn2")):
            blk = layer[name]
            tag = f"{l}_{a}"
            wq_s = np.asarray(blk["wq"], np.float32) * scale
            wk_s = np.asarray(blk["wkv"][:, :inner], np.float32) * scale
            wv = np.asarray(blk["wkv"][:, inner:], np.float32)
            put(wqkv, wqkv_off["wqkv_" + tag],
                np.concatenate([wq_s, wk_s, wv], axis=1))
            put(wn, wn_off["wo_" + tag], blk["wo"])
            for p in ("ln1_g", "ln1_b", "ln2_g", "ln2_b"):
                put_vec(f"{p}_{tag}", blk[p])
        ff = layer["ff"]
        wff1[l] = np.asarray(ff["w1"], np.float32)
        put(wn, wn_off[f"ff_w2_{l}"], ff["w2"])
        put_vec(f"ff_ln_g_{l}", ff["ln_g"])
        put_vec(f"ff_ln_b_{l}", ff["ln_b"])

    return {
        "w_narrow": jnp.asarray(wn, bf16),
        "w_qkv": jnp.asarray(wqkv, bf16),
        "w_ff1": jnp.asarray(wff1, bf16),
        "smallp": jnp.asarray(sp, f32),
        "depth": depth,
    }


def _cost_estimate(b, n_id, n_st, depth, inputs_nbytes):
    nt, d, inner = NUM_TOKENS, DIM, INNER

    def attn_macs(n1):
        return (nt * d * 3 * inner + n1 * d * 2 * inner
                + 2 * nt * (n1 + nt) * inner + nt * inner * d)

    proj_macs = (n_id * (ID_IN_PAD * ID_HID_PAD + ID_HID_PAD * d)
                 + n_st * (ST_IN_PAD * ST_HID_PAD + ST_HID_PAD * d))
    ff_macs = 2 * nt * d * d * FF_MULT
    head_macs = nt * d * OUTPUT_DIM
    macs = b * (proj_macs + head_macs
                + depth * (attn_macs(n_id) + attn_macs(n_st) + ff_macs))
    exps = b * depth * HEADS * nt * (n_id + n_st + 2 * nt)
    erfs = b * (n_id * ID_HID_PAD + n_st * ST_HID_PAD + depth * nt * d * FF_MULT)
    out_bytes = b * nt * OUTPUT_DIM * 4
    return pl.CostEstimate(flops=int(2 * macs),
                           transcendentals=int(exps + erfs),
                           bytes_accessed=int(inputs_nbytes + out_bytes))


# ----------------------------------------------------------------------------
# Forward pass wrapper (mirrors UniPortraitFaceIDResampler.forward).
# ----------------------------------------------------------------------------
def resampler_forward(packed, intrinsic_id_embeds, structure_embeds,
                      structure_scale=1.0):
    b, n_id, d_id = intrinsic_id_embeds.shape
    _, n_st, d_st = structure_embeds.shape
    depth = packed["depth"]

    idp = jnp.pad(intrinsic_id_embeds.astype(jnp.float32),
                  ((0, 0), (0, 0), (0, ID_IN_PAD - d_id)))
    stp = jnp.pad(structure_embeds.astype(jnp.float32),
                  ((0, 0), (0, 0), (0, ST_IN_PAD - d_st)))

    wn_off, _ = _narrow_layout(depth)
    wqkv_off, _ = _qkv_layout(depth)
    sp_off, _ = _smallp_layout(depth)

    kernel = functools.partial(
        fused_resampler_kernel,
        structure_scale=float(structure_scale), depth=depth,
        heads=HEADS, dim_head=DIM_HEAD,
        wn_off=wn_off, wqkv_off=wqkv_off, sp_off=sp_off)

    def shared_spec(a):
        nd = a.ndim
        return pl.BlockSpec(a.shape, lambda i, _n=nd: (0,) * _n)

    inputs = (idp, stp, packed["smallp"], packed["w_narrow"],
              packed["w_qkv"], packed["w_ff1"])
    in_specs = [
        pl.BlockSpec((1, n_id, ID_IN_PAD), lambda i: (i, 0, 0)),
        pl.BlockSpec((1, n_st, ST_IN_PAD), lambda i: (i, 0, 0)),
        shared_spec(packed["smallp"]),
        shared_spec(packed["w_narrow"]),
        shared_spec(packed["w_qkv"]),
        shared_spec(packed["w_ff1"]),
    ]
    inputs_nbytes = sum(int(a.size) * a.dtype.itemsize for a in inputs)

    return pl.pallas_call(
        kernel,
        out_shape=jax.ShapeDtypeStruct((b, NUM_TOKENS, OUTPUT_DIM), jnp.float32),
        grid=(b,),
        in_specs=in_specs,
        out_specs=pl.BlockSpec((1, NUM_TOKENS, OUTPUT_DIM), lambda i: (i, 0, 0)),
        compiler_params=pltpu.CompilerParams(
            # "parallel" batch axis: v7x's 2 TensorCores each take one batch
            # element; on v5e/v6e this is 2 cheap serial steps (constant-index
            # weight slabs are not re-fetched across steps).
            dimension_semantics=("parallel",),
            vmem_limit_bytes=32 * 1024 * 1024),
        cost_estimate=_cost_estimate(b, n_id, n_st, depth, inputs_nbytes),
    )(*inputs)


# ----------------------------------------------------------------------------
# Parameter construction (deterministic, synthetic) - PyTorch-layout shapes.
# ----------------------------------------------------------------------------
def init_params(key):
    keys = iter(jax.random.split(key, 128))

    def w(shape, scale=0.02):
        return (scale * jax.random.normal(next(keys), shape)).astype(jnp.float32)

    params = {
        "latents": (jax.random.normal(next(keys), (1, NUM_TOKENS, DIM))
                    / math.sqrt(DIM)).astype(jnp.float32),
        "proj_id": {
            "w1": w((INTRINSIC_ID_DIM, INTRINSIC_ID_DIM * 2)),
            "b1": w((INTRINSIC_ID_DIM * 2,)),
            "w2": w((INTRINSIC_ID_DIM * 2, DIM)),
            "b2": w((DIM,)),
        },
        "proj_clip": {
            "w1": w((STRUCTURE_DIM, STRUCTURE_DIM * 2)),
            "b1": w((STRUCTURE_DIM * 2,)),
            "w2": w((STRUCTURE_DIM * 2, DIM)),
            "b2": w((DIM,)),
        },
        "layers": [],
        "proj_out": {
            "w": w((DIM, OUTPUT_DIM)),
            "b": w((OUTPUT_DIM,)),
            "ln_g": jnp.ones((OUTPUT_DIM,), jnp.float32),
            "ln_b": jnp.zeros((OUTPUT_DIM,), jnp.float32),
        },
    }

    inner = HEADS * DIM_HEAD
    for _ in range(DEPTH):
        def attn_params():
            return {
                "ln1_g": jnp.ones((DIM,), jnp.float32),
                "ln1_b": jnp.zeros((DIM,), jnp.float32),
                "ln2_g": jnp.ones((DIM,), jnp.float32),
                "ln2_b": jnp.zeros((DIM,), jnp.float32),
                "wq": w((DIM, inner)),
                "wkv": w((DIM, 2 * inner)),
                "wo": w((inner, DIM)),
            }

        params["layers"].append({
            "attn1": attn_params(),
            "attn2": attn_params(),
            "ff": {
                "ln_g": jnp.ones((DIM,), jnp.float32),
                "ln_b": jnp.zeros((DIM,), jnp.float32),
                "w1": w((DIM, DIM * FF_MULT)),
                "w2": w((DIM * FF_MULT, DIM)),
            },
        })
    return params


# ----------------------------------------------------------------------------
# Pure-JAX reference (mirrors the PyTorch forward exactly, f32) - used only to
# sanity check the fused kernel numerically.
# ----------------------------------------------------------------------------
def _ref_layernorm(x, g, b):
    mu = jnp.mean(x, -1, keepdims=True)
    var = jnp.mean((x - mu) ** 2, -1, keepdims=True)
    return (x - mu) / jnp.sqrt(var + LN_EPS) * g + b


def _ref_gelu(x):
    return 0.5 * x * (1.0 + jax.lax.erf(x * (1.0 / math.sqrt(2.0))))


def _ref_attention(p, x, lat):
    xn = _ref_layernorm(x, p["ln1_g"], p["ln1_b"])
    ln = _ref_layernorm(lat, p["ln2_g"], p["ln2_b"])
    b, n2, _ = lat.shape
    inner = HEADS * DIM_HEAD
    q = ln @ p["wq"]
    kv = jnp.concatenate([xn, ln], axis=1) @ p["wkv"]
    k, v = kv[..., :inner], kv[..., inner:]

    def split(t):
        return t.reshape(b, t.shape[1], HEADS, DIM_HEAD).transpose(0, 2, 1, 3)

    qh, kh, vh = split(q), split(k), split(v)
    s = 1.0 / math.sqrt(math.sqrt(DIM_HEAD))
    wgt = jnp.einsum("bhqd,bhkd->bhqk", qh * s, kh * s)
    wgt = jax.nn.softmax(wgt, axis=-1)
    o = jnp.einsum("bhqk,bhkd->bhqd", wgt, vh)
    o = o.transpose(0, 2, 1, 3).reshape(b, n2, inner)
    return o @ p["wo"]


def ref_forward(params, ids, sts, structure_scale=1.0):
    b = ids.shape[0]
    lat = jnp.broadcast_to(params["latents"], (b, NUM_TOKENS, DIM))

    def mlp(p, x):
        return _ref_gelu(x @ p["w1"] + p["b1"]) @ p["w2"] + p["b2"]

    idf = mlp(params["proj_id"], ids)
    stf = mlp(params["proj_clip"], sts)
    for layer in params["layers"]:
        lat = _ref_attention(layer["attn1"], idf, lat) + lat
        lat = structure_scale * _ref_attention(layer["attn2"], stf, lat) + lat
        ffp = layer["ff"]
        xn = _ref_layernorm(lat, ffp["ln_g"], ffp["ln_b"])
        lat = _ref_gelu(xn @ ffp["w1"]) @ ffp["w2"] + lat
    y = lat @ params["proj_out"]["w"] + params["proj_out"]["b"]
    return _ref_layernorm(y, params["proj_out"]["ln_g"], params["proj_out"]["ln_b"])


# ----------------------------------------------------------------------------
# Main
# ----------------------------------------------------------------------------
if __name__ == "__main__":
    key = jax.random.PRNGKey(0)
    k_params, k_id, k_st = jax.random.split(key, 3)

    params = init_params(k_params)
    packed = pack_params(params)

    batch = 2
    n_id_tokens = 8
    n_st_tokens = 8
    intrinsic_id_embeds = jax.random.normal(
        k_id, (batch, n_id_tokens, INTRINSIC_ID_DIM), dtype=jnp.float32)
    structure_embeds = jax.random.normal(
        k_st, (batch, n_st_tokens, STRUCTURE_DIM), dtype=jnp.float32)

    out = resampler_forward(packed, intrinsic_id_embeds, structure_embeds,
                            structure_scale=1.0)
    out = jax.block_until_ready(out)

    assert out.shape == (batch, NUM_TOKENS, OUTPUT_DIM), out.shape
    assert bool(jnp.all(jnp.isfinite(out)))

    # Numerical sanity check vs. the pure-JAX f32 reference (bf16 MXU inputs in
    # the kernel => loose tolerance).
    ref = ref_forward(params, intrinsic_id_embeds, structure_embeds, 1.0)
    np.testing.assert_allclose(np.asarray(out), np.asarray(ref),
                               atol=0.1, rtol=0.0)

    print("KERNEL_OK")
</pallas_src>

<mosaic_0001>
module attributes {stable_mosaic.version = 11 : i64} {
  func.func @fused_resampler_kernel(%arg0: i32, %arg1: memref<1x8x128xf32, #tpu.memory_space<vmem>>, %arg2: memref<1x8x128xf32, #tpu.memory_space<vmem>>, %arg3: memref<48x256xf32, #tpu.memory_space<vmem>>, %arg4: memref<2176x128xbf16, #tpu.memory_space<vmem>>, %arg5: memref<640x384xbf16, #tpu.memory_space<vmem>>, %arg6: memref<2x128x512xbf16, #tpu.memory_space<vmem>>, %arg7: memref<1x16x128xf32, #tpu.memory_space<vmem>>) attributes {dimension_semantics = [#tpu.dimension_semantics<parallel>], iteration_bounds = array<i64: 2>, scalar_prefetch = 0 : i64, scratch_operands = 0 : i64, tpu.core_type = #tpu.core_type<tc>, window_params = [{transform_indices = @transform_0, window_bounds = array<i64: 1, 8, 128>}, {transform_indices = @transform_1, window_bounds = array<i64: 1, 8, 128>}, {pipeline_mode = #tpu.pipeline_mode<synchronous>, transform_indices = @transform_2, window_bounds = array<i64: 48, 256>}, {pipeline_mode = #tpu.pipeline_mode<synchronous>, transform_indices = @transform_3, window_bounds = array<i64: 2176, 128>}, {pipeline_mode = #tpu.pipeline_mode<synchronous>, transform_indices = @transform_4, window_bounds = array<i64: 640, 384>}, {pipeline_mode = #tpu.pipeline_mode<synchronous>, transform_indices = @transform_5, window_bounds = array<i64: 2, 128, 512>}, {transform_indices = @transform_6, window_bounds = array<i64: 1, 16, 128>}]} {
    %c0 = arith.constant 0 : index
    %c0_0 = arith.constant 0 : index
    %c0_1 = arith.constant 0 : index
    %0 = vector.load %arg1[%c0, %c0_0, %c0_1] : memref<1x8x128xf32, #tpu.memory_space<vmem>>, vector<1x8x128xf32>
    %1 = vector.shape_cast %0 : vector<1x8x128xf32> to vector<8x128xf32>
    %c0_2 = arith.constant 0 : index
    %c0_3 = arith.constant 0 : index
    %c0_4 = arith.constant 0 : index
    %2 = vector.load %arg2[%c0_2, %c0_3, %c0_4] : memref<1x8x128xf32, #tpu.memory_space<vmem>>, vector<1x8x128xf32>
    %3 = vector.shape_cast %2 : vector<1x8x128xf32> to vector<8x128xf32>
    %c0_5 = arith.constant 0 : index
    %c0_6 = arith.constant 0 : index
    %4 = vector.load %arg4[%c0_5, %c0_6] : memref<2176x128xbf16, #tpu.memory_space<vmem>>, vector<128x128xbf16>
    %5 = arith.truncf %1 : vector<8x128xf32> to vector<8x128xbf16>
    %cst = arith.constant dense<0.000000e+00> : vector<8x128xf32>
    %6 = tpu.matmul %5, %4, %cst {dimension_numbers = #tpu.dot_dimension_numbers<[1], [0], [0], [1], [0, 0, 1, 1], [], []>} : vector<8x128xbf16>, vector<128x128xbf16>, vector<8x128xf32> -> vector<8x128xf32>
    %c16 = arith.constant 16 : index
    %c0_7 = arith.constant 0 : index
    %7 = vector.load %arg3[%c16, %c0_7] : memref<48x256xf32, #tpu.memory_space<vmem>>, vector<1x128xf32>
    %8 = vector.broadcast %7 : vector<1x128xf32> to vector<8x128xf32>
    %9 = arith.addf %6, %8 : vector<8x128xf32>
    %cst_8 = arith.constant 5.000000e-01 : f32
    %10 = vector.broadcast %cst_8 : f32 to vector<8x128xf32>
    %11 = arith.mulf %10, %9 : vector<8x128xf32>
    %cst_9 = arith.constant 0.707106769 : f32
    %12 = vector.broadcast %cst_9 : f32 to vector<8x128xf32>
    %13 = arith.mulf %9, %12 : vector<8x128xf32>
    %14 = math.erf %13 : vector<8x128xf32>
    %cst_10 = arith.constant 1.000000e+00 : f32
    %15 = vector.broadcast %cst_10 : f32 to vector<8x128xf32>
    %16 = arith.addf %15, %14 : vector<8x128xf32>
    %17 = arith.mulf %11, %16 : vector<8x128xf32>
    %c128 = arith.constant 128 : index
    %c0_11 = arith.constant 0 : index
    %18 = vector.load %arg4[%c128, %c0_11] : memref<2176x128xbf16, #tpu.memory_space<vmem>>, vector<128x128xbf16>
    %19 = arith.truncf %17 : vector<8x128xf32> to vector<8x128xbf16>
    %cst_12 = arith.constant dense<0.000000e+00> : vector<8x128xf32>
    %20 = tpu.matmul %19, %18, %cst_12 {dimension_numbers = #tpu.dot_dimension_numbers<[1], [0], [0], [1], [0, 0, 1, 1], [], []>} : vector<8x128xbf16>, vector<128x128xbf16>, vector<8x128xf32> -> vector<8x128xf32>
    %c17 = arith.constant 17 : index
    %c0_13 = arith.constant 0 : index
    %21 = vector.load %arg3[%c17, %c0_13] : memref<48x256xf32, #tpu.memory_space<vmem>>, vector<1x128xf32>
    %22 = vector.broadcast %21 : vector<1x128xf32> to vector<8x128xf32>
    %23 = arith.addf %20, %22 : vector<8x128xf32>
    %c512 = arith.constant 512 : index
    %c0_14 = arith.constant 0 : index
    %24 = vector.load %arg5[%c512, %c0_14] : memref<640x384xbf16, #tpu.memory_space<vmem>>, vector<128x256xbf16>
    %25 = arith.truncf %3 : vector<8x128xf32> to vector<8x128xbf16>
    %cst_15 = arith.constant dense<0.000000e+00> : vector<8x256xf32>
    %26 = tpu.matmul %25, %24, %cst_15 {dimension_numbers = #tpu.dot_dimension_numbers<[1], [0], [0], [1], [0, 0, 1, 1], [], []>} : vector<8x128xbf16>, vector<128x256xbf16>, vector<8x256xf32> -> vector<8x256xf32>
    %c18 = arith.constant 18 : index
    %c0_16 = arith.constant 0 : index
    %27 = vector.load %arg3[%c18, %c0_16] : memref<48x256xf32, #tpu.memory_space<vmem>>, vector<1x256xf32>
    %28 = vector.broadcast %27 : vector<1x256xf32> to vector<8x256xf32>
    %29 = arith.addf %26, %28 : vector<8x256xf32>
    %cst_17 = arith.constant 5.000000e-01 : f32
    %30 = vector.broadcast %cst_17 : f32 to vector<8x256xf32>
    %31 = arith.mulf %30, %29 : vector<8x256xf32>
    %cst_18 = arith.constant 0.707106769 : f32
    %32 = vector.broadcast %cst_18 : f32 to vector<8x256xf32>
    %33 = arith.mulf %29, %32 : vector<8x256xf32>
    %34 = math.erf %33 : vector<8x256xf32>
    %cst_19 = arith.constant 1.000000e+00 : f32
    %35 = vector.broadcast %cst_19 : f32 to vector<8x256xf32>
    %36 = arith.addf %35, %34 : vector<8x256xf32>
    %37 = arith.mulf %31, %36 : vector<8x256xf32>
    %c256 = arith.constant 256 : index
    %c0_20 = arith.constant 0 : index
    %38 = vector.load %arg4[%c256, %c0_20] : memref<2176x128xbf16, #tpu.memory_space<vmem>>, vector<256x128xbf16>
    %39 = arith.truncf %37 : vector<8x256xf32> to vector<8x256xbf16>
    %cst_21 = arith.constant dense<0.000000e+00> : vector<8x128xf32>
    %40 = tpu.matmul %39, %38, %cst_21 {dimension_numbers = #tpu.dot_dimension_numbers<[1], [0], [0], [1], [0, 0, 1, 1], [], []>} : vector<8x256xbf16>, vector<256x128xbf16>, vector<8x128xf32> -> vector<8x128xf32>
    %c19 = arith.constant 19 : index
    %c0_22 = arith.constant 0 : index
    %41 = vector.load %arg3[%c19, %c0_22] : memref<48x256xf32, #tpu.memory_space<vmem>>, vector<1x128xf32>
    %42 = vector.broadcast %41 : vector<1x128xf32> to vector<8x128xf32>
    %43 = arith.addf %40, %42 : vector<8x128xf32>
    %c0_23 = arith.constant 0 : index
    %c0_24 = arith.constant 0 : index
    %44 = vector.load %arg3[%c0_23, %c0_24] : memref<48x256xf32, #tpu.memory_space<vmem>>, vector<16x128xf32>
    %c23 = arith.constant 23 : index
    %c0_25 = arith.constant 0 : index
    %45 = vector.load %arg3[%c23, %c0_25] : memref<48x256xf32, #tpu.memory_space<vmem>>, vector<1x128xf32>
    %c24 = arith.constant 24 : index
    %c0_26 = arith.constant 0 : index
    %46 = vector.load %arg3[%c24, %c0_26] : memref<48x256xf32, #tpu.memory_space<vmem>>, vector<1x128xf32>
    %cst_27 = arith.constant dense<0.000000e+00> : vector<8xf32>
    %47 = vector.multi_reduction <add>, %23, %cst_27 [1] : vector<8x128xf32> to vector<8xf32>
    %48 = vector.shape_cast %47 : vector<8xf32> to vector<8x1xf32>
    %cst_28 = arith.constant 1.280000e+02 : f32
    %49 = vector.broadcast %cst_28 : f32 to vector<8x1xf32>
    %50 = arith.divf %48, %49 : vector<8x1xf32>
    %51 = vector.broadcast %50 : vector<8x1xf32> to vector<8x128xf32>
    %52 = arith.subf %23, %51 : vector<8x128xf32>
    %53 = arith.mulf %52, %52 : vector<8x128xf32>
    %cst_29 = arith.constant dense<0.000000e+00> : vector<8xf32>
    %54 = vector.multi_reduction <add>, %53, %cst_29 [1] : vector<8x128xf32> to vector<8xf32>
    %55 = vector.shape_cast %54 : vector<8xf32> to vector<8x1xf32>
    %cst_30 = arith.constant 1.280000e+02 : f32
    %56 = vector.broadcast %cst_30 : f32 to vector<8x1xf32>
    %57 = arith.divf %55, %56 : vector<8x1xf32>
    %58 = vector.broadcast %50 : vector<8x1xf32> to vector<8x128xf32>
    %59 = arith.subf %23, %58 : vector<8x128xf32>
    %cst_31 = arith.constant 9.99999974E-6 : f32
    %60 = vector.broadcast %cst_31 : f32 to vector<8x1xf32>
    %61 = arith.addf %57, %60 : vector<8x1xf32>
    %62 = math.rsqrt %61 : vector<8x1xf32>
    %63 = vector.broadcast %62 : vector<8x1xf32> to vector<8x128xf32>
    %64 = arith.mulf %59, %63 : vector<8x128xf32>
    %65 = vector.broadcast %45 : vector<1x128xf32> to vector<8x128xf32>
    %66 = arith.mulf %64, %65 : vector<8x128xf32>
    %67 = vector.broadcast %46 : vector<1x128xf32> to vector<8x128xf32>
    %68 = arith.addf %66, %67 : vector<8x128xf32>
    %c25 = arith.constant 25 : index
    %c0_32 = arith.constant 0 : index
    %69 = vector.load %arg3[%c25, %c0_32] : memref<48x256xf32, #tpu.memory_space<vmem>>, vector<1x128xf32>
    %c26 = arith.constant 26 : index
    %c0_33 = arith.constant 0 : index
    %70 = vector.load %arg3[%c26, %c0_33] : memref<48x256xf32, #tpu.memory_space<vmem>>, vector<1x128xf32>
    %cst_34 = arith.constant dense<0.000000e+00> : vector<16xf32>
    %71 = vector.multi_reduction <add>, %44, %cst_34 [1] : vector<16x128xf32> to vector<16xf32>
    %72 = vector.shape_cast %71 : vector<16xf32> to vector<16x1xf32>
    %cst_35 = arith.constant 1.280000e+02 : f32
    %73 = vector.broadcast %cst_35 : f32 to vector<16x1xf32>
    %74 = arith.divf %72, %73 : vector<16x1xf32>
    %75 = vector.broadcast %74 : vector<16x1xf32> to vector<16x128xf32>
    %76 = arith.subf %44, %75 : vector<16x128xf32>
    %77 = arith.mulf %76, %76 : vector<16x128xf32>
    %cst_36 = arith.constant dense<0.000000e+00> : vector<16xf32>
    %78 = vector.multi_reduction <add>, %77, %cst_36 [1] : vector<16x128xf32> to vector<16xf32>
    %79 = vector.shape_cast %78 : vector<16xf32> to vector<16x1xf32>
    %cst_37 = arith.constant 1.280000e+02 : f32
    %80 = vector.broadcast %cst_37 : f32 to vector<16x1xf32>
    %81 = arith.divf %79, %80 : vector<16x1xf32>
    %82 = vector.broadcast %74 : vector<16x1xf32> to vector<16x128xf32>
    %83 = arith.subf %44, %82 : vector<16x128xf32>
    %cst_38 = arith.constant 9.99999974E-6 : f32
    %84 = vector.broadcast %cst_38 : f32 to vector<16x1xf32>
    %85 = arith.addf %81, %84 : vector<16x1xf32>
    %86 = math.rsqrt %85 : vector<16x1xf32>
    %87 = vector.broadcast %86 : vector<16x1xf32> to vector<16x128xf32>
    %88 = arith.mulf %83, %87 : vector<16x128xf32>
    %89 = vector.broadcast %69 : vector<1x128xf32> to vector<16x128xf32>
    %90 = arith.mulf %88, %89 : vector<16x128xf32>
    %91 = vector.broadcast %70 : vector<1x128xf32> to vector<16x128xf32>
    %92 = arith.addf %90, %91 : vector<16x128xf32>
    %c0_39 = arith.constant 0 : index
    %c0_40 = arith.constant 0 : index
    %93 = vector.load %arg5[%c0_39, %c0_40] : memref<640x384xbf16, #tpu.memory_space<vmem>>, vector<128x384xbf16>
    %c0_41 = arith.constant 0 : index
    %c128_42 = arith.constant 128 : index
    %94 = vector.load %arg5[%c0_41, %c128_42] : memref<640x384xbf16, #tpu.memory_space<vmem>>, vector<128x256xbf16>
    %95 = arith.truncf %92 : vector<16x128xf32> to vector<16x128xbf16>
    %cst_43 = arith.constant dense<0.000000e+00> : vector<16x384xf32>
    %96 = tpu.matmul %95, %93, %cst_43 {dimension_numbers = #tpu.dot_dimension_numbers<[1], [0], [0], [1], [0, 0, 1, 1], [], []>} : vector<16x128xbf16>, vector<128x384xbf16>, vector<16x384xf32> -> vector<16x384xf32>
    %97 = arith.truncf %68 : vector<8x128xf32> to vector<8x128xbf16>
    %cst_44 = arith.constant dense<0.000000e+00> : vector<8x256xf32>
    %98 = tpu.matmul %97, %94, %cst_44 {dimension_numbers = #tpu.dot_dimension_numbers<[1], [0], [0], [1], [0, 0, 1, 1], [], []>} : vector<8x128xbf16>, vector<128x256xbf16>, vector<8x256xf32> -> vector<8x256xf32>
    %99 = vector.extract_strided_slice %96 {offsets = [0, 0], sizes = [16, 128], strides = [1, 1]} : vector<16x384xf32> to vector<16x128xf32>
    %100 = vector.extract_strided_slice %99 {offsets = [0, 0], sizes = [16, 32], strides = [1, 1]} : vector<16x128xf32> to vector<16x32xf32>
    %101 = vector.extract_strided_slice %99 {offsets = [0, 32], sizes = [16, 32], strides = [1, 1]} : vector<16x128xf32> to vector<16x32xf32>
    %102 = vector.extract_strided_slice %99 {offsets = [0, 64], sizes = [16, 32], strides = [1, 1]} : vector<16x128xf32> to vector<16x32xf32>
    %103 = vector.extract_strided_slice %99 {offsets = [0, 96], sizes = [16, 32], strides = [1, 1]} : vector<16x128xf32> to vector<16x32xf32>
    %104 = vector.shape_cast %100 : vector<16x32xf32> to vector<1x16x32xf32>
    %105 = vector.shape_cast %101 : vector<16x32xf32> to vector<1x16x32xf32>
    %106 = vector.shape_cast %102 : vector<16x32xf32> to vector<1x16x32xf32>
    %107 = vector.shape_cast %103 : vector<16x32xf32> to vector<1x16x32xf32>
    %108 = tpu.concatenate %104, %105, %106, %107 in 0 : vector<1x16x32xf32>, vector<1x16x32xf32>, vector<1x16x32xf32>, vector<1x16x32xf32> -> vector<4x16x32xf32>
    %109 = arith.truncf %108 : vector<4x16x32xf32> to vector<4x16x32xbf16>
    %110 = vector.extract_strided_slice %96 {offsets = [0, 128], sizes = [16, 128], strides = [1, 1]} : vector<16x384xf32> to vector<16x128xf32>
    %111 = vector.extract_strided_slice %110 {offsets = [0, 0], sizes = [16, 32], strides = [1, 1]} : vector<16x128xf32> to vector<16x32xf32>
    %112 = vector.extract_strided_slice %110 {offsets = [0, 32], sizes = [16, 32], strides = [1, 1]} : vector<16x128xf32> to vector<16x32xf32>
    %113 = vector.extract_strided_slice %110 {offsets = [0, 64], sizes = [16, 32], strides = [1, 1]} : vector<16x128xf32> to vector<16x32xf32>
    %114 = vector.extract_strided_slice %110 {offsets = [0, 96], sizes = [16, 32], strides = [1, 1]} : vector<16x128xf32> to vector<16x32xf32>
    %115 = vector.shape_cast %111 : vector<16x32xf32> to vector<1x16x32xf32>
    %116 = vector.shape_cast %112 : vector<16x32xf32> to vector<1x16x32xf32>
    %117 = vector.shape_cast %113 : vector<16x32xf32> to vector<1x16x32xf32>
    %118 = vector.shape_cast %114 : vector<16x32xf32> to vector<1x16x32xf32>
    %119 = tpu.concatenate %115, %116, %117, %118 in 0 : vector<1x16x32xf32>, vector<1x16x32xf32>, vector<1x16x32xf32>, vector<1x16x32xf32> -> vector<4x16x32xf32>
    %120 = arith.truncf %119 : vector<4x16x32xf32> to vector<4x16x32xbf16>
    %121 = vector.extract_strided_slice %96 {offsets = [0, 256], sizes = [16, 128], strides = [1, 1]} : vector<16x384xf32> to vector<16x128xf32>
    %122 = vector.extract_strided_slice %121 {offsets = [0, 0], sizes = [16, 32], strides = [1, 1]} : vector<16x128xf32> to vector<16x32xf32>
    %123 = vector.extract_strided_slice %121 {offsets = [0, 32], sizes = [16, 32], strides = [1, 1]} : vector<16x128xf32> to vector<16x32xf32>
    %124 = vector.extract_strided_slice %121 {offsets = [0, 64], sizes = [16, 32], strides = [1, 1]} : vector<16x128xf32> to vector<16x32xf32>
    %125 = vector.extract_strided_slice %121 {offsets = [0, 96], sizes = [16, 32], strides = [1, 1]} : vector<16x128xf32> to vector<16x32xf32>
    %126 = vector.shape_cast %122 : vector<16x32xf32> to vector<1x16x32xf32>
    %127 = vector.shape_cast %123 : vector<16x32xf32> to vector<1x16x32xf32>
    %128 = vector.shape_cast %124 : vector<16x32xf32> to vector<1x16x32xf32>
    %129 = vector.shape_cast %125 : vector<16x32xf32> to vector<1x16x32xf32>
    %130 = tpu.concatenate %126, %127, %128, %129 in 0 : vector<1x16x32xf32>, vector<1x16x32xf32>, vector<1x16x32xf32>, vector<1x16x32xf32> -> vector<4x16x32xf32>
    %131 = arith.truncf %130 : vector<4x16x32xf32> to vector<4x16x32xbf16>
    %132 = vector.extract_strided_slice %98 {offsets = [0, 0], sizes = [8, 128], strides = [1, 1]} : vector<8x256xf32> to vector<8x128xf32>
    %133 = vector.extract_strided_slice %132 {offsets = [0, 0], sizes = [8, 32], strides = [1, 1]} : vector<8x128xf32> to vector<8x32xf32>
    %134 = vector.extract_strided_slice %132 {offsets = [0, 32], sizes = [8, 32], strides = [1, 1]} : vector<8x128xf32> to vector<8x32xf32>
    %135 = vector.extract_strided_slice %132 {offsets = [0, 64], sizes = [8, 32], strides = [1, 1]} : vector<8x128xf32> to vector<8x32xf32>
    %136 = vector.extract_strided_slice %132 {offsets = [0, 96], sizes = [8, 32], strides = [1, 1]} : vector<8x128xf32> to vector<8x32xf32>
    %137 = vector.shape_cast %133 : vector<8x32xf32> to vector<1x8x32xf32>
    %138 = vector.shape_cast %134 : vector<8x32xf32> to vector<1x8x32xf32>
    %139 = vector.shape_cast %135 : vector<8x32xf32> to vector<1x8x32xf32>
    %140 = vector.shape_cast %136 : vector<8x32xf32> to vector<1x8x32xf32>
    %141 = tpu.concatenate %137, %138, %139, %140 in 0 : vector<1x8x32xf32>, vector<1x8x32xf32>, vector<1x8x32xf32>, vector<1x8x32xf32> -> vector<4x8x32xf32>
    %142 = arith.truncf %141 : vector<4x8x32xf32> to vector<4x8x32xbf16>
    %143 = vector.extract_strided_slice %98 {offsets = [0, 128], sizes = [8, 128], strides = [1, 1]} : vector<8x256xf32> to vector<8x128xf32>
    %144 = vector.extract_strided_slice %143 {offsets = [0, 0], sizes = [8, 32], strides = [1, 1]} : vector<8x128xf32> to vector<8x32xf32>
    %145 = vector.extract_strided_slice %143 {offsets = [0, 32], sizes = [8, 32], strides = [1, 1]} : vector<8x128xf32> to vector<8x32xf32>
    %146 = vector.extract_strided_slice %143 {offsets = [0, 64], sizes = [8, 32], strides = [1, 1]} : vector<8x128xf32> to vector<8x32xf32>
    %147 = vector.extract_strided_slice %143 {offsets = [0, 96], sizes = [8, 32], strides = [1, 1]} : vector<8x128xf32> to vector<8x32xf32>
    %148 = vector.shape_cast %144 : vector<8x32xf32> to vector<1x8x32xf32>
    %149 = vector.shape_cast %145 : vector<8x32xf32> to vector<1x8x32xf32>
    %150 = vector.shape_cast %146 : vector<8x32xf32> to vector<1x8x32xf32>
    %151 = vector.shape_cast %147 : vector<8x32xf32> to vector<1x8x32xf32>
    %152 = tpu.concatenate %148, %149, %150, %151 in 0 : vector<1x8x32xf32>, vector<1x8x32xf32>, vector<1x8x32xf32>, vector<1x8x32xf32> -> vector<4x8x32xf32>
    %153 = arith.truncf %152 : vector<4x8x32xf32> to vector<4x8x32xbf16>
    %cst_45 = arith.constant dense<0.000000e+00> : vector<4x16x8xf32>
    %154 = tpu.matmul %109, %142, %cst_45 {dimension_numbers = #tpu.dot_dimension_numbers<[2], [2], [1], [1], [0, 0, 0, 1, 1, 1], [0], [0]>} : vector<4x16x32xbf16>, vector<4x8x32xbf16>, vector<4x16x8xf32> -> vector<4x16x8xf32>
    %cst_46 = arith.constant dense<0.000000e+00> : vector<4x16x16xf32>
    %155 = tpu.matmul %109, %120, %cst_46 {dimension_numbers = #tpu.dot_dimension_numbers<[2], [2], [1], [1], [0, 0, 0, 1, 1, 1], [0], [0]>} : vector<4x16x32xbf16>, vector<4x16x32xbf16>, vector<4x16x16xf32> -> vector<4x16x16xf32>
    %cst_47 = arith.constant dense<0xFF800000> : vector<4x16xf32>
    %156 = vector.multi_reduction <maximumf>, %154, %cst_47 [2] : vector<4x16x8xf32> to vector<4x16xf32>
    %157 = vector.shape_cast %156 : vector<4x16xf32> to vector<4x16x1xf32>
    %cst_48 = arith.constant dense<0xFF800000> : vector<4x16xf32>
    %158 = vector.multi_reduction <maximumf>, %155, %cst_48 [2] : vector<4x16x16xf32> to vector<4x16xf32>
    %159 = vector.shape_cast %158 : vector<4x16xf32> to vector<4x16x1xf32>
    %160 = arith.maximumf %157, %159 : vector<4x16x1xf32>
    %161 = vector.broadcast %160 : vector<4x16x1xf32> to vector<4x16x8xf32>
    %162 = arith.subf %154, %161 : vector<4x16x8xf32>
    %163 = math.exp %162 : vector<4x16x8xf32>
    %164 = vector.broadcast %160 : vector<4x16x1xf32> to vector<4x16x16xf32>
    %165 = arith.subf %155, %164 : vector<4x16x16xf32>
    %166 = math.exp %165 : vector<4x16x16xf32>
    %cst_49 = arith.constant dense<0.000000e+00> : vector<4x16xf32>
    %167 = vector.multi_reduction <add>, %163, %cst_49 [2] : vector<4x16x8xf32> to vector<4x16xf32>
    %168 = vector.shape_cast %167 : vector<4x16xf32> to vector<4x16x1xf32>
    %cst_50 = arith.constant dense<0.000000e+00> : vector<4x16xf32>
    %169 = vector.multi_reduction <add>, %166, %cst_50 [2] : vector<4x16x16xf32> to vector<4x16xf32>
    %170 = vector.shape_cast %169 : vector<4x16xf32> to vector<4x16x1xf32>
    %171 = arith.addf %168, %170 : vector<4x16x1xf32>
    %172 = tpu.reciprocal %171 {approx = true} : vector<4x16x1xf32> -> vector<4x16x1xf32>
    %173 = arith.truncf %163 : vector<4x16x8xf32> to vector<4x16x8xbf16>
    %cst_51 = arith.constant dense<0.000000e+00> : vector<4x16x32xf32>
    %174 = tpu.matmul %173, %153, %cst_51 {dimension_numbers = #tpu.dot_dimension_numbers<[2], [1], [1], [2], [0, 0, 0, 1, 1, 2], [0], [0]>} : vector<4x16x8xbf16>, vector<4x8x32xbf16>, vector<4x16x32xf32> -> vector<4x16x32xf32>
    %175 = arith.truncf %166 : vector<4x16x16xf32> to vector<4x16x16xbf16>
    %cst_52 = arith.constant dense<0.000000e+00> : vector<4x16x32xf32>
    %176 = tpu.matmul %175, %131, %cst_52 {dimension_numbers = #tpu.dot_dimension_numbers<[2], [1], [1], [2], [0, 0, 0, 1, 1, 2], [0], [0]>} : vector<4x16x16xbf16>, vector<4x16x32xbf16>, vector<4x16x32xf32> -> vector<4x16x32xf32>
    %177 = arith.addf %174, %176 : vector<4x16x32xf32>
    %178 = vector.broadcast %172 : vector<4x16x1xf32> to vector<4x16x32xf32>
    %179 = arith.mulf %177, %178 : vector<4x16x32xf32>
    %180 = vector.extract_strided_slice %179 {offsets = [0, 0, 0], sizes = [1, 16, 32], strides = [1, 1, 1]} : vector<4x16x32xf32> to vector<1x16x32xf32>
    %181 = vector.shape_cast %180 : vector<1x16x32xf32> to vector<16x32xf32>
    %182 = vector.extract_strided_slice %179 {offsets = [1, 0, 0], sizes = [1, 16, 32], strides = [1, 1, 1]} : vector<4x16x32xf32> to vector<1x16x32xf32>
    %183 = vector.shape_cast %182 : vector<1x16x32xf32> to vector<16x32xf32>
    %184 = vector.extract_strided_slice %179 {offsets = [2, 0, 0], sizes = [1, 16, 32], strides = [1, 1, 1]} : vector<4x16x32xf32> to vector<1x16x32xf32>
    %185 = vector.shape_cast %184 : vector<1x16x32xf32> to vector<16x32xf32>
    %186 = vector.extract_strided_slice %179 {offsets = [3, 0, 0], sizes = [1, 16, 32], strides = [1, 1, 1]} : vector<4x16x32xf32> to vector<1x16x32xf32>
    %187 = vector.shape_cast %186 : vector<1x16x32xf32> to vector<16x32xf32>
    %188 = tpu.concatenate %181, %183, %185, %187 in 1 : vector<16x32xf32>, vector<16x32xf32>, vector<16x32xf32>, vector<16x32xf32> -> vector<16x128xf32>
    %c640 = arith.constant 640 : index
    %c0_53 = arith.constant 0 : index
    %189 = vector.load %arg4[%c640, %c0_53] : memref<2176x128xbf16, #tpu.memory_space<vmem>>, vector<128x128xbf16>
    %190 = arith.truncf %188 : vector<16x128xf32> to vector<16x128xbf16>
    %cst_54 = arith.constant dense<0.000000e+00> : vector<16x128xf32>
    %191 = tpu.matmul %190, %189, %cst_54 {dimension_numbers = #tpu.dot_dimension_numbers<[1], [0], [0], [1], [0, 0, 1, 1], [], []>} : vector<16x128xbf16>, vector<128x128xbf16>, vector<16x128xf32> -> vector<16x128xf32>
    %192 = arith.addf %44, %191 : vector<16x128xf32>
    %c27 = arith.constant 27 : index
    %c0_55 = arith.constant 0 : index
    %193 = vector.load %arg3[%c27, %c0_55] : memref<48x256xf32, #tpu.memory_space<vmem>>, vector<1x128xf32>
    %c28 = arith.constant 28 : index
    %c0_56 = arith.constant 0 : index
    %194 = vector.load %arg3[%c28, %c0_56] : memref<48x256xf32, #tpu.memory_space<vmem>>, vector<1x128xf32>
    %cst_57 = arith.constant dense<0.000000e+00> : vector<8xf32>
    %195 = vector.multi_reduction <add>, %43, %cst_57 [1] : vector<8x128xf32> to vector<8xf32>
    %196 = vector.shape_cast %195 : vector<8xf32> to vector<8x1xf32>
    %cst_58 = arith.constant 1.280000e+02 : f32
    %197 = vector.broadcast %cst_58 : f32 to vector<8x1xf32>
    %198 = arith.divf %196, %197 : vector<8x1xf32>
    %199 = vector.broadcast %198 : vector<8x1xf32> to vector<8x128xf32>
    %200 = arith.subf %43, %199 : vector<8x128xf32>
    %201 = arith.mulf %200, %200 : vector<8x128xf32>
    %cst_59 = arith.constant dense<0.000000e+00> : vector<8xf32>
    %202 = vector.multi_reduction <add>, %201, %cst_59 [1] : vector<8x128xf32> to vector<8xf32>
    %203 = vector.shape_cast %202 : vector<8xf32> to vector<8x1xf32>
    %cst_60 = arith.constant 1.280000e+02 : f32
    %204 = vector.broadcast %cst_60 : f32 to vector<8x1xf32>
    %205 = arith.divf %203, %204 : vector<8x1xf32>
    %206 = vector.broadcast %198 : vector<8x1xf32> to vector<8x128xf32>
    %207 = arith.subf %43, %206 : vector<8x128xf32>
    %cst_61 = arith.constant 9.99999974E-6 : f32
    %208 = vector.broadcast %cst_61 : f32 to vector<8x1xf32>
    %209 = arith.addf %205, %208 : vector<8x1xf32>
    %210 = math.rsqrt %209 : vector<8x1xf32>
    %211 = vector.broadcast %210 : vector<8x1xf32> to vector<8x128xf32>
    %212 = arith.mulf %207, %211 : vector<8x128xf32>
    %213 = vector.broadcast %193 : vector<1x128xf32> to vector<8x128xf32>
    %214 = arith.mulf %212, %213 : vector<8x128xf32>
    %215 = vector.broadcast %194 : vector<1x128xf32> to vector<8x128xf32>
    %216 = arith.addf %214, %215 : vector<8x128xf32>
    %c29 = arith.constant 29 : index
    %c0_62 = arith.constant 0 : index
    %217 = vector.load %arg3[%c29, %c0_62] : memref<48x256xf32, #tpu.memory_space<vmem>>, vector<1x128xf32>
    %c30 = arith.constant 30 : index
    %c0_63 = arith.constant 0 : index
    %218 = vector.load %arg3[%c30, %c0_63] : memref<48x256xf32, #tpu.memory_space<vmem>>, vector<1x128xf32>
    %cst_64 = arith.constant dense<0.000000e+00> : vector<16xf32>
    %219 = vector.multi_reduction <add>, %192, %cst_64 [1] : vector<16x128xf32> to vector<16xf32>
    %220 = vector.shape_cast %219 : vector<16xf32> to vector<16x1xf32>
    %cst_65 = arith.constant 1.280000e+02 : f32
    %221 = vector.broadcast %cst_65 : f32 to vector<16x1xf32>
    %222 = arith.divf %220, %221 : vector<16x1xf32>
    %223 = vector.broadcast %222 : vector<16x1xf32> to vector<16x128xf32>
    %224 = arith.subf %192, %223 : vector<16x128xf32>
    %225 = arith.mulf %224, %224 : vector<16x128xf32>
    %cst_66 = arith.constant dense<0.000000e+00> : vector<16xf32>
    %226 = vector.multi_reduction <add>, %225, %cst_66 [1] : vector<16x128xf32> to vector<16xf32>
    %227 = vector.shape_cast %226 : vector<16xf32> to vector<16x1xf32>
    %cst_67 = arith.constant 1.280000e+02 : f32
    %228 = vector.broadcast %cst_67 : f32 to vector<16x1xf32>
    %229 = arith.divf %227, %228 : vector<16x1xf32>
    %230 = vector.broadcast %222 : vector<16x1xf32> to vector<16x128xf32>
    %231 = arith.subf %192, %230 : vector<16x128xf32>
    %cst_68 = arith.constant 9.99999974E-6 : f32
    %232 = vector.broadcast %cst_68 : f32 to vector<16x1xf32>
    %233 = arith.addf %229, %232 : vector<16x1xf32>
    %234 = math.rsqrt %233 : vector<16x1xf32>
    %235 = vector.broadcast %234 : vector<16x1xf32> to vector<16x128xf32>
    %236 = arith.mulf %231, %235 : vector<16x128xf32>
    %237 = vector.broadcast %217 : vector<1x128xf32> to vector<16x128xf32>
    %238 = arith.mulf %236, %237 : vector<16x128xf32>
    %239 = vector.broadcast %218 : vector<1x128xf32> to vector<16x128xf32>
    %240 = arith.addf %238, %239 : vector<16x128xf32>
    %c128_69 = arith.constant 128 : index
    %c0_70 = arith.constant 0 : index
    %241 = vector.load %arg5[%c128_69, %c0_70] : memref<640x384xbf16, #tpu.memory_space<vmem>>, vector<128x384xbf16>
    %c128_71 = arith.constant 128 : index
    %c128_72 = arith.constant 128 : index
    %242 = vector.load %arg5[%c128_71, %c128_72] : memref<640x384xbf16, #tpu.memory_space<vmem>>, vector<128x256xbf16>
    %243 = arith.truncf %240 : vector<16x128xf32> to vector<16x128xbf16>
    %cst_73 = arith.constant dense<0.000000e+00> : vector<16x384xf32>
    %244 = tpu.matmul %243, %241, %cst_73 {dimension_numbers = #tpu.dot_dimension_numbers<[1], [0], [0], [1], [0, 0, 1, 1], [], []>} : vector<16x128xbf16>, vector<128x384xbf16>, vector<16x384xf32> -> vector<16x384xf32>
    %245 = arith.truncf %216 : vector<8x128xf32> to vector<8x128xbf16>
    %cst_74 = arith.constant dense<0.000000e+00> : vector<8x256xf32>
    %246 = tpu.matmul %245, %242, %cst_74 {dimension_numbers = #tpu.dot_dimension_numbers<[1], [0], [0], [1], [0, 0, 1, 1], [], []>} : vector<8x128xbf16>, vector<128x256xbf16>, vector<8x256xf32> -> vector<8x256xf32>
    %247 = vector.extract_strided_slice %244 {offsets = [0, 0], sizes = [16, 128], strides = [1, 1]} : vector<16x384xf32> to vector<16x128xf32>
    %248 = vector.extract_strided_slice %247 {offsets = [0, 0], sizes = [16, 32], strides = [1, 1]} : vector<16x128xf32> to vector<16x32xf32>
    %249 = vector.extract_strided_slice %247 {offsets = [0, 32], sizes = [16, 32], strides = [1, 1]} : vector<16x128xf32> to vector<16x32xf32>
    %250 = vector.extract_strided_slice %247 {offsets = [0, 64], sizes = [16, 32], strides = [1, 1]} : vector<16x128xf32> to vector<16x32xf32>
    %251 = vector.extract_strided_slice %247 {offsets = [0, 96], sizes = [16, 32], strides = [1, 1]} : vector<16x128xf32> to vector<16x32xf32>
    %252 = vector.shape_cast %248 : vector<16x32xf32> to vector<1x16x32xf32>
    %253 = vector.shape_cast %249 : vector<16x32xf32> to vector<1x16x32xf32>
    %254 = vector.shape_cast %250 : vector<16x32xf32> to vector<1x16x32xf32>
    %255 = vector.shape_cast %251 : vector<16x32xf32> to vector<1x16x32xf32>
    %256 = tpu.concatenate %252, %253, %254, %255 in 0 : vector<1x16x32xf32>, vector<1x16x32xf32>, vector<1x16x32xf32>, vector<1x16x32xf32> -> vector<4x16x32xf32>
    %257 = arith.truncf %256 : vector<4x16x32xf32> to vector<4x16x32xbf16>
    %258 = vector.extract_strided_slice %244 {offsets = [0, 128], sizes = [16, 128], strides = [1, 1]} : vector<16x384xf32> to vector<16x128xf32>
    %259 = vector.extract_strided_slice %258 {offsets = [0, 0], sizes = [16, 32], strides = [1, 1]} : vector<16x128xf32> to vector<16x32xf32>
    %260 = vector.extract_strided_slice %258 {offsets = [0, 32], sizes = [16, 32], strides = [1, 1]} : vector<16x128xf32> to vector<16x32xf32>
    %261 = vector.extract_strided_slice %258 {offsets = [0, 64], sizes = [16, 32], strides = [1, 1]} : vector<16x128xf32> to vector<16x32xf32>
    %262 = vector.extract_strided_slice %258 {offsets = [0, 96], sizes = [16, 32], strides = [1, 1]} : vector<16x128xf32> to vector<16x32xf32>
    %263 = vector.shape_cast %259 : vector<16x32xf32> to vector<1x16x32xf32>
    %264 = vector.shape_cast %260 : vector<16x32xf32> to vector<1x16x32xf32>
    %265 = vector.shape_cast %261 : vector<16x32xf32> to vector<1x16x32xf32>
    %266 = vector.shape_cast %262 : vector<16x32xf32> to vector<1x16x32xf32>
    %267 = tpu.concatenate %263, %264, %265, %266 in 0 : vector<1x16x32xf32>, vector<1x16x32xf32>, vector<1x16x32xf32>, vector<1x16x32xf32> -> vector<4x16x32xf32>
    %268 = arith.truncf %267 : vector<4x16x32xf32> to vector<4x16x32xbf16>
    %269 = vector.extract_strided_slice %244 {offsets = [0, 256], sizes = [16, 128], strides = [1, 1]} : vector<16x384xf32> to vector<16x128xf32>
    %270 = vector.extract_strided_slice %269 {offsets = [0, 0], sizes = [16, 32], strides = [1, 1]} : vector<16x128xf32> to vector<16x32xf32>
    %271 = vector.extract_strided_slice %269 {offsets = [0, 32], sizes = [16, 32], strides = [1, 1]} : vector<16x128xf32> to vector<16x32xf32>
    %272 = vector.extract_strided_slice %269 {offsets = [0, 64], sizes = [16, 32], strides = [1, 1]} : vector<16x128xf32> to vector<16x32xf32>
    %273 = vector.extract_strided_slice %269 {offsets = [0, 96], sizes = [16, 32], strides = [1, 1]} : vector<16x128xf32> to vector<16x32xf32>
    %274 = vector.shape_cast %270 : vector<16x32xf32> to vector<1x16x32xf32>
    %275 = vector.shape_cast %271 : vector<16x32xf32> to vector<1x16x32xf32>
    %276 = vector.shape_cast %272 : vector<16x32xf32> to vector<1x16x32xf32>
    %277 = vector.shape_cast %273 : vector<16x32xf32> to vector<1x16x32xf32>
    %278 = tpu.concatenate %274, %275, %276, %277 in 0 : vector<1x16x32xf32>, vector<1x16x32xf32>, vector<1x16x32xf32>, vector<1x16x32xf32> -> vector<4x16x32xf32>
    %279 = arith.truncf %278 : vector<4x16x32xf32> to vector<4x16x32xbf16>
    %280 = vector.extract_strided_slice %246 {offsets = [0, 0], sizes = [8, 128], strides = [1, 1]} : vector<8x256xf32> to vector<8x128xf32>
    %281 = vector.extract_strided_slice %280 {offsets = [0, 0], sizes = [8, 32], strides = [1, 1]} : vector<8x128xf32> to vector<8x32xf32>
    %282 = vector.extract_strided_slice %280 {offsets = [0, 32], sizes = [8, 32], strides = [1, 1]} : vector<8x128xf32> to vector<8x32xf32>
    %283 = vector.extract_strided_slice %280 {offsets = [0, 64], sizes = [8, 32], strides = [1, 1]} : vector<8x128xf32> to vector<8x32xf32>
    %284 = vector.extract_strided_slice %280 {offsets = [0, 96], sizes = [8, 32], strides = [1, 1]} : vector<8x128xf32> to vector<8x32xf32>
    %285 = vector.shape_cast %281 : vector<8x32xf32> to vector<1x8x32xf32>
    %286 = vector.shape_cast %282 : vector<8x32xf32> to vector<1x8x32xf32>
    %287 = vector.shape_cast %283 : vector<8x32xf32> to vector<1x8x32xf32>
    %288 = vector.shape_cast %284 : vector<8x32xf32> to vector<1x8x32xf32>
    %289 = tpu.concatenate %285, %286, %287, %288 in 0 : vector<1x8x32xf32>, vector<1x8x32xf32>, vector<1x8x32xf32>, vector<1x8x32xf32> -> vector<4x8x32xf32>
    %290 = arith.truncf %289 : vector<4x8x32xf32> to vector<4x8x32xbf16>
    %291 = vector.extract_strided_slice %246 {offsets = [0, 128], sizes = [8, 128], strides = [1, 1]} : vector<8x256xf32> to vector<8x128xf32>
    %292 = vector.extract_strided_slice %291 {offsets = [0, 0], sizes = [8, 32], strides = [1, 1]} : vector<8x128xf32> to vector<8x32xf32>
    %293 = vector.extract_strided_slice %291 {offsets = [0, 32], sizes = [8, 32], strides = [1, 1]} : vector<8x128xf32> to vector<8x32xf32>
    %294 = vector.extract_strided_slice %291 {offsets = [0, 64], sizes = [8, 32], strides = [1, 1]} : vector<8x128xf32> to vector<8x32xf32>
    %295 = vector.extract_strided_slice %291 {offsets = [0, 96], sizes = [8, 32], strides = [1, 1]} : vector<8x128xf32> to vector<8x32xf32>
    %296 = vector.shape_cast %292 : vector<8x32xf32> to vector<1x8x32xf32>
    %297 = vector.shape_cast %293 : vector<8x32xf32> to vector<1x8x32xf32>
    %298 = vector.shape_cast %294 : vector<8x32xf32> to vector<1x8x32xf32>
    %299 = vector.shape_cast %295 : vector<8x32xf32> to vector<1x8x32xf32>
    %300 = tpu.concatenate %296, %297, %298, %299 in 0 : vector<1x8x32xf32>, vector<1x8x32xf32>, vector<1x8x32xf32>, vector<1x8x32xf32> -> vector<4x8x32xf32>
    %301 = arith.truncf %300 : vector<4x8x32xf32> to vector<4x8x32xbf16>
    %cst_75 = arith.constant dense<0.000000e+00> : vector<4x16x8xf32>
    %302 = tpu.matmul %257, %290, %cst_75 {dimension_numbers = #tpu.dot_dimension_numbers<[2], [2], [1], [1], [0, 0, 0, 1, 1, 1], [0], [0]>} : vector<4x16x32xbf16>, vector<4x8x32xbf16>, vector<4x16x8xf32> -> vector<4x16x8xf32>
    %cst_76 = arith.constant dense<0.000000e+00> : vector<4x16x16xf32>
    %303 = tpu.matmul %257, %268, %cst_76 {dimension_numbers = #tpu.dot_dimension_numbers<[2], [2], [1], [1], [0, 0, 0, 1, 1, 1], [0], [0]>} : vector<4x16x32xbf16>, vector<4x16x32xbf16>, vector<4x16x16xf32> -> vector<4x16x16xf32>
    %cst_77 = arith.constant dense<0xFF800000> : vector<4x16xf32>
    %304 = vector.multi_reduction <maximumf>, %302, %cst_77 [2] : vector<4x16x8xf32> to vector<4x16xf32>
    %305 = vector.shape_cast %304 : vector<4x16xf32> to vector<4x16x1xf32>
    %cst_78 = arith.constant dense<0xFF800000> : vector<4x16xf32>
    %306 = vector.multi_reduction <maximumf>, %303, %cst_78 [2] : vector<4x16x16xf32> to vector<4x16xf32>
    %307 = vector.shape_cast %306 : vector<4x16xf32> to vector<4x16x1xf32>
    %308 = arith.maximumf %305, %307 : vector<4x16x1xf32>
    %309 = vector.broadcast %308 : vector<4x16x1xf32> to vector<4x16x8xf32>
    %310 = arith.subf %302, %309 : vector<4x16x8xf32>
    %311 = math.exp %310 : vector<4x16x8xf32>
    %312 = vector.broadcast %308 : vector<4x16x1xf32> to vector<4x16x16xf32>
    %313 = arith.subf %303, %312 : vector<4x16x16xf32>
    %314 = math.exp %313 : vector<4x16x16xf32>
    %cst_79 = arith.constant dense<0.000000e+00> : vector<4x16xf32>
    %315 = vector.multi_reduction <add>, %311, %cst_79 [2] : vector<4x16x8xf32> to vector<4x16xf32>
    %316 = vector.shape_cast %315 : vector<4x16xf32> to vector<4x16x1xf32>
    %cst_80 = arith.constant dense<0.000000e+00> : vector<4x16xf32>
    %317 = vector.multi_reduction <add>, %314, %cst_80 [2] : vector<4x16x16xf32> to vector<4x16xf32>
    %318 = vector.shape_cast %317 : vector<4x16xf32> to vector<4x16x1xf32>
    %319 = arith.addf %316, %318 : vector<4x16x1xf32>
    %320 = tpu.reciprocal %319 {approx = true} : vector<4x16x1xf32> -> vector<4x16x1xf32>
    %321 = arith.truncf %311 : vector<4x16x8xf32> to vector<4x16x8xbf16>
    %cst_81 = arith.constant dense<0.000000e+00> : vector<4x16x32xf32>
    %322 = tpu.matmul %321, %301, %cst_81 {dimension_numbers = #tpu.dot_dimension_numbers<[2], [1], [1], [2], [0, 0, 0, 1, 1, 2], [0], [0]>} : vector<4x16x8xbf16>, vector<4x8x32xbf16>, vector<4x16x32xf32> -> vector<4x16x32xf32>
    %323 = arith.truncf %314 : vector<4x16x16xf32> to vector<4x16x16xbf16>
    %cst_82 = arith.constant dense<0.000000e+00> : vector<4x16x32xf32>
    %324 = tpu.matmul %323, %279, %cst_82 {dimension_numbers = #tpu.dot_dimension_numbers<[2], [1], [1], [2], [0, 0, 0, 1, 1, 2], [0], [0]>} : vector<4x16x16xbf16>, vector<4x16x32xbf16>, vector<4x16x32xf32> -> vector<4x16x32xf32>
    %325 = arith.addf %322, %324 : vector<4x16x32xf32>
    %326 = vector.broadcast %320 : vector<4x16x1xf32> to vector<4x16x32xf32>
    %327 = arith.mulf %325, %326 : vector<4x16x32xf32>
    %328 = vector.extract_strided_slice %327 {offsets = [0, 0, 0], sizes = [1, 16, 32], strides = [1, 1, 1]} : vector<4x16x32xf32> to vector<1x16x32xf32>
    %329 = vector.shape_cast %328 : vector<1x16x32xf32> to vector<16x32xf32>
    %330 = vector.extract_strided_slice %327 {offsets = [1, 0, 0], sizes = [1, 16, 32], strides = [1, 1, 1]} : vector<4x16x32xf32> to vector<1x16x32xf32>
    %331 = vector.shape_cast %330 : vector<1x16x32xf32> to vector<16x32xf32>
    %332 = vector.extract_strided_slice %327 {offsets = [2, 0, 0], sizes = [1, 16, 32], strides = [1, 1, 1]} : vector<4x16x32xf32> to vector<1x16x32xf32>
    %333 = vector.shape_cast %332 : vector<1x16x32xf32> to vector<16x32xf32>
    %334 = vector.extract_strided_slice %327 {offsets = [3, 0, 0], sizes = [1, 16, 32], strides = [1, 1, 1]} : vector<4x16x32xf32> to vector<1x16x32xf32>
    %335 = vector.shape_cast %334 : vector<1x16x32xf32> to vector<16x32xf32>
    %336 = tpu.concatenate %329, %331, %333, %335 in 1 : vector<16x32xf32>, vector<16x32xf32>, vector<16x32xf32>, vector<16x32xf32> -> vector<16x128xf32>
    %c768 = arith.constant 768 : index
    %c0_83 = arith.constant 0 : index
    %337 = vector.load %arg4[%c768, %c0_83] : memref<2176x128xbf16, #tpu.memory_space<vmem>>, vector<128x128xbf16>
    %338 = arith.truncf %336 : vector<16x128xf32> to vector<16x128xbf16>
    %cst_84 = arith.constant dense<0.000000e+00> : vector<16x128xf32>
    %339 = tpu.matmul %338, %337, %cst_84 {dimension_numbers = #tpu.dot_dimension_numbers<[1], [0], [0], [1], [0, 0, 1, 1], [], []>} : vector<16x128xbf16>, vector<128x128xbf16>, vector<16x128xf32> -> vector<16x128xf32>
    %cst_85 = arith.constant 1.000000e+00 : f32
    %340 = vector.broadcast %cst_85 : f32 to vector<16x128xf32>
    %341 = arith.mulf %340, %339 : vector<16x128xf32>
    %342 = arith.addf %192, %341 : vector<16x128xf32>
    %c39 = arith.constant 39 : index
    %c0_86 = arith.constant 0 : index
    %343 = vector.load %arg3[%c39, %c0_86] : memref<48x256xf32, #tpu.memory_space<vmem>>, vector<1x128xf32>
    %c40 = arith.constant 40 : index
    %c0_87 = arith.constant 0 : index
    %344 = vector.load %arg3[%c40, %c0_87] : memref<48x256xf32, #tpu.memory_space<vmem>>, vector<1x128xf32>
    %cst_88 = arith.constant dense<0.000000e+00> : vector<16xf32>
    %345 = vector.multi_reduction <add>, %342, %cst_88 [1] : vector<16x128xf32> to vector<16xf32>
    %346 = vector.shape_cast %345 : vector<16xf32> to vector<16x1xf32>
    %cst_89 = arith.constant 1.280000e+02 : f32
    %347 = vector.broadcast %cst_89 : f32 to vector<16x1xf32>
    %348 = arith.divf %346, %347 : vector<16x1xf32>
    %349 = vector.broadcast %348 : vector<16x1xf32> to vector<16x128xf32>
    %350 = arith.subf %342, %349 : vector<16x128xf32>
    %351 = arith.mulf %350, %350 : vector<16x128xf32>
    %cst_90 = arith.constant dense<0.000000e+00> : vector<16xf32>
    %352 = vector.multi_reduction <add>, %351, %cst_90 [1] : vector<16x128xf32> to vector<16xf32>
    %353 = vector.shape_cast %352 : vector<16xf32> to vector<16x1xf32>
    %cst_91 = arith.constant 1.280000e+02 : f32
    %354 = vector.broadcast %cst_91 : f32 to vector<16x1xf32>
    %355 = arith.divf %353, %354 : vector<16x1xf32>
    %356 = vector.broadcast %348 : vector<16x1xf32> to vector<16x128xf32>
    %357 = arith.subf %342, %356 : vector<16x128xf32>
    %cst_92 = arith.constant 9.99999974E-6 : f32
    %358 = vector.broadcast %cst_92 : f32 to vector<16x1xf32>
    %359 = arith.addf %355, %358 : vector<16x1xf32>
    %360 = math.rsqrt %359 : vector<16x1xf32>
    %361 = vector.broadcast %360 : vector<16x1xf32> to vector<16x128xf32>
    %362 = arith.mulf %357, %361 : vector<16x128xf32>
    %363 = vector.broadcast %343 : vector<1x128xf32> to vector<16x128xf32>
    %364 = arith.mulf %362, %363 : vector<16x128xf32>
    %365 = vector.broadcast %344 : vector<1x128xf32> to vector<16x128xf32>
    %366 = arith.addf %364, %365 : vector<16x128xf32>
    %c0_93 = arith.constant 0 : index
    %c0_94 = arith.constant 0 : index
    %c0_95 = arith.constant 0 : index
    %367 = vector.load %arg6[%c0_93, %c0_94, %c0_95] : memref<2x128x512xbf16, #tpu.memory_space<vmem>>, vector<1x128x512xbf16>
    %368 = vector.shape_cast %367 : vector<1x128x512xbf16> to vector<128x512xbf16>
    %369 = arith.truncf %366 : vector<16x128xf32> to vector<16x128xbf16>
    %cst_96 = arith.constant dense<0.000000e+00> : vector<16x512xf32>
    %370 = tpu.matmul %369, %368, %cst_96 {dimension_numbers = #tpu.dot_dimension_numbers<[1], [0], [0], [1], [0, 0, 1, 1], [], []>} : vector<16x128xbf16>, vector<128x512xbf16>, vector<16x512xf32> -> vector<16x512xf32>
    %cst_97 = arith.constant 5.000000e-01 : f32
    %371 = vector.broadcast %cst_97 : f32 to vector<16x512xf32>
    %372 = arith.mulf %371, %370 : vector<16x512xf32>
    %cst_98 = arith.constant 0.707106769 : f32
    %373 = vector.broadcast %cst_98 : f32 to vector<16x512xf32>
    %374 = arith.mulf %370, %373 : vector<16x512xf32>
    %375 = math.erf %374 : vector<16x512xf32>
    %cst_99 = arith.constant 1.000000e+00 : f32
    %376 = vector.broadcast %cst_99 : f32 to vector<16x512xf32>
    %377 = arith.addf %376, %375 : vector<16x512xf32>
    %378 = arith.mulf %372, %377 : vector<16x512xf32>
    %c1152 = arith.constant 1152 : index
    %c0_100 = arith.constant 0 : index
    %379 = vector.load %arg4[%c1152, %c0_100] : memref<2176x128xbf16, #tpu.memory_space<vmem>>, vector<512x128xbf16>
    %380 = arith.truncf %378 : vector<16x512xf32> to vector<16x512xbf16>
    %cst_101 = arith.constant dense<0.000000e+00> : vector<16x128xf32>
    %381 = tpu.matmul %380, %379, %cst_101 {dimension_numbers = #tpu.dot_dimension_numbers<[1], [0], [0], [1], [0, 0, 1, 1], [], []>} : vector<16x512xbf16>, vector<512x128xbf16>, vector<16x128xf32> -> vector<16x128xf32>
    %382 = arith.addf %342, %381 : vector<16x128xf32>
    %c31 = arith.constant 31 : index
    %c0_102 = arith.constant 0 : index
    %383 = vector.load %arg3[%c31, %c0_102] : memref<48x256xf32, #tpu.memory_space<vmem>>, vector<1x128xf32>
    %c32 = arith.constant 32 : index
    %c0_103 = arith.constant 0 : index
    %384 = vector.load %arg3[%c32, %c0_103] : memref<48x256xf32, #tpu.memory_space<vmem>>, vector<1x128xf32>
    %cst_104 = arith.constant dense<0.000000e+00> : vector<8xf32>
    %385 = vector.multi_reduction <add>, %23, %cst_104 [1] : vector<8x128xf32> to vector<8xf32>
    %386 = vector.shape_cast %385 : vector<8xf32> to vector<8x1xf32>
    %cst_105 = arith.constant 1.280000e+02 : f32
    %387 = vector.broadcast %cst_105 : f32 to vector<8x1xf32>
    %388 = arith.divf %386, %387 : vector<8x1xf32>
    %389 = vector.broadcast %388 : vector<8x1xf32> to vector<8x128xf32>
    %390 = arith.subf %23, %389 : vector<8x128xf32>
    %391 = arith.mulf %390, %390 : vector<8x128xf32>
    %cst_106 = arith.constant dense<0.000000e+00> : vector<8xf32>
    %392 = vector.multi_reduction <add>, %391, %cst_106 [1] : vector<8x128xf32> to vector<8xf32>
    %393 = vector.shape_cast %392 : vector<8xf32> to vector<8x1xf32>
    %cst_107 = arith.constant 1.280000e+02 : f32
    %394 = vector.broadcast %cst_107 : f32 to vector<8x1xf32>
    %395 = arith.divf %393, %394 : vector<8x1xf32>
    %396 = vector.broadcast %388 : vector<8x1xf32> to vector<8x128xf32>
    %397 = arith.subf %23, %396 : vector<8x128xf32>
    %cst_108 = arith.constant 9.99999974E-6 : f32
    %398 = vector.broadcast %cst_108 : f32 to vector<8x1xf32>
    %399 = arith.addf %395, %398 : vector<8x1xf32>
    %400 = math.rsqrt %399 : vector<8x1xf32>
    %401 = vector.broadcast %400 : vector<8x1xf32> to vector<8x128xf32>
    %402 = arith.mulf %397, %401 : vector<8x128xf32>
    %403 = vector.broadcast %383 : vector<1x128xf32> to vector<8x128xf32>
    %404 = arith.mulf %402, %403 : vector<8x128xf32>
    %405 = vector.broadcast %384 : vector<1x128xf32> to vector<8x128xf32>
    %406 = arith.addf %404, %405 : vector<8x128xf32>
    %c33 = arith.constant 33 : index
    %c0_109 = arith.constant 0 : index
    %407 = vector.load %arg3[%c33, %c0_109] : memref<48x256xf32, #tpu.memory_space<vmem>>, vector<1x128xf32>
    %c34 = arith.constant 34 : index
    %c0_110 = arith.constant 0 : index
    %408 = vector.load %arg3[%c34, %c0_110] : memref<48x256xf32, #tpu.memory_space<vmem>>, vector<1x128xf32>
    %cst_111 = arith.constant dense<0.000000e+00> : vector<16xf32>
    %409 = vector.multi_reduction <add>, %382, %cst_111 [1] : vector<16x128xf32> to vector<16xf32>
    %410 = vector.shape_cast %409 : vector<16xf32> to vector<16x1xf32>
    %cst_112 = arith.constant 1.280000e+02 : f32
    %411 = vector.broadcast %cst_112 : f32 to vector<16x1xf32>
    %412 = arith.divf %410, %411 : vector<16x1xf32>
    %413 = vector.broadcast %412 : vector<16x1xf32> to vector<16x128xf32>
    %414 = arith.subf %382, %413 : vector<16x128xf32>
    %415 = arith.mulf %414, %414 : vector<16x128xf32>
    %cst_113 = arith.constant dense<0.000000e+00> : vector<16xf32>
    %416 = vector.multi_reduction <add>, %415, %cst_113 [1] : vector<16x128xf32> to vector<16xf32>
    %417 = vector.shape_cast %416 : vector<16xf32> to vector<16x1xf32>
    %cst_114 = arith.constant 1.280000e+02 : f32
    %418 = vector.broadcast %cst_114 : f32 to vector<16x1xf32>
    %419 = arith.divf %417, %418 : vector<16x1xf32>
    %420 = vector.broadcast %412 : vector<16x1xf32> to vector<16x128xf32>
    %421 = arith.subf %382, %420 : vector<16x128xf32>
    %cst_115 = arith.constant 9.99999974E-6 : f32
    %422 = vector.broadcast %cst_115 : f32 to vector<16x1xf32>
    %423 = arith.addf %419, %422 : vector<16x1xf32>
    %424 = math.rsqrt %423 : vector<16x1xf32>
    %425 = vector.broadcast %424 : vector<16x1xf32> to vector<16x128xf32>
    %426 = arith.mulf %421, %425 : vector<16x128xf32>
    %427 = vector.broadcast %407 : vector<1x128xf32> to vector<16x128xf32>
    %428 = arith.mulf %426, %427 : vector<16x128xf32>
    %429 = vector.broadcast %408 : vector<1x128xf32> to vector<16x128xf32>
    %430 = arith.addf %428, %429 : vector<16x128xf32>
    %c256_116 = arith.constant 256 : index
    %c0_117 = arith.constant 0 : index
    %431 = vector.load %arg5[%c256_116, %c0_117] : memref<640x384xbf16, #tpu.memory_space<vmem>>, vector<128x384xbf16>
    %c256_118 = arith.constant 256 : index
    %c128_119 = arith.constant 128 : index
    %432 = vector.load %arg5[%c256_118, %c128_119] : memref<640x384xbf16, #tpu.memory_space<vmem>>, vector<128x256xbf16>
    %433 = arith.truncf %430 : vector<16x128xf32> to vector<16x128xbf16>
    %cst_120 = arith.constant dense<0.000000e+00> : vector<16x384xf32>
    %434 = tpu.matmul %433, %431, %cst_120 {dimension_numbers = #tpu.dot_dimension_numbers<[1], [0], [0], [1], [0, 0, 1, 1], [], []>} : vector<16x128xbf16>, vector<128x384xbf16>, vector<16x384xf32> -> vector<16x384xf32>
    %435 = arith.truncf %406 : vector<8x128xf32> to vector<8x128xbf16>
    %cst_121 = arith.constant dense<0.000000e+00> : vector<8x256xf32>
    %436 = tpu.matmul %435, %432, %cst_121 {dimension_numbers = #tpu.dot_dimension_numbers<[1], [0], [0], [1], [0, 0, 1, 1], [], []>} : vector<8x128xbf16>, vector<128x256xbf16>, vector<8x256xf32> -> vector<8x256xf32>
    %437 = vector.extract_strided_slice %434 {offsets = [0, 0], sizes = [16, 128], strides = [1, 1]} : vector<16x384xf32> to vector<16x128xf32>
    %438 = vector.extract_strided_slice %437 {offsets = [0, 0], sizes = [16, 32], strides = [1, 1]} : vector<16x128xf32> to vector<16x32xf32>
    %439 = vector.extract_strided_slice %437 {offsets = [0, 32], sizes = [16, 32], strides = [1, 1]} : vector<16x128xf32> to vector<16x32xf32>
    %440 = vector.extract_strided_slice %437 {offsets = [0, 64], sizes = [16, 32], strides = [1, 1]} : vector<16x128xf32> to vector<16x32xf32>
    %441 = vector.extract_strided_slice %437 {offsets = [0, 96], sizes = [16, 32], strides = [1, 1]} : vector<16x128xf32> to vector<16x32xf32>
    %442 = vector.shape_cast %438 : vector<16x32xf32> to vector<1x16x32xf32>
    %443 = vector.shape_cast %439 : vector<16x32xf32> to vector<1x16x32xf32>
    %444 = vector.shape_cast %440 : vector<16x32xf32> to vector<1x16x32xf32>
    %445 = vector.shape_cast %441 : vector<16x32xf32> to vector<1x16x32xf32>
    %446 = tpu.concatenate %442, %443, %444, %445 in 0 : vector<1x16x32xf32>, vector<1x16x32xf32>, vector<1x16x32xf32>, vector<1x16x32xf32> -> vector<4x16x32xf32>
    %447 = arith.truncf %446 : vector<4x16x32xf32> to vector<4x16x32xbf16>
    %448 = vector.extract_strided_slice %434 {offsets = [0, 128], sizes = [16, 128], strides = [1, 1]} : vector<16x384xf32> to vector<16x128xf32>
    %449 = vector.extract_strided_slice %448 {offsets = [0, 0], sizes = [16, 32], strides = [1, 1]} : vector<16x128xf32> to vector<16x32xf32>
    %450 = vector.extract_strided_slice %448 {offsets = [0, 32], sizes = [16, 32], strides = [1, 1]} : vector<16x128xf32> to vector<16x32xf32>
    %451 = vector.extract_strided_slice %448 {offsets = [0, 64], sizes = [16, 32], strides = [1, 1]} : vector<16x128xf32> to vector<16x32xf32>
    %452 = vector.extract_strided_slice %448 {offsets = [0, 96], sizes = [16, 32], strides = [1, 1]} : vector<16x128xf32> to vector<16x32xf32>
    %453 = vector.shape_cast %449 : vector<16x32xf32> to vector<1x16x32xf32>
    %454 = vector.shape_cast %450 : vector<16x32xf32> to vector<1x16x32xf32>
    %455 = vector.shape_cast %451 : vector<16x32xf32> to vector<1x16x32xf32>
    %456 = vector.shape_cast %452 : vector<16x32xf32> to vector<1x16x32xf32>
    %457 = tpu.concatenate %453, %454, %455, %456 in 0 : vector<1x16x32xf32>, vector<1x16x32xf32>, vector<1x16x32xf32>, vector<1x16x32xf32> -> vector<4x16x32xf32>
    %458 = arith.truncf %457 : vector<4x16x32xf32> to vector<4x16x32xbf16>
    %459 = vector.extract_strided_slice %434 {offsets = [0, 256], sizes = [16, 128], strides = [1, 1]} : vector<16x384xf32> to vector<16x128xf32>
    %460 = vector.extract_strided_slice %459 {offsets = [0, 0], sizes = [16, 32], strides = [1, 1]} : vector<16x128xf32> to vector<16x32xf32>
    %461 = vector.extract_strided_slice %459 {offsets = [0, 32], sizes = [16, 32], strides = [1, 1]} : vector<16x128xf32> to vector<16x32xf32>
    %462 = vector.extract_strided_slice %459 {offsets = [0, 64], sizes = [16, 32], strides = [1, 1]} : vector<16x128xf32> to vector<16x32xf32>
    %463 = vector.extract_strided_slice %459 {offsets = [0, 96], sizes = [16, 32], strides = [1, 1]} : vector<16x128xf32> to vector<16x32xf32>
    %464 = vector.shape_cast %460 : vector<16x32xf32> to vector<1x16x32xf32>
    %465 = vector.shape_cast %461 : vector<16x32xf32> to vector<1x16x32xf32>
    %466 = vector.shape_cast %462 : vector<16x32xf32> to vector<1x16x32xf32>
    %467 = vector.shape_cast %463 : vector<16x32xf32> to vector<1x16x32xf32>
    %468 = tpu.concatenate %464, %465, %466, %467 in 0 : vector<1x16x32xf32>, vector<1x16x32xf32>, vector<1x16x32xf32>, vector<1x16x32xf32> -> vector<4x16x32xf32>
    %469 = arith.truncf %468 : vector<4x16x32xf32> to vector<4x16x32xbf16>
    %470 = vector.extract_strided_slice %436 {offsets = [0, 0], sizes = [8, 128], strides = [1, 1]} : vector<8x256xf32> to vector<8x128xf32>
    %471 = vector.extract_strided_slice %470 {offsets = [0, 0], sizes = [8, 32], strides = [1, 1]} : vector<8x128xf32> to vector<8x32xf32>
    %472 = vector.extract_strided_slice %470 {offsets = [0, 32], sizes = [8, 32], strides = [1, 1]} : vector<8x128xf32> to vector<8x32xf32>
    %473 = vector.extract_strided_slice %470 {offsets = [0, 64], sizes = [8, 32], strides = [1, 1]} : vector<8x128xf32> to vector<8x32xf32>
    %474 = vector.extract_strided_slice %470 {offsets = [0, 96], sizes = [8, 32], strides = [1, 1]} : vector<8x128xf32> to vector<8x32xf32>
    %475 = vector.shape_cast %471 : vector<8x32xf32> to vector<1x8x32xf32>
    %476 = vector.shape_cast %472 : vector<8x32xf32> to vector<1x8x32xf32>
    %477 = vector.shape_cast %473 : vector<8x32xf32> to vector<1x8x32xf32>
    %478 = vector.shape_cast %474 : vector<8x32xf32> to vector<1x8x32xf32>
    %479 = tpu.concatenate %475, %476, %477, %478 in 0 : vector<1x8x32xf32>, vector<1x8x32xf32>, vector<1x8x32xf32>, vector<1x8x32xf32> -> vector<4x8x32xf32>
    %480 = arith.truncf %479 : vector<4x8x32xf32> to vector<4x8x32xbf16>
    %481 = vector.extract_strided_slice %436 {offsets = [0, 128], sizes = [8, 128], strides = [1, 1]} : vector<8x256xf32> to vector<8x128xf32>
    %482 = vector.extract_strided_slice %481 {offsets = [0, 0], sizes = [8, 32], strides = [1, 1]} : vector<8x128xf32> to vector<8x32xf32>
    %483 = vector.extract_strided_slice %481 {offsets = [0, 32], sizes = [8, 32], strides = [1, 1]} : vector<8x128xf32> to vector<8x32xf32>
    %484 = vector.extract_strided_slice %481 {offsets = [0, 64], sizes = [8, 32], strides = [1, 1]} : vector<8x128xf32> to vector<8x32xf32>
    %485 = vector.extract_strided_slice %481 {offsets = [0, 96], sizes = [8, 32], strides = [1, 1]} : vector<8x128xf32> to vector<8x32xf32>
    %486 = vector.shape_cast %482 : vector<8x32xf32> to vector<1x8x32xf32>
    %487 = vector.shape_cast %483 : vector<8x32xf32> to vector<1x8x32xf32>
    %488 = vector.shape_cast %484 : vector<8x32xf32> to vector<1x8x32xf32>
    %489 = vector.shape_cast %485 : vector<8x32xf32> to vector<1x8x32xf32>
    %490 = tpu.concatenate %486, %487, %488, %489 in 0 : vector<1x8x32xf32>, vector<1x8x32xf32>, vector<1x8x32xf32>, vector<1x8x32xf32> -> vector<4x8x32xf32>
    %491 = arith.truncf %490 : vector<4x8x32xf32> to vector<4x8x32xbf16>
    %cst_122 = arith.constant dense<0.000000e+00> : vector<4x16x8xf32>
    %492 = tpu.matmul %447, %480, %cst_122 {dimension_numbers = #tpu.dot_dimension_numbers<[2], [2], [1], [1], [0, 0, 0, 1, 1, 1], [0], [0]>} : vector<4x16x32xbf16>, vector<4x8x32xbf16>, vector<4x16x8xf32> -> vector<4x16x8xf32>
    %cst_123 = arith.constant dense<0.000000e+00> : vector<4x16x16xf32>
    %493 = tpu.matmul %447, %458, %cst_123 {dimension_numbers = #tpu.dot_dimension_numbers<[2], [2], [1], [1], [0, 0, 0, 1, 1, 1], [0], [0]>} : vector<4x16x32xbf16>, vector<4x16x32xbf16>, vector<4x16x16xf32> -> vector<4x16x16xf32>
    %cst_124 = arith.constant dense<0xFF800000> : vector<4x16xf32>
    %494 = vector.multi_reduction <maximumf>, %492, %cst_124 [2] : vector<4x16x8xf32> to vector<4x16xf32>
    %495 = vector.shape_cast %494 : vector<4x16xf32> to vector<4x16x1xf32>
    %cst_125 = arith.constant dense<0xFF800000> : vector<4x16xf32>
    %496 = vector.multi_reduction <maximumf>, %493, %cst_125 [2] : vector<4x16x16xf32> to vector<4x16xf32>
    %497 = vector.shape_cast %496 : vector<4x16xf32> to vector<4x16x1xf32>
    %498 = arith.maximumf %495, %497 : vector<4x16x1xf32>
    %499 = vector.broadcast %498 : vector<4x16x1xf32> to vector<4x16x8xf32>
    %500 = arith.subf %492, %499 : vector<4x16x8xf32>
    %501 = math.exp %500 : vector<4x16x8xf32>
    %502 = vector.broadcast %498 : vector<4x16x1xf32> to vector<4x16x16xf32>
    %503 = arith.subf %493, %502 : vector<4x16x16xf32>
    %504 = math.exp %503 : vector<4x16x16xf32>
    %cst_126 = arith.constant dense<0.000000e+00> : vector<4x16xf32>
    %505 = vector.multi_reduction <add>, %501, %cst_126 [2] : vector<4x16x8xf32> to vector<4x16xf32>
    %506 = vector.shape_cast %505 : vector<4x16xf32> to vector<4x16x1xf32>
    %cst_127 = arith.constant dense<0.000000e+00> : vector<4x16xf32>
    %507 = vector.multi_reduction <add>, %504, %cst_127 [2] : vector<4x16x16xf32> to vector<4x16xf32>
    %508 = vector.shape_cast %507 : vector<4x16xf32> to vector<4x16x1xf32>
    %509 = arith.addf %506, %508 : vector<4x16x1xf32>
    %510 = tpu.reciprocal %509 {approx = true} : vector<4x16x1xf32> -> vector<4x16x1xf32>
    %511 = arith.truncf %501 : vector<4x16x8xf32> to vector<4x16x8xbf16>
    %cst_128 = arith.constant dense<0.000000e+00> : vector<4x16x32xf32>
    %512 = tpu.matmul %511, %491, %cst_128 {dimension_numbers = #tpu.dot_dimension_numbers<[2], [1], [1], [2], [0, 0, 0, 1, 1, 2], [0], [0]>} : vector<4x16x8xbf16>, vector<4x8x32xbf16>, vector<4x16x32xf32> -> vector<4x16x32xf32>
    %513 = arith.truncf %504 : vector<4x16x16xf32> to vector<4x16x16xbf16>
    %cst_129 = arith.constant dense<0.000000e+00> : vector<4x16x32xf32>
    %514 = tpu.matmul %513, %469, %cst_129 {dimension_numbers = #tpu.dot_dimension_numbers<[2], [1], [1], [2], [0, 0, 0, 1, 1, 2], [0], [0]>} : vector<4x16x16xbf16>, vector<4x16x32xbf16>, vector<4x16x32xf32> -> vector<4x16x32xf32>
    %515 = arith.addf %512, %514 : vector<4x16x32xf32>
    %516 = vector.broadcast %510 : vector<4x16x1xf32> to vector<4x16x32xf32>
    %517 = arith.mulf %515, %516 : vector<4x16x32xf32>
    %518 = vector.extract_strided_slice %517 {offsets = [0, 0, 0], sizes = [1, 16, 32], strides = [1, 1, 1]} : vector<4x16x32xf32> to vector<1x16x32xf32>
    %519 = vector.shape_cast %518 : vector<1x16x32xf32> to vector<16x32xf32>
    %520 = vector.extract_strided_slice %517 {offsets = [1, 0, 0], sizes = [1, 16, 32], strides = [1, 1, 1]} : vector<4x16x32xf32> to vector<1x16x32xf32>
    %521 = vector.shape_cast %520 : vector<1x16x32xf32> to vector<16x32xf32>
    %522 = vector.extract_strided_slice %517 {offsets = [2, 0, 0], sizes = [1, 16, 32], strides = [1, 1, 1]} : vector<4x16x32xf32> to vector<1x16x32xf32>
    %523 = vector.shape_cast %522 : vector<1x16x32xf32> to vector<16x32xf32>
    %524 = vector.extract_strided_slice %517 {offsets = [3, 0, 0], sizes = [1, 16, 32], strides = [1, 1, 1]} : vector<4x16x32xf32> to vector<1x16x32xf32>
    %525 = vector.shape_cast %524 : vector<1x16x32xf32> to vector<16x32xf32>
    %526 = tpu.concatenate %519, %521, %523, %525 in 1 : vector<16x32xf32>, vector<16x32xf32>, vector<16x32xf32>, vector<16x32xf32> -> vector<16x128xf32>
    %c896 = arith.constant 896 : index
    %c0_130 = arith.constant 0 : index
    %527 = vector.load %arg4[%c896, %c0_130] : memref<2176x128xbf16, #tpu.memory_space<vmem>>, vector<128x128xbf16>
    %528 = arith.truncf %526 : vector<16x128xf32> to vector<16x128xbf16>
    %cst_131 = arith.constant dense<0.000000e+00> : vector<16x128xf32>
    %529 = tpu.matmul %528, %527, %cst_131 {dimension_numbers = #tpu.dot_dimension_numbers<[1], [0], [0], [1], [0, 0, 1, 1], [], []>} : vector<16x128xbf16>, vector<128x128xbf16>, vector<16x128xf32> -> vector<16x128xf32>
    %530 = arith.addf %382, %529 : vector<16x128xf32>
    %c35 = arith.constant 35 : index
    %c0_132 = arith.constant 0 : index
    %531 = vector.load %arg3[%c35, %c0_132] : memref<48x256xf32, #tpu.memory_space<vmem>>, vector<1x128xf32>
    %c36 = arith.constant 36 : index
    %c0_133 = arith.constant 0 : index
    %532 = vector.load %arg3[%c36, %c0_133] : memref<48x256xf32, #tpu.memory_space<vmem>>, vector<1x128xf32>
    %cst_134 = arith.constant dense<0.000000e+00> : vector<8xf32>
    %533 = vector.multi_reduction <add>, %43, %cst_134 [1] : vector<8x128xf32> to vector<8xf32>
    %534 = vector.shape_cast %533 : vector<8xf32> to vector<8x1xf32>
    %cst_135 = arith.constant 1.280000e+02 : f32
    %535 = vector.broadcast %cst_135 : f32 to vector<8x1xf32>
    %536 = arith.divf %534, %535 : vector<8x1xf32>
    %537 = vector.broadcast %536 : vector<8x1xf32> to vector<8x128xf32>
    %538 = arith.subf %43, %537 : vector<8x128xf32>
    %539 = arith.mulf %538, %538 : vector<8x128xf32>
    %cst_136 = arith.constant dense<0.000000e+00> : vector<8xf32>
    %540 = vector.multi_reduction <add>, %539, %cst_136 [1] : vector<8x128xf32> to vector<8xf32>
    %541 = vector.shape_cast %540 : vector<8xf32> to vector<8x1xf32>
    %cst_137 = arith.constant 1.280000e+02 : f32
    %542 = vector.broadcast %cst_137 : f32 to vector<8x1xf32>
    %543 = arith.divf %541, %542 : vector<8x1xf32>
    %544 = vector.broadcast %536 : vector<8x1xf32> to vector<8x128xf32>
    %545 = arith.subf %43, %544 : vector<8x128xf32>
    %cst_138 = arith.constant 9.99999974E-6 : f32
    %546 = vector.broadcast %cst_138 : f32 to vector<8x1xf32>
    %547 = arith.addf %543, %546 : vector<8x1xf32>
    %548 = math.rsqrt %547 : vector<8x1xf32>
    %549 = vector.broadcast %548 : vector<8x1xf32> to vector<8x128xf32>
    %550 = arith.mulf %545, %549 : vector<8x128xf32>
    %551 = vector.broadcast %531 : vector<1x128xf32> to vector<8x128xf32>
    %552 = arith.mulf %550, %551 : vector<8x128xf32>
    %553 = vector.broadcast %532 : vector<1x128xf32> to vector<8x128xf32>
    %554 = arith.addf %552, %553 : vector<8x128xf32>
    %c37 = arith.constant 37 : index
    %c0_139 = arith.constant 0 : index
    %555 = vector.load %arg3[%c37, %c0_139] : memref<48x256xf32, #tpu.memory_space<vmem>>, vector<1x128xf32>
    %c38 = arith.constant 38 : index
    %c0_140 = arith.constant 0 : index
    %556 = vector.load %arg3[%c38, %c0_140] : memref<48x256xf32, #tpu.memory_space<vmem>>, vector<1x128xf32>
    %cst_141 = arith.constant dense<0.000000e+00> : vector<16xf32>
    %557 = vector.multi_reduction <add>, %530, %cst_141 [1] : vector<16x128xf32> to vector<16xf32>
    %558 = vector.shape_cast %557 : vector<16xf32> to vector<16x1xf32>
    %cst_142 = arith.constant 1.280000e+02 : f32
    %559 = vector.broadcast %cst_142 : f32 to vector<16x1xf32>
    %560 = arith.divf %558, %559 : vector<16x1xf32>
    %561 = vector.broadcast %560 : vector<16x1xf32> to vector<16x128xf32>
    %562 = arith.subf %530, %561 : vector<16x128xf32>
    %563 = arith.mulf %562, %562 : vector<16x128xf32>
    %cst_143 = arith.constant dense<0.000000e+00> : vector<16xf32>
    %564 = vector.multi_reduction <add>, %563, %cst_143 [1] : vector<16x128xf32> to vector<16xf32>
    %565 = vector.shape_cast %564 : vector<16xf32> to vector<16x1xf32>
    %cst_144 = arith.constant 1.280000e+02 : f32
    %566 = vector.broadcast %cst_144 : f32 to vector<16x1xf32>
    %567 = arith.divf %565, %566 : vector<16x1xf32>
    %568 = vector.broadcast %560 : vector<16x1xf32> to vector<16x128xf32>
    %569 = arith.subf %530, %568 : vector<16x128xf32>
    %cst_145 = arith.constant 9.99999974E-6 : f32
    %570 = vector.broadcast %cst_145 : f32 to vector<16x1xf32>
    %571 = arith.addf %567, %570 : vector<16x1xf32>
    %572 = math.rsqrt %571 : vector<16x1xf32>
    %573 = vector.broadcast %572 : vector<16x1xf32> to vector<16x128xf32>
    %574 = arith.mulf %569, %573 : vector<16x128xf32>
    %575 = vector.broadcast %555 : vector<1x128xf32> to vector<16x128xf32>
    %576 = arith.mulf %574, %575 : vector<16x128xf32>
    %577 = vector.broadcast %556 : vector<1x128xf32> to vector<16x128xf32>
    %578 = arith.addf %576, %577 : vector<16x128xf32>
    %c384 = arith.constant 384 : index
    %c0_146 = arith.constant 0 : index
    %579 = vector.load %arg5[%c384, %c0_146] : memref<640x384xbf16, #tpu.memory_space<vmem>>, vector<128x384xbf16>
    %c384_147 = arith.constant 384 : index
    %c128_148 = arith.constant 128 : index
    %580 = vector.load %arg5[%c384_147, %c128_148] : memref<640x384xbf16, #tpu.memory_space<vmem>>, vector<128x256xbf16>
    %581 = arith.truncf %578 : vector<16x128xf32> to vector<16x128xbf16>
    %cst_149 = arith.constant dense<0.000000e+00> : vector<16x384xf32>
    %582 = tpu.matmul %581, %579, %cst_149 {dimension_numbers = #tpu.dot_dimension_numbers<[1], [0], [0], [1], [0, 0, 1, 1], [], []>} : vector<16x128xbf16>, vector<128x384xbf16>, vector<16x384xf32> -> vector<16x384xf32>
    %583 = arith.truncf %554 : vector<8x128xf32> to vector<8x128xbf16>
    %cst_150 = arith.constant dense<0.000000e+00> : vector<8x256xf32>
    %584 = tpu.matmul %583, %580, %cst_150 {dimension_numbers = #tpu.dot_dimension_numbers<[1], [0], [0], [1], [0, 0, 1, 1], [], []>} : vector<8x128xbf16>, vector<128x256xbf16>, vector<8x256xf32> -> vector<8x256xf32>
    %585 = vector.extract_strided_slice %582 {offsets = [0, 0], sizes = [16, 128], strides = [1, 1]} : vector<16x384xf32> to vector<16x128xf32>
    %586 = vector.extract_strided_slice %585 {offsets = [0, 0], sizes = [16, 32], strides = [1, 1]} : vector<16x128xf32> to vector<16x32xf32>
    %587 = vector.extract_strided_slice %585 {offsets = [0, 32], sizes = [16, 32], strides = [1, 1]} : vector<16x128xf32> to vector<16x32xf32>
    %588 = vector.extract_strided_slice %585 {offsets = [0, 64], sizes = [16, 32], strides = [1, 1]} : vector<16x128xf32> to vector<16x32xf32>
    %589 = vector.extract_strided_slice %585 {offsets = [0, 96], sizes = [16, 32], strides = [1, 1]} : vector<16x128xf32> to vector<16x32xf32>
    %590 = vector.shape_cast %586 : vector<16x32xf32> to vector<1x16x32xf32>
    %591 = vector.shape_cast %587 : vector<16x32xf32> to vector<1x16x32xf32>
    %592 = vector.shape_cast %588 : vector<16x32xf32> to vector<1x16x32xf32>
    %593 = vector.shape_cast %589 : vector<16x32xf32> to vector<1x16x32xf32>
    %594 = tpu.concatenate %590, %591, %592, %593 in 0 : vector<1x16x32xf32>, vector<1x16x32xf32>, vector<1x16x32xf32>, vector<1x16x32xf32> -> vector<4x16x32xf32>
    %595 = arith.truncf %594 : vector<4x16x32xf32> to vector<4x16x32xbf16>
    %596 = vector.extract_strided_slice %582 {offsets = [0, 128], sizes = [16, 128], strides = [1, 1]} : vector<16x384xf32> to vector<16x128xf32>
    %597 = vector.extract_strided_slice %596 {offsets = [0, 0], sizes = [16, 32], strides = [1, 1]} : vector<16x128xf32> to vector<16x32xf32>
    %598 = vector.extract_strided_slice %596 {offsets = [0, 32], sizes = [16, 32], strides = [1, 1]} : vector<16x128xf32> to vector<16x32xf32>
    %599 = vector.extract_strided_slice %596 {offsets = [0, 64], sizes = [16, 32], strides = [1, 1]} : vector<16x128xf32> to vector<16x32xf32>
    %600 = vector.extract_strided_slice %596 {offsets = [0, 96], sizes = [16, 32], strides = [1, 1]} : vector<16x128xf32> to vector<16x32xf32>
    %601 = vector.shape_cast %597 : vector<16x32xf32> to vector<1x16x32xf32>
    %602 = vector.shape_cast %598 : vector<16x32xf32> to vector<1x16x32xf32>
    %603 = vector.shape_cast %599 : vector<16x32xf32> to vector<1x16x32xf32>
    %604 = vector.shape_cast %600 : vector<16x32xf32> to vector<1x16x32xf32>
    %605 = tpu.concatenate %601, %602, %603, %604 in 0 : vector<1x16x32xf32>, vector<1x16x32xf32>, vector<1x16x32xf32>, vector<1x16x32xf32> -> vector<4x16x32xf32>
    %606 = arith.truncf %605 : vector<4x16x32xf32> to vector<4x16x32xbf16>
    %607 = vector.extract_strided_slice %582 {offsets = [0, 256], sizes = [16, 128], strides = [1, 1]} : vector<16x384xf32> to vector<16x128xf32>
    %608 = vector.extract_strided_slice %607 {offsets = [0, 0], sizes = [16, 32], strides = [1, 1]} : vector<16x128xf32> to vector<16x32xf32>
    %609 = vector.extract_strided_slice %607 {offsets = [0, 32], sizes = [16, 32], strides = [1, 1]} : vector<16x128xf32> to vector<16x32xf32>
    %610 = vector.extract_strided_slice %607 {offsets = [0, 64], sizes = [16, 32], strides = [1, 1]} : vector<16x128xf32> to vector<16x32xf32>
    %611 = vector.extract_strided_slice %607 {offsets = [0, 96], sizes = [16, 32], strides = [1, 1]} : vector<16x128xf32> to vector<16x32xf32>
    %612 = vector.shape_cast %608 : vector<16x32xf32> to vector<1x16x32xf32>
    %613 = vector.shape_cast %609 : vector<16x32xf32> to vector<1x16x32xf32>
    %614 = vector.shape_cast %610 : vector<16x32xf32> to vector<1x16x32xf32>
    %615 = vector.shape_cast %611 : vector<16x32xf32> to vector<1x16x32xf32>
    %616 = tpu.concatenate %612, %613, %614, %615 in 0 : vector<1x16x32xf32>, vector<1x16x32xf32>, vector<1x16x32xf32>, vector<1x16x32xf32> -> vector<4x16x32xf32>
    %617 = arith.truncf %616 : vector<4x16x32xf32> to vector<4x16x32xbf16>
    %618 = vector.extract_strided_slice %584 {offsets = [0, 0], sizes = [8, 128], strides = [1, 1]} : vector<8x256xf32> to vector<8x128xf32>
    %619 = vector.extract_strided_slice %618 {offsets = [0, 0], sizes = [8, 32], strides = [1, 1]} : vector<8x128xf32> to vector<8x32xf32>
    %620 = vector.extract_strided_slice %618 {offsets = [0, 32], sizes = [8, 32], strides = [1, 1]} : vector<8x128xf32> to vector<8x32xf32>
    %621 = vector.extract_strided_slice %618 {offsets = [0, 64], sizes = [8, 32], strides = [1, 1]} : vector<8x128xf32> to vector<8x32xf32>
    %622 = vector.extract_strided_slice %618 {offsets = [0, 96], sizes = [8, 32], strides = [1, 1]} : vector<8x128xf32> to vector<8x32xf32>
    %623 = vector.shape_cast %619 : vector<8x32xf32> to vector<1x8x32xf32>
    %624 = vector.shape_cast %620 : vector<8x32xf32> to vector<1x8x32xf32>
    %625 = vector.shape_cast %621 : vector<8x32xf32> to vector<1x8x32xf32>
    %626 = vector.shape_cast %622 : vector<8x32xf32> to vector<1x8x32xf32>
    %627 = tpu.concatenate %623, %624, %625, %626 in 0 : vector<1x8x32xf32>, vector<1x8x32xf32>, vector<1x8x32xf32>, vector<1x8x32xf32> -> vector<4x8x32xf32>
    %628 = arith.truncf %627 : vector<4x8x32xf32> to vector<4x8x32xbf16>
    %629 = vector.extract_strided_slice %584 {offsets = [0, 128], sizes = [8, 128], strides = [1, 1]} : vector<8x256xf32> to vector<8x128xf32>
    %630 = vector.extract_strided_slice %629 {offsets = [0, 0], sizes = [8, 32], strides = [1, 1]} : vector<8x128xf32> to vector<8x32xf32>
    %631 = vector.extract_strided_slice %629 {offsets = [0, 32], sizes = [8, 32], strides = [1, 1]} : vector<8x128xf32> to vector<8x32xf32>
    %632 = vector.extract_strided_slice %629 {offsets = [0, 64], sizes = [8, 32], strides = [1, 1]} : vector<8x128xf32> to vector<8x32xf32>
    %633 = vector.extract_strided_slice %629 {offsets = [0, 96], sizes = [8, 32], strides = [1, 1]} : vector<8x128xf32> to vector<8x32xf32>
    %634 = vector.shape_cast %630 : vector<8x32xf32> to vector<1x8x32xf32>
    %635 = vector.shape_cast %631 : vector<8x32xf32> to vector<1x8x32xf32>
    %636 = vector.shape_cast %632 : vector<8x32xf32> to vector<1x8x32xf32>
    %637 = vector.shape_cast %633 : vector<8x32xf32> to vector<1x8x32xf32>
    %638 = tpu.concatenate %634, %635, %636, %637 in 0 : vector<1x8x32xf32>, vector<1x8x32xf32>, vector<1x8x32xf32>, vector<1x8x32xf32> -> vector<4x8x32xf32>
    %639 = arith.truncf %638 : vector<4x8x32xf32> to vector<4x8x32xbf16>
    %cst_151 = arith.constant dense<0.000000e+00> : vector<4x16x8xf32>
    %640 = tpu.matmul %595, %628, %cst_151 {dimension_numbers = #tpu.dot_dimension_numbers<[2], [2], [1], [1], [0, 0, 0, 1, 1, 1], [0], [0]>} : vector<4x16x32xbf16>, vector<4x8x32xbf16>, vector<4x16x8xf32> -> vector<4x16x8xf32>
    %cst_152 = arith.constant dense<0.000000e+00> : vector<4x16x16xf32>
    %641 = tpu.matmul %595, %606, %cst_152 {dimension_numbers = #tpu.dot_dimension_numbers<[2], [2], [1], [1], [0, 0, 0, 1, 1, 1], [0], [0]>} : vector<4x16x32xbf16>, vector<4x16x32xbf16>, vector<4x16x16xf32> -> vector<4x16x16xf32>
    %cst_153 = arith.constant dense<0xFF800000> : vector<4x16xf32>
    %642 = vector.multi_reduction <maximumf>, %640, %cst_153 [2] : vector<4x16x8xf32> to vector<4x16xf32>
    %643 = vector.shape_cast %642 : vector<4x16xf32> to vector<4x16x1xf32>
    %cst_154 = arith.constant dense<0xFF800000> : vector<4x16xf32>
    %644 = vector.multi_reduction <maximumf>, %641, %cst_154 [2] : vector<4x16x16xf32> to vector<4x16xf32>
    %645 = vector.shape_cast %644 : vector<4x16xf32> to vector<4x16x1xf32>
    %646 = arith.maximumf %643, %645 : vector<4x16x1xf32>
    %647 = vector.broadcast %646 : vector<4x16x1xf32> to vector<4x16x8xf32>
    %648 = arith.subf %640, %647 : vector<4x16x8xf32>
    %649 = math.exp %648 : vector<4x16x8xf32>
    %650 = vector.broadcast %646 : vector<4x16x1xf32> to vector<4x16x16xf32>
    %651 = arith.subf %641, %650 : vector<4x16x16xf32>
    %652 = math.exp %651 : vector<4x16x16xf32>
    %cst_155 = arith.constant dense<0.000000e+00> : vector<4x16xf32>
    %653 = vector.multi_reduction <add>, %649, %cst_155 [2] : vector<4x16x8xf32> to vector<4x16xf32>
    %654 = vector.shape_cast %653 : vector<4x16xf32> to vector<4x16x1xf32>
    %cst_156 = arith.constant dense<0.000000e+00> : vector<4x16xf32>
    %655 = vector.multi_reduction <add>, %652, %cst_156 [2] : vector<4x16x16xf32> to vector<4x16xf32>
    %656 = vector.shape_cast %655 : vector<4x16xf32> to vector<4x16x1xf32>
    %657 = arith.addf %654, %656 : vector<4x16x1xf32>
    %658 = tpu.reciprocal %657 {approx = true} : vector<4x16x1xf32> -> vector<4x16x1xf32>
    %659 = arith.truncf %649 : vector<4x16x8xf32> to vector<4x16x8xbf16>
    %cst_157 = arith.constant dense<0.000000e+00> : vector<4x16x32xf32>
    %660 = tpu.matmul %659, %639, %cst_157 {dimension_numbers = #tpu.dot_dimension_numbers<[2], [1], [1], [2], [0, 0, 0, 1, 1, 2], [0], [0]>} : vector<4x16x8xbf16>, vector<4x8x32xbf16>, vector<4x16x32xf32> -> vector<4x16x32xf32>
    %661 = arith.truncf %652 : vector<4x16x16xf32> to vector<4x16x16xbf16>
    %cst_158 = arith.constant dense<0.000000e+00> : vector<4x16x32xf32>
    %662 = tpu.matmul %661, %617, %cst_158 {dimension_numbers = #tpu.dot_dimension_numbers<[2], [1], [1], [2], [0, 0, 0, 1, 1, 2], [0], [0]>} : vector<4x16x16xbf16>, vector<4x16x32xbf16>, vector<4x16x32xf32> -> vector<4x16x32xf32>
    %663 = arith.addf %660, %662 : vector<4x16x32xf32>
    %664 = vector.broadcast %658 : vector<4x16x1xf32> to vector<4x16x32xf32>
    %665 = arith.mulf %663, %664 : vector<4x16x32xf32>
    %666 = vector.extract_strided_slice %665 {offsets = [0, 0, 0], sizes = [1, 16, 32], strides = [1, 1, 1]} : vector<4x16x32xf32> to vector<1x16x32xf32>
    %667 = vector.shape_cast %666 : vector<1x16x32xf32> to vector<16x32xf32>
    %668 = vector.extract_strided_slice %665 {offsets = [1, 0, 0], sizes = [1, 16, 32], strides = [1, 1, 1]} : vector<4x16x32xf32> to vector<1x16x32xf32>
    %669 = vector.shape_cast %668 : vector<1x16x32xf32> to vector<16x32xf32>
    %670 = vector.extract_strided_slice %665 {offsets = [2, 0, 0], sizes = [1, 16, 32], strides = [1, 1, 1]} : vector<4x16x32xf32> to vector<1x16x32xf32>
    %671 = vector.shape_cast %670 : vector<1x16x32xf32> to vector<16x32xf32>
    %672 = vector.extract_strided_slice %665 {offsets = [3, 0, 0], sizes = [1, 16, 32], strides = [1, 1, 1]} : vector<4x16x32xf32> to vector<1x16x32xf32>
    %673 = vector.shape_cast %672 : vector<1x16x32xf32> to vector<16x32xf32>
    %674 = tpu.concatenate %667, %669, %671, %673 in 1 : vector<16x32xf32>, vector<16x32xf32>, vector<16x32xf32>, vector<16x32xf32> -> vector<16x128xf32>
    %c1024 = arith.constant 1024 : index
    %c0_159 = arith.constant 0 : index
    %675 = vector.load %arg4[%c1024, %c0_159] : memref<2176x128xbf16, #tpu.memory_space<vmem>>, vector<128x128xbf16>
    %676 = arith.truncf %674 : vector<16x128xf32> to vector<16x128xbf16>
    %cst_160 = arith.constant dense<0.000000e+00> : vector<16x128xf32>
    %677 = tpu.matmul %676, %675, %cst_160 {dimension_numbers = #tpu.dot_dimension_numbers<[1], [0], [0], [1], [0, 0, 1, 1], [], []>} : vector<16x128xbf16>, vector<128x128xbf16>, vector<16x128xf32> -> vector<16x128xf32>
    %cst_161 = arith.constant 1.000000e+00 : f32
    %678 = vector.broadcast %cst_161 : f32 to vector<16x128xf32>
    %679 = arith.mulf %678, %677 : vector<16x128xf32>
    %680 = arith.addf %530, %679 : vector<16x128xf32>
    %c41 = arith.constant 41 : index
    %c0_162 = arith.constant 0 : index
    %681 = vector.load %arg3[%c41, %c0_162] : memref<48x256xf32, #tpu.memory_space<vmem>>, vector<1x128xf32>
    %c42 = arith.constant 42 : index
    %c0_163 = arith.constant 0 : index
    %682 = vector.load %arg3[%c42, %c0_163] : memref<48x256xf32, #tpu.memory_space<vmem>>, vector<1x128xf32>
    %cst_164 = arith.constant dense<0.000000e+00> : vector<16xf32>
    %683 = vector.multi_reduction <add>, %680, %cst_164 [1] : vector<16x128xf32> to vector<16xf32>
    %684 = vector.shape_cast %683 : vector<16xf32> to vector<16x1xf32>
    %cst_165 = arith.constant 1.280000e+02 : f32
    %685 = vector.broadcast %cst_165 : f32 to vector<16x1xf32>
    %686 = arith.divf %684, %685 : vector<16x1xf32>
    %687 = vector.broadcast %686 : vector<16x1xf32> to vector<16x128xf32>
    %688 = arith.subf %680, %687 : vector<16x128xf32>
    %689 = arith.mulf %688, %688 : vector<16x128xf32>
    %cst_166 = arith.constant dense<0.000000e+00> : vector<16xf32>
    %690 = vector.multi_reduction <add>, %689, %cst_166 [1] : vector<16x128xf32> to vector<16xf32>
    %691 = vector.shape_cast %690 : vector<16xf32> to vector<16x1xf32>
    %cst_167 = arith.constant 1.280000e+02 : f32
    %692 = vector.broadcast %cst_167 : f32 to vector<16x1xf32>
    %693 = arith.divf %691, %692 : vector<16x1xf32>
    %694 = vector.broadcast %686 : vector<16x1xf32> to vector<16x128xf32>
    %695 = arith.subf %680, %694 : vector<16x128xf32>
    %cst_168 = arith.constant 9.99999974E-6 : f32
    %696 = vector.broadcast %cst_168 : f32 to vector<16x1xf32>
    %697 = arith.addf %693, %696 : vector<16x1xf32>
    %698 = math.rsqrt %697 : vector<16x1xf32>
    %699 = vector.broadcast %698 : vector<16x1xf32> to vector<16x128xf32>
    %700 = arith.mulf %695, %699 : vector<16x128xf32>
    %701 = vector.broadcast %681 : vector<1x128xf32> to vector<16x128xf32>
    %702 = arith.mulf %700, %701 : vector<16x128xf32>
    %703 = vector.broadcast %682 : vector<1x128xf32> to vector<16x128xf32>
    %704 = arith.addf %702, %703 : vector<16x128xf32>
    %c1 = arith.constant 1 : index
    %c0_169 = arith.constant 0 : index
    %c0_170 = arith.constant 0 : index
    %705 = vector.load %arg6[%c1, %c0_169, %c0_170] : memref<2x128x512xbf16, #tpu.memory_space<vmem>>, vector<1x128x512xbf16>
    %706 = vector.shape_cast %705 : vector<1x128x512xbf16> to vector<128x512xbf16>
    %707 = arith.truncf %704 : vector<16x128xf32> to vector<16x128xbf16>
    %cst_171 = arith.constant dense<0.000000e+00> : vector<16x512xf32>
    %708 = tpu.matmul %707, %706, %cst_171 {dimension_numbers = #tpu.dot_dimension_numbers<[1], [0], [0], [1], [0, 0, 1, 1], [], []>} : vector<16x128xbf16>, vector<128x512xbf16>, vector<16x512xf32> -> vector<16x512xf32>
    %cst_172 = arith.constant 5.000000e-01 : f32
    %709 = vector.broadcast %cst_172 : f32 to vector<16x512xf32>
    %710 = arith.mulf %709, %708 : vector<16x512xf32>
    %cst_173 = arith.constant 0.707106769 : f32
    %711 = vector.broadcast %cst_173 : f32 to vector<16x512xf32>
    %712 = arith.mulf %708, %711 : vector<16x512xf32>
    %713 = math.erf %712 : vector<16x512xf32>
    %cst_174 = arith.constant 1.000000e+00 : f32
    %714 = vector.broadcast %cst_174 : f32 to vector<16x512xf32>
    %715 = arith.addf %714, %713 : vector<16x512xf32>
    %716 = arith.mulf %710, %715 : vector<16x512xf32>
    %c1664 = arith.constant 1664 : index
    %c0_175 = arith.constant 0 : index
    %717 = vector.load %arg4[%c1664, %c0_175] : memref<2176x128xbf16, #tpu.memory_space<vmem>>, vector<512x128xbf16>
    %718 = arith.truncf %716 : vector<16x512xf32> to vector<16x512xbf16>
    %cst_176 = arith.constant dense<0.000000e+00> : vector<16x128xf32>
    %719 = tpu.matmul %718, %717, %cst_176 {dimension_numbers = #tpu.dot_dimension_numbers<[1], [0], [0], [1], [0, 0, 1, 1], [], []>} : vector<16x512xbf16>, vector<512x128xbf16>, vector<16x128xf32> -> vector<16x128xf32>
    %720 = arith.addf %680, %719 : vector<16x128xf32>
    %c512_177 = arith.constant 512 : index
    %c0_178 = arith.constant 0 : index
    %721 = vector.load %arg4[%c512_177, %c0_178] : memref<2176x128xbf16, #tpu.memory_space<vmem>>, vector<128x128xbf16>
    %722 = arith.truncf %720 : vector<16x128xf32> to vector<16x128xbf16>
    %cst_179 = arith.constant dense<0.000000e+00> : vector<16x128xf32>
    %723 = tpu.matmul %722, %721, %cst_179 {dimension_numbers = #tpu.dot_dimension_numbers<[1], [0], [0], [1], [0, 0, 1, 1], [], []>} : vector<16x128xbf16>, vector<128x128xbf16>, vector<16x128xf32> -> vector<16x128xf32>
    %c20 = arith.constant 20 : index
    %c0_180 = arith.constant 0 : index
    %724 = vector.load %arg3[%c20, %c0_180] : memref<48x256xf32, #tpu.memory_space<vmem>>, vector<1x128xf32>
    %725 = vector.broadcast %724 : vector<1x128xf32> to vector<16x128xf32>
    %726 = arith.addf %723, %725 : vector<16x128xf32>
    %c21 = arith.constant 21 : index
    %c0_181 = arith.constant 0 : index
    %727 = vector.load %arg3[%c21, %c0_181] : memref<48x256xf32, #tpu.memory_space<vmem>>, vector<1x128xf32>
    %c22 = arith.constant 22 : index
    %c0_182 = arith.constant 0 : index
    %728 = vector.load %arg3[%c22, %c0_182] : memref<48x256xf32, #tpu.memory_space<vmem>>, vector<1x128xf32>
    %cst_183 = arith.constant dense<0.000000e+00> : vector<16xf32>
    %729 = vector.multi_reduction <add>, %726, %cst_183 [1] : vector<16x128xf32> to vector<16xf32>
    %730 = vector.shape_cast %729 : vector<16xf32> to vector<16x1xf32>
    %cst_184 = arith.constant 1.280000e+02 : f32
    %731 = vector.broadcast %cst_184 : f32 to vector<16x1xf32>
    %732 = arith.divf %730, %731 : vector<16x1xf32>
    %733 = vector.broadcast %732 : vector<16x1xf32> to vector<16x128xf32>
    %734 = arith.subf %726, %733 : vector<16x128xf32>
    %735 = arith.mulf %734, %734 : vector<16x128xf32>
    %cst_185 = arith.constant dense<0.000000e+00> : vector<16xf32>
    %736 = vector.multi_reduction <add>, %735, %cst_185 [1] : vector<16x128xf32> to vector<16xf32>
    %737 = vector.shape_cast %736 : vector<16xf32> to vector<16x1xf32>
    %cst_186 = arith.constant 1.280000e+02 : f32
    %738 = vector.broadcast %cst_186 : f32 to vector<16x1xf32>
    %739 = arith.divf %737, %738 : vector<16x1xf32>
    %740 = vector.broadcast %732 : vector<16x1xf32> to vector<16x128xf32>
    %741 = arith.subf %726, %740 : vector<16x128xf32>
    %cst_187 = arith.constant 9.99999974E-6 : f32
    %742 = vector.broadcast %cst_187 : f32 to vector<16x1xf32>
    %743 = arith.addf %739, %742 : vector<16x1xf32>
    %744 = math.rsqrt %743 : vector<16x1xf32>
    %745 = vector.broadcast %744 : vector<16x1xf32> to vector<16x128xf32>
    %746 = arith.mulf %741, %745 : vector<16x128xf32>
    %747 = vector.broadcast %727 : vector<1x128xf32> to vector<16x128xf32>
    %748 = arith.mulf %746, %747 : vector<16x128xf32>
    %749 = vector.broadcast %728 : vector<1x128xf32> to vector<16x128xf32>
    %750 = arith.addf %748, %749 : vector<16x128xf32>
    %c0_188 = arith.constant 0 : index
    %c0_189 = arith.constant 0 : index
    %c0_190 = arith.constant 0 : index
    %751 = vector.load %arg7[%c0_188, %c0_189, %c0_190] : memref<1x16x128xf32, #tpu.memory_space<vmem>>, vector<1x16x128xf32>
    %752 = vector.shape_cast %751 : vector<1x16x128xf32> to vector<16x128xf32>
    %753 = vector.shape_cast %750 : vector<16x128xf32> to vector<1x16x128xf32>
    tpu.vector_store %arg7[%c0_188, %c0_189, %c0_190], %753 {strides = array<i32>} : memref<1x16x128xf32, #tpu.memory_space<vmem>>, vector<1x16x128xf32>,
    return
  }
  func.func @transform_0(%arg0: i32) -> (i32, i32, i32) {
    %c0_i32 = arith.constant 0 : i32
    %c0_i32_0 = arith.constant 0 : i32
    %c0_i32_1 = arith.constant 0 : i32
    return %arg0, %c0_i32, %c0_i32_0 : i32, i32, i32
  }
  func.func @transform_1(%arg0: i32) -> (i32, i32, i32) {
    %c0_i32 = arith.constant 0 : i32
    %c0_i32_0 = arith.constant 0 : i32
    %c0_i32_1 = arith.constant 0 : i32
    return %arg0, %c0_i32, %c0_i32_0 : i32, i32, i32
  }
  func.func @transform_2(%arg0: i32) -> (i32, i32) {
    %c0_i32 = arith.constant 0 : i32
    %c0_i32_0 = arith.constant 0 : i32
    %c0_i32_1 = arith.constant 0 : i32
    return %c0_i32, %c0_i32_0 : i32, i32
  }
  func.func @transform_3(%arg0: i32) -> (i32, i32) {
    %c0_i32 = arith.constant 0 : i32
    %c0_i32_0 = arith.constant 0 : i32
    %c0_i32_1 = arith.constant 0 : i32
    return %c0_i32, %c0_i32_0 : i32, i32
  }
  func.func @transform_4(%arg0: i32) -> (i32, i32) {
    %c0_i32 = arith.constant 0 : i32
    %c0_i32_0 = arith.constant 0 : i32
    %c0_i32_1 = arith.constant 0 : i32
    return %c0_i32, %c0_i32_0 : i32, i32
  }
  func.func @transform_5(%arg0: i32) -> (i32, i32, i32) {
    %c0_i32 = arith.constant 0 : i32
    %c0_i32_0 = arith.constant 0 : i32
    %c0_i32_1 = arith.constant 0 : i32
    %c0_i32_2 = arith.constant 0 : i32
    return %c0_i32, %c0_i32_0, %c0_i32_1 : i32, i32, i32
  }
  func.func @transform_6(%arg0: i32) -> (i32, i32, i32) {
    %c0_i32 = arith.constant 0 : i32
    %c0_i32_0 = arith.constant 0 : i32
    %c0_i32_1 = arith.constant 0 : i32
    return %arg0, %c0_i32, %c0_i32_0 : i32, i32, i32
  }
}

</mosaic_0001>

<bundles_post_ra>
// kernel: tpu_custom_call.1
= control target key start
LH: loop header
LB: loop body
LE: loop exit
PB: predicated region body
PF: predicated region fallthrough
CT: control target
= control target key end

     0   :  { %s13311_s0 = inlined_call_operand.hbm [shape: f32[2,8,128], index: 0, kind: input, shape index: {}]   ;;  %s13312_s1 = inlined_call_operand.hbm [shape: f32[2,8,128], index: 1, kind: input, shape index: {}]   ;;  %s13313_s2 = inlined_call_operand.hbm [shape: f32[48,256], index: 2, kind: input, shape index: {}]   ;;  %s13314_s3 = inlined_call_operand.hbm [shape: bf16[2176,128], index: 3, kind: input, shape index: {}]   ;;  %s13315_s4 = inlined_call_operand.hbm [shape: bf16[640,384], index: 4, kind: input, shape index: {}]   ;;  %s13316_s5 = inlined_call_operand.hbm [shape: bf16[2,128,512], index: 5, kind: input, shape index: {}]   ;;  %s13317_s6 = inlined_call_operand.hbm [shape: f32[2,16,128], index: 6, kind: output, shape index: {}]  }
   0x1   :  { %13322 = sst [smem:[#allocation20_spill]] %s13313_s2 }
   0x2   :  { %13323 = sst [smem:[#allocation21_spill]] %s13314_s3 }
   0x3   :  { %13324 = sst [smem:[#allocation22_spill]] %s13315_s4 }
   0x4   :  { %11 = vsyncpa [#allocation3], 0 }
   0x5   :  { %13 = vsyncpa [#allocation3 + $0x1], 0 }
   0x6   :  { %14 = vsyncpa [#allocation6], 0 }
   0x7   :  { %16 = vsyncpa [#allocation6 + $0x1], 0 }
   0x8   :  { %17 = vsyncpa [#allocation9], 0 }
   0x9   :  { %18 = vsyncpa [#allocation12], 0 }
   0xa   :  { %19 = vsyncpa [#allocation4], 0 }
   0xb   :  { %21 = vsyncpa [#allocation4 + $0x1], 0  ;;  %s11745_s21 = smov 0   ;;  %s11747_s22 = smov 0  }
   0xc   :  { %s11749_s23 = smov 0   ;;  %s11751_s24 = smov 0  }
   0xd LB: > { %s11689_s25 = smov [#allocation7]   ;;  %s11766_s27 = sadd.s32 4294967295, %s11687_s24   ;;  %s11687_s24 = sphi %s11751_s24, %s13351_s24   ;;  %s11683_s23 = sphi %s11749_s23, %s13350_s23   ;;  %s11679_s22 = sphi %s11747_s22, %s13349_s22   ;;  %s11675_s21 = sphi %s11745_s21, %s13348_s21  }
   0xe   : > { %s206_s26 = sshll.u32 %s11689_s25, 4  ;;  %p8874_p0 = scmp.ge.s32.totalorder %s11687_s24, 1  ;;  %s11771_s26 = int_to_ptr.vmem [resolvable:$true] %s206_s26 }
   0xf   : > { %p13318_p1 = scmp.eq.s32.totalorder %s11766_s27, 0  ;;  %p194_p2 = scmp.lt.s32.totalorder %s11687_s24, 3 }
  0x10   : > { %s11690_s29 = smov [#allocation8]   ;;  %s11691_s8 = smov [#allocation10]  }
  0x11   : > { %p11773_p3 = pnand %p8874_p0, %p194_p2  ;;  %s219_s30 = sshll.u32 %s11690_s29, 4  ;;  %s11786_s30 = int_to_ptr.vmem [resolvable:$true] %s219_s30 }
  0x12   : > { %s11788_s9 = sshll.u32 %s11691_s8, 4  ;;  %s13327_s2 = sld [smem:[#allocation20_spill]]  ;;  %s233_s9 = int_to_ptr.vmem [resolvable:$true] %s11788_s9 }
  0x13   : > { %s13325_s28 = scalar_select %p11773_p3, 1, 0 }
  0x14   : > { %p10365_p5 = pneg %p11773_p3 }
  0x16   : > { %p11782_p6 = pnand %p10365_p5, %p13318_p1 }
  0x18   : > { %s11433_s12 = scalar_lea.hbm %s13327_s2, 1536  ;;  %p11798_p8 = pneg %p11782_p6 }
  0x19   : > { %p11434_p7 = scmp.ne.s32.totalorder %s13327_s2, %s11433_s12  ;;  %p11440_p11 = scmp.lt.u32.totalorder %s11433_s12, %s13327_s2 }
  0x1b   : > { %p11436_p9 = pnand %p11798_p8, %p11434_p7 }
  0x1d   : > { %p11437_p10 = pneg %p11436_p9 }
  0x1f   : > { %p11442_p12 = pnand %p11440_p11, %p11437_p10 }
  0x21   : > { %11445 = shalt.err (!%p11442_p12)
}
  0x22   : > { %s11446_s18 = scalar_lea.vmem %s11771_s26, 1536  ;;  %p11454_p5 = scmp.lt.s32.totalorder %s11771_s26, %s11771_s26 }
  0x23   : > { %p11447_p13 = scmp.ne.s32.totalorder %s11771_s26, %s11446_s18  ;;  %p11455_p4 = scmp.lt.s32.totalorder %s11446_s18, %s11446_s18 }
  0x25   : > { %p11449_p0 = pnand %p11447_p13, %p11798_p8  ;;  %p11456_p7 = por %p11455_p4, %p11454_p5 }
  0x27   : > { %p11450_p2 = pneg %p11449_p0 }
  0x29   : > { %p11457_p9 = pnand %p11456_p7, %p11450_p2 }
  0x2b   : > { %11460 = shalt.err (!%p11457_p9)
}
  0x2c   : > { %s11692_s19 = smov 256   ;;  %s11693_s20 = smov 16  }
  0x2d   : > { %10368 = dma.hbm_to_vmem [thread:$0]  (!%p11782_p6), %s13327_s2, 1536, %s11771_s26, [#allocation6], %s11692_s19, %s11692_s19, %s11693_s20  }
  0x2e   : > { %s13329_s3 = sld [smem:[#allocation21_spill]] }
  0x34   : > { %s11461_s11 = scalar_lea.hbm %s13329_s3, 17408 }
  0x35   : > { %p11462_p4 = scmp.ne.s32.totalorder %s13329_s3, %s11461_s11  ;;  %p11468_p12 = scmp.lt.u32.totalorder %s11461_s11, %s13329_s3 }
  0x37   : > { %p11464_p10 = pnand %p11462_p4, %p11798_p8 }
  0x39   : > { %p11465_p11 = pneg %p11464_p10 }
  0x3b   : > { %p11470_p13 = pnand %p11468_p12, %p11465_p11 }
  0x3d   : > { %11473 = shalt.err (!%p11470_p13)
}
  0x3e   : > { %s11474_s26 = scalar_lea.vmem %s11786_s30, 17408  ;;  %p11482_p7 = scmp.lt.s32.totalorder %s11786_s30, %s11786_s30 }
  0x3f   : > { %p11475_p0 = scmp.ne.s32.totalorder %s11786_s30, %s11474_s26  ;;  %p11483_p9 = scmp.lt.s32.totalorder %s11474_s26, %s11474_s26 }
  0x41   : > { %p11477_p2 = pnand %p11475_p0, %p11798_p8  ;;  %p11484_p4 = por %p11483_p9, %p11482_p7 }
  0x43   : > { %p11478_p5 = pneg %p11477_p2 }
  0x45   : > { %p11485_p10 = pnand %p11484_p4, %p11478_p5 }
  0x47   : > { %11488 = shalt.err (!%p11485_p10)
}
  0x48   : > { %s11694_s17 = smov 64   ;;  %s11695_s18 = smov 4  }
  0x49   : > { %10371 = dma.hbm_to_vmem [thread:$0]  (!%p11782_p6), %s13329_s3, 17408, %s11786_s30, [#allocation9], %s11694_s17, %s11694_s17, %s11695_s18  }
  0x4a   : > { %s13330_s4 = sld [smem:[#allocation22_spill]] }
  0x50   : > { %s11489_s11 = scalar_lea.hbm %s13330_s4, 15360 }
  0x51   : > { %p11490_p11 = scmp.ne.s32.totalorder %s13330_s4, %s11489_s11  ;;  %p11496_p0 = scmp.lt.u32.totalorder %s11489_s11, %s13330_s4 }
  0x53   : > { %p11492_p12 = pnand %p11490_p11, %p11798_p8 }
  0x55   : > { %p11493_p13 = pneg %p11492_p12 }
  0x57   : > { %p11498_p2 = pnand %p11496_p0, %p11493_p13 }
  0x59   : > { %11501 = shalt.err (!%p11498_p2)
}
  0x5a   : > { %s11502_s26 = scalar_lea.vmem %s233_s9, 15360  ;;  %p11510_p4 = scmp.lt.s32.totalorder %s233_s9, %s233_s9 }
  0x5b   : > { %p11503_p5 = scmp.ne.s32.totalorder %s233_s9, %s11502_s26  ;;  %p11511_p10 = scmp.lt.s32.totalorder %s11502_s26, %s11502_s26 }
  0x5d   : > { %p11505_p7 = pnand %p11503_p5, %p11798_p8  ;;  %p11512_p1 = por %p11511_p10, %p11510_p4 }
  0x5f   : > { %p11506_p9 = pneg %p11505_p7 }
  0x61   : > { %p11513_p3 = pnand %p11512_p1, %p11506_p9 }
  0x63   : > { %11516 = shalt.err (!%p11513_p3)
}
  0x64   : > { %s11696_s30 = smov 192   ;;  %s11697_s17 = smov 12  }
  0x65   : > { %10374 = dma.hbm_to_vmem [thread:$0]  (!%p11782_p6), %s13330_s4, 15360, %s233_s9, [#allocation9], %s11696_s30, %s11696_s30, %s11697_s17  }
  0x66   : > { %s11698_s29 = smov [#allocation11]   ;;  %s11517_s12 = scalar_lea.hbm %s13316_s5, 8192 }
  0x67   : > { %s245_s8 = sshll.u32 %s11698_s29, 4  ;;  %p11518_p1 = scmp.ne.s32.totalorder %s13316_s5, %s11517_s12  ;;  %s246_s8 = int_to_ptr.vmem [resolvable:$true] %s245_s8 }
  0x68   : > { %p11524_p12 = scmp.lt.u32.totalorder %s11517_s12, %s13316_s5 }
  0x69   : > { %p11520_p3 = pnand %p11518_p1, %p11798_p8 }
  0x6b   : > { %p11521_p11 = pneg %p11520_p3 }
  0x6d   : > { %p11526_p13 = pnand %p11524_p12, %p11521_p11 }
  0x6f   : > { %11529 = shalt.err (!%p11526_p13)
}
  0x70   : > { %s11530_s9 = scalar_lea.vmem %s246_s8, 8192  ;;  %p11538_p7 = scmp.lt.s32.totalorder %s246_s8, %s246_s8 }
  0x71   : > { %p11531_p0 = scmp.ne.s32.totalorder %s246_s8, %s11530_s9  ;;  %p11539_p9 = scmp.lt.s32.totalorder %s11530_s9, %s11530_s9 }
  0x73   : > { %p11533_p2 = pnand %p11531_p0, %p11798_p8  ;;  %p11540_p4 = por %p11539_p9, %p11538_p7 }
  0x75   : > { %p11534_p5 = pneg %p11533_p2 }
  0x77   : > { %p11541_p10 = pnand %p11540_p4, %p11534_p5 }
  0x79   : > { %11544 = shalt.err (!%p11541_p10)
}
  0x7a   : > { %10377 = dma.hbm_to_vmem [thread:$0]  (!%p11782_p6), %s13316_s5, 8192, %s246_s8, [#allocation12], %s11692_s19, %s11692_s19, %s11693_s20  }
  0x7b   : > { %s8873_s7 = sadd.s32 4294967294, %s11687_s24   ;;  %s11887_s15 = sadd.s32 1, %s11687_s24  }
  0x7c   : > { %s31_s18 = ssub.s32 %s11687_s24, %s11887_s15  ;;  %s34_s25 = sadd.s32 1, %s11683_s23 }
  0x7d   : > { %p32_p8 = scmp.eq.s32.totalorder %s31_s18, 0  ;;  %p41_p1 = scmp.ne.s32.totalorder %s11683_s23, %s11679_s22 }
  0x7e   : > { %p42_p3 = scmp.eq.s32.totalorder %s11687_s24, 0  ;;  %p47_p11 = scmp.ne.s32.totalorder %s11679_s22, %s11675_s21 }
  0x7f   : > { %s11898_s29 = scalar_select %p32_p8, %s11683_s23, %s34_s25  }
  0x80   : > { %p11900_p12 = por %p42_p3, %p41_p1  ;;  %p13332_p13 = scmp.eq.s32.totalorder %s11766_s27, 0 }
  0x81   : > { %p181_p0 = scmp.eq.s32.totalorder %s11766_s27, 1  ;;  %p187_p2 = scmp.eq.s32.totalorder %s8873_s7, 1 }
  0x82   : > { %p11906_p6 = por %p13332_p13, %p47_p11  ;;  %p10393_p5 = scmp.lt.s32.totalorder %s11687_s24, 2 }
  0x83   : > { %s259_s20 = sand.u32 1, %s11683_s23   ;;  %p11913_p7 = por %p181_p0, %p41_p1 }
  0x84   : > { %s13333_s19 = scalar_select %p11906_p6, 1, 0 }
  0x85   : > { %s13334_s8 = scalar_select %p11913_p7, 1, 0 }
  0x86   : > { %p11917_p9 = por %p187_p2, %p47_p11  ;;  %s11921_s12 = sshll.u32 %s259_s20, 3 }
  0x87   : > { %s8881_s13 = sshll.u32 %s11687_s24, 7  ;;  %s263_s9 = scalar_lea.vmem [#allocation2], %s11921_s12 }
  0x88   : > { %s13335_s11 = scalar_select %p11917_p9, 1, 0 }
  0x89   : > { %s11927_s26 = scalar_lea.hbm %s13311_s0, %s8881_s13  ;;  %s270_s30 = sshll.u32 %s263_s9, 4  ;;  %s11930_s30 = int_to_ptr.vmem [resolvable:$true] %s270_s30 }
  0x8a   : > { %p11934_p4 = pnand %p10393_p5, %p11900_p12  ;;  %s11941_s25 = scalar_lea.hbm %s13312_s1, %s8881_s13 }
  0x8b   : > { %s277_s14 = sand.u32 1, %s11687_s24   ;;  %s260_s16 = scalar_lea.sflag [#allocation3], %s259_s20 }
  0x8c   : > { %s11545_s2 = scalar_lea.hbm %s11927_s26, 128  ;;  %p11547_p8 = pneg %p11934_p4 }
  0x8d   : > { %p11546_p10 = scmp.ne.s32.totalorder %s11927_s26, %s11545_s2  ;;  %s11550_s3 = scalar_lea.hbm %s13311_s0, 256 }
  0x8e   : > { %p11551_p11 = scmp.lt.u32.totalorder %s11927_s26, %s13311_s0  ;;  %p11552_p12 = scmp.lt.u32.totalorder %s11550_s3, %s11545_s2 }
  0x8f   : > { %p11548_p1 = pnand %p11547_p8, %p11546_p10  ;;  %p11554_p0 = scmp.lt.u32.totalorder %s11545_s2, %s11927_s26 }
  0x90   : > { %p11553_p13 = por %p11552_p12, %p11551_p11 }
  0x91   : > { %p11549_p3 = pneg %p11548_p1 }
  0x92   : > { %p11555_p2 = por %p11554_p0, %p11553_p13 }
  0x94   : > { %p11556_p5 = pnand %p11555_p2, %p11549_p3 }
  0x96   : > { %11559 = shalt.err (!%p11556_p5)
}
  0x97   : > { %s11560_s20 = scalar_lea.vmem %s11930_s30, 128  ;;  %s11699_s13 = smov [#allocation2]  }
  0x98   : > { %p11561_p10 = scmp.ne.s32.totalorder %s11930_s30, %s11560_s20  ;;  %s11565_s18 = sshll.u32 %s11699_s13, 4  ;;  %s11566_s18 = int_to_ptr.vmem [resolvable:$false] %s11565_s18 }
  0x99   : > { %s11567_s4 = scalar_lea.vmem %s11566_s18, 256  ;;  %p11568_p7 = scmp.lt.s32.totalorder %s11930_s30, %s11566_s18 }
  0x9a   : > { %p11563_p1 = pnand %p11561_p10, %p11547_p8  ;;  %p11569_p11 = scmp.lt.s32.totalorder %s11567_s4, %s11560_s20 }
  0x9c   : > { %p11564_p9 = pneg %p11563_p1  ;;  %p11570_p12 = por %p11569_p11, %p11568_p7 }
  0x9e   : > { %p11571_p13 = pnand %p11570_p12, %p11564_p9 }
  0xa0   : > { %11574 = shalt.err (!%p11571_p13)
}
  0xa1   : > { %10381 = dma.hbm_to_vmem [thread:$0]  (!%p11934_p4), %s11927_s26, 128, %s11930_s30, %s260_s16  }
  0xa2   : > { %s281_s2 = scalar_lea.vmem [#allocation5], %s11921_s12  ;;  %s278_s10 = scalar_lea.sflag [#allocation6], %s277_s14 }
  0xa3   : > { %s288_s3 = sshll.u32 %s281_s2, 4  ;;  %s11575_s9 = scalar_lea.hbm %s11941_s25, 128  ;;  %s289_s3 = int_to_ptr.vmem [resolvable:$true] %s288_s3 }
  0xa4   : > { %p11576_p7 = scmp.ne.s32.totalorder %s11941_s25, %s11575_s9  ;;  %s11580_s13 = scalar_lea.hbm %s13312_s1, 256 }
  0xa5   : > { %p11581_p0 = scmp.lt.u32.totalorder %s11941_s25, %s13312_s1  ;;  %p11582_p2 = scmp.lt.u32.totalorder %s11580_s13, %s11575_s9 }
  0xa6   : > { %p11578_p9 = pnand %p11576_p7, %p11547_p8  ;;  %p11584_p10 = scmp.lt.u32.totalorder %s11575_s9, %s11941_s25 }
  0xa7   : > { %p11583_p5 = por %p11582_p2, %p11581_p0 }
  0xa8   : > { %p11579_p3 = pneg %p11578_p9 }
  0xa9   : > { %p11585_p1 = por %p11584_p10, %p11583_p5 }
  0xab   : > { %p11586_p11 = pnand %p11585_p1, %p11579_p3 }
  0xad   : > { %11589 = shalt.err (!%p11586_p11)
}
  0xae   : > { %s11590_s12 = scalar_lea.vmem %s289_s3, 128  ;;  %s11700_s26 = smov [#allocation5]  }
  0xaf   : > { %p11591_p12 = scmp.ne.s32.totalorder %s289_s3, %s11590_s12  ;;  %s11595_s30 = sshll.u32 %s11700_s26, 4  ;;  %s11596_s30 = int_to_ptr.vmem [resolvable:$false] %s11595_s30 }
  0xb0   : > { %s11597_s14 = scalar_lea.vmem %s11596_s30, 256  ;;  %p11598_p9 = scmp.lt.s32.totalorder %s289_s3, %s11596_s30 }
  0xb1   : > { %p11593_p13 = pnand %p11591_p12, %p11547_p8  ;;  %p11599_p6 = scmp.lt.s32.totalorder %s11597_s14, %s11590_s12 }
  0xb3   : > { %p11594_p7 = pneg %p11593_p13  ;;  %p11600_p0 = por %p11599_p6, %p11598_p9 }
  0xb5   : > { %p11601_p2 = pnand %p11600_p0, %p11594_p7 }
  0xb7   : > { %11604 = shalt.err (!%p11601_p2)
}
  0xb8   : > { %10384 = dma.hbm_to_vmem [thread:$0]  (!%p11934_p4), %s11941_s25, 128, %s289_s3, %s278_s10  }
  0xb9   : > { %p13337_p3 = scmp.ne.s32.totalorder %s13325_s28, 0 }
  0xba   : > { %s11994_s16 = sand.u32 (!%p13337_p3), 1, %s11679_s22   ;;  %p13338_p6 = scmp.ne.s32.totalorder (!%p13337_p3), %s13333_s19, 0 }
  0xbb   : > { %297 = sbr.rel (%p13337_p3) target bundleno = 9400 (0x24b8), region = 44  ;;  %s8885_s2 = sshll.u32 (!%p13337_p3), %s11994_s16, 3 }
  0xbc   : > { %s300_s9 = scalar_lea.sflag (!%p13337_p3), [#allocation3], %s11994_s16  ;;  %s11998_s7 = scalar_lea.vmem (!%p13337_p3), [#allocation2], %s8885_s2 }
  0xc2   : > { %11650 = dma.done.wait (%p13338_p6), %s300_s9, 128  }
  0xc3   : > { %11652 = vsyncadd (%p13338_p6), %s300_s9, 4294967168  ;;  %s308_s17 = sand.u32 1, %s11766_s27   ;;  %s12005_s25 = scalar_lea.vmem [#allocation5], %s8885_s2 }
  0xc4   : > { %s309_s28 = scalar_lea.sflag [#allocation6], %s308_s17 }
  0xc5   : > { %11654 = dma.done.wait (%p13338_p6), %s309_s28, 128  }
  0xc6   : > { %11656 = vsyncadd (%p13338_p6), %s309_s28, 4294967168  ;;  %p13339_p4 = scmp.eq.s32.totalorder %s11766_s27, 0 }
  0xc8   : > { %11658 = dma.done.wait (%p13339_p4), [#allocation6], 1536   ;;  %p13340_p8 = pmov %p13339_p4 }
  0xc9   : > { %p13341_p5 = pmov %p13339_p4 }
  0xca   : > { %11660 = vsyncadd (%p13340_p8), [#allocation6], 4294965760 }
  0xcb   : > { %11662 = dma.done.wait (%p13341_p5), [#allocation9], 32768   ;;  %p13342_p10 = pmov %p13339_p4 }
  0xcc   : > { %p13343_p1 = pmov %p13339_p4 }
  0xcd   : > { %11664 = vsyncadd (%p13342_p10), [#allocation9], 4294934528 }
  0xce   : > { %11666 = dma.done.wait (%p13343_p1), [#allocation12], 8192   ;;  %p13344_p11 = pmov %p13343_p1 }
  0xcf   : > { %v11701_v0 = vmov 0.0   ;;  %vm11702_vm0 = vmmov 0   ;;  %v10689_v1 = vld [vmem:[#allocation8] sm:$0xff]   ;;  %v10690_v2 = vld [vmem:[#allocation8 + $0x8] sm:$0xff]   ;;  %v10691_v3 = vld [vmem:[#allocation8 + $0x10] sm:$0xff]   ;;  %v11703_v23 = vmov 0  }
  0xd0   : > { %11668 = vsyncadd (%p13344_p11), [#allocation12], 4294959104  ;;  %9675 = vmatprep.subr.bf16.mxu0 %v11701_v0  ;;  %9691 = vmatprep.mubr.msk.bf16.mxu0 %vm11702_vm0, %v11701_v0  ;;  %v10697_v4 = vld [vmem:[#allocation8 + $0x40] sm:$0xff]   ;;  %v10692_v5 = vld [vmem:[#allocation8 + $0x18] sm:$0xff]   ;;  %vm1443_vm1 = vcmask 261120   ;;  %s11704_s19 = smov 96  }
  0xd1   : > { %9695 = vmatprep.subr.bf16.mxu1 %v11701_v0  ;;  %9711 = vmatprep.mubr.msk.bf16.mxu1 %vm11702_vm0, %v11701_v0  ;;  %v10698_v6 = vld [vmem:[#allocation8 + $0x48] sm:$0xff]   ;;  %v10693_v7 = vld [vmem:[#allocation8 + $0x20] sm:$0xff]   ;;  %v10699_v8 = vld [vmem:[#allocation8 + $0x50] sm:$0xff]   ;;  %s11705_s3 = smov 64   ;;  %s11706_s10 = smov 32   ;;  %vm1833_vm2 = vcmask 130048  }
  0xd2   : > { %9676 = vmatpush3.bf16.msra.mxu0 %v10689_v1  ;;  %9696 = vmatpush3.bf16.msra.mxu1 %v10697_v4  ;;  %v10694_v9 = vld [vmem:[#allocation8 + $0x28] sm:$0xff]   ;;  %v10695_v10 = vld [vmem:[#allocation8 + $0x30] sm:$0xff]   ;;  %v10696_v11 = vld [vmem:[#allocation8 + $0x38] sm:$0xff]   ;;  %vm1808_vm3 = vcmask 64512   ;;  %vm2165_vm4 = vcmask 1043456   ;;  %vm2385_vm5 = vcmask 523264  }
  0xd3   : > { %9677 = vmatprep.subr.bf16.mxu0 %v11701_v0  ;;  %9697 = vmatprep.subr.bf16.mxu1 %v11701_v0  ;;  %v363_v12 = vld [vmem:[%s11998_s7] sm:$0xff]  ;;  %v10700_v14 = vld [vmem:[#allocation8 + $0x58] sm:$0xff]   ;;  %v10703_v17 = vld [vmem:[#allocation8 + $0x70] sm:$0xff]   ;;  %vm2388_vm6 = vcmask 785408   ;;  %s8891_s20 = sshll.u32 %s11994_s16, 4  ;;  %s9337_s13 = sshll.u32 %s11766_s27, 8 }
  0xd4   : > { %v381_v13 = vpack.c.bf16 %v363_v12, %v363_v12  ;;  %v10701_v15 = vld [vmem:[#allocation8 + $0x60] sm:$0xff]   ;;  %v10702_v16 = vld [vmem:[#allocation8 + $0x68] sm:$0xff]   ;;  %v10704_v18 = vld [vmem:[#allocation8 + $0x78] sm:$0xff]   ;;  %s361_s18 = scalar_lea.vmem [#allocation13], %s8891_s20  ;;  %s13265_s30 = scalar_lea.hbm %s13317_s6, %s9337_s13 }
  0xd5   : > { %v12044_v19 = vld [vmem:[#allocation7] sm:$0xff]  ;;  %v10710_v22 = vld [vmem:[#allocation10 + $0x31c] ss:$12 sps:$4 sm:$0xff]   ;;  %v915_v24 = vld [vmem:[#allocation7 + $0x10] sm:$0xff]  ;;  %s8739_s4 = sshll.u32 %s361_s18, 4  ;;  %s8726_s14 = scalar_lea.sflag [#allocation4], %s11994_s16  ;;  %s13267_s4 = int_to_ptr.vmem [resolvable:$true] %s8739_s4 }
  0xd6   : > { %9678 = vmatpush3.bf16.msra.mxu0 %v10690_v2  ;;  %9698 = vmatpush3.bf16.msra.mxu1 %v10698_v6  ;;  %v10705_v20 = vld [vmem:[#allocation10 + $0x300] ss:$12 sps:$4 sm:$0xff]   ;;  %v10707_v21 = vld [vmem:[#allocation10 + $0x304] ss:$12 sps:$4 sm:$0xff]   ;;  %v10714_v29 = vld [vmem:[#allocation10 + $0x348] ss:$12 sps:$4 sm:$0xff]  }
  0xd7   : > { %9679 = vmatprep.subr.bf16.mxu0 %v11701_v0  ;;  %9699 = vmatprep.subr.bf16.mxu1 %v11701_v0  ;;  %v10708_v25 = vld [vmem:[#allocation10 + $0x318] ss:$12 sps:$4 sm:$0xff]   ;;  %v10713_v26 = vld [vmem:[#allocation10 + $0x334] ss:$12 sps:$4 sm:$0xff]   ;;  %v10711_v27 = vld [vmem:[#allocation10 + $0x330] ss:$12 sps:$4 sm:$0xff]  }
  0xd8   : > { %934 = vadd.xlane.f32.xlu0 %v12044_v19  ;;  %v10716_v28 = vld [vmem:[#allocation10 + $0x34c] ss:$12 sps:$4 sm:$0xff]   ;;  %v10719_v30 = vld [vmem:[#allocation10 + $0x364] ss:$12 sps:$4 sm:$0xff]   ;;  %v10722_v32 = vld [vmem:[#allocation10 + $0x37c] ss:$12 sps:$4 sm:$0xff]  }
  0xd9   : > { %v10717_v31 = vld [vmem:[#allocation10 + $0x360] ss:$12 sps:$4 sm:$0xff]   ;;  %v10720_v33 = vld [vmem:[#allocation10 + $0x378] ss:$12 sps:$4 sm:$0xff]   ;;  %v10723_v35 = vld [vmem:[#allocation10 + $0x390] ss:$12 sps:$4 sm:$0xff]  }
  0xda   : > { %9680 = vmatpush3.bf16.msra.mxu0 %v10691_v3  ;;  %9700 = vmatpush3.bf16.msra.mxu1 %v10699_v8  ;;  %v10725_v34 = vld [vmem:[#allocation10 + $0x394] ss:$12 sps:$4 sm:$0xff]   ;;  %v10728_v36 = vld [vmem:[#allocation10 + $0x3ac] ss:$12 sps:$4 sm:$0xff]   ;;  %v10747_v63 = vld [vmem:[#allocation10 + $0x4] ss:$12 sps:$4 sm:$0xff]  }
  0xdb   : > { %9681 = vmatprep.subr.bf16.mxu0 %v11701_v0  ;;  %9701 = vmatprep.subr.bf16.mxu1 %v11701_v0  ;;  %v10726_v37 = vld [vmem:[#allocation10 + $0x3a8] ss:$12 sps:$4 sm:$0xff]   ;;  %v382_v40 = vld [vmem:[#allocation7 + $0x20] ss:$0 sm:$0xff]  ;;  %v10735_v3 = vld [vmem:[#allocation8 + $0xd8] sm:$0xff]   ;;  %s11605_s2 = scalar_lea.vmem %s13267_s4, 256 }
  0xdc   : > { %936 = vadd.xlane.f32.xlu0 %v915_v24  ;;  %v364_v38 = vld [vmem:[%s12005_s25] sm:$0xff]  ;;  %v10729_v57 = vld [vmem:[#allocation8 + $0xc0] sm:$0xff]   ;;  %v10731_v59 = vld [vmem:[#allocation8 + $0xc8] sm:$0xff]   ;;  %p11606_p12 = scmp.ne.s32.totalorder %s13267_s4, %s11605_s2  ;;  %p13345_p13 = scmp.ne.s32.totalorder %s13334_s8, 0 }
  0xdd   : > { %v598_v39 = vpack.c.bf16 %v364_v38, %v364_v38  ;;  %v10730_v58 = vld [vmem:[#allocation8 + $0x80] sm:$0xff]   ;;  %v10732_v60 = vld [vmem:[#allocation8 + $0x88] sm:$0xff]   ;;  %v10733_v61 = vld [vmem:[#allocation8 + $0xd0] sm:$0xff]   ;;  %s11707_s27 = smov [#allocation13]  }
  0xde   : > { %9682 = vmatpush3.bf16.msra.mxu0 %v10692_v5  ;;  %9702 = vmatpush3.bf16.msra.mxu1 %v10700_v14  ;;  %v10745_v62 = vld [vmem:[#allocation10] ss:$12 sps:$4 sm:$0xff]   ;;  %v10734_v1 = vld [vmem:[#allocation8 + $0x90] sm:$0xff]   ;;  %v10751_v2 = vld [vmem:[#allocation10 + $0x1c] ss:$12 sps:$4 sm:$0xff]   ;;  %p11607_p7 = pnand %p11606_p12, %p13345_p13  ;;  %s11609_s9 = sshll.u32 %s11707_s27, 4  ;;  %s11610_s9 = int_to_ptr.vmem [resolvable:$false] %s11609_s9 }
  0xdf   : > { %9683 = vmatprep.subr.bf16.mxu0 %v11701_v0  ;;  %9703 = vmatprep.subr.bf16.mxu1 %v11701_v0  ;;  %v10749_v4 = vld [vmem:[#allocation10 + $0x18] ss:$12 sps:$4 sm:$0xff]   ;;  %v10741_v12 = vld [vmem:[#allocation8 + $0xf0] sm:$0xff]   ;;  %v600_v14 = vld [vmem:[#allocation7 + $0x22] ss:$8 sm:$0x3]  ;;  %p11612_p0 = scmp.lt.s32.totalorder %s13267_s4, %s11610_s9 }
  0xe0   : > { %v10736_v5 = vld [vmem:[#allocation8 + $0x98] sm:$0xff]   ;;  %v10737_v6 = vld [vmem:[#allocation8 + $0xe0] sm:$0xff]   ;;  %p11608_p9 = pneg %p11607_p7  ;;  %s11611_s7 = scalar_lea.vmem %s11610_s9, 512 }
  0xe1   : > { %v10738_v8 = vld [vmem:[#allocation8 + $0xa0] sm:$0xff]   ;;  %p11613_p2 = scmp.lt.s32.totalorder %s11611_s7, %s11605_s2 }
  0xe2   : > { %9684 = vmatpush3.bf16.msra.mxu0 %v10693_v7  ;;  %9704 = vmatpush3.bf16.msra.mxu1 %v10701_v15  ;;  %v602_v7 = vlaneseq }
  0xe3   : > { %9685 = vmatprep.subr.bf16.mxu0 %v11701_v0  ;;  %9705 = vmatprep.subr.bf16.mxu1 %v11701_v0  ;;  %p11614_p3 = por %p11613_p2, %p11612_p0 }
  0xe5   : > { %p11615_p6 = pnand %p11614_p3, %p11608_p9 }
  0xe6   : > { %9686 = vmatpush3.bf16.msra.mxu0 %v10694_v9  ;;  %9706 = vmatpush3.bf16.msra.mxu1 %v10702_v16  ;;  %v10739_v9 = vld [vmem:[#allocation8 + $0xe8] sm:$0xff]   ;;  %v10742_v16 = vld [vmem:[#allocation8 + $0xb0] sm:$0xff]  }
  0xe7   : > { %9687 = vmatprep.subr.bf16.mxu0 %v11701_v0  ;;  %9707 = vmatprep.subr.bf16.mxu1 %v11701_v0 }
  0xea   : > { %9688 = vmatpush3.bf16.msra.mxu0 %v10695_v10  ;;  %9708 = vmatpush3.bf16.msra.mxu1 %v10703_v17  ;;  %v603_v10 = vshrl.u32 %v602_v7, 7  ;;  %v10743_v17 = vld [vmem:[#allocation8 + $0xf8] sm:$0xff]   ;;  %v10779_v7 = vld [vmem:[#allocation10 + $0x8] ss:$12 sps:$4 sm:$0xff]  }
  0xeb   : > { %9689 = vmatprep.subr.bf16.mxu0 %v11701_v0  ;;  %9709 = vmatprep.subr.bf16.mxu1 %v11701_v0 }
  0xec   : > { %v608_v15 = vsub.s32 1, %v603_v10 }
  0xee   : > { %9690 = vmatpush3.bf16.msra.mxu0 %v10696_v11  ;;  %9710 = vmatpush3.bf16.msra.mxu1 %v10704_v18  ;;  %v10740_v11 = vld [vmem:[#allocation8 + $0xa8] sm:$0xff]  }
  0xef   : > { %692 = vmatprep.subr.bf16.mxu0 %v10707_v21  ;;  %9356 = vmatprep.subr.bf16.mxu1 %v10729_v57  ;;  %v10744_v21 = vld [vmem:[#allocation8 + $0xb8] sm:$0xff]  }
  0xf0   : > { %v10760_v57 = vld [vmem:[#allocation10 + $0x50] ss:$12 sps:$4 sm:$0xff]  }
  0xf1   : > { %9692 = vmatmul.mubr.bf16.vlgmr.msra.gmra.mrb[0].mxu0 %v381_v13  ;;  %v604_v13 = vsub.s32 0, %v603_v10 }
  0xf2   : > { %724 = vmatprep.mubr.bf16.mxu0 %v11703_v23  ;;  %693 = vmatpush1.bf16.msra.mxu0 %v10705_v20  ;;  %v609_v20 = vrot.slane %v600_v14, %v608_v15 }
  0xf3   : > { %694 = vmatprep.subr.bf16.mxu0 %v10710_v22  ;;  %v605_v18 = vrot.slane %v600_v14, %v604_v13 }
  0xf6   : > { %695 = vmatpush1.bf16.msra.mxu0 %v10708_v25 }
  0xf7   : > { %696 = vmatprep.subr.bf16.mxu0 %v10713_v26 }
  0xfa   : > { %697 = vmatpush1.bf16.msra.mxu0 %v10711_v27 }
  0xfb   : > { %698 = vmatprep.subr.bf16.mxu0 %v10716_v28 }
  0xfe   : > { %699 = vmatpush1.bf16.msra.mxu0 %v10714_v29 }
  0xff   : > { %700 = vmatprep.subr.bf16.mxu0 %v10719_v30 }
 0x102   : > { %701 = vmatpush1.bf16.msra.mxu0 %v10717_v31 }
 0x103   : > { %702 = vmatprep.subr.bf16.mxu0 %v10722_v32 }
 0x106   : > { %703 = vmatpush1.bf16.msra.mxu0 %v10720_v33 }
 0x107   : > { %704 = vmatprep.subr.bf16.mxu0 %v10725_v34 }
 0x10a   : > { %705 = vmatpush1.bf16.msra.mxu0 %v10723_v35 }
 0x10b   : > { %706 = vmatprep.subr.bf16.mxu0 %v10728_v36 }
 0x10e   : > { %707 = vmatpush1.bf16.msra.mxu0 %v10726_v37 }
 0x10f   : > { %1137 = vmatprep.subr.bf16.mxu0 %v10747_v63  ;;  %v10768_v63 = vld [vmem:[#allocation10 + $0x80] ss:$12 sps:$4 sm:$0xff]  }
 0x111   : > { %725 = vmatmul.mubr.bf16.vlgmr.msra.gmra.mrb[4].mxu0 %v598_v39 }
 0x112   : > { %1169 = vmatprep.mubr.bf16.mxu0 %v11703_v23  ;;  %1138 = vmatpush1.bf16.msra.mxu0 %v10745_v62  ;;  %v10765_v62 = vld [vmem:[#allocation10 + $0x78] ss:$12 sps:$4 sm:$0xff]  }
 0x113   : > { %1139 = vmatprep.subr.bf16.mxu0 %v10751_v2  ;;  %v10769_v2 = vld [vmem:[#allocation10 + $0x90] ss:$12 sps:$4 sm:$0xff]  }
 0x116   : > { %1140 = vmatpush1.bf16.msra.mxu0 %v10749_v4  ;;  %v10775_v4 = vld [vmem:[#allocation10 + $0xac] ss:$12 sps:$4 sm:$0xff]  }
 0x165   : > { %v12050_v52 = vpop.xlane.xlu0 %934 }
 0x169   : > { %v937_v53 = vpop.xlane.xlu0 %936 }
 0x16a   : > { %v939_v54 = vmul.f32 0.0078125, %v937_v53  ;;  %v10753_v53 = vld [vmem:[#allocation10 + $0x30] ss:$12 sps:$4 sm:$0xff]  }
 0x16c   : > { %v12052_v55 = vsub.f32 %v915_v24, %v939_v54  ;;  %v10755_v54 = vld [vmem:[#allocation10 + $0x34] ss:$12 sps:$4 sm:$0xff]  }
 0x16d   : > { %1141 = vmatprep.subr.bf16.mxu0 %v10755_v54 }
 0x16e   : > { %v943_v56 = vmul.f32 %v12052_v55, %v12052_v55  ;;  %1142 = vmatpush1.bf16.msra.mxu0 %v10753_v53 }
 0x170   : > { %946 = vadd.xlane.f32.xlu0 %v943_v56  ;;  %v10757_v56 = vld [vmem:[#allocation10 + $0x48] ss:$12 sps:$4 sm:$0xff]  }
 0x1c4   : > { %v465_v41 = vpop.f32.mrb[0].mxu0 }
 0x1c5   : > { %v466_v42 = vadd.f32 %v465_v41, %v382_v40  ;;  %v9693_v43 = vpop.f32.mrb[1].mxu0  ;;  %v10748_v41 = vld [vmem:[#allocation10 + $0x8] ss:$12 sps:$4 sm:$0xff]  }
 0x1c6   : > { %v468_v44 = vpop.f32.mrb[2].mxu0  ;;  %v493_v43 = vld [vmem:[#allocation7 + $0x21] ss:$0 sm:$0xff] }
 0x1c7   : > { %v472_v45 = vmul.f32 0.70710677, %v466_v42  ;;  %v9694_v46 = vpop.f32.mrb[3].mxu0  ;;  %v471_v48 = vmul.f32 0.5, %v466_v42  ;;  %v938_v42 = vmul.f32 0.0078125, %v12050_v52 }
 0x1c8   : > { %v10756_v52 = vld [vmem:[#allocation10 + $0x38] ss:$12 sps:$4 sm:$0xff]  }
 0x1c9   : > { %11169 = verf.f32 %v472_v45  ;;  %v12062_v44 = vsub.f32 %v12044_v19, %v938_v42  ;;  %v10759_v19 = vld [vmem:[#allocation10 + $0x4c] ss:$12 sps:$4 sm:$0xff]  }
 0x1ca   : > { %1143 = vmatprep.subr.bf16.mxu0 %v10759_v19 }
 0x1cb   : > { %1144 = vmatpush1.bf16.msra.mxu0 %v10757_v56  ;;  %v917_v56 = vld [vmem:[#allocation7 + $0x30] ss:$0 sm:$0xff] }
 0x1d3   : > { %v11170_v47 = vpop.eup %11169 }
 0x1d4   : > { %v474_v49 = vadd.f32 1.0, %v11170_v47 }
 0x1d6   : > { %v475_v50 = vmul.f32 %v474_v49, %v471_v48 }
 0x1d8   : > { %v492_v51 = vpack.c.bf16 %v475_v50, %v475_v50  ;;  %v942_v50 = vmul.f32 %v12062_v44, %v12062_v44 }
 0x1da   : > { %9712 = vmatmul.mubr.bf16.vlgmr.msra.gmra.mrb[0].mxu1 %v492_v51  ;;  %v10752_v51 = vld [vmem:[#allocation10 + $0x20] ss:$12 sps:$4 sm:$0xff]  }
 0x1db   : > { %9357 = vmatpush3.bf16.msra.mxu1 %v10730_v58  ;;  %v10761_v58 = vld [vmem:[#allocation10 + $0x60] ss:$12 sps:$4 sm:$0xff]  }
 0x1dc   : > { %9358 = vmatprep.subr.bf16.mxu1 %v10731_v59  ;;  %v10763_v59 = vld [vmem:[#allocation10 + $0x64] ss:$12 sps:$4 sm:$0xff]  }
 0x1dd   : > { %1145 = vmatprep.subr.bf16.mxu0 %v10763_v59 }
 0x1de   : > { %1146 = vmatpush1.bf16.msra.mxu0 %v10761_v58 }
 0x1df   : > { %9359 = vmatpush3.bf16.msra.mxu1 %v10732_v60  ;;  %v10764_v60 = vld [vmem:[#allocation10 + $0x68] ss:$12 sps:$4 sm:$0xff]  }
 0x1e0   : > { %9360 = vmatprep.subr.bf16.mxu1 %v10733_v61  ;;  %v10767_v61 = vld [vmem:[#allocation10 + $0x7c] ss:$12 sps:$4 sm:$0xff]  }
 0x1e1   : > { %1147 = vmatprep.subr.bf16.mxu0 %v10767_v61 }
 0x1e2   : > { %1148 = vmatpush1.bf16.msra.mxu0 %v10765_v62 }
 0x1e3   : > { %9361 = vmatpush3.bf16.msra.mxu1 %v10734_v1  ;;  %v10771_v1 = vld [vmem:[#allocation10 + $0x94] ss:$12 sps:$4 sm:$0xff]  }
 0x1e4   : > { %9362 = vmatprep.subr.bf16.mxu1 %v10735_v3  ;;  %v726_v22 = vpop.f32.mrb[4].mxu0  ;;  %v10772_v3 = vld [vmem:[#allocation10 + $0x98] ss:$12 sps:$4 sm:$0xff]   ;;  %1149 = vmatprep.subr.bf16.mxu0 %v10771_v1 }
 0x1e5   : > { %v727_v24 = vadd.f32 %v726_v22, %v605_v18  ;;  %v728_v25 = vpop.f32.mrb[5].mxu0 }
 0x1e6   : > { %v729_v26 = vadd.f32 %v728_v25, %v609_v20  ;;  %v730_v27 = vpop.f32.mrb[6].mxu0  ;;  %1150 = vmatpush1.bf16.msra.mxu0 %v10769_v2 }
 0x1e7   : > { %9363 = vmatpush3.bf16.msra.mxu1 %v10736_v5  ;;  %v735_v28 = vmul.f32 0.70710677, %v727_v24  ;;  %v731_v29 = vpop.f32.mrb[7].mxu0  ;;  %v733_v31 = vmul.f32 0.5, %v727_v24  ;;  %v10773_v5 = vld [vmem:[#allocation10 + $0xa8] ss:$12 sps:$4 sm:$0xff]   ;;  %1151 = vmatprep.subr.bf16.mxu0 %v10775_v4 }
 0x1e8   : > { %9364 = vmatprep.subr.bf16.mxu1 %v10737_v6  ;;  %v736_v30 = vmul.f32 0.70710677, %v729_v26  ;;  %v734_v33 = vmul.f32 0.5, %v729_v26  ;;  %v10776_v6 = vld [vmem:[#allocation10 + $0xb0] ss:$12 sps:$4 sm:$0xff]  }
 0x1e9   : > { %11171 = verf.f32 %v735_v28  ;;  %v933_v26 = vld [vmem:[#allocation7 + $0x32] ss:$0 sm:$0xff] }
 0x1ea   : > { %11173 = verf.f32 %v736_v30  ;;  %1152 = vmatpush1.bf16.msra.mxu0 %v10773_v5  ;;  %v10777_v30 = vld [vmem:[#allocation10 + $0x4] ss:$12 sps:$4 sm:$0xff]  }
 0x1eb   : > { %9365 = vmatpush3.bf16.msra.mxu1 %v10738_v8  ;;  %1302 = vmatprep.subr.bf16.mxu0 %v10779_v7 }
 0x1ec   : > { %9366 = vmatprep.subr.bf16.mxu1 %v10739_v9 }
 0x1ef   : > { %9367 = vmatpush3.bf16.msra.mxu1 %v10740_v11 }
 0x1f0   : > { %9368 = vmatprep.subr.bf16.mxu1 %v10741_v12 }
 0x1f3   : > { %9369 = vmatpush3.bf16.msra.mxu1 %v10742_v16  ;;  %v11172_v32 = vpop.eup %11171 }
 0x1f4   : > { %9370 = vmatprep.subr.bf16.mxu1 %v10743_v17  ;;  %v11174_v34 = vpop.eup %11173  ;;  %v739_v35 = vadd.f32 1.0, %v11172_v32  ;;  %v10782_v32 = vld [vmem:[#allocation10 + $0x20] ss:$12 sps:$4 sm:$0xff]  }
 0x1f5   : > { %v740_v36 = vadd.f32 1.0, %v11174_v34  ;;  %v10783_v34 = vld [vmem:[#allocation10 + $0x34] ss:$12 sps:$4 sm:$0xff]  }
 0x1f6   : > { %v741_v37 = vmul.f32 %v739_v35, %v733_v31  ;;  %v10788_v35 = vld [vmem:[#allocation10 + $0x50] ss:$12 sps:$4 sm:$0xff]  }
 0x1f7   : > { %9371 = vmatpush3.bf16.msra.mxu1 %v10744_v21  ;;  %v742_v38 = vmul.f32 %v740_v36, %v734_v33  ;;  %v932_v21 = vld [vmem:[#allocation7 + $0x31] ss:$0 sm:$0xff]  ;;  %v10780_v33 = vld [vmem:[#allocation10 + $0x1c] ss:$12 sps:$4 sm:$0xff]   ;;  %v10786_v36 = vld [vmem:[#allocation10 + $0x4c] ss:$12 sps:$4 sm:$0xff]  }
 0x1f8   : > { %9715 = vmatprep.subr.bf16.mxu1 %v11701_v0  ;;  %v775_v39 = vpack.c.bf16 %v741_v37, %v741_v37  ;;  %v10791_v37 = vld [vmem:[#allocation10 + $0x68] ss:$12 sps:$4 sm:$0xff]  }
 0x1f9   : > { %v776_v40 = vpack.c.bf16 %v742_v38, %v742_v38  ;;  %v10789_v38 = vld [vmem:[#allocation10 + $0x64] ss:$12 sps:$4 sm:$0xff]  }
 0x1fb   : > { %906 = vmatprep.mubr.bf16.mxu1 %v776_v40 }
 0x1fc   : > { %907 = vmatmul.mubr.bf16.vlgmr.msra.gmra.mrb[4].mxu1 %v775_v39  ;;  %v10794_v39 = vld [vmem:[#allocation10 + $0x80] ss:$12 sps:$4 sm:$0xff]  }
 0x1fd   : > { %9716 = vmatpush3.bf16.msra.mxu1 %v10748_v41  ;;  %9731 = vmatprep.mubr.msk.bf16.mxu1 %vm11702_vm0, %v11701_v0  ;;  %v947_v8 = vpop.xlane.xlu0 %946  ;;  %v10792_v41 = vld [vmem:[#allocation10 + $0x7c] ss:$12 sps:$4 sm:$0xff]  }
 0x1fe   : > { %9717 = vmatprep.subr.bf16.mxu1 %v11701_v0  ;;  %v949_v9 = vmul.f32 0.0078125, %v947_v8 }
 0x200   : > { %v951_v10 = vadd.f32 1e-05, %v949_v9 }
 0x201   : > { %9718 = vmatpush3.bf16.msra.mxu1 %v10752_v51 }
 0x202   : > { %9719 = vmatprep.subr.bf16.mxu1 %v11701_v0  ;;  %11175 = vrsqrt.f32 %v951_v10 }
 0x205   : > { %9720 = vmatpush3.bf16.msra.mxu1 %v10756_v52  ;;  %v916_v52 = vld [vmem:[#allocation7 + $0x27] ss:$0 sm:$0xff] }
 0x206   : > { %9721 = vmatprep.subr.bf16.mxu1 %v11701_v0 }
 0x209   : > { %9722 = vmatpush3.bf16.msra.mxu1 %v10760_v57 }
 0x20a   : > { %9723 = vmatprep.subr.bf16.mxu1 %v11701_v0 }
 0x20c   : > { %v11176_v18 = vpop.eup %11175 }
 0x20d   : > { %9724 = vmatpush3.bf16.msra.mxu1 %v10764_v60  ;;  %v955_v20 = vmul.f32 %v11176_v18, %v12052_v55  ;;  %v10785_v55 = vld [vmem:[#allocation10 + $0x38] ss:$12 sps:$4 sm:$0xff]  }
 0x20e   : > { %9725 = vmatprep.subr.bf16.mxu1 %v11701_v0 }
 0x20f   : > { %v957_v25 = vmul.f32 %v955_v20, %v932_v21 }
 0x211   : > { %9726 = vmatpush3.bf16.msra.mxu1 %v10768_v63  ;;  %v959_v29 = vadd.f32 %v957_v25, %v933_v26 }
 0x212   : > { %9727 = vmatprep.subr.bf16.mxu1 %v11701_v0 }
 0x215   : > { %9728 = vmatpush3.bf16.msra.mxu1 %v10772_v3 }
 0x216   : > { %9729 = vmatprep.subr.bf16.mxu1 %v11701_v0 }
 0x219   : > { %9730 = vmatpush3.bf16.msra.mxu1 %v10776_v6 }
 0x21a   : > { %9735 = vmatprep.subr.bf16.mxu1 %v11701_v0 }
 0x2ad   : > { %v576_v45 = vpop.f32.mrb[0].mxu1 }
 0x2ae   : > { %v577_v46 = vadd.f32 %v576_v45, %v493_v43  ;;  %v9713_v47 = vpop.f32.mrb[1].mxu1  ;;  %v10797_v43 = vld [vmem:[#allocation10 + $0x98] ss:$12 sps:$4 sm:$0xff]  }
 0x2af   : > { %v579_v48 = vpop.f32.mrb[2].mxu1  ;;  %v10795_v47 = vld [vmem:[#allocation10 + $0x94] ss:$12 sps:$4 sm:$0xff]  }
 0x2b0   : > { %918 = vadd.xlane.f32.xlu1 %v577_v46  ;;  %v9714_v49 = vpop.f32.mrb[3].mxu1  ;;  %v10800_v48 = vld [vmem:[#allocation10 + $0xb0] ss:$12 sps:$4 sm:$0xff]  }
 0x2b1   : > { %v10798_v49 = vld [vmem:[#allocation10 + $0xac] ss:$12 sps:$4 sm:$0xff]  }
 0x2b4   : > { %944 = vadd.xlane.f32.xlu1 %v942_v50 }
 0x2cf   : > { %v9372_v40 = vpop.f32.mrb[4].mxu1 }
 0x2d0   : > { %v9373_v42 = vpop.f32.mrb[5].mxu1 }
 0x2d1   : > { %v9375_v45 = vpop.f32.mrb[6].mxu1 }
 0x33d   : > { %v919_v11 = vpop.xlane.xlu1 %918 }
 0x33e   : > { %v921_v12 = vmul.f32 0.0078125, %v919_v11 }
 0x340   : > { %v12073_v13 = vsub.f32 %v577_v46, %v921_v12  ;;  %v9376_v46 = vpop.f32.mrb[7].mxu1 }
 0x341   : > { %v945_v14 = vpop.xlane.xlu1 %944 }
 0x342   : > { %v948_v15 = vmul.f32 0.0078125, %v945_v14  ;;  %v923_v16 = vmul.f32 %v12073_v13, %v12073_v13 }
 0x344   : > { %v950_v17 = vadd.f32 1e-05, %v948_v15  ;;  %924 = vadd.xlane.f32.xlu1 %v923_v16 }
 0x346   : > { %11177 = vrsqrt.f32 %v950_v17 }
 0x350   : > { %v11178_v22 = vpop.eup %11177 }
 0x351   : > { %v954_v24 = vmul.f32 %v11178_v22, %v12062_v44  ;;  %v12082_v44 = vadd.f32 %v9373_v42, %v9372_v40 }
 0x353   : > { %v956_v27 = vmul.f32 %v954_v24, %v932_v21 }
 0x355   : > { %v958_v28 = vadd.f32 %v956_v27, %v933_v26 }
 0x357   : > { %v1008_v31 = vpack.c.bf16 %v959_v29, %v958_v28 }
 0x359   : > { %1170 = vmatmul.mubr.bf16.vlgmr.msra.gmra.mrb[8].mxu0 %v1008_v31  ;;  %9732 = vmatmul.mubr.bf16.vlgmr.msra.gmra.mrb[8].mxu1 %v1008_v31 }
 0x35a   : > { %1303 = vmatpush1.bf16.msra.mxu0 %v10777_v30  ;;  %1334 = vmatprep.mubr.bf16.mxu0 %v11703_v23 }
 0x35b   : > { %1304 = vmatprep.subr.bf16.mxu0 %v10782_v32  ;;  %9737 = vmatprep.mubr.msk.bf16.mxu1 %vm11702_vm0, %v11701_v0 }
 0x35e   : > { %1305 = vmatpush1.bf16.msra.mxu0 %v10780_v33 }
 0x35f   : > { %1306 = vmatprep.subr.bf16.mxu0 %v10785_v55 }
 0x362   : > { %1307 = vmatpush1.bf16.msra.mxu0 %v10783_v34 }
 0x363   : > { %1308 = vmatprep.subr.bf16.mxu0 %v10788_v35 }
 0x366   : > { %1309 = vmatpush1.bf16.msra.mxu0 %v10786_v36 }
 0x367   : > { %1310 = vmatprep.subr.bf16.mxu0 %v10791_v37 }
 0x36a   : > { %1311 = vmatpush1.bf16.msra.mxu0 %v10789_v38 }
 0x36b   : > { %1312 = vmatprep.subr.bf16.mxu0 %v10794_v39 }
 0x36e   : > { %1313 = vmatpush1.bf16.msra.mxu0 %v10792_v41 }
 0x36f   : > { %1314 = vmatprep.subr.bf16.mxu0 %v10797_v43 }
 0x372   : > { %1315 = vmatpush1.bf16.msra.mxu0 %v10795_v47 }
 0x373   : > { %1316 = vmatprep.subr.bf16.mxu0 %v10800_v48 }
 0x376   : > { %1317 = vmatpush1.bf16.msra.mxu0 %v10798_v49 }
 0x377   : > { %9759 = vmatprep.subr.bf16.mxu0 %v11701_v0 }
 0x3d1   : > { %v925_v50 = vpop.xlane.xlu1 %924 }
 0x3d2   : > { %v926_v51 = vmul.f32 0.0078125, %v925_v50 }
 0x3d4   : > { %v927_v53 = vadd.f32 1e-05, %v926_v51 }
 0x3d6   : > { %11179 = vrsqrt.f32 %v927_v53 }
 0x3e0   : > { %v11180_v54 = vpop.eup %11179 }
 0x3e1   : > { %v12086_v19 = vmul.f32 %v11180_v54, %v12073_v13 }
 0x3e3   : > { %v930_v57 = vmul.f32 %v12086_v19, %v916_v52 }
 0x3e5   : > { %v931_v58 = vadd.f32 %v930_v57, %v917_v56 }
 0x3e7   : > { %v1221_v59 = vpack.c.bf16 %v931_v58, %v931_v58 }
 0x3e9   : > { %1335 = vmatmul.mubr.bf16.vlgmr.msra.gmra.mrb[12].mxu0 %v1221_v59 }
 0x3ea   : > { %9761 = vmatprep.mubr.msk.bf16.mxu0 %vm11702_vm0, %v11701_v0 }
 0x42c   : > { %v1171_v60 = vpop.f32.mrb[8].mxu0  ;;  %v12091_v61 = vpop.f32.mrb[8].mxu1 }
 0x42d   : > { %v1173_v62 = vpop.f32.mrb[9].mxu0  ;;  %v9733_v63 = vpop.f32.mrb[9].mxu1 }
 0x42e   : > { %v1175_v1 = vpop.f32.mrb[10].mxu0  ;;  %v12093_v2 = vpop.f32.mrb[10].mxu1 }
 0x42f   : > { %v1363_v3 = vpack.c.bf16 %v1175_v1, %v1171_v60  ;;  %v1411_v4 = vpack.c.bf16 %v12093_v2, %v12091_v61  ;;  %v1177_v5 = vpop.f32.mrb[11].mxu0  ;;  %v9734_v6 = vpop.f32.mrb[11].mxu1  ;;  %v10449_v7 = vpack.i.bf16 %v1175_v1, %v1171_v60  ;;  %v12100_v10 = vpack.i.bf16 %v12093_v2, %v12091_v61 }
 0x430   : > { %v1387_v8 = vpack.c.bf16 %v1177_v5, %v1173_v62  ;;  %v10464_v9 = vpack.i.bf16 %v1177_v5, %v1173_v62 }
 0x431   : > { %10450 = vrot.lane.b32.xlu1 %v10449_v7, %s11704_s19 }
 0x432   : > { %v1633_v11 = vsel %vm1443_vm1, %v1387_v8, 0 }
 0x433   : > { %9760 = vmatpush3.bf16.xpose.msra.mxu0 %v1633_v11 }
 0x434   : > { %9771 = vmatprep.subr.bf16.mxu0 %v11701_v0 }
 0x43a   : > { %9762 = vmatmul.mubr.msk.bf16.vlgmr.msra.gmra.mrb[16].mxu0 %vm1443_vm1, %v1363_v3 }
 0x43b   : > { %9773 = vmatprep.mubr.msk.bf16.mxu0 %vm11702_vm0, %v11701_v0 }
 0x4a3   : > { %v10451_v26 = vpop.permute.xlu1 %10450 }
 0x4a4   : > { %v10453_v32 = vunpack.i.h.bf16 %v10451_v26  ;;  %v10452_v33 = vunpack.i.l.bf16 %v10451_v26 }
 0x4a6   : > { %v1364_v35 = vpack.c.bf16 %v10453_v32, %v10452_v33 }
 0x4bc   : > { %v1336_v12 = vpop.f32.mrb[12].mxu0 }
 0x4bd   : > { %1419 = vrot.lane.b32.xlu1 %v1336_v12, %s11705_s3  ;;  %1416 = vrot.lane.b32.xlu0 %v1336_v12, %s11704_s19  ;;  %v12109_v13 = vpop.f32.mrb[13].mxu0  ;;  %v1425_v14 = vpack.c.bf16 %v1336_v12, %v1336_v12 }
 0x4be   : > { %v1340_v15 = vpop.f32.mrb[14].mxu0 }
 0x4bf   : > { %v1341_v16 = vpop.f32.mrb[15].mxu0  ;;  %v1448_v17 = vsel %vm1443_vm1, %v1425_v14, 0 }
 0x4c0   : > { %9736 = vmatpush3.bf16.xpose.msra.mxu1 %v1448_v17 }
 0x4c1   : > { %10455 = vrot.lane.b32.xlu1 %v10449_v7, %s11705_s3  ;;  %1422 = vrot.lane.b32.xlu0 %v1336_v12, %s11706_s10 }
 0x4c2   : > { %9741 = vmatprep.subr.bf16.mxu1 %v11701_v0 }
 0x4c5   : > { %10460 = vrot.lane.b32.xlu1 %v10449_v7, %s11706_s10  ;;  %10465 = vrot.lane.b32.xlu0 %v10464_v9, %s11704_s19 }
 0x4c7   : > { %9738 = vmatmul.mubr.msk.bf16.vlgmr.msra.gmra.mrb[12].mxu1 %vm1443_vm1, %v1363_v3 }
 0x4c8   : > { %9743 = vmatprep.mubr.msk.bf16.mxu1 %vm11702_vm0, %v11701_v0 }
 0x4c9   : > { %10470 = vrot.lane.b32.xlu1 %v10464_v9, %s11705_s3  ;;  %10475 = vrot.lane.b32.xlu0 %v10464_v9, %s11706_s10 }
 0x4cd   : > { %10480 = vrot.lane.b32.xlu1 %v12100_v10, %s11704_s19 }
 0x50d   : > { %v12124_v18 = vpop.f32.mrb[16].mxu0 }
 0x50e   : > { %v9763_v20 = vpop.f32.mrb[17].mxu0  ;;  %v1834_v21 = vsel %vm1833_vm2, %v12124_v18, -inf }
 0x50f   : > { %1835 = vmax.xlane.f32.xlu0 %v1834_v21  ;;  %v12128_v22 = vpop.f32.mrb[18].mxu0 }
 0x510   : > { %v9764_v24 = vpop.f32.mrb[19].mxu0  ;;  %v1837_v25 = vsel %vm1833_vm2, %v12128_v22, -inf }
 0x513   : > { %1838 = vmax.xlane.f32.xlu0 %v1837_v25 }
 0x52f   : > { %v1420_v27 = vpop.permute.xlu1 %1419  ;;  %v1417_v28 = vpop.permute.xlu0 %1416 }
 0x530   : > { %v1426_v29 = vpack.c.bf16 %v1417_v28, %v1417_v28  ;;  %v1427_v55 = vpack.c.bf16 %v1420_v27, %v1420_v27 }
 0x532   : > { %v1495_v30 = vsel %vm1443_vm1, %v1426_v29, 0  ;;  %v1542_v37 = vsel %vm1443_vm1, %v1427_v55, 0 }
 0x533   : > { %v10456_v31 = vpop.permute.xlu1 %10455  ;;  %9742 = vmatpush3.bf16.xpose.msra.mxu1 %v1495_v30  ;;  %v1423_v36 = vpop.permute.xlu0 %1422 }
 0x534   : > { %9747 = vmatprep.subr.bf16.mxu1 %v11701_v0  ;;  %v10458_v39 = vunpack.i.h.bf16 %v10456_v31  ;;  %v10457_v40 = vunpack.i.l.bf16 %v10456_v31  ;;  %v1428_v43 = vpack.c.bf16 %v1423_v36, %v1423_v36 }
 0x536   : > { %v1365_v47 = vpack.c.bf16 %v10458_v39, %v10457_v40  ;;  %v1589_v51 = vsel %vm1443_vm1, %v1428_v43, 0 }
 0x537   : > { %v10461_v34 = vpop.permute.xlu1 %10460  ;;  %v10466_v46 = vpop.permute.xlu0 %10465 }
 0x538   : > { %v10468_v49 = vunpack.i.h.bf16 %v10466_v46  ;;  %v10467_v50 = vunpack.i.l.bf16 %v10466_v46  ;;  %v10463_v53 = vunpack.i.h.bf16 %v10461_v34  ;;  %v10462_v54 = vunpack.i.l.bf16 %v10461_v34 }
 0x53a   : > { %9744 = vmatmul.mubr.msk.bf16.vlgmr.msra.gmra.mrb[16].mxu1 %vm1443_vm1, %v1364_v35  ;;  %v1388_v52 = vpack.c.bf16 %v10468_v49, %v10467_v50  ;;  %v1366_v57 = vpack.c.bf16 %v10463_v53, %v10462_v54 }
 0x53b   : > { %v10471_v38 = vpop.permute.xlu1 %10470  ;;  %9748 = vmatpush3.bf16.xpose.msra.mxu1 %v1542_v37  ;;  %9749 = vmatprep.mubr.msk.bf16.mxu1 %vm11702_vm0, %v11701_v0  ;;  %v10476_v56 = vpop.permute.xlu0 %10475 }
 0x53c   : > { %v10473_v41 = vunpack.i.h.bf16 %v10471_v38  ;;  %v10472_v42 = vunpack.i.l.bf16 %v10471_v38  ;;  %9753 = vmatprep.subr.bf16.mxu1 %v11701_v0  ;;  %v10478_v58 = vunpack.i.h.bf16 %v10476_v56  ;;  %v10477_v59 = vunpack.i.l.bf16 %v10476_v56 }
 0x53d   : > { %v1677_v60 = vsel %vm1443_vm1, %v1388_v52, 0 }
 0x53e   : > { %v1389_v45 = vpack.c.bf16 %v10473_v41, %v10472_v42  ;;  %v1390_v62 = vpack.c.bf16 %v10478_v58, %v10477_v59 }
 0x53f   : > { %v10481_v61 = vpop.permute.xlu1 %10480 }
 0x540   : > { %v1721_v48 = vsel %vm1443_vm1, %v1389_v45, 0  ;;  %v1765_v63 = vsel %vm1443_vm1, %v1390_v62, 0  ;;  %v10483_v1 = vunpack.i.h.bf16 %v10481_v61  ;;  %v10482_v2 = vunpack.i.l.bf16 %v10481_v61 }
 0x541   : > { %9772 = vmatpush3.bf16.xpose.msra.mxu0 %v1721_v48 }
 0x542   : > { %9750 = vmatmul.mubr.msk.bf16.vlgmr.msra.gmra.mrb[20].mxu1 %vm1443_vm1, %v1365_v47  ;;  %9783 = vmatprep.subr.bf16.mxu0 %v11701_v0  ;;  %v1412_v3 = vpack.c.bf16 %v10483_v1, %v10482_v2 }
 0x543   : > { %9754 = vmatpush3.bf16.xpose.msra.mxu1 %v1589_v51  ;;  %9755 = vmatprep.mubr.msk.bf16.mxu1 %vm11702_vm0, %v11701_v0 }
 0x544   : > { %9765 = vmatprep.subr.bf16.mxu1 %v11701_v0 }
 0x548   : > { %9774 = vmatmul.mubr.msk.bf16.vlgmr.msra.gmra.mrb[20].mxu0 %vm1443_vm1, %v1365_v47 }
 0x549   : > { %9784 = vmatpush3.bf16.msra.mxu0 %v1411_v4  ;;  %9785 = vmatprep.mubr.msk.bf16.mxu0 %vm11702_vm0, %v11701_v0 }
 0x54a   : > { %9756 = vmatmul.mubr.msk.bf16.vlgmr.msra.gmra.mrb[24].mxu1 %vm1443_vm1, %v1366_v57  ;;  %9795 = vmatprep.subr.bf16.mxu0 %v11701_v0 }
 0x54b   : > { %9766 = vmatpush3.bf16.xpose.msra.mxu1 %v1677_v60  ;;  %9767 = vmatprep.mubr.msk.bf16.mxu1 %vm11702_vm0, %v11701_v0 }
 0x54c   : > { %9777 = vmatprep.subr.bf16.mxu1 %v11701_v0 }
 0x552   : > { %9768 = vmatmul.mubr.msk.bf16.vlgmr.msra.gmra.mrb[28].mxu1 %vm1443_vm1, %v1364_v35 }
 0x553   : > { %9778 = vmatpush3.bf16.xpose.msra.mxu1 %v1765_v63  ;;  %9779 = vmatprep.mubr.msk.bf16.mxu1 %vm11702_vm0, %v11701_v0 }
 0x554   : > { %9789 = vmatprep.subr.bf16.mxu1 %v11701_v0 }
 0x55a   : > { %9780 = vmatmul.mubr.msk.bf16.vlgmr.msra.gmra.mrb[32].mxu1 %vm1443_vm1, %v1366_v57 }
 0x55b   : > { %9790 = vmatpush3.bf16.msra.mxu1 %v1412_v3  ;;  %9791 = vmatprep.mubr.msk.bf16.mxu1 %vm11702_vm0, %v11701_v0 }
 0x55c   : > { %9801 = vmatprep.subr.bf16.mxu1 %v11701_v0 }
 0x59a   : > { %v12167_v4 = vpop.f32.mrb[12].mxu1 }
 0x59b   : > { %v9739_v5 = vpop.f32.mrb[13].mxu1  ;;  %v1809_v32 = vsel %vm1808_vm3, %v12167_v4, -inf }
 0x59c   : > { %v12169_v6 = vpop.f32.mrb[14].mxu1  ;;  %v1836_v53 = vpop.xlane.xlu0 %1835 }
 0x59d   : > { %v9740_v7 = vpop.f32.mrb[15].mxu1  ;;  %v1812_v33 = vsel %vm1808_vm3, %v12169_v6, -inf }
 0x5a0   : > { %v1839_v54 = vpop.xlane.xlu0 %1838 }
 0x60d   : > { %v12171_v8 = vpop.f32.mrb[16].mxu1 }
 0x60e   : > { %v9745_v9 = vpop.f32.mrb[17].mxu1  ;;  %v1815_v55 = vsel %vm1808_vm3, %v12171_v8, -inf }
 0x60f   : > { %v12173_v11 = vpop.f32.mrb[18].mxu1 }
 0x610   : > { %v9746_v12 = vpop.f32.mrb[19].mxu1  ;;  %v1818_v36 = vsel %vm1808_vm3, %v12173_v11, -inf }
 0x615   : > { %v12175_v14 = vpop.f32.mrb[20].mxu1 }
 0x616   : > { %v9751_v15 = vpop.f32.mrb[21].mxu1  ;;  %v1821_v39 = vsel %vm1808_vm3, %v12175_v14, -inf }
 0x617   : > { %v12177_v16 = vpop.f32.mrb[22].mxu1 }
 0x618   : > { %v9752_v17 = vpop.f32.mrb[23].mxu1  ;;  %v1824_v40 = vsel %vm1808_vm3, %v12177_v16, -inf }
 0x61b   : > { %v12179_v20 = vpop.f32.mrb[20].mxu0 }
 0x61c   : > { %v9775_v21 = vpop.f32.mrb[21].mxu0  ;;  %v1846_v24 = vsel %vm1833_vm2, %v12179_v20, -inf }
 0x61d   : > { %v12183_v25 = vpop.f32.mrb[22].mxu0  ;;  %1847 = vmax.xlane.f32.xlu1 %v1846_v24  ;;  %v12185_v26 = vpop.f32.mrb[24].mxu1 }
 0x61e   : > { %v9757_v27 = vpop.f32.mrb[25].mxu1  ;;  %v9776_v28 = vpop.f32.mrb[23].mxu0  ;;  %v1849_v29 = vsel %vm1833_vm2, %v12183_v25, -inf  ;;  %v1827_v41 = vsel %vm1808_vm3, %v12185_v26, -inf }
 0x61f   : > { %1850 = vmax.xlane.f32.xlu0 %v1849_v29  ;;  %v12189_v30 = vpop.f32.mrb[26].mxu1 }
 0x620   : > { %v9758_v31 = vpop.f32.mrb[27].mxu1  ;;  %v1830_v45 = vsel %vm1808_vm3, %v12189_v30, -inf }
 0x621   : > { %1810 = vmax.xlane.f32.xlu1 %v1809_v32 }
 0x623   : > { %1813 = vmax.xlane.f32.xlu0 %v1812_v33 }
 0x625   : > { %1816 = vmax.xlane.f32.xlu1 %v1815_v55  ;;  %v12197_v34 = vpop.f32.mrb[28].mxu1 }
 0x626   : > { %v9769_v35 = vpop.f32.mrb[29].mxu1  ;;  %v1840_v48 = vsel %vm1833_vm2, %v12197_v34, -inf }
 0x627   : > { %1819 = vmax.xlane.f32.xlu0 %v1818_v36  ;;  %v12201_v37 = vpop.f32.mrb[30].mxu1 }
 0x628   : > { %v9770_v38 = vpop.f32.mrb[31].mxu1  ;;  %v1843_v49 = vsel %vm1833_vm2, %v12201_v37, -inf }
 0x629   : > { %1822 = vmax.xlane.f32.xlu1 %v1821_v39 }
 0x62b   : > { %1825 = vmax.xlane.f32.xlu0 %v1824_v40 }
 0x62d   : > { %1828 = vmax.xlane.f32.xlu1 %v1827_v41  ;;  %v12209_v42 = vpop.f32.mrb[32].mxu1 }
 0x62e   : > { %v9781_v43 = vpop.f32.mrb[33].mxu1  ;;  %v1852_v50 = vsel %vm1833_vm2, %v12209_v42, -inf }
 0x62f   : > { %1831 = vmax.xlane.f32.xlu0 %v1830_v45  ;;  %v12213_v46 = vpop.f32.mrb[34].mxu1 }
 0x630   : > { %v9782_v47 = vpop.f32.mrb[35].mxu1  ;;  %v1855_v51 = vsel %vm1833_vm2, %v12213_v46, -inf }
 0x631   : > { %1841 = vmax.xlane.f32.xlu1 %v1840_v48 }
 0x633   : > { %1844 = vmax.xlane.f32.xlu0 %v1843_v49 }
 0x635   : > { %1853 = vmax.xlane.f32.xlu1 %v1852_v50 }
 0x637   : > { %1856 = vmax.xlane.f32.xlu0 %v1855_v51 }
 0x646   : > { %10490 = vrot.lane.b32.xlu1 %v12100_v10, %s11706_s10 }
 0x64a   : > { %1430 = vrot.lane.b32.xlu1 %v12109_v13, %s11704_s19 }
 0x64d   : > { %10485 = vrot.lane.b32.xlu0 %v12100_v10, %s11705_s3 }
 0x64e   : > { %1433 = vrot.lane.b32.xlu1 %v12109_v13, %s11705_s3 }
 0x651   : > { %1436 = vrot.lane.b32.xlu0 %v12109_v13, %s11706_s10 }
 0x6aa   : > { %v1848_v52 = vpop.xlane.xlu1 %1847 }
 0x6ac   : > { %v1851_v56 = vpop.xlane.xlu0 %1850 }
 0x6ae   : > { %v1811_v57 = vpop.xlane.xlu1 %1810 }
 0x6af   : > { %v1858_v58 = vmax.f32 %v1811_v57, %v1836_v53 }
 0x6b0   : > { %v1814_v59 = vpop.xlane.xlu0 %1813 }
 0x6b1   : > { %v1866_v60 = vsub.f32 %v12167_v4, %v1858_v58  ;;  %v1890_v62 = vsub.f32 %v12124_v18, %v1858_v58  ;;  %v1859_v61 = vmax.f32 %v1814_v59, %v1839_v54 }
 0x6b2   : > { %v1817_v63 = vpop.xlane.xlu1 %1816 }
 0x6b3   : > { %v1874_v10 = vmul.f32 1.442695, %v1866_v60  ;;  %v1867_v1 = vsub.f32 %v12169_v6, %v1859_v61  ;;  %v1891_v2 = vsub.f32 %v12128_v22, %v1859_v61  ;;  %v1898_v5 = vmul.f32 1.442695, %v1890_v62 }
 0x6b4   : > { %v1820_v3 = vpop.xlane.xlu0 %1819 }
 0x6b5   : > { %v1876_v7 = vmul.f32 1.442695, %v1867_v1  ;;  %v1900_v9 = vmul.f32 1.442695, %v1891_v2  ;;  %11181 = vpow2.f32 %v1874_v10 }
 0x6b6   : > { %v1823_v12 = vpop.xlane.xlu1 %1822 }
 0x6b7   : > { %11183 = vpow2.f32 %v1876_v7  ;;  %v1862_v15 = vmax.f32 %v1823_v12, %v1848_v52  ;;  %v1439_v7 = vpack.c.bf16 %v12109_v13, %v12109_v13 }
 0x6b8   : > { %11185 = vpow2.f32 %v1900_v9  ;;  %v1826_v17 = vpop.xlane.xlu0 %1825 }
 0x6b9   : > { %11187 = vpow2.f32 %v1898_v5  ;;  %v1870_v18 = vsub.f32 %v12175_v14, %v1862_v15  ;;  %v1894_v4 = vsub.f32 %v12179_v20, %v1862_v15  ;;  %v1863_v21 = vmax.f32 %v1826_v17, %v1851_v56 }
 0x6ba   : > { %v1829_v24 = vpop.xlane.xlu1 %1828 }
 0x6bb   : > { %v1882_v6 = vmul.f32 1.442695, %v1870_v18  ;;  %v1871_v22 = vsub.f32 %v12177_v16, %v1863_v21  ;;  %v1895_v27 = vsub.f32 %v12183_v25, %v1863_v21  ;;  %v1906_v29 = vmul.f32 1.442695, %v1894_v4 }
 0x6bc   : > { %v1832_v28 = vpop.xlane.xlu0 %1831 }
 0x6bd   : > { %11189 = vpow2.f32 %v1882_v6  ;;  %v1884_v31 = vmul.f32 1.442695, %v1871_v22  ;;  %v1908_v32 = vmul.f32 1.442695, %v1895_v27 }
 0x6be   : > { %v1842_v33 = vpop.xlane.xlu1 %1841 }
 0x6bf   : > { %11191 = vpow2.f32 %v1884_v31  ;;  %v1860_v55 = vmax.f32 %v1817_v63, %v1842_v33  ;;  %v12241_v35 = vpop.eup %11181 }
 0x6c0   : > { %11193 = vpow2.f32 %v1908_v32  ;;  %v1845_v14 = vpop.xlane.xlu0 %1844 }
 0x6c1   : > { %v12243_v20 = vpop.eup %11183  ;;  %11195 = vpow2.f32 %v1906_v29  ;;  %v1868_v36 = vsub.f32 %v12171_v8, %v1860_v55  ;;  %v1892_v16 = vsub.f32 %v12197_v34, %v1860_v55  ;;  %v1861_v25 = vmax.f32 %v1820_v3, %v1845_v14 }
 0x6c2   : > { %v12247_v38 = vpop.eup %11185  ;;  %v1854_v39 = vpop.xlane.xlu1 %1853  ;;  %v1978_v40 = vpack.c.bf16 %v12243_v20, %v12241_v35 }
 0x6c3   : > { %v12251_v41 = vpop.eup %11187  ;;  %v1878_v43 = vmul.f32 1.442695, %v1868_v36  ;;  %v1902_v45 = vmul.f32 1.442695, %v1892_v16  ;;  %v1869_v47 = vsub.f32 %v12173_v11, %v1861_v25  ;;  %v1893_v48 = vsub.f32 %v12201_v37, %v1861_v25 }
 0x6c4   : > { %v1864_v49 = vmax.f32 %v1829_v24, %v1854_v39  ;;  %v1982_v8 = vpack.c.bf16 %v12247_v38, %v12251_v41  ;;  %v1857_v34 = vpop.xlane.xlu0 %1856  ;;  %v2167_v24 = vsel %vm2165_vm4, %v1439_v7, 0 }
 0x6c5   : > { %11197 = vpow2.f32 %v1878_v43  ;;  %v1880_v50 = vmul.f32 1.442695, %v1869_v47  ;;  %v1904_v51 = vmul.f32 1.442695, %v1893_v48  ;;  %v1865_v53 = vmax.f32 %v1832_v28, %v1857_v34 }
 0x6c6   : > { %11199 = vpow2.f32 %v1902_v45  ;;  %v1872_v54 = vsub.f32 %v12185_v26, %v1864_v49  ;;  %v1896_v52 = vsub.f32 %v12209_v42, %v1864_v49  ;;  %9786 = vmatmul.mubr.msk.bf16.vlgmr.msra.gmra.mrb[24].mxu0 %vm1833_vm2, %v1982_v8  ;;  %v10491_v56 = vpop.permute.xlu1 %10490 }
 0x6c7   : > { %v12260_v11 = vpop.eup %11189  ;;  %11201 = vpow2.f32 %v1880_v50  ;;  %v1873_v37 = vsub.f32 %v12189_v30, %v1865_v53  ;;  %v1897_v57 = vsub.f32 %v12213_v46, %v1865_v53  ;;  %9797 = vmatprep.mubr.msk.bf16.mxu0 %vm11702_vm0, %v11701_v0  ;;  %v10493_v4 = vunpack.i.h.bf16 %v10491_v56 }
 0x6c8   : > { %11203 = vpow2.f32 %v1904_v51  ;;  %v1886_v58 = vmul.f32 1.442695, %v1872_v54  ;;  %v1910_v59 = vmul.f32 1.442695, %v1896_v52  ;;  %v10486_v60 = vpop.permute.xlu0 %10485  ;;  %v1926_v30 = vsel %vm1808_vm3, %v12260_v11, 0.0 }
 0x6c9   : > { %v12266_v26 = vpop.eup %11191  ;;  %v1888_v42 = vmul.f32 1.442695, %v1873_v37  ;;  %v1912_v62 = vmul.f32 1.442695, %v1897_v57  ;;  %v10488_v61 = vunpack.i.h.bf16 %v10486_v60  ;;  %v10487_v63 = vunpack.i.l.bf16 %v10486_v60  ;;  %1927 = vadd.xlane.f32.xlu1 %v1926_v30  ;;  %v10802_v37 = vld [vmem:[#allocation8 + $0x148] sm:$0xff]   ;;  %v10803_v57 = vld [vmem:[#allocation8 + $0x150] sm:$0xff]  }
 0x6ca   : > { %v11194_v10 = vpop.eup %11193  ;;  %11205 = vpow2.f32 %v1886_v58  ;;  %v1929_v46 = vsel %vm1808_vm3, %v12266_v26, 0.0  ;;  %v1431_v3 = vpop.permute.xlu1 %1430  ;;  %v1980_v9 = vpack.c.bf16 %v12266_v26, %v12260_v11  ;;  %v10492_v21 = vunpack.i.l.bf16 %v10491_v56 }
 0x6cb   : > { %v11196_v1 = vpop.eup %11195  ;;  %11207 = vpow2.f32 %v1910_v59  ;;  %v1413_v2 = vpack.c.bf16 %v10488_v61, %v10487_v63  ;;  %1930 = vadd.xlane.f32.xlu0 %v1929_v46  ;;  %v1953_v15 = vsel %vm1833_vm2, %v11194_v10, 0.0  ;;  %v1440_v48 = vpack.c.bf16 %v1431_v3, %v1431_v3 }
 0x6cc   : > { %11209 = vpow2.f32 %v1888_v42  ;;  %v1984_v5 = vpack.c.bf16 %v11194_v10, %v11196_v1  ;;  %v1950_v12 = vsel %vm1833_vm2, %v11196_v1, 0.0  ;;  %v1414_v33 = vpack.c.bf16 %v10493_v4, %v10492_v21  ;;  %v1437_v34 = vpop.permute.xlu0 %1436 }
 0x6cd   : > { %11211 = vpow2.f32 %v1912_v62  ;;  %9796 = vmatpush3.bf16.msra.mxu0 %v1413_v2  ;;  %1951 = vadd.xlane.f32.xlu1 %v1950_v12  ;;  %v1914_v50 = vsel %vm1808_vm3, %v12241_v35, 0.0  ;;  %v1442_v53 = vpack.c.bf16 %v1437_v34, %v1437_v34  ;;  %v1938_v54 = vsel %vm1833_vm2, %v12251_v41, 0.0  ;;  %v10801_v41 = vld [vmem:[#allocation8 + $0x140] sm:$0xff]  }
 0x6ce   : > { %9807 = vmatprep.subr.bf16.mxu0 %v11701_v0  ;;  %v1434_v22 = vpop.permute.xlu1 %1433  ;;  %v1917_v56 = vsel %vm1808_vm3, %v12243_v20, 0.0  ;;  %v1941_v11 = vsel %vm1833_vm2, %v12247_v38, 0.0  ;;  %v10804_v20 = vld [vmem:[#allocation8 + $0x158] sm:$0xff]  }
 0x6cf   : > { %v12279_v17 = vpop.eup %11197  ;;  %1954 = vadd.xlane.f32.xlu0 %v1953_v15  ;;  %v1441_v55 = vpack.c.bf16 %v1434_v22, %v1434_v22  ;;  %v2308_v52 = vsel %vm2165_vm4, %v1442_v53, 0 }
 0x6d0   : > { %v11200_v18 = vpop.eup %11199  ;;  %9798 = vmatmul.mubr.msk.bf16.vlgmr.msra.gmra.mrb[28].mxu0 %vm1833_vm2, %v1984_v5  ;;  %v1920_v13 = vsel %vm1808_vm3, %v12279_v17, 0.0 }
 0x6d1   : > { %v11202_v6 = vpop.eup %11201  ;;  %9808 = vmatpush3.bf16.msra.mxu0 %v2167_v24  ;;  %9809 = vmatprep.mubr.msk.bf16.mxu0 %vm11702_vm0, %v11701_v0  ;;  %v1944_v28 = vsel %vm1833_vm2, %v11200_v18, 0.0  ;;  %v2261_v45 = vsel %vm2165_vm4, %v1441_v55, 0 }
 0x6d2   : > { %v11204_v27 = vpop.eup %11203  ;;  %9819 = vmatprep.subr.bf16.mxu0 %v11701_v0  ;;  %v1979_v29 = vpack.c.bf16 %v11202_v6, %v12279_v17  ;;  %1921 = vadd.xlane.f32.xlu1 %v1920_v13  ;;  %v1923_v25 = vsel %vm1808_vm3, %v11202_v6, 0.0  ;;  %v10806_v6 = vld [vmem:[#allocation8 + $0x168] sm:$0xff]  }
 0x6d3   : > { %1945 = vadd.xlane.f32.xlu0 %v1944_v28  ;;  %v1983_v31 = vpack.c.bf16 %v11204_v27, %v11200_v18  ;;  %v1947_v8 = vsel %vm1833_vm2, %v11204_v27, 0.0 }
 0x6d4   : > { %v11206_v32 = vpop.eup %11205 }
 0x6d5   : > { %v11208_v14 = vpop.eup %11207  ;;  %9792 = vmatmul.mubr.msk.bf16.vlgmr.msra.gmra.mrb[36].mxu1 %vm1833_vm2, %v1983_v31  ;;  %v1932_v36 = vsel %vm1808_vm3, %v11206_v32, 0.0 }
 0x6d6   : > { %v11210_v16 = vpop.eup %11209  ;;  %9802 = vmatpush3.bf16.msra.mxu1 %v1414_v33  ;;  %9803 = vmatprep.mubr.msk.bf16.mxu1 %vm11702_vm0, %v11701_v0  ;;  %v1956_v49 = vsel %vm1833_vm2, %v11208_v14, 0.0 }
 0x6d7   : > { %v11212_v39 = vpop.eup %11211  ;;  %1933 = vadd.xlane.f32.xlu1 %v1932_v36  ;;  %1924 = vadd.xlane.f32.xlu0 %v1923_v25  ;;  %v1981_v43 = vpack.c.bf16 %v11210_v16, %v11206_v32  ;;  %v1935_v51 = vsel %vm1808_vm3, %v11210_v16, 0.0  ;;  %v10807_v32 = vld [vmem:[#allocation8 + $0x170] sm:$0xff]  }
 0x6d8   : > { %9810 = vmatmul.mubr.msk.bf16.vlgmr.msra.gmra.mrb[24].mxu0 %vm1808_vm3, %v1978_v40  ;;  %9813 = vmatprep.subr.bf16.mxu1 %v11701_v0  ;;  %v1985_v47 = vpack.c.bf16 %v11212_v39, %v11208_v14  ;;  %v2214_v40 = vsel %vm2165_vm4, %v1440_v48, 0  ;;  %v1959_v35 = vsel %vm1833_vm2, %v11212_v39, 0.0 }
 0x6d9   : > { %9820 = vmatpush3.bf16.msra.mxu0 %v2261_v45  ;;  %9821 = vmatprep.mubr.msk.bf16.mxu0 %vm11702_vm0, %v11701_v0 }
 0x6da   : > { %9831 = vmatprep.subr.bf16.mxu0 %v11701_v0 }
 0x6db   : > { %1957 = vadd.xlane.f32.xlu1 %v1956_v49  ;;  %1948 = vadd.xlane.f32.xlu0 %v1947_v8 }
 0x6dd   : > { %9804 = vmatmul.mubr.msk.bf16.vlgmr.msra.gmra.mrb[40].mxu1 %vm1833_vm2, %v1985_v47  ;;  %v10808_v47 = vld [vmem:[#allocation8 + $0x178] sm:$0xff]  }
 0x6de   : > { %9814 = vmatpush3.bf16.msra.mxu1 %v2214_v40  ;;  %9815 = vmatprep.mubr.msk.bf16.mxu1 %vm11702_vm0, %v11701_v0 }
 0x6df   : > { %1915 = vadd.xlane.f32.xlu1 %v1914_v50  ;;  %1936 = vadd.xlane.f32.xlu0 %v1935_v51 }
 0x6e0   : > { %9822 = vmatmul.mubr.msk.bf16.vlgmr.msra.gmra.mrb[28].mxu0 %vm1808_vm3, %v1980_v9  ;;  %9825 = vmatprep.subr.bf16.mxu1 %v11701_v0  ;;  %v10805_v9 = vld [vmem:[#allocation8 + $0x160] sm:$0xff]  }
 0x6e1   : > { %9847 = vmatprep.mubr.msk.bf16.mxu0 %vm11702_vm0, %v11701_v0  ;;  %9832 = vmatpush3.bf16.msra.mxu0 %v10801_v41 }
 0x6e2   : > { %9833 = vmatprep.subr.bf16.mxu0 %v11701_v0 }
 0x6e3   : > { %1939 = vadd.xlane.f32.xlu1 %v1938_v54  ;;  %1960 = vadd.xlane.f32.xlu0 %v1959_v35 }
 0x6e5   : > { %9816 = vmatmul.mubr.msk.bf16.vlgmr.msra.gmra.mrb[36].mxu1 %vm1808_vm3, %v1979_v29  ;;  %9834 = vmatpush3.bf16.msra.mxu0 %v10802_v37 }
 0x6e6   : > { %9826 = vmatpush3.bf16.msra.mxu1 %v2308_v52  ;;  %9827 = vmatprep.mubr.msk.bf16.mxu1 %vm11702_vm0, %v11701_v0 }
 0x6e7   : > { %1918 = vadd.xlane.f32.xlu0 %v1917_v56  ;;  %9835 = vmatprep.subr.bf16.mxu0 %v11701_v0 }
 0x6e9   : > { %9836 = vmatpush3.bf16.msra.mxu0 %v10803_v57 }
 0x6ea   : > { %9837 = vmatprep.subr.bf16.mxu0 %v11701_v0 }
 0x6eb   : > { %1942 = vadd.xlane.f32.xlu0 %v1941_v11 }
 0x6ed   : > { %9828 = vmatmul.mubr.msk.bf16.vlgmr.msra.gmra.mrb[40].mxu1 %vm1808_vm3, %v1981_v43  ;;  %9838 = vmatpush3.bf16.msra.mxu0 %v10804_v20 }
 0x6ee   : > { %2751 = vmatprep.mubr.bf16.mxu1 %v11703_v23  ;;  %9839 = vmatprep.subr.bf16.mxu0 %v11701_v0 }
 0x6f1   : > { %9840 = vmatpush3.bf16.msra.mxu0 %v10805_v9 }
 0x6f2   : > { %9841 = vmatprep.subr.bf16.mxu0 %v11701_v0 }
 0x6f5   : > { %9842 = vmatpush3.bf16.msra.mxu0 %v10806_v6 }
 0x6f6   : > { %9843 = vmatprep.subr.bf16.mxu0 %v11701_v0 }
 0x6f9   : > { %9844 = vmatpush3.bf16.msra.mxu0 %v10807_v32  ;;  %v10815_v32 = vld [vmem:[#allocation10 + $0xdc] ss:$12 sps:$4 sm:$0xff]  }
 0x6fa   : > { %9845 = vmatprep.subr.bf16.mxu0 %v11701_v0 }
 0x6fd   : > { %9846 = vmatpush3.bf16.msra.mxu0 %v10808_v47 }
 0x6fe   : > { %9851 = vmatprep.subr.bf16.mxu0 %v11701_v0 }
 0x756   : > { %v1928_v59 = vpop.xlane.xlu1 %1927 }
 0x758   : > { %v1931_v38 = vpop.xlane.xlu0 %1930 }
 0x75a   : > { %v1952_v26 = vpop.xlane.xlu1 %1951 }
 0x75b   : > { %v1966_v63 = vadd.f32 %v1952_v26, %v1928_v59 }
 0x75c   : > { %v1955_v58 = vpop.xlane.xlu0 %1954 }
 0x75d   : > { %v1967_v10 = vadd.f32 %v1955_v58, %v1931_v38  ;;  %11213 = vrcp.f32 %v1966_v63 }
 0x75f   : > { %v1922_v62 = vpop.xlane.xlu1 %1921  ;;  %11215 = vrcp.f32 %v1967_v10 }
 0x760   : > { %v1946_v60 = vpop.xlane.xlu0 %1945 }
 0x761   : > { %v1964_v46 = vadd.f32 %v1946_v60, %v1922_v62 }
 0x763   : > { %11217 = vrcp.f32 %v1964_v46 }
 0x764   : > { %v1925_v42 = vpop.xlane.xlu0 %1924  ;;  %v1934_v30 = vpop.xlane.xlu1 %1933 }
 0x767   : > { %v11214_v21 = vpop.eup %11213 }
 0x768   : > { %v1949_v61 = vpop.xlane.xlu0 %1948  ;;  %v1958_v15 = vpop.xlane.xlu1 %1957 }
 0x769   : > { %v1965_v3 = vadd.f32 %v1949_v61, %v1925_v42  ;;  %v1968_v18 = vadd.f32 %v1958_v15, %v1934_v30  ;;  %v11216_v22 = vpop.eup %11215 }
 0x76b   : > { %11219 = vrcp.f32 %v1965_v3 }
 0x76c   : > { %v1937_v1 = vpop.xlane.xlu0 %1936  ;;  %11221 = vrcp.f32 %v1968_v18  ;;  %v1916_v52 = vpop.xlane.xlu1 %1915 }
 0x76d   : > { %v11218_v14 = vpop.eup %11217 }
 0x770   : > { %v1961_v17 = vpop.xlane.xlu0 %1960  ;;  %v1940_v11 = vpop.xlane.xlu1 %1939 }
 0x771   : > { %v1969_v13 = vadd.f32 %v1961_v17, %v1937_v1  ;;  %v1962_v37 = vadd.f32 %v1940_v11, %v1916_v52  ;;  %v11431_v17 = vld [vmem:[#allocation7] sm:$0xff]  ;;  %v10831_v11 = vld [vmem:[#allocation10 + $0x13c] ss:$12 sps:$4 sm:$0xff]  }
 0x772   : > { %v10825_v52 = vld [vmem:[#allocation10 + $0x120] ss:$12 sps:$4 sm:$0xff]  }
 0x773   : > { %11223 = vrcp.f32 %v1969_v13  ;;  %v11432_v13 = vld [vmem:[#allocation7 + $0x10] sm:$0xff] }
 0x774   : > { %v1919_v56 = vpop.xlane.xlu0 %1918  ;;  %11225 = vrcp.f32 %v1962_v37  ;;  %v10832_v37 = vld [vmem:[#allocation10 + $0x140] ss:$12 sps:$4 sm:$0xff]  }
 0x775   : > { %v11220_v16 = vpop.eup %11219 }
 0x776   : > { %v11222_v8 = vpop.eup %11221 }
 0x778   : > { %v1943_v41 = vpop.xlane.xlu0 %1942 }
 0x779   : > { %v1963_v57 = vadd.f32 %v1943_v41, %v1919_v56  ;;  %v10828_v56 = vld [vmem:[#allocation10 + $0x128] ss:$12 sps:$4 sm:$0xff]   ;;  %v10829_v41 = vld [vmem:[#allocation10 + $0x138] ss:$12 sps:$4 sm:$0xff]  }
 0x77b   : > { %11227 = vrcp.f32 %v1963_v57  ;;  %v10835_v57 = vld [vmem:[#allocation10 + $0x154] ss:$12 sps:$4 sm:$0xff]  }
 0x77d   : > { %v11224_v34 = vpop.eup %11223 }
 0x77e   : > { %v11226_v38 = vpop.eup %11225 }
 0x785   : > { %v11228_v60 = vpop.eup %11227 }
 0x7ab   : > { %v12334_v2 = vpop.f32.mrb[24].mxu0 }
 0x7ac   : > { %v9811_v5 = vpop.f32.mrb[25].mxu0  ;;  %v2351_v26 = vmul.f32 %v11226_v38, %v12334_v2  ;;  %v10836_v38 = vld [vmem:[#allocation10 + $0x158] ss:$12 sps:$4 sm:$0xff]  }
 0x7ad   : > { %v12336_v7 = vpop.f32.mrb[26].mxu0 }
 0x7ae   : > { %v9812_v12 = vpop.f32.mrb[27].mxu0  ;;  %v2352_v42 = vmul.f32 %v11228_v60, %v12336_v7  ;;  %v10840_v60 = vld [vmem:[#allocation10 + $0x170] ss:$12 sps:$4 sm:$0xff]  }
 0x7b3   : > { %v2297_v4 = vpop.f32.mrb[28].mxu0 }
 0x7b4   : > { %v9823_v24 = vpop.f32.mrb[29].mxu0  ;;  %v2355_v28 = vmul.f32 %v11214_v21, %v2297_v4 }
 0x7b5   : > { %v2300_v27 = vpop.f32.mrb[30].mxu0 }
 0x7b6   : > { %v2356_v29 = vmul.f32 %v11216_v22, %v2300_v27  ;;  %v9824_v31 = vpop.f32.mrb[31].mxu0  ;;  %v777_v22 = vld [vmem:[#allocation7 + $0x23] ss:$0 sm:$0xff] }
 0x7b7   : > { %v909_v27 = vadd.f32 %v12082_v44, %v777_v22  ;;  %v10812_v31 = vld [vmem:[#allocation10 + $0xc8] ss:$12 sps:$4 sm:$0xff]   ;;  %v10846_v22 = vld [vmem:[#allocation10 + $0xe0] ss:$12 sps:$4 sm:$0xff]  }
 0x7b8   : > { %v10494_v33 = vpack.i.bf16 %v2356_v29, %v2355_v28  ;;  %v2250_v55 = vpop.f32.mrb[36].mxu1  ;;  %v10809_v28 = vld [vmem:[#allocation10 + $0xc0] ss:$12 sps:$4 sm:$0xff]   ;;  %v10811_v29 = vld [vmem:[#allocation10 + $0xc4] ss:$12 sps:$4 sm:$0xff]  }
 0x7b9   : > { %v9817_v36 = vpop.f32.mrb[37].mxu1  ;;  %v2353_v39 = vmul.f32 %v11218_v14, %v2250_v55  ;;  %2719 = vmatprep.subr.bf16.mxu1 %v10811_v29  ;;  %v10813_v55 = vld [vmem:[#allocation10 + $0xd8] ss:$12 sps:$4 sm:$0xff]  }
 0x7ba   : > { %v2253_v25 = vpop.f32.mrb[38].mxu1  ;;  %10495 = vrot.lane.b32.xlu0 %v10494_v33, %s11705_s3  ;;  %v10816_v33 = vld [vmem:[#allocation10 + $0xe0] ss:$12 sps:$4 sm:$0xff]   ;;  %2720 = vmatpush1.bf16.msra.mxu1 %v10809_v28  ;;  %v10844_v28 = vld [vmem:[#allocation10 + $0xdc] ss:$12 sps:$4 sm:$0xff]  }
 0x7bb   : > { %v2354_v43 = vmul.f32 %v11220_v16, %v2253_v25  ;;  %v9818_v45 = vpop.f32.mrb[39].mxu1  ;;  %2721 = vmatprep.subr.bf16.mxu1 %v10815_v32  ;;  %v10849_v29 = vld [vmem:[#allocation10 + $0xf8] ss:$12 sps:$4 sm:$0xff]   ;;  %v10852_v32 = vld [vmem:[#allocation10 + $0x110] ss:$12 sps:$4 sm:$0xff]  }
 0x7bd   : > { %v10499_v48 = vpack.i.bf16 %v2354_v43, %v2353_v39 }
 0x7be   : > { %2722 = vmatpush1.bf16.msra.mxu1 %v10813_v55  ;;  %v10855_v55 = vld [vmem:[#allocation10 + $0x128] ss:$12 sps:$4 sm:$0xff]  }
 0x7bf   : > { %10500 = vrot.lane.b32.xlu1 %v10499_v48, %s11706_s10 }
 0x7c0   : > { %v2344_v49 = vpop.f32.mrb[40].mxu1 }
 0x7c1   : > { %v9829_v40 = vpop.f32.mrb[41].mxu1  ;;  %v2357_v51 = vmul.f32 %v11222_v8, %v2344_v49 }
 0x7c2   : > { %v2347_v50 = vpop.f32.mrb[42].mxu1  ;;  %v10819_v40 = vld [vmem:[#allocation10 + $0xf4] ss:$12 sps:$4 sm:$0xff]  }
 0x7c3   : > { %v2358_v53 = vmul.f32 %v11224_v34, %v2347_v50  ;;  %v9830_v54 = vpop.f32.mrb[43].mxu1  ;;  %v10817_v34 = vld [vmem:[#allocation10 + $0xf0] ss:$12 sps:$4 sm:$0xff]   ;;  %2723 = vmatprep.subr.bf16.mxu1 %v10819_v40  ;;  %v10820_v50 = vld [vmem:[#allocation10 + $0xf8] ss:$12 sps:$4 sm:$0xff]  }
 0x7c4   : > { %2724 = vmatpush1.bf16.msra.mxu1 %v10817_v34  ;;  %v10824_v54 = vld [vmem:[#allocation10 + $0x110] ss:$12 sps:$4 sm:$0xff]   ;;  %v10862_v40 = vld [vmem:[#allocation10 + $0x16c] ss:$12 sps:$4 sm:$0xff]  }
 0x7c5   : > { %v10504_v35 = vpack.i.bf16 %v2358_v53, %v2357_v51  ;;  %v10823_v51 = vld [vmem:[#allocation10 + $0x10c] ss:$12 sps:$4 sm:$0xff]   ;;  %v10821_v53 = vld [vmem:[#allocation10 + $0x108] ss:$12 sps:$4 sm:$0xff]  }
 0x7c6   : > { %2725 = vmatprep.subr.bf16.mxu1 %v10823_v51 }
 0x7c7   : > { %10505 = vrot.lane.b32.xlu1 %v10504_v35, %s11704_s19  ;;  %v10827_v35 = vld [vmem:[#allocation10 + $0x124] ss:$12 sps:$4 sm:$0xff]  }
 0x7c8   : > { %2726 = vmatpush1.bf16.msra.mxu1 %v10821_v53 }
 0x7c9   : > { %2727 = vmatprep.subr.bf16.mxu1 %v10827_v35 }
 0x7cc   : > { %2728 = vmatpush1.bf16.msra.mxu1 %v10825_v52 }
 0x7cd   : > { %2729 = vmatprep.subr.bf16.mxu1 %v10831_v11 }
 0x7d0   : > { %2730 = vmatpush1.bf16.msra.mxu1 %v10829_v41 }
 0x7d1   : > { %2731 = vmatprep.subr.bf16.mxu1 %v10835_v57 }
 0x82c   : > { %v10496_v62 = vpop.permute.xlu0 %10495 }
 0x82d   : > { %v10498_v10 = vunpack.i.h.bf16 %v10496_v62  ;;  %v10497_v30 = vunpack.i.l.bf16 %v10496_v62 }
 0x831   : > { %v10501_v20 = vpop.permute.xlu1 %10500 }
 0x832   : > { %v10503_v58 = vunpack.i.h.bf16 %v10501_v20  ;;  %v10502_v59 = vunpack.i.l.bf16 %v10501_v20  ;;  %v10833_v20 = vld [vmem:[#allocation10 + $0x150] ss:$12 sps:$4 sm:$0xff]  }
 0x833   : > { %2732 = vmatpush1.bf16.msra.mxu1 %v10833_v20 }
 0x834   : > { %v2384_v61 = vsel %vm1443_vm1, %v2352_v42, %v10503_v58  ;;  %v2383_v63 = vsel %vm1443_vm1, %v2351_v26, %v10502_v59  ;;  %v10839_v58 = vld [vmem:[#allocation10 + $0x16c] ss:$12 sps:$4 sm:$0xff]   ;;  %v10837_v59 = vld [vmem:[#allocation10 + $0x168] ss:$12 sps:$4 sm:$0xff]  }
 0x835   : > { %v2386_v5 = vsel %vm2385_vm5, %v2383_v63, %v10497_v30  ;;  %v2387_v9 = vsel %vm2385_vm5, %v2384_v61, %v10498_v10  ;;  %2733 = vmatprep.subr.bf16.mxu1 %v10839_v58  ;;  %v10843_v26 = vld [vmem:[#allocation10 + $0xc8] ss:$12 sps:$4 sm:$0xff]  }
 0x837   : > { %2734 = vmatpush1.bf16.msra.mxu1 %v10837_v59 }
 0x838   : > { %2884 = vmatprep.subr.bf16.mxu1 %v10843_v26 }
 0x839   : > { %v10506_v46 = vpop.permute.xlu1 %10505 }
 0x83a   : > { %v10508_v1 = vunpack.i.h.bf16 %v10506_v46  ;;  %v10507_v3 = vunpack.i.l.bf16 %v10506_v46 }
 0x83c   : > { %v2390_v2 = vsel %vm2388_vm6, %v2387_v9, %v10508_v1  ;;  %v2389_v7 = vsel %vm2388_vm6, %v2386_v5, %v10507_v3  ;;  %v2514_v1 = vld [vmem:[#allocation7 + $0x35] ss:$0 sm:$0xff] }
 0x83d   : > { %v2407_v12 = vpack.c.bf16 %v2390_v2, %v2389_v7  ;;  %v2515_v7 = vld [vmem:[#allocation7 + $0x36] ss:$0 sm:$0xff] }
 0x83f   : > { %9848 = vmatmul.mubr.bf16.vlgmr.msra.gmra.mrb[32].mxu0 %v2407_v12 }
 0x840   : > { %9867 = vmatprep.mubr.msk.bf16.mxu0 %vm11702_vm0, %v11701_v0  ;;  %9852 = vmatpush3.bf16.msra.mxu0 %v10812_v31  ;;  %v10847_v31 = vld [vmem:[#allocation10 + $0xf4] ss:$12 sps:$4 sm:$0xff]  }
 0x841   : > { %9853 = vmatprep.subr.bf16.mxu0 %v11701_v0 }
 0x844   : > { %9854 = vmatpush3.bf16.msra.mxu0 %v10816_v33  ;;  %v10850_v33 = vld [vmem:[#allocation10 + $0x10c] ss:$12 sps:$4 sm:$0xff]  }
 0x845   : > { %9855 = vmatprep.subr.bf16.mxu0 %v11701_v0 }
 0x848   : > { %9856 = vmatpush3.bf16.msra.mxu0 %v10820_v50 }
 0x849   : > { %9857 = vmatprep.subr.bf16.mxu0 %v11701_v0 }
 0x84c   : > { %9858 = vmatpush3.bf16.msra.mxu0 %v10824_v54 }
 0x84d   : > { %9859 = vmatprep.subr.bf16.mxu0 %v11701_v0 }
 0x850   : > { %9860 = vmatpush3.bf16.msra.mxu0 %v10828_v56 }
 0x851   : > { %9861 = vmatprep.subr.bf16.mxu0 %v11701_v0 }
 0x854   : > { %9862 = vmatpush3.bf16.msra.mxu0 %v10832_v37 }
 0x855   : > { %9863 = vmatprep.subr.bf16.mxu0 %v11701_v0 }
 0x858   : > { %9864 = vmatpush3.bf16.msra.mxu0 %v10836_v38 }
 0x859   : > { %9865 = vmatprep.subr.bf16.mxu0 %v11701_v0 }
 0x85c   : > { %9866 = vmatpush3.bf16.msra.mxu0 %v10840_v60 }
 0x85d   : > { %9871 = vmatprep.subr.bf16.mxu0 %v11701_v0 }
 0x912   : > { %v2490_v15 = vpop.f32.mrb[32].mxu0 }
 0x913   : > { %v12355_v18 = vadd.f32 %v11431_v17, %v2490_v15  ;;  %v9849_v4 = vpop.f32.mrb[33].mxu0 }
 0x914   : > { %v2493_v21 = vpop.f32.mrb[34].mxu0 }
 0x915   : > { %v12357_v24 = vadd.f32 %v11432_v13, %v2493_v21  ;;  %2516 = vadd.xlane.f32.xlu1 %v12355_v18  ;;  %v9850_v6 = vpop.f32.mrb[35].mxu0  ;;  %v10841_v13 = vld [vmem:[#allocation10 + $0xc4] ss:$12 sps:$4 sm:$0xff]  }
 0x917   : > { %2518 = vadd.xlane.f32.xlu0 %v12357_v24 }
 0x91b   : > { %2501 = vadd.xlane.f32.xlu0 %v909_v27 }
 0x9a2   : > { %v2517_v14 = vpop.xlane.xlu1 %2516 }
 0x9a3   : > { %v2520_v36 = vmul.f32 0.0078125, %v2517_v14  ;;  %v10853_v14 = vld [vmem:[#allocation10 + $0x124] ss:$12 sps:$4 sm:$0xff]  }
 0x9a4   : > { %v2519_v44 = vpop.xlane.xlu0 %2518 }
 0x9a5   : > { %v2521_v16 = vmul.f32 0.0078125, %v2519_v44  ;;  %v12365_v25 = vsub.f32 %v12355_v18, %v2520_v36  ;;  %v10858_v36 = vld [vmem:[#allocation10 + $0x140] ss:$12 sps:$4 sm:$0xff]  }
 0x9a7   : > { %v2524_v39 = vmul.f32 %v12365_v25, %v12365_v25  ;;  %v12370_v43 = vsub.f32 %v12357_v24, %v2521_v16  ;;  %v10856_v16 = vld [vmem:[#allocation10 + $0x13c] ss:$12 sps:$4 sm:$0xff]  }
 0x9a8   : > { %v2502_v45 = vpop.xlane.xlu0 %2501 }
 0x9a9   : > { %v2503_v47 = vmul.f32 0.0078125, %v2502_v45  ;;  %2526 = vadd.xlane.f32.xlu1 %v2524_v39  ;;  %v2525_v48 = vmul.f32 %v12370_v43, %v12370_v43  ;;  %v10859_v45 = vld [vmem:[#allocation10 + $0x154] ss:$12 sps:$4 sm:$0xff]  }
 0x9ab   : > { %2528 = vadd.xlane.f32.xlu0 %v2525_v48  ;;  %v12374_v49 = vsub.f32 %v909_v27, %v2503_v47  ;;  %v10864_v47 = vld [vmem:[#allocation10 + $0x170] ss:$12 sps:$4 sm:$0xff]  }
 0x9ad   : > { %v2505_v8 = vmul.f32 %v12374_v49, %v12374_v49 }
 0x9af   : > { %2506 = vadd.xlane.f32.xlu1 %v2505_v8  ;;  %v2500_v8 = vld [vmem:[#allocation7 + $0x34] ss:$0 sm:$0xff] }
 0xa36   : > { %v2527_v42 = vpop.xlane.xlu1 %2526 }
 0xa37   : > { %v2530_v62 = vmul.f32 0.0078125, %v2527_v42 }
 0xa38   : > { %v2529_v61 = vpop.xlane.xlu0 %2528 }
 0xa39   : > { %v2532_v63 = vadd.f32 1e-05, %v2530_v62  ;;  %v2531_v10 = vmul.f32 0.0078125, %v2529_v61 }
 0xa3b   : > { %11229 = vrsqrt.f32 %v2532_v63  ;;  %v2533_v30 = vadd.f32 1e-05, %v2531_v10 }
 0xa3c   : > { %v2507_v12 = vpop.xlane.xlu1 %2506 }
 0xa3d   : > { %11231 = vrsqrt.f32 %v2533_v30  ;;  %v2508_v21 = vmul.f32 0.0078125, %v2507_v12 }
 0xa3f   : > { %v2509_v27 = vadd.f32 1e-05, %v2508_v21 }
 0xa41   : > { %11233 = vrsqrt.f32 %v2509_v27 }
 0xa45   : > { %v11230_v46 = vpop.eup %11229 }
 0xa46   : > { %v2536_v3 = vmul.f32 %v11230_v46, %v12365_v25  ;;  %v10861_v25 = vld [vmem:[#allocation10 + $0x158] ss:$12 sps:$4 sm:$0xff]  }
 0xa47   : > { %v11232_v5 = vpop.eup %11231 }
 0xa48   : > { %v2537_v9 = vmul.f32 %v11232_v5, %v12370_v43  ;;  %v2538_v2 = vmul.f32 %v2536_v3, %v2514_v1  ;;  %v2499_v43 = vld [vmem:[#allocation7 + $0x33] ss:$0 sm:$0xff] }
 0xa4a   : > { %v2539_v15 = vmul.f32 %v2537_v9, %v2514_v1  ;;  %v2540_v17 = vadd.f32 %v2538_v2, %v2515_v7 }
 0xa4b   : > { %v11234_v44 = vpop.eup %11233 }
 0xa4c   : > { %v2541_v4 = vadd.f32 %v2539_v15, %v2515_v7  ;;  %v12390_v39 = vmul.f32 %v11234_v44, %v12374_v49 }
 0xa4e   : > { %v2590_v6 = vpack.c.bf16 %v2541_v4, %v2540_v17  ;;  %v2512_v48 = vmul.f32 %v12390_v39, %v2499_v43 }
 0xa50   : > { %2752 = vmatmul.mubr.bf16.vlgmr.msra.gmra.mrb[44].mxu1 %v2590_v6  ;;  %9868 = vmatmul.mubr.bf16.vlgmr.msra.gmra.mrb[36].mxu0 %v2590_v6  ;;  %v2513_v34 = vadd.f32 %v2512_v48, %v2500_v8 }
 0xa51   : > { %2885 = vmatpush1.bf16.msra.mxu1 %v10841_v13  ;;  %2916 = vmatprep.mubr.bf16.mxu1 %v11703_v23 }
 0xa52   : > { %2886 = vmatprep.subr.bf16.mxu1 %v10846_v22  ;;  %9873 = vmatprep.mubr.msk.bf16.mxu0 %vm11702_vm0, %v11701_v0  ;;  %v2803_v50 = vpack.c.bf16 %v2513_v34, %v2513_v34 }
 0xa55   : > { %2887 = vmatpush1.bf16.msra.mxu1 %v10844_v28 }
 0xa56   : > { %2888 = vmatprep.subr.bf16.mxu1 %v10849_v29 }
 0xa59   : > { %2889 = vmatpush1.bf16.msra.mxu1 %v10847_v31 }
 0xa5a   : > { %2890 = vmatprep.subr.bf16.mxu1 %v10852_v32 }
 0xa5d   : > { %2891 = vmatpush1.bf16.msra.mxu1 %v10850_v33 }
 0xa5e   : > { %2892 = vmatprep.subr.bf16.mxu1 %v10855_v55 }
 0xa61   : > { %2893 = vmatpush1.bf16.msra.mxu1 %v10853_v14 }
 0xa62   : > { %2894 = vmatprep.subr.bf16.mxu1 %v10858_v36 }
 0xa65   : > { %2895 = vmatpush1.bf16.msra.mxu1 %v10856_v16 }
 0xa66   : > { %2896 = vmatprep.subr.bf16.mxu1 %v10861_v25 }
 0xa69   : > { %2897 = vmatpush1.bf16.msra.mxu1 %v10859_v45 }
 0xa6a   : > { %2898 = vmatprep.subr.bf16.mxu1 %v10864_v47 }
 0xa6d   : > { %2899 = vmatpush1.bf16.msra.mxu1 %v10862_v40 }
 0xa6e   : > { %9877 = vmatprep.subr.bf16.mxu1 %v11701_v0 }
 0xa70   : > { %2917 = vmatmul.mubr.bf16.vlgmr.msra.gmra.mrb[48].mxu1 %v2803_v50 }
 0xa71   : > { %9879 = vmatprep.mubr.msk.bf16.mxu1 %vm11702_vm0, %v11701_v0 }
 0xb23   : > { %v2753_v49 = vpop.f32.mrb[44].mxu1  ;;  %v12396_v51 = vpop.f32.mrb[36].mxu0 }
 0xb24   : > { %v2755_v53 = vpop.f32.mrb[45].mxu1  ;;  %v9869_v54 = vpop.f32.mrb[37].mxu0 }
 0xb25   : > { %v2757_v35 = vpop.f32.mrb[46].mxu1  ;;  %v12398_v52 = vpop.f32.mrb[38].mxu0 }
 0xb26   : > { %v12400_v56 = vpack.c.bf16 %v2757_v35, %v2753_v49  ;;  %v2993_v11 = vpack.c.bf16 %v12398_v52, %v12396_v51  ;;  %v9870_v41 = vpop.f32.mrb[39].mxu0  ;;  %2929 = vrot.lane.b32.xlu1 %v2757_v35, %s11704_s19  ;;  %v2759_v37 = vpop.f32.mrb[47].mxu1  ;;  %v10519_v57 = vpack.i.bf16 %v2757_v35, %v2753_v49  ;;  %v12407_v20 = vpack.i.bf16 %v12398_v52, %v12396_v51 }
 0xb27   : > { %v10524_v38 = vpack.i.bf16 %v2759_v37, %v2755_v53  ;;  %v2969_v58 = vpack.c.bf16 %v2759_v37, %v2755_v53 }
 0xb29   : > { %v3214_v31 = vsel %vm1443_vm1, %v2969_v58, 0 }
 0xb43   : > { %v2918_v59 = vpop.f32.mrb[48].mxu1 }
 0xb44   : > { %v12409_v60 = vpop.f32.mrb[49].mxu1  ;;  %v10514_v26 = vpack.i.bf16 %v2753_v49, %v2918_v59  ;;  %v3007_v42 = vpack.c.bf16 %v2918_v59, %v2918_v59 }
 0xb45   : > { %v2922_v62 = vpop.f32.mrb[50].mxu1 }
 0xb46   : > { %10515 = vrot.lane.b32.xlu1 %v10514_v26, %s11705_s3  ;;  %10510 = vrot.lane.b32.xlu0 %v10514_v26, %s11704_s19  ;;  %v2923_v61 = vpop.f32.mrb[51].mxu1  ;;  %v3029_v63 = vsel %vm1443_vm1, %v3007_v42, 0 }
 0xb47   : > { %9872 = vmatpush3.bf16.xpose.msra.mxu0 %v3029_v63 }
 0xb48   : > { %9883 = vmatprep.subr.bf16.mxu0 %v11701_v0 }
 0xb4a   : > { %3004 = vrot.lane.b32.xlu1 %v2918_v59, %s11706_s10  ;;  %2935 = vrot.lane.b32.xlu0 %v2757_v35, %s11705_s3 }
 0xb4e   : > { %10520 = vrot.lane.b32.xlu1 %v10519_v57, %s11706_s10  ;;  %10525 = vrot.lane.b32.xlu0 %v10524_v38, %s11704_s19 }
 0xb4f   : > { %9874 = vmatmul.mubr.msk.bf16.vlgmr.msra.gmra.mrb[40].mxu0 %vm1443_vm1, %v12400_v56 }
 0xb50   : > { %9885 = vmatprep.mubr.msk.bf16.mxu0 %vm11702_vm0, %v11701_v0 }
 0xb52   : > { %10530 = vrot.lane.b32.xlu1 %v10524_v38, %s11705_s3  ;;  %10535 = vrot.lane.b32.xlu0 %v10524_v38, %s11706_s10 }
 0xb56   : > { %10540 = vrot.lane.b32.xlu1 %v12407_v20, %s11704_s19 }
 0xb98   : > { %v2930_v10 = vpop.permute.xlu1 %2929 }
 0xbb8   : > { %v10516_v30 = vpop.permute.xlu1 %10515  ;;  %v10511_v46 = vpop.permute.xlu0 %10510 }
 0xbb9   : > { %v10517_v1 = vunpack.i.l.bf16 %v10516_v30  ;;  %v10512_v3 = vunpack.i.l.bf16 %v10511_v46  ;;  %v10513_v17 = vunpack.i.h.bf16 %v10511_v46  ;;  %v10518_v13 = vunpack.i.h.bf16 %v10516_v30 }
 0xbbb   : > { %v3009_v5 = vpack.c.bf16 %v10517_v1, %v10517_v1  ;;  %v3008_v9 = vpack.c.bf16 %v10512_v3, %v10512_v3  ;;  %v2946_v22 = vpack.c.bf16 %v2930_v10, %v10513_v17 }
 0xbbc   : > { %v3005_v2 = vpop.permute.xlu1 %3004  ;;  %v2936_v7 = vpop.permute.xlu0 %2935 }
 0xbbd   : > { %v3076_v12 = vsel %vm1443_vm1, %v3008_v9, 0  ;;  %v3123_v15 = vsel %vm1443_vm1, %v3009_v5, 0  ;;  %v3010_v4 = vpack.c.bf16 %v3005_v2, %v3005_v2  ;;  %v2947_v27 = vpack.c.bf16 %v2936_v7, %v10518_v13 }
 0xbbe   : > { %9878 = vmatpush3.bf16.xpose.msra.mxu1 %v3076_v12  ;;  %9884 = vmatpush3.bf16.xpose.msra.mxu0 %v3123_v15 }
 0xbbf   : > { %9889 = vmatprep.subr.bf16.mxu1 %v11701_v0  ;;  %9895 = vmatprep.subr.bf16.mxu0 %v11701_v0  ;;  %v3170_v29 = vsel %vm1443_vm1, %v3010_v4, 0 }
 0xbc0   : > { %v10521_v21 = vpop.permute.xlu1 %10520  ;;  %v10526_v6 = vpop.permute.xlu0 %10525 }
 0xbc1   : > { %v10528_v32 = vunpack.i.h.bf16 %v10526_v6  ;;  %v10527_v33 = vunpack.i.l.bf16 %v10526_v6  ;;  %v10523_v36 = vunpack.i.h.bf16 %v10521_v21  ;;  %v10522_v44 = vunpack.i.l.bf16 %v10521_v21 }
 0xbc3   : > { %v2970_v16 = vpack.c.bf16 %v10528_v32, %v10527_v33  ;;  %v2948_v45 = vpack.c.bf16 %v10523_v36, %v10522_v44 }
 0xbc4   : > { %v10531_v28 = vpop.permute.xlu1 %10530  ;;  %v10536_v43 = vpop.permute.xlu0 %10535 }
 0xbc5   : > { %v10533_v55 = vunpack.i.h.bf16 %v10531_v28  ;;  %v10532_v14 = vunpack.i.l.bf16 %v10531_v28  ;;  %9880 = vmatmul.mubr.msk.bf16.vlgmr.msra.gmra.mrb[52].mxu1 %vm1443_vm1, %v2946_v22  ;;  %9886 = vmatmul.mubr.msk.bf16.vlgmr.msra.gmra.mrb[44].mxu0 %vm1443_vm1, %v2947_v27  ;;  %v10538_v47 = vunpack.i.h.bf16 %v10536_v43  ;;  %v10537_v48 = vunpack.i.l.bf16 %v10536_v43 }
 0xbc6   : > { %9890 = vmatpush3.bf16.xpose.msra.mxu1 %v3170_v29  ;;  %9896 = vmatpush3.bf16.xpose.msra.mxu0 %v3214_v31  ;;  %v3258_v8 = vsel %vm1443_vm1, %v2970_v16, 0 }
 0xbc7   : > { %9891 = vmatprep.mubr.msk.bf16.mxu1 %vm11702_vm0, %v11701_v0  ;;  %9897 = vmatprep.mubr.msk.bf16.mxu0 %vm11702_vm0, %v11701_v0  ;;  %v2971_v25 = vpack.c.bf16 %v10533_v55, %v10532_v14  ;;  %v2972_v34 = vpack.c.bf16 %v10538_v47, %v10537_v48 }
 0xbc8   : > { %9901 = vmatprep.subr.bf16.mxu1 %v11701_v0  ;;  %9907 = vmatprep.subr.bf16.mxu0 %v11701_v0  ;;  %v10541_v50 = vpop.permute.xlu1 %10540 }
 0xbc9   : > { %v3302_v40 = vsel %vm1443_vm1, %v2971_v25, 0  ;;  %v3346_v49 = vsel %vm1443_vm1, %v2972_v34, 0  ;;  %v10543_v53 = vunpack.i.h.bf16 %v10541_v50  ;;  %v10542_v54 = vunpack.i.l.bf16 %v10541_v50 }
 0xbcb   : > { %v2994_v35 = vpack.c.bf16 %v10543_v53, %v10542_v54 }
 0xbcd   : > { %9892 = vmatmul.mubr.msk.bf16.vlgmr.msra.gmra.mrb[56].mxu1 %vm1443_vm1, %v2948_v45  ;;  %9898 = vmatmul.mubr.msk.bf16.vlgmr.msra.gmra.mrb[48].mxu0 %vm1443_vm1, %v12400_v56 }
 0xbce   : > { %9902 = vmatpush3.bf16.xpose.msra.mxu1 %v3258_v8  ;;  %9908 = vmatpush3.bf16.xpose.msra.mxu0 %v3302_v40 }
 0xbcf   : > { %9903 = vmatprep.mubr.msk.bf16.mxu1 %vm11702_vm0, %v11701_v0  ;;  %9909 = vmatprep.mubr.msk.bf16.mxu0 %vm11702_vm0, %v11701_v0 }
 0xbd0   : > { %9913 = vmatprep.subr.bf16.mxu1 %v11701_v0  ;;  %9919 = vmatprep.subr.bf16.mxu0 %v11701_v0 }
 0xbd5   : > { %9904 = vmatmul.mubr.msk.bf16.vlgmr.msra.gmra.mrb[60].mxu1 %vm1443_vm1, %v2946_v22  ;;  %9910 = vmatmul.mubr.msk.bf16.vlgmr.msra.gmra.mrb[52].mxu0 %vm1443_vm1, %v2947_v27 }
 0xbd6   : > { %9914 = vmatpush3.bf16.xpose.msra.mxu1 %v3346_v49  ;;  %9920 = vmatpush3.bf16.msra.mxu0 %v2993_v11 }
 0xbd7   : > { %9915 = vmatprep.mubr.msk.bf16.mxu1 %vm11702_vm0, %v11701_v0  ;;  %9925 = vmatprep.subr.bf16.mxu1 %v11701_v0 }
 0xbd8   : > { %9921 = vmatprep.mubr.msk.bf16.mxu0 %vm11702_vm0, %v11701_v0  ;;  %9931 = vmatprep.subr.bf16.mxu0 %v11701_v0 }
 0xbdd   : > { %9916 = vmatmul.mubr.msk.bf16.vlgmr.msra.gmra.mrb[64].mxu1 %vm1443_vm1, %v2948_v45 }
 0xbde   : > { %9926 = vmatpush3.bf16.msra.mxu1 %v2994_v35  ;;  %9927 = vmatprep.mubr.msk.bf16.mxu1 %vm11702_vm0, %v11701_v0 }
 0xbdf   : > { %9937 = vmatprep.subr.bf16.mxu1 %v11701_v0 }
 0xc22   : > { %v12468_v51 = vpop.f32.mrb[40].mxu0 }
 0xc23   : > { %v9875_v52 = vpop.f32.mrb[41].mxu0  ;;  %v3389_v56 = vsel %vm1808_vm3, %v12468_v51, -inf }
 0xc24   : > { %3390 = vmax.xlane.f32.xlu1 %v3389_v56  ;;  %v12472_v11 = vpop.f32.mrb[42].mxu0 }
 0xc25   : > { %v9876_v41 = vpop.f32.mrb[43].mxu0  ;;  %v3392_v37 = vsel %vm1808_vm3, %v12472_v11, -inf }
 0xc26   : > { %3393 = vmax.xlane.f32.xlu0 %v3392_v37 }
 0xc98   : > { %v12476_v57 = vpop.f32.mrb[52].mxu1  ;;  %v12478_v38 = vpop.f32.mrb[44].mxu0 }
 0xc99   : > { %v9881_v58 = vpop.f32.mrb[53].mxu1  ;;  %v9887_v59 = vpop.f32.mrb[45].mxu0  ;;  %v3395_v26 = vsel %vm1808_vm3, %v12476_v57, -inf  ;;  %v3401_v30 = vsel %vm1808_vm3, %v12478_v38, -inf }
 0xc9a   : > { %v12482_v42 = vpop.f32.mrb[46].mxu0  ;;  %3396 = vmax.xlane.f32.xlu1 %v3395_v26  ;;  %v12484_v62 = vpop.f32.mrb[54].mxu1 }
 0xc9b   : > { %v9882_v61 = vpop.f32.mrb[55].mxu1  ;;  %v9888_v63 = vpop.f32.mrb[47].mxu0  ;;  %v3398_v10 = vsel %vm1808_vm3, %v12484_v62, -inf  ;;  %v3404_v46 = vsel %vm1808_vm3, %v12482_v42, -inf }
 0xc9c   : > { %3399 = vmax.xlane.f32.xlu0 %v3398_v10 }
 0xc9e   : > { %3402 = vmax.xlane.f32.xlu1 %v3401_v30 }
 0xca0   : > { %v3250_v1 = vpop.f32.mrb[48].mxu0  ;;  %3405 = vmax.xlane.f32.xlu0 %v3404_v46  ;;  %v12492_v3 = vpop.f32.mrb[56].mxu1 }
 0xca1   : > { %v9893_v5 = vpop.f32.mrb[57].mxu1  ;;  %v9899_v9 = vpop.f32.mrb[49].mxu0  ;;  %v3407_v2 = vsel %vm1808_vm3, %v12492_v3, -inf  ;;  %v3413_v4 = vsel %vm1833_vm2, %v3250_v1, -inf }
 0xca2   : > { %v3253_v7 = vpop.f32.mrb[50].mxu0  ;;  %3408 = vmax.xlane.f32.xlu1 %v3407_v2  ;;  %v12496_v12 = vpop.f32.mrb[58].mxu1 }
 0xca3   : > { %v9894_v15 = vpop.f32.mrb[59].mxu1  ;;  %v9900_v17 = vpop.f32.mrb[51].mxu0  ;;  %v3416_v21 = vsel %vm1833_vm2, %v3253_v7, -inf  ;;  %v3410_v55 = vsel %vm1808_vm3, %v12496_v12, -inf }
 0xca4   : > { %3414 = vmax.xlane.f32.xlu0 %v3413_v4 }
 0xca8   : > { %v12500_v13 = vpop.f32.mrb[52].mxu0  ;;  %3417 = vmax.xlane.f32.xlu0 %v3416_v21  ;;  %v3294_v6 = vpop.f32.mrb[60].mxu1 }
 0xca9   : > { %v9905_v22 = vpop.f32.mrb[61].mxu1  ;;  %v9911_v27 = vpop.f32.mrb[53].mxu0  ;;  %v3419_v28 = vsel %vm1833_vm2, %v3294_v6, -inf  ;;  %v3425_v14 = vsel %vm1833_vm2, %v12500_v13, -inf }
 0xcaa   : > { %v12503_v29 = vpop.f32.mrb[54].mxu0  ;;  %3420 = vmax.xlane.f32.xlu1 %v3419_v28  ;;  %v12505_v31 = vpop.f32.mrb[62].mxu1 }
 0xcab   : > { %v9906_v32 = vpop.f32.mrb[63].mxu1  ;;  %v9912_v33 = vpop.f32.mrb[55].mxu0  ;;  %v3422_v36 = vsel %vm1833_vm2, %v12505_v31, -inf  ;;  %v3428_v47 = vsel %vm1833_vm2, %v12503_v29, -inf }
 0xcac   : > { %3411 = vmax.xlane.f32.xlu0 %v3410_v55 }
 0xcae   : > { %3426 = vmax.xlane.f32.xlu1 %v3425_v14 }
 0xcb0   : > { %3423 = vmax.xlane.f32.xlu0 %v3422_v36  ;;  %v12513_v44 = vpop.f32.mrb[64].mxu1 }
 0xcb1   : > { %v9917_v16 = vpop.f32.mrb[65].mxu1  ;;  %v3431_v25 = vsel %vm1833_vm2, %v12513_v44, -inf  ;;  %v3391_v8 = vpop.xlane.xlu1 %3390 }
 0xcb2   : > { %3432 = vmax.xlane.f32.xlu1 %v3431_v25  ;;  %v12517_v43 = vpop.f32.mrb[66].mxu1 }
 0xcb3   : > { %v9918_v45 = vpop.f32.mrb[67].mxu1  ;;  %v3434_v48 = vsel %vm1833_vm2, %v12517_v43, -inf  ;;  %v3394_v40 = vpop.xlane.xlu0 %3393 }
 0xcb4   : > { %3429 = vmax.xlane.f32.xlu0 %v3428_v47 }
 0xcb8   : > { %3435 = vmax.xlane.f32.xlu0 %v3434_v48 }
 0xcc3   : > { %10550 = vrot.lane.b32.xlu1 %v12407_v20, %s11706_s10 }
 0xcc7   : > { %3012 = vrot.lane.b32.xlu1 %v12409_v60, %s11704_s19 }
 0xccb   : > { %3015 = vrot.lane.b32.xlu1 %v12409_v60, %s11705_s3 }
 0xcce   : > { %10545 = vrot.lane.b32.xlu0 %v12407_v20, %s11705_s3 }
 0xcd2   : > { %3018 = vrot.lane.b32.xlu0 %v12409_v60, %s11706_s10 }
 0xd27   : > { %v3397_v34 = vpop.xlane.xlu1 %3396 }
 0xd29   : > { %v3400_v50 = vpop.xlane.xlu0 %3399 }
 0xd2b   : > { %v3403_v49 = vpop.xlane.xlu1 %3402 }
 0xd2d   : > { %v3406_v53 = vpop.xlane.xlu0 %3405 }
 0xd2f   : > { %v3409_v52 = vpop.xlane.xlu1 %3408 }
 0xd31   : > { %v3415_v54 = vpop.xlane.xlu0 %3414 }
 0xd32   : > { %v3437_v35 = vmax.f32 %v3391_v8, %v3415_v54 }
 0xd34   : > { %v3445_v56 = vsub.f32 %v12468_v51, %v3437_v35  ;;  %v3469_v41 = vsub.f32 %v3250_v1, %v3437_v35 }
 0xd35   : > { %v3418_v37 = vpop.xlane.xlu0 %3417 }
 0xd36   : > { %v3453_v58 = vmul.f32 1.442695, %v3445_v56  ;;  %v3438_v59 = vmax.f32 %v3394_v40, %v3418_v37  ;;  %v3477_v26 = vmul.f32 1.442695, %v3469_v41 }
 0xd37   : > { %v3421_v20 = vpop.xlane.xlu1 %3420 }
 0xd38   : > { %v3446_v61 = vsub.f32 %v12472_v11, %v3438_v59  ;;  %v3470_v63 = vsub.f32 %v3253_v7, %v3438_v59  ;;  %v3439_v10 = vmax.f32 %v3397_v34, %v3421_v20  ;;  %11235 = vpow2.f32 %v3453_v58 }
 0xd39   : > { %v3412_v30 = vpop.xlane.xlu0 %3411  ;;  %11237 = vpow2.f32 %v3477_v26 }
 0xd3a   : > { %v3455_v46 = vmul.f32 1.442695, %v3446_v61  ;;  %v3479_v5 = vmul.f32 1.442695, %v3470_v63  ;;  %v3447_v9 = vsub.f32 %v12476_v57, %v3439_v10  ;;  %v3471_v2 = vsub.f32 %v3294_v6, %v3439_v10 }
 0xd3b   : > { %v3427_v15 = vpop.xlane.xlu1 %3426 }
 0xd3c   : > { %11239 = vpow2.f32 %v3455_v46  ;;  %v3457_v51 = vmul.f32 1.442695, %v3447_v9  ;;  %v3481_v1 = vmul.f32 1.442695, %v3471_v2  ;;  %v3441_v17 = vmax.f32 %v3403_v49, %v3427_v15 }
 0xd3d   : > { %11241 = vpow2.f32 %v3479_v5  ;;  %v3424_v4 = vpop.xlane.xlu0 %3423 }
 0xd3e   : > { %11243 = vpow2.f32 %v3457_v51  ;;  %v3449_v11 = vsub.f32 %v12478_v38, %v3441_v17  ;;  %v3473_v7 = vsub.f32 %v12500_v13, %v3441_v17  ;;  %v3440_v21 = vmax.f32 %v3400_v50, %v3424_v4 }
 0xd3f   : > { %11245 = vpow2.f32 %v3481_v1  ;;  %v3433_v22 = vpop.xlane.xlu1 %3432 }
 0xd40   : > { %v3461_v27 = vmul.f32 1.442695, %v3449_v11  ;;  %v3485_v28 = vmul.f32 1.442695, %v3473_v7  ;;  %v3448_v57 = vsub.f32 %v12484_v62, %v3440_v21  ;;  %v3472_v6 = vsub.f32 %v12505_v31, %v3440_v21 }
 0xd41   : > { %v3443_v32 = vmax.f32 %v3409_v52, %v3433_v22  ;;  %v3430_v33 = vpop.xlane.xlu0 %3429  ;;  %v3021_v7 = vpack.c.bf16 %v12409_v60, %v12409_v60 }
 0xd42   : > { %11247 = vpow2.f32 %v3461_v27  ;;  %v3459_v55 = vmul.f32 1.442695, %v3448_v57  ;;  %v3483_v14 = vmul.f32 1.442695, %v3472_v6  ;;  %v3442_v36 = vmax.f32 %v3406_v53, %v3430_v33  ;;  %v12540_v16 = vpop.eup %11235 }
 0xd43   : > { %11249 = vpow2.f32 %v3485_v28  ;;  %v3451_v38 = vsub.f32 %v12492_v3, %v3443_v32  ;;  %v3475_v13 = vsub.f32 %v12513_v44, %v3443_v32  ;;  %v12546_v45 = vpop.eup %11237  ;;  %v10551_v54 = vpop.permute.xlu1 %10550  ;;  %v3745_v60 = vsel %vm2165_vm4, %v3021_v7, 0 }
 0xd44   : > { %11251 = vpow2.f32 %v3459_v55  ;;  %v3450_v25 = vsub.f32 %v12482_v42, %v3442_v36  ;;  %v3474_v62 = vsub.f32 %v12503_v29, %v3442_v36  ;;  %v10553_v26 = vunpack.i.h.bf16 %v10551_v54 }
 0xd45   : > { %11253 = vpow2.f32 %v3483_v14  ;;  %v3465_v31 = vmul.f32 1.442695, %v3451_v38  ;;  %v3436_v47 = vpop.xlane.xlu0 %3435  ;;  %v3489_v3 = vmul.f32 1.442695, %v3475_v13  ;;  %v10552_v61 = vunpack.i.l.bf16 %v10551_v54  ;;  %v10867_v54 = vld [vmem:[#allocation8 + $0x190] sm:$0xff]  }
 0xd46   : > { %v12548_v48 = vpop.eup %11239  ;;  %v3463_v8 = vmul.f32 1.442695, %v3450_v25  ;;  %v3487_v40 = vmul.f32 1.442695, %v3474_v62  ;;  %v3444_v34 = vmax.f32 %v3412_v30, %v3436_v47 }
 0xd47   : > { %v12550_v50 = vpop.eup %11241  ;;  %v3557_v44 = vpack.c.bf16 %v12548_v48, %v12540_v16  ;;  %11255 = vpow2.f32 %v3465_v31  ;;  %v2996_v15 = vpack.c.bf16 %v10553_v26, %v10552_v61  ;;  %v3013_v17 = vpop.permute.xlu1 %3012 }
 0xd48   : > { %v12554_v49 = vpop.eup %11243  ;;  %v3452_v42 = vsub.f32 %v12496_v12, %v3444_v34  ;;  %v3476_v29 = vsub.f32 %v12517_v43, %v3444_v34  ;;  %11257 = vpow2.f32 %v3463_v8  ;;  %v3561_v35 = vpack.c.bf16 %v12550_v50, %v12546_v45 }
 0xd49   : > { %v11246_v53 = vpop.eup %11245  ;;  %v10546_v52 = vpop.permute.xlu0 %10545  ;;  %v3499_v56 = vsel %vm1808_vm3, %v12554_v49, 0.0  ;;  %11259 = vpow2.f32 %v3487_v40  ;;  %v3022_v32 = vpack.c.bf16 %v3013_v17, %v3013_v17  ;;  %v3493_v8 = vsel %vm1808_vm3, %v12540_v16, 0.0 }
 0xd4a   : > { %v3467_v41 = vmul.f32 1.442695, %v3452_v42  ;;  %v3491_v37 = vmul.f32 1.442695, %v3476_v29  ;;  %v10548_v58 = vunpack.i.h.bf16 %v10546_v52  ;;  %3500 = vadd.xlane.f32.xlu1 %v3499_v56  ;;  %11261 = vpow2.f32 %v3489_v3  ;;  %9922 = vmatmul.mubr.msk.bf16.vlgmr.msra.gmra.mrb[56].mxu0 %vm1833_vm2, %v3561_v35  ;;  %v10865_v29 = vld [vmem:[#allocation8 + $0x180] sm:$0xff]  }
 0xd4b   : > { %v10547_v12 = vunpack.i.l.bf16 %v10546_v52  ;;  %v3523_v43 = vsel %vm1833_vm2, %v11246_v53, 0.0  ;;  %9933 = vmatprep.mubr.msk.bf16.mxu0 %vm11702_vm0, %v11701_v0  ;;  %v3016_v36 = vpop.permute.xlu1 %3015  ;;  %v3792_v25 = vsel %vm2165_vm4, %v3022_v32, 0  ;;  %v3520_v42 = vsel %vm1833_vm2, %v12550_v50, 0.0  ;;  %v10869_v35 = vld [vmem:[#allocation8 + $0x1a0] sm:$0xff]   ;;  %v10872_v32 = vld [vmem:[#allocation8 + $0x1b8] sm:$0xff]  }
 0xd4c   : > { %v12564_v59 = vpop.eup %11247  ;;  %11263 = vpow2.f32 %v3467_v41  ;;  %3524 = vadd.xlane.f32.xlu0 %v3523_v43  ;;  %v3023_v62 = vpack.c.bf16 %v3016_v36, %v3016_v36 }
 0xd4d   : > { %v11250_v20 = vpop.eup %11249  ;;  %11265 = vpow2.f32 %v3491_v37  ;;  %v2995_v63 = vpack.c.bf16 %v10548_v58, %v10547_v12  ;;  %v3505_v10 = vsel %vm1808_vm3, %v12564_v59, 0.0  ;;  %v3019_v31 = vpop.permute.xlu0 %3018 }
 0xd4e   : > { %v12570_v30 = vpop.eup %11251  ;;  %3506 = vadd.xlane.f32.xlu1 %v3505_v10  ;;  %v3529_v51 = vsel %vm1833_vm2, %v11250_v20, 0.0  ;;  %v3024_v40 = vpack.c.bf16 %v3019_v31, %v3019_v31  ;;  %v3839_v34 = vsel %vm2165_vm4, %v3023_v62, 0 }
 0xd4f   : > { %v11254_v46 = vpop.eup %11253  ;;  %9932 = vmatpush3.bf16.msra.mxu0 %v2995_v63  ;;  %v3502_v5 = vsel %vm1808_vm3, %v12570_v30, 0.0  ;;  %v3558_v9 = vpack.c.bf16 %v12570_v30, %v12554_v49  ;;  %v3517_v49 = vsel %vm1833_vm2, %v12546_v45, 0.0  ;;  %v3496_v45 = vsel %vm1808_vm3, %v12548_v48, 0.0  ;;  %v10868_v48 = vld [vmem:[#allocation8 + $0x198] sm:$0xff]  }
 0xd50   : > { %3503 = vadd.xlane.f32.xlu0 %v3502_v5  ;;  %v3562_v2 = vpack.c.bf16 %v11254_v46, %v11246_v53  ;;  %9943 = vmatprep.subr.bf16.mxu0 %v11701_v0  ;;  %v3526_v11 = vsel %vm1833_vm2, %v11254_v46, 0.0  ;;  %v3886_v16 = vsel %vm2165_vm4, %v3024_v40, 0  ;;  %v10866_v53 = vld [vmem:[#allocation8 + $0x188] sm:$0xff]  }
 0xd51   : > { %v12578_v1 = vpop.eup %11255 }
 0xd52   : > { %9928 = vmatmul.mubr.msk.bf16.vlgmr.msra.gmra.mrb[68].mxu1 %vm1833_vm2, %v3562_v2  ;;  %3530 = vadd.xlane.f32.xlu1 %v3529_v51  ;;  %v11258_v4 = vpop.eup %11257  ;;  %v3511_v57 = vsel %vm1808_vm3, %v12578_v1, 0.0  ;;  %v10870_v2 = vld [vmem:[#allocation8 + $0x1a8] sm:$0xff]  }
 0xd53   : > { %9938 = vmatpush3.bf16.msra.mxu1 %v2996_v15  ;;  %9939 = vmatprep.mubr.msk.bf16.mxu1 %vm11702_vm0, %v11701_v0  ;;  %v11260_v21 = vpop.eup %11259  ;;  %v3559_v22 = vpack.c.bf16 %v11258_v4, %v12564_v59  ;;  %v3508_v55 = vsel %vm1808_vm3, %v11258_v4, 0.0 }
 0xd54   : > { %3527 = vadd.xlane.f32.xlu0 %v3526_v11  ;;  %9949 = vmatprep.subr.bf16.mxu1 %v11701_v0  ;;  %v11262_v27 = vpop.eup %11261  ;;  %v3563_v28 = vpack.c.bf16 %v11260_v21, %v11250_v20  ;;  %v3532_v47 = vsel %vm1833_vm2, %v11260_v21, 0.0  ;;  %v10871_v11 = vld [vmem:[#allocation8 + $0x1b0] sm:$0xff]  }
 0xd55   : > { %v3535_v13 = vsel %vm1833_vm2, %v11262_v27, 0.0 }
 0xd56   : > { %v11264_v6 = vpop.eup %11263  ;;  %3512 = vadd.xlane.f32.xlu1 %v3511_v57  ;;  %9934 = vmatmul.mubr.msk.bf16.vlgmr.msra.gmra.mrb[60].mxu0 %vm1833_vm2, %v3563_v28 }
 0xd57   : > { %v11266_v33 = vpop.eup %11265  ;;  %v3560_v14 = vpack.c.bf16 %v11264_v6, %v12578_v1  ;;  %9944 = vmatpush3.bf16.msra.mxu0 %v3745_v60  ;;  %9945 = vmatprep.mubr.msk.bf16.mxu0 %vm11702_vm0, %v11701_v0  ;;  %v3514_v3 = vsel %vm1808_vm3, %v11264_v6, 0.0 }
 0xd58   : > { %3509 = vadd.xlane.f32.xlu0 %v3508_v55  ;;  %v3564_v38 = vpack.c.bf16 %v11266_v33, %v11262_v27  ;;  %9955 = vmatprep.subr.bf16.mxu0 %v11701_v0 }
 0xd5a   : > { %9940 = vmatmul.mubr.msk.bf16.vlgmr.msra.gmra.mrb[72].mxu1 %vm1833_vm2, %v3564_v38  ;;  %3536 = vadd.xlane.f32.xlu1 %v3535_v13 }
 0xd5b   : > { %9950 = vmatpush3.bf16.msra.mxu1 %v3792_v25  ;;  %9951 = vmatprep.mubr.msk.bf16.mxu1 %vm11702_vm0, %v11701_v0 }
 0xd5c   : > { %3533 = vadd.xlane.f32.xlu0 %v3532_v47  ;;  %9961 = vmatprep.subr.bf16.mxu1 %v11701_v0 }
 0xd5e   : > { %3494 = vadd.xlane.f32.xlu1 %v3493_v8  ;;  %9946 = vmatmul.mubr.msk.bf16.vlgmr.msra.gmra.mrb[56].mxu0 %vm1808_vm3, %v3557_v44  ;;  %v3538_v44 = vsel %vm1833_vm2, %v11266_v33, 0.0 }
 0xd5f   : > { %9956 = vmatpush3.bf16.msra.mxu0 %v3839_v34  ;;  %9957 = vmatprep.mubr.msk.bf16.mxu0 %vm11702_vm0, %v11701_v0 }
 0xd60   : > { %3515 = vadd.xlane.f32.xlu0 %v3514_v3  ;;  %9967 = vmatprep.subr.bf16.mxu0 %v11701_v0 }
 0xd62   : > { %9952 = vmatmul.mubr.msk.bf16.vlgmr.msra.gmra.mrb[68].mxu1 %vm1808_vm3, %v3558_v9  ;;  %3518 = vadd.xlane.f32.xlu1 %v3517_v49 }
 0xd63   : > { %9962 = vmatpush3.bf16.msra.mxu1 %v3886_v16  ;;  %9963 = vmatprep.mubr.msk.bf16.mxu1 %vm11702_vm0, %v11701_v0 }
 0xd64   : > { %3539 = vadd.xlane.f32.xlu0 %v3538_v44 }
 0xd66   : > { %9958 = vmatmul.mubr.msk.bf16.vlgmr.msra.gmra.mrb[60].mxu0 %vm1808_vm3, %v3559_v22 }
 0xd67   : > { %9983 = vmatprep.mubr.msk.bf16.mxu0 %vm11702_vm0, %v11701_v0  ;;  %9968 = vmatpush3.bf16.msra.mxu0 %v10865_v29 }
 0xd68   : > { %3497 = vadd.xlane.f32.xlu0 %v3496_v45  ;;  %9969 = vmatprep.subr.bf16.mxu0 %v11701_v0 }
 0xd6a   : > { %9964 = vmatmul.mubr.msk.bf16.vlgmr.msra.gmra.mrb[72].mxu1 %vm1808_vm3, %v3560_v14 }
 0xd6b   : > { %4328 = vmatprep.mubr.bf16.mxu1 %v11703_v23  ;;  %9970 = vmatpush3.bf16.msra.mxu0 %v10866_v53 }
 0xd6c   : > { %3521 = vadd.xlane.f32.xlu0 %v3520_v42  ;;  %9971 = vmatprep.subr.bf16.mxu0 %v11701_v0 }
 0xd6f   : > { %9972 = vmatpush3.bf16.msra.mxu0 %v10867_v54 }
 0xd70   : > { %9973 = vmatprep.subr.bf16.mxu0 %v11701_v0 }
 0xd73   : > { %9974 = vmatpush3.bf16.msra.mxu0 %v10868_v48 }
 0xd74   : > { %9975 = vmatprep.subr.bf16.mxu0 %v11701_v0 }
 0xd77   : > { %9976 = vmatpush3.bf16.msra.mxu0 %v10869_v35 }
 0xd78   : > { %9977 = vmatprep.subr.bf16.mxu0 %v11701_v0 }
 0xd7b   : > { %9978 = vmatpush3.bf16.msra.mxu0 %v10870_v2 }
 0xd7c   : > { %9979 = vmatprep.subr.bf16.mxu0 %v11701_v0 }
 0xd7f   : > { %9980 = vmatpush3.bf16.msra.mxu0 %v10871_v11 }
 0xd80   : > { %9981 = vmatprep.subr.bf16.mxu0 %v11701_v0 }
 0xd83   : > { %9982 = vmatpush3.bf16.msra.mxu0 %v10872_v32  ;;  %v10882_v32 = vld [vmem:[#allocation11 + $0x28] ss:$16 sps:$4 sm:$0xff]  }
 0xdd7   : > { %v3501_v56 = vpop.xlane.xlu1 %3500 }
 0xdd9   : > { %v3525_v50 = vpop.xlane.xlu0 %3524 }
 0xdda   : > { %v3543_v26 = vadd.f32 %v3525_v50, %v3501_v56 }
 0xddb   : > { %v3507_v37 = vpop.xlane.xlu1 %3506 }
 0xddc   : > { %11267 = vrcp.f32 %v3543_v26 }
 0xddd   : > { %v3504_v52 = vpop.xlane.xlu0 %3503 }
 0xddf   : > { %v3531_v12 = vpop.xlane.xlu1 %3530 }
 0xde0   : > { %v3545_v63 = vadd.f32 %v3531_v12, %v3507_v37 }
 0xde1   : > { %v3528_v41 = vpop.xlane.xlu0 %3527 }
 0xde2   : > { %v3544_v61 = vadd.f32 %v3528_v41, %v3504_v52 }
 0xde3   : > { %v3513_v59 = vpop.xlane.xlu1 %3512 }
 0xde4   : > { %11269 = vrcp.f32 %v3544_v61 }
 0xde5   : > { %v3510_v58 = vpop.xlane.xlu0 %3509  ;;  %11271 = vrcp.f32 %v3545_v63 }
 0xde6   : > { %v11268_v7 = vpop.eup %11267 }
 0xde7   : > { %v3537_v10 = vpop.xlane.xlu1 %3536 }
 0xde8   : > { %v3547_v5 = vadd.f32 %v3537_v10, %v3513_v59 }
 0xde9   : > { %v3534_v43 = vpop.xlane.xlu0 %3533 }
 0xdea   : > { %v3546_v30 = vadd.f32 %v3534_v43, %v3510_v58 }
 0xdeb   : > { %v3495_v42 = vpop.xlane.xlu1 %3494 }
 0xdec   : > { %11273 = vrcp.f32 %v3546_v30 }
 0xded   : > { %v3516_v20 = vpop.xlane.xlu0 %3515  ;;  %11275 = vrcp.f32 %v3547_v5 }
 0xdee   : > { %v11270_v22 = vpop.eup %11269 }
 0xdef   : > { %v11272_v55 = vpop.eup %11271  ;;  %v3519_v53 = vpop.xlane.xlu1 %3518 }
 0xdf0   : > { %v3541_v48 = vadd.f32 %v3519_v53, %v3495_v42  ;;  %v10905_v42 = vld [vmem:[#allocation11 + $0xa4] ss:$16 sps:$4 sm:$0xff]   ;;  %v10903_v53 = vld [vmem:[#allocation11 + $0xa0] ss:$16 sps:$4 sm:$0xff]  }
 0xdf1   : > { %v3540_v46 = vpop.xlane.xlu0 %3539 }
 0xdf2   : > { %v3548_v9 = vadd.f32 %v3540_v46, %v3516_v20 }
 0xdf4   : > { %11277 = vrcp.f32 %v3548_v9 }
 0xdf5   : > { %v3498_v29 = vpop.xlane.xlu0 %3497  ;;  %11279 = vrcp.f32 %v3541_v48  ;;  %v10911_v48 = vld [vmem:[#allocation11 + $0xc4] ss:$16 sps:$4 sm:$0xff]  }
 0xdf6   : > { %v11274_v36 = vpop.eup %11273 }
 0xdf7   : > { %v11276_v47 = vpop.eup %11275 }
 0xdf9   : > { %v3522_v54 = vpop.xlane.xlu0 %3521 }
 0xdfa   : > { %v3542_v35 = vadd.f32 %v3522_v54, %v3498_v29  ;;  %v10908_v29 = vld [vmem:[#allocation11 + $0xac] ss:$16 sps:$4 sm:$0xff]   ;;  %v10906_v54 = vld [vmem:[#allocation11 + $0xa8] ss:$16 sps:$4 sm:$0xff]  }
 0xdfc   : > { %11281 = vrcp.f32 %v3542_v35  ;;  %v10914_v35 = vld [vmem:[#allocation11 + $0xcc] ss:$16 sps:$4 sm:$0xff]  }
 0xdfe   : > { %v11278_v40 = vpop.eup %11277 }
 0xdff   : > { %v11280_v52 = vpop.eup %11279 }
 0xe06   : > { %v11282_v58 = vpop.eup %11281 }
 0xe31   : > { %v3781_v15 = vpop.f32.mrb[56].mxu0 }
 0xe32   : > { %v9947_v51 = vpop.f32.mrb[57].mxu0  ;;  %v3929_v59 = vmul.f32 %v11280_v52, %v3781_v15  ;;  %v10912_v52 = vld [vmem:[#allocation11 + $0xc8] ss:$16 sps:$4 sm:$0xff]  }
 0xe33   : > { %v3784_v1 = vpop.f32.mrb[58].mxu0 }
 0xe34   : > { %v9948_v17 = vpop.f32.mrb[59].mxu0  ;;  %v3930_v26 = vmul.f32 %v11282_v58, %v3784_v1  ;;  %v10918_v58 = vld [vmem:[#allocation11 + $0xe8] ss:$16 sps:$4 sm:$0xff]  }
 0xe35   : > { %v3828_v4 = vpop.f32.mrb[68].mxu1 }
 0xe36   : > { %v9953_v21 = vpop.f32.mrb[69].mxu1  ;;  %v3931_v28 = vmul.f32 %v11268_v7, %v3828_v4 }
 0xe37   : > { %v3831_v27 = vpop.f32.mrb[70].mxu1  ;;  %v10873_v21 = vld [vmem:[#allocation11] ss:$16 sps:$4 sm:$0xff]  }
 0xe38   : > { %v3932_v57 = vmul.f32 %v11270_v22, %v3831_v27  ;;  %v9954_v6 = vpop.f32.mrb[71].mxu1  ;;  %v10875_v22 = vld [vmem:[#allocation11 + $0x4] ss:$16 sps:$4 sm:$0xff]   ;;  %v10876_v27 = vld [vmem:[#allocation11 + $0x8] ss:$16 sps:$4 sm:$0xff]  }
 0xe39   : > { %v3875_v60 = vpop.f32.mrb[60].mxu0  ;;  %4296 = vmatprep.subr.bf16.mxu1 %v10875_v22  ;;  %v10884_v6 = vld [vmem:[#allocation11 + $0x2c] ss:$16 sps:$4 sm:$0xff]   ;;  %v10924_v22 = vld [vmem:[#allocation8 + $0x2c0] sm:$0xff]  }
 0xe3a   : > { %v10554_v33 = vpack.i.bf16 %v3932_v57, %v3931_v28  ;;  %v9959_v14 = vpop.f32.mrb[61].mxu0  ;;  %v3933_v13 = vmul.f32 %v11272_v55, %v3875_v60  ;;  %v10878_v28 = vld [vmem:[#allocation11 + $0xc] ss:$16 sps:$4 sm:$0xff]   ;;  %v10881_v57 = vld [vmem:[#allocation11 + $0x24] ss:$16 sps:$4 sm:$0xff]   ;;  %4297 = vmatpush1.bf16.msra.mxu1 %v10873_v21 }
 0xe3b   : > { %v3878_v38 = vpop.f32.mrb[62].mxu0  ;;  %4339 = vmatprep.subr.bf16.mxu0 %v10878_v28  ;;  %4298 = vmatprep.subr.bf16.mxu1 %v10881_v57  ;;  %v10923_v21 = vld [vmem:[#allocation8 + $0x240] sm:$0xff]   ;;  %v10925_v28 = vld [vmem:[#allocation8 + $0x288] sm:$0xff]  }
 0xe3c   : > { %10555 = vrot.lane.b32.xlu1 %v10554_v33, %s11706_s10  ;;  %v3934_v25 = vmul.f32 %v11274_v36, %v3878_v38  ;;  %v9960_v62 = vpop.f32.mrb[63].mxu0  ;;  %v10926_v57 = vld [vmem:[#allocation8 + $0x308] sm:$0xff]  }
 0xe3d   : > { %v3922_v31 = vpop.f32.mrb[72].mxu1  ;;  %v10890_v62 = vld [vmem:[#allocation11 + $0x4c] ss:$16 sps:$4 sm:$0xff]  }
 0xe3e   : > { %v9965_v8 = vpop.f32.mrb[73].mxu1  ;;  %v10559_v34 = vpack.i.bf16 %v3934_v25, %v3933_v13  ;;  %v3935_v49 = vmul.f32 %v11276_v47, %v3922_v31  ;;  %v10887_v25 = vld [vmem:[#allocation11 + $0x44] ss:$16 sps:$4 sm:$0xff]   ;;  %v10885_v31 = vld [vmem:[#allocation11 + $0x40] ss:$16 sps:$4 sm:$0xff]  }
 0xe3f   : > { %v3925_v3 = vpop.f32.mrb[74].mxu1  ;;  %v10888_v47 = vld [vmem:[#allocation11 + $0x48] ss:$16 sps:$4 sm:$0xff]   ;;  %v10893_v8 = vld [vmem:[#allocation11 + $0x64] ss:$16 sps:$4 sm:$0xff]  }
 0xe40   : > { %v3936_v16 = vmul.f32 %v11278_v40, %v3925_v3  ;;  %v9966_v44 = vpop.f32.mrb[75].mxu1  ;;  %10560 = vrot.lane.b32.xlu0 %v10559_v34, %s11705_s3  ;;  %v10896_v40 = vld [vmem:[#allocation11 + $0x6c] ss:$16 sps:$4 sm:$0xff]   ;;  %v10891_v34 = vld [vmem:[#allocation11 + $0x60] ss:$16 sps:$4 sm:$0xff]  }
 0xe41   : > { %v10894_v3 = vld [vmem:[#allocation11 + $0x68] ss:$16 sps:$4 sm:$0xff]   ;;  %v10897_v44 = vld [vmem:[#allocation11 + $0x80] ss:$16 sps:$4 sm:$0xff]  }
 0xe42   : > { %v10564_v45 = vpack.i.bf16 %v3936_v16, %v3935_v49  ;;  %v10899_v49 = vld [vmem:[#allocation11 + $0x84] ss:$16 sps:$4 sm:$0xff]   ;;  %v10902_v16 = vld [vmem:[#allocation11 + $0x8c] ss:$16 sps:$4 sm:$0xff]  }
 0xe44   : > { %10565 = vrot.lane.b32.xlu1 %v10564_v45, %s11704_s19  ;;  %v10900_v45 = vld [vmem:[#allocation11 + $0x88] ss:$16 sps:$4 sm:$0xff]  }
 0xeae   : > { %v10556_v50 = vpop.permute.xlu1 %10555 }
 0xeaf   : > { %v10558_v56 = vunpack.i.h.bf16 %v10556_v50  ;;  %v10557_v41 = vunpack.i.l.bf16 %v10556_v50  ;;  %v10909_v50 = vld [vmem:[#allocation11 + $0xc0] ss:$16 sps:$4 sm:$0xff]  }
 0xeb1   : > { %v3962_v61 = vsel %vm1443_vm1, %v3930_v26, %v10558_v56  ;;  %v3961_v63 = vsel %vm1443_vm1, %v3929_v59, %v10557_v41  ;;  %v10917_v56 = vld [vmem:[#allocation11 + $0xe4] ss:$16 sps:$4 sm:$0xff]   ;;  %v10920_v41 = vld [vmem:[#allocation11 + $0xec] ss:$16 sps:$4 sm:$0xff]  }
 0xeb2   : > { %v10561_v37 = vpop.permute.xlu0 %10560 }
 0xeb3   : > { %v10563_v12 = vunpack.i.h.bf16 %v10561_v37  ;;  %v10562_v43 = vunpack.i.l.bf16 %v10561_v37  ;;  %v10915_v37 = vld [vmem:[#allocation11 + $0xe0] ss:$16 sps:$4 sm:$0xff]  }
 0xeb5   : > { %v3963_v46 = vsel %vm2385_vm5, %v3961_v63, %v10562_v43  ;;  %v3964_v5 = vsel %vm2385_vm5, %v3962_v61, %v10563_v12  ;;  %v10921_v12 = vld [vmem:[#allocation8 + $0x280] sm:$0xff]  }
 0xeb6   : > { %v10566_v20 = vpop.permute.xlu1 %10565  ;;  %v10922_v43 = vld [vmem:[#allocation8 + $0x300] sm:$0xff]  }
 0xeb7   : > { %v10568_v10 = vunpack.i.h.bf16 %v10566_v20  ;;  %v10567_v30 = vunpack.i.l.bf16 %v10566_v20 }
 0xeb9   : > { %v3966_v9 = vsel %vm2388_vm6, %v3964_v5, %v10568_v10  ;;  %v3965_v2 = vsel %vm2388_vm6, %v3963_v46, %v10567_v30  ;;  %v4075_v46 = vld [vmem:[#allocation7 + $0x47] ss:$0 sm:$0xff] }
 0xeba   : > { %v3983_v51 = vpack.c.bf16 %v3966_v9, %v3965_v2 }
 0xebc   : > { %9984 = vmatmul.mubr.bf16.vlgmr.msra.gmra.mrb[64].mxu0 %v3983_v51 }
 0xebd   : > { %4371 = vmatprep.mubr.bf16.mxu0 %v11703_v23  ;;  %4340 = vmatpush1.bf16.msra.mxu0 %v10876_v27 }
 0xebe   : > { %4341 = vmatprep.subr.bf16.mxu0 %v10884_v6  ;;  %v10927_v6 = vld [vmem:[#allocation8 + $0x248] sm:$0xff]  }
 0xec1   : > { %4342 = vmatpush1.bf16.msra.mxu0 %v10882_v32  ;;  %v10929_v32 = vld [vmem:[#allocation8 + $0x290] sm:$0xff]  }
 0xec2   : > { %4343 = vmatprep.subr.bf16.mxu0 %v10890_v62  ;;  %v10939_v62 = vld [vmem:[#allocation8 + $0x260] sm:$0xff]  }
 0xec5   : > { %4344 = vmatpush1.bf16.msra.mxu0 %v10888_v47  ;;  %v10941_v47 = vld [vmem:[#allocation8 + $0x2a8] sm:$0xff]  }
 0xec6   : > { %4345 = vmatprep.subr.bf16.mxu0 %v10896_v40  ;;  %v10943_v40 = vld [vmem:[#allocation8 + $0x268] sm:$0xff]  }
 0xec9   : > { %4346 = vmatpush1.bf16.msra.mxu0 %v10894_v3  ;;  %v10945_v3 = vld [vmem:[#allocation8 + $0x2b0] sm:$0xff]  }
 0xeca   : > { %4347 = vmatprep.subr.bf16.mxu0 %v10902_v16  ;;  %v10947_v16 = vld [vmem:[#allocation8 + $0x270] sm:$0xff]  }
 0xecd   : > { %4348 = vmatpush1.bf16.msra.mxu0 %v10900_v45  ;;  %v10949_v45 = vld [vmem:[#allocation8 + $0x2b8] sm:$0xff]  }
 0xece   : > { %4349 = vmatprep.subr.bf16.mxu0 %v10908_v29  ;;  %v10951_v29 = vld [vmem:[#allocation8 + $0x278] sm:$0xff]  }
 0xed1   : > { %4350 = vmatpush1.bf16.msra.mxu0 %v10906_v54 }
 0xed2   : > { %4351 = vmatprep.subr.bf16.mxu0 %v10914_v35 }
 0xed5   : > { %4352 = vmatpush1.bf16.msra.mxu0 %v10912_v52 }
 0xed6   : > { %4353 = vmatprep.subr.bf16.mxu0 %v10920_v41 }
 0xed9   : > { %4354 = vmatpush1.bf16.msra.mxu0 %v10918_v58 }
 0xeda   : > { %9500 = vmatprep.subr.bf16.mxu0 %v10922_v43 }
 0xf8f   : > { %v4066_v15 = vpop.f32.mrb[64].mxu0 }
 0xf90   : > { %v12649_v1 = vadd.f32 %v4066_v15, %v12355_v18  ;;  %v9985_v17 = vpop.f32.mrb[65].mxu0  ;;  %v10879_v18 = vld [vmem:[#allocation11 + $0x20] ss:$16 sps:$4 sm:$0xff]  }
 0xf91   : > { %v4069_v4 = vpop.f32.mrb[66].mxu0  ;;  %4299 = vmatpush1.bf16.msra.mxu1 %v10879_v18  ;;  %v4076_v15 = vld [vmem:[#allocation7 + $0x50] ss:$0 sm:$0xff]  ;;  %v10928_v18 = vld [vmem:[#allocation8 + $0x2c8] sm:$0xff]  }
 0xf92   : > { %v12652_v11 = vadd.f32 %v4069_v4, %v12357_v24  ;;  %4077 = vadd.xlane.f32.xlu1 %v12649_v1  ;;  %v9986_v7 = vpop.f32.mrb[67].mxu0  ;;  %4300 = vmatprep.subr.bf16.mxu1 %v10887_v25  ;;  %v10938_v25 = vld [vmem:[#allocation8 + $0x320] sm:$0xff]  }
 0xf94   : > { %4079 = vadd.xlane.f32.xlu0 %v12652_v11 }
 0xf95   : > { %4301 = vmatpush1.bf16.msra.mxu1 %v10885_v31  ;;  %v10940_v31 = vld [vmem:[#allocation8 + $0x2e0] sm:$0xff]  }
 0xf96   : > { %4302 = vmatprep.subr.bf16.mxu1 %v10893_v8  ;;  %v10942_v8 = vld [vmem:[#allocation8 + $0x328] sm:$0xff]  }
 0xf99   : > { %4303 = vmatpush1.bf16.msra.mxu1 %v10891_v34  ;;  %v10944_v34 = vld [vmem:[#allocation8 + $0x2e8] sm:$0xff]  }
 0xf9a   : > { %4304 = vmatprep.subr.bf16.mxu1 %v10899_v49  ;;  %v10946_v49 = vld [vmem:[#allocation8 + $0x330] sm:$0xff]  }
 0xf9d   : > { %4305 = vmatpush1.bf16.msra.mxu1 %v10897_v44  ;;  %v10948_v44 = vld [vmem:[#allocation8 + $0x2f0] sm:$0xff]  }
 0xf9e   : > { %4306 = vmatprep.subr.bf16.mxu1 %v10905_v42  ;;  %v10950_v42 = vld [vmem:[#allocation8 + $0x338] sm:$0xff]  }
 0xfa1   : > { %4307 = vmatpush1.bf16.msra.mxu1 %v10903_v53  ;;  %v10952_v53 = vld [vmem:[#allocation8 + $0x2f8] sm:$0xff]  }
 0xfa2   : > { %4308 = vmatprep.subr.bf16.mxu1 %v10911_v48 }
 0xfa5   : > { %4309 = vmatpush1.bf16.msra.mxu1 %v10909_v50 }
 0xfa6   : > { %4310 = vmatprep.subr.bf16.mxu1 %v10917_v56 }
 0xfa9   : > { %4311 = vmatpush1.bf16.msra.mxu1 %v10915_v37 }
 0xfaa   : > { %9478 = vmatprep.subr.bf16.mxu1 %v10921_v12 }
0x101f   : > { %v4078_v24 = vpop.xlane.xlu1 %4077 }
0x1020   : > { %v4081_v33 = vmul.f32 0.0078125, %v4078_v24  ;;  %v10930_v24 = vld [vmem:[#allocation8 + $0x310] sm:$0xff]  }
0x1021   : > { %v4080_v60 = vpop.xlane.xlu0 %4079 }
0x1022   : > { %v12657_v55 = vsub.f32 %v12649_v1, %v4081_v33  ;;  %v4082_v14 = vmul.f32 0.0078125, %v4080_v60  ;;  %v10931_v33 = vld [vmem:[#allocation8 + $0x250] sm:$0xff]  }
0x1023   : > { %v10932_v60 = vld [vmem:[#allocation8 + $0x2d0] sm:$0xff]  }
0x1024   : > { %v12660_v36 = vsub.f32 %v12652_v11, %v4082_v14  ;;  %v4085_v38 = vmul.f32 %v12657_v55, %v12657_v55  ;;  %v10934_v14 = vld [vmem:[#allocation8 + $0x318] sm:$0xff]  }
0x1026   : > { %4087 = vadd.xlane.f32.xlu0 %v4085_v38  ;;  %v4086_v13 = vmul.f32 %v12660_v36, %v12660_v36  ;;  %v10936_v38 = vld [vmem:[#allocation8 + $0x2d8] sm:$0xff]  }
0x1028   : > { %4089 = vadd.xlane.f32.xlu1 %v4086_v13  ;;  %v10937_v13 = vld [vmem:[#allocation8 + $0x2a0] sm:$0xff]  }
0x10b3   : > { %v4088_v59 = vpop.xlane.xlu0 %4087 }
0x10b4   : > { %v4091_v26 = vmul.f32 0.0078125, %v4088_v59 }
0x10b5   : > { %v4090_v20 = vpop.xlane.xlu1 %4089 }
0x10b6   : > { %v4093_v61 = vadd.f32 1e-05, %v4091_v26  ;;  %v4092_v63 = vmul.f32 0.0078125, %v4090_v20 }
0x10b8   : > { %11283 = vrsqrt.f32 %v4093_v61  ;;  %v4094_v10 = vadd.f32 1e-05, %v4092_v63 }
0x10ba   : > { %11285 = vrsqrt.f32 %v4094_v10 }
0x10c2   : > { %v11284_v30 = vpop.eup %11283 }
0x10c3   : > { %v4097_v5 = vmul.f32 %v11284_v30, %v12657_v55  ;;  %v10933_v55 = vld [vmem:[#allocation8 + $0x298] sm:$0xff]  }
0x10c4   : > { %v11286_v9 = vpop.eup %11285 }
0x10c5   : > { %v4098_v2 = vmul.f32 %v11286_v9, %v12660_v36  ;;  %v4099_v51 = vmul.f32 %v4097_v5, %v4075_v46  ;;  %v10935_v36 = vld [vmem:[#allocation8 + $0x258] sm:$0xff]  }
0x10c7   : > { %v4100_v17 = vmul.f32 %v4098_v2, %v4075_v46  ;;  %v4101_v4 = vadd.f32 %v4099_v51, %v4076_v15 }
0x10c9   : > { %v4102_v7 = vadd.f32 %v4100_v17, %v4076_v15 }
0x10cb   : > { %v4135_v27 = vpack.c.bf16 %v4102_v7, %v4101_v4 }
0x10cd   : > { %4329 = vmatmul.mubr.bf16.vlgmr.msra.gmra.mrb[76].mxu1 %v4135_v27  ;;  %4372 = vmatmul.mubr.bf16.vlgmr.msra.gmra.mrb[68].mxu0 %v4135_v27 }
0x10ce   : > { %9479 = vmatpush3.bf16.msra.mxu1 %v10923_v21  ;;  %9501 = vmatpush3.bf16.msra.mxu0 %v10924_v22 }
0x10cf   : > { %9480 = vmatprep.subr.bf16.mxu1 %v10925_v28  ;;  %9502 = vmatprep.subr.bf16.mxu0 %v10926_v57 }
0x10d2   : > { %9481 = vmatpush3.bf16.msra.mxu1 %v10927_v6  ;;  %9503 = vmatpush3.bf16.msra.mxu0 %v10928_v18 }
0x10d3   : > { %9482 = vmatprep.subr.bf16.mxu1 %v10929_v32  ;;  %9504 = vmatprep.subr.bf16.mxu0 %v10930_v24 }
0x10d6   : > { %9483 = vmatpush3.bf16.msra.mxu1 %v10931_v33  ;;  %9505 = vmatpush3.bf16.msra.mxu0 %v10932_v60 }
0x10d7   : > { %9484 = vmatprep.subr.bf16.mxu1 %v10933_v55  ;;  %9506 = vmatprep.subr.bf16.mxu0 %v10934_v14 }
0x10da   : > { %9485 = vmatpush3.bf16.msra.mxu1 %v10935_v36  ;;  %9507 = vmatpush3.bf16.msra.mxu0 %v10936_v38 }
0x10db   : > { %9486 = vmatprep.subr.bf16.mxu1 %v10937_v13  ;;  %9508 = vmatprep.subr.bf16.mxu0 %v10938_v25 }
0x10de   : > { %9487 = vmatpush3.bf16.msra.mxu1 %v10939_v62  ;;  %9509 = vmatpush3.bf16.msra.mxu0 %v10940_v31 }
0x10df   : > { %9488 = vmatprep.subr.bf16.mxu1 %v10941_v47  ;;  %9510 = vmatprep.subr.bf16.mxu0 %v10942_v8 }
0x10e2   : > { %9489 = vmatpush3.bf16.msra.mxu1 %v10943_v40  ;;  %9511 = vmatpush3.bf16.msra.mxu0 %v10944_v34 }
0x10e3   : > { %9490 = vmatprep.subr.bf16.mxu1 %v10945_v3  ;;  %9512 = vmatprep.subr.bf16.mxu0 %v10946_v49 }
0x10e6   : > { %9491 = vmatpush3.bf16.msra.mxu1 %v10947_v16  ;;  %9513 = vmatpush3.bf16.msra.mxu0 %v10948_v44 }
0x10e7   : > { %9492 = vmatprep.subr.bf16.mxu1 %v10949_v45  ;;  %9514 = vmatprep.subr.bf16.mxu0 %v10950_v42 }
0x10ea   : > { %9493 = vmatpush3.bf16.msra.mxu1 %v10951_v29  ;;  %9515 = vmatpush3.bf16.msra.mxu0 %v10952_v53 }
0x10eb   : > { %9987 = vmatprep.subr.bf16.mxu0 %v11701_v0 }
0x11a0   : > { %v4330_v54 = vpop.f32.mrb[76].mxu1  ;;  %v4373_v48 = vpop.f32.mrb[68].mxu0 }
0x11a1   : > { %v4390_v35 = vmul.f32 0.70710677, %v4330_v54  ;;  %v4392_v50 = vmul.f32 0.70710677, %v4373_v48  ;;  %v4332_v52 = vpop.f32.mrb[77].mxu1  ;;  %v4375_v56 = vpop.f32.mrb[69].mxu0 }
0x11a2   : > { %v4391_v41 = vmul.f32 0.70710677, %v4332_v52  ;;  %v4334_v37 = vpop.f32.mrb[78].mxu1  ;;  %v4377_v58 = vpop.f32.mrb[70].mxu0  ;;  %v4393_v12 = vmul.f32 0.70710677, %v4375_v56 }
0x11a3   : > { %11287 = verf.f32 %v4390_v35  ;;  %v4394_v43 = vmul.f32 0.70710677, %v4334_v37  ;;  %v4336_v59 = vpop.f32.mrb[79].mxu1  ;;  %v4396_v26 = vmul.f32 0.70710677, %v4377_v58  ;;  %v4379_v20 = vpop.f32.mrb[71].mxu0 }
0x11a4   : > { %11289 = verf.f32 %v4392_v50  ;;  %v4395_v61 = vmul.f32 0.70710677, %v4336_v59  ;;  %v4397_v63 = vmul.f32 0.70710677, %v4379_v20  ;;  %v4382_v51 = vmul.f32 0.5, %v4330_v54 }
0x11a5   : > { %11291 = verf.f32 %v4391_v41  ;;  %v4384_v15 = vmul.f32 0.5, %v4373_v48  ;;  %v4383_v7 = vmul.f32 0.5, %v4332_v52  ;;  %v4386_v22 = vmul.f32 0.5, %v4334_v37 }
0x11a6   : > { %11293 = verf.f32 %v4393_v12  ;;  %v4385_v57 = vmul.f32 0.5, %v4375_v56  ;;  %v4388_v18 = vmul.f32 0.5, %v4377_v58  ;;  %v4387_v55 = vmul.f32 0.5, %v4336_v59  ;;  %v10955_v59 = vld [vmem:[#allocation10 + $0x184] ss:$12 sps:$4 sm:$0xff]  }
0x11a7   : > { %11295 = verf.f32 %v4394_v43  ;;  %v4389_v13 = vmul.f32 0.5, %v4379_v20  ;;  %v10953_v43 = vld [vmem:[#allocation10 + $0x180] ss:$12 sps:$4 sm:$0xff]   ;;  %v10959_v20 = vld [vmem:[#allocation10 + $0x19c] ss:$12 sps:$4 sm:$0xff]   ;;  %4975 = vmatprep.subr.bf16.mxu1 %v10955_v59 }
0x11a8   : > { %11297 = verf.f32 %v4396_v26  ;;  %v10956_v26 = vld [vmem:[#allocation10 + $0x188] ss:$12 sps:$4 sm:$0xff]   ;;  %v11002_v59 = vld [vmem:[#allocation10 + $0x200] ss:$12 sps:$4 sm:$0xff]  }
0x11a9   : > { %11299 = verf.f32 %v4395_v61  ;;  %v10960_v61 = vld [vmem:[#allocation10 + $0x1a0] ss:$12 sps:$4 sm:$0xff]  }
0x11aa   : > { %11301 = verf.f32 %v4397_v63  ;;  %v10957_v63 = vld [vmem:[#allocation10 + $0x198] ss:$12 sps:$4 sm:$0xff]  }
0x11ad   : > { %v11288_v10 = vpop.eup %11287 }
0x11ae   : > { %v11290_v30 = vpop.eup %11289  ;;  %v4406_v9 = vadd.f32 1.0, %v11288_v10 }
0x11af   : > { %v11292_v46 = vpop.eup %11291  ;;  %v4408_v17 = vadd.f32 1.0, %v11290_v30 }
0x11b0   : > { %v11294_v5 = vpop.eup %11293  ;;  %v4407_v21 = vadd.f32 1.0, %v11292_v46  ;;  %v4414_v33 = vmul.f32 %v4406_v9, %v4382_v51  ;;  %v10963_v51 = vld [vmem:[#allocation10 + $0x1b4] ss:$12 sps:$4 sm:$0xff]  }
0x11b1   : > { %v11296_v2 = vpop.eup %11295  ;;  %v4409_v6 = vadd.f32 1.0, %v11294_v5  ;;  %v4416_v36 = vmul.f32 %v4408_v17, %v4384_v15  ;;  %v10961_v15 = vld [vmem:[#allocation10 + $0x1b0] ss:$12 sps:$4 sm:$0xff]   ;;  %v10964_v17 = vld [vmem:[#allocation10 + $0x1b8] ss:$12 sps:$4 sm:$0xff]  }
0x11b2   : > { %v11298_v4 = vpop.eup %11297  ;;  %v4410_v27 = vadd.f32 1.0, %v11296_v2  ;;  %v4415_v62 = vmul.f32 %v4407_v21, %v4383_v7  ;;  %v10965_v7 = vld [vmem:[#allocation10 + $0x1c8] ss:$12 sps:$4 sm:$0xff]   ;;  %v10968_v21 = vld [vmem:[#allocation10 + $0x1d0] ss:$12 sps:$4 sm:$0xff]  }
0x11b3   : > { %v11300_v28 = vpop.eup %11299  ;;  %v4412_v32 = vadd.f32 1.0, %v11298_v4  ;;  %v4417_v8 = vmul.f32 %v4409_v6, %v4385_v57  ;;  %v10967_v4 = vld [vmem:[#allocation10 + $0x1cc] ss:$12 sps:$4 sm:$0xff]   ;;  %v10975_v57 = vld [vmem:[#allocation10 + $0x1fc] ss:$12 sps:$4 sm:$0xff]  }
0x11b4   : > { %v11302_v24 = vpop.eup %11301  ;;  %v4418_v60 = vmul.f32 %v4410_v27, %v4386_v22  ;;  %v4411_v14 = vadd.f32 1.0, %v11300_v28  ;;  %v10969_v22 = vld [vmem:[#allocation10 + $0x1e0] ss:$12 sps:$4 sm:$0xff]   ;;  %v10971_v27 = vld [vmem:[#allocation10 + $0x1e4] ss:$12 sps:$4 sm:$0xff]  }
0x11b5   : > { %v4420_v38 = vmul.f32 %v4412_v32, %v4388_v18  ;;  %v4413_v25 = vadd.f32 1.0, %v11302_v24  ;;  %v10972_v28 = vld [vmem:[#allocation10 + $0x1e8] ss:$12 sps:$4 sm:$0xff]   ;;  %v10973_v6 = vld [vmem:[#allocation10 + $0x1f8] ss:$12 sps:$4 sm:$0xff]  }
0x11b6   : > { %v4486_v31 = vpack.c.bf16 %v4418_v60, %v4414_v33  ;;  %v4419_v47 = vmul.f32 %v4411_v14, %v4387_v55  ;;  %v10976_v18 = vld [vmem:[#allocation10 + $0x200] ss:$12 sps:$4 sm:$0xff]   ;;  %v10977_v24 = vld [vmem:[#allocation10 + $0x210] ss:$12 sps:$4 sm:$0xff]   ;;  %v10980_v33 = vld [vmem:[#allocation10 + $0x218] ss:$12 sps:$4 sm:$0xff]  }
0x11b7   : > { %v4488_v40 = vpack.c.bf16 %v4420_v38, %v4416_v36  ;;  %v4421_v34 = vmul.f32 %v4413_v25, %v4389_v13  ;;  %v10979_v32 = vld [vmem:[#allocation10 + $0x214] ss:$12 sps:$4 sm:$0xff]   ;;  %v10983_v60 = vld [vmem:[#allocation10 + $0x22c] ss:$12 sps:$4 sm:$0xff]   ;;  %v10984_v14 = vld [vmem:[#allocation10 + $0x230] ss:$12 sps:$4 sm:$0xff]  }
0x11b8   : > { %v4487_v3 = vpack.c.bf16 %v4419_v47, %v4415_v62  ;;  %v10981_v55 = vld [vmem:[#allocation10 + $0x228] ss:$12 sps:$4 sm:$0xff]  }
0x11b9   : > { %v4489_v49 = vpack.c.bf16 %v4421_v34, %v4417_v8  ;;  %v10987_v36 = vld [vmem:[#allocation10 + $0x188] ss:$12 sps:$4 sm:$0xff]  }
0x11ba   : > { %4714 = vmatprep.mubr.bf16.mxu1 %v4487_v3 }
0x11bb   : > { %4755 = vmatprep.mubr.bf16.mxu0 %v4489_v49  ;;  %4715 = vmatmul.mubr.bf16.vlgmr.msra.gmra.mrb[80].mxu1 %v4486_v31 }
0x11bc   : > { %4756 = vmatmul.mubr.bf16.vlgmr.msra.gmra.mrb[72].mxu0 %v4488_v40  ;;  %5007 = vmatprep.mubr.bf16.mxu1 %v11703_v23  ;;  %v4770_v40 = vld [vmem:[#allocation7 + $0x41] ss:$0 sm:$0xff] }
0x11bd   : > { %10003 = vmatprep.mubr.msk.bf16.mxu0 %vm11702_vm0, %v11701_v0  ;;  %9988 = vmatpush3.bf16.msra.mxu0 %v10956_v26  ;;  %v11000_v26 = vld [vmem:[#allocation10 + $0x1fc] ss:$12 sps:$4 sm:$0xff]  }
0x11be   : > { %4976 = vmatpush1.bf16.msra.mxu1 %v10953_v43  ;;  %9989 = vmatprep.subr.bf16.mxu0 %v11701_v0  ;;  %v10997_v43 = vld [vmem:[#allocation10 + $0x1e4] ss:$12 sps:$4 sm:$0xff]  }
0x11bf   : > { %4977 = vmatprep.subr.bf16.mxu1 %v10959_v20  ;;  %v11005_v20 = vld [vmem:[#allocation10 + $0x218] ss:$12 sps:$4 sm:$0xff]  }
0x11c1   : > { %9990 = vmatpush3.bf16.msra.mxu0 %v10960_v61  ;;  %v4766_v61 = vld [vmem:[#allocation7 + $0x37] ss:$0 sm:$0xff] }
0x11c2   : > { %4978 = vmatpush1.bf16.msra.mxu1 %v10957_v63  ;;  %9991 = vmatprep.subr.bf16.mxu0 %v11701_v0  ;;  %v11003_v63 = vld [vmem:[#allocation10 + $0x214] ss:$12 sps:$4 sm:$0xff]  }
0x11c3   : > { %4979 = vmatprep.subr.bf16.mxu1 %v10963_v51 }
0x11c5   : > { %9992 = vmatpush3.bf16.msra.mxu0 %v10964_v17 }
0x11c6   : > { %4980 = vmatpush1.bf16.msra.mxu1 %v10961_v15  ;;  %9993 = vmatprep.subr.bf16.mxu0 %v11701_v0 }
0x11c7   : > { %4981 = vmatprep.subr.bf16.mxu1 %v10967_v4 }
0x11c9   : > { %9994 = vmatpush3.bf16.msra.mxu0 %v10968_v21 }
0x11ca   : > { %4982 = vmatpush1.bf16.msra.mxu1 %v10965_v7  ;;  %9995 = vmatprep.subr.bf16.mxu0 %v11701_v0 }
0x11cb   : > { %4983 = vmatprep.subr.bf16.mxu1 %v10971_v27 }
0x11cd   : > { %9996 = vmatpush3.bf16.msra.mxu0 %v10972_v28 }
0x11ce   : > { %4984 = vmatpush1.bf16.msra.mxu1 %v10969_v22  ;;  %9997 = vmatprep.subr.bf16.mxu0 %v11701_v0 }
0x11cf   : > { %4985 = vmatprep.subr.bf16.mxu1 %v10975_v57 }
0x11d1   : > { %9998 = vmatpush3.bf16.msra.mxu0 %v10976_v18 }
0x11d2   : > { %4986 = vmatpush1.bf16.msra.mxu1 %v10973_v6  ;;  %9999 = vmatprep.subr.bf16.mxu0 %v11701_v0 }
0x11d3   : > { %4987 = vmatprep.subr.bf16.mxu1 %v10979_v32 }
0x11d5   : > { %10000 = vmatpush3.bf16.msra.mxu0 %v10980_v33 }
0x11d6   : > { %4988 = vmatpush1.bf16.msra.mxu1 %v10977_v24  ;;  %10001 = vmatprep.subr.bf16.mxu0 %v11701_v0 }
0x11d7   : > { %4989 = vmatprep.subr.bf16.mxu1 %v10983_v60 }
0x11d9   : > { %10002 = vmatpush3.bf16.msra.mxu0 %v10984_v14 }
0x11da   : > { %4990 = vmatpush1.bf16.msra.mxu1 %v10981_v55  ;;  %10007 = vmatprep.subr.bf16.mxu0 %v11701_v0 }
0x11db   : > { %5140 = vmatprep.subr.bf16.mxu1 %v10987_v36 }
0x128e   : > { %v9494_v16 = vpop.f32.mrb[80].mxu1 }
0x128f   : > { %v9516_v44 = vpop.f32.mrb[72].mxu0  ;;  %v9495_v45 = vpop.f32.mrb[81].mxu1 }
0x1290   : > { %v9496_v42 = vadd.f32 %v9495_v45, %v9494_v16  ;;  %v9517_v29 = vpop.f32.mrb[73].mxu0  ;;  %v9497_v53 = vpop.f32.mrb[82].mxu1 }
0x1291   : > { %v9518_v54 = vadd.f32 %v9517_v29, %v9516_v44  ;;  %v9519_v48 = vpop.f32.mrb[74].mxu0  ;;  %v9498_v35 = vpop.f32.mrb[83].mxu1  ;;  %v4771_v44 = vld [vmem:[#allocation7 + $0x42] ss:$0 sm:$0xff] }
0x1292   : > { %v9499_v50 = vadd.f32 %v9498_v35, %v9497_v53  ;;  %v9520_v52 = vpop.f32.mrb[75].mxu0  ;;  %v10985_v53 = vld [vmem:[#allocation10 + $0x184] ss:$12 sps:$4 sm:$0xff]   ;;  %v10988_v35 = vld [vmem:[#allocation10 + $0x19c] ss:$12 sps:$4 sm:$0xff]  }
0x1293   : > { %v4758_v56 = vadd.f32 %v9518_v54, %v9496_v42  ;;  %v9521_v41 = vadd.f32 %v9520_v52, %v9519_v48  ;;  %v10990_v48 = vld [vmem:[#allocation10 + $0x1a0] ss:$12 sps:$4 sm:$0xff]  }
0x1294   : > { %v10991_v52 = vld [vmem:[#allocation10 + $0x1b4] ss:$12 sps:$4 sm:$0xff]  }
0x1295   : > { %v4761_v37 = vadd.f32 %v9521_v41, %v9499_v50  ;;  %v12673_v58 = vadd.f32 %v4758_v56, %v12649_v1  ;;  %v10993_v50 = vld [vmem:[#allocation10 + $0x1b8] ss:$12 sps:$4 sm:$0xff]   ;;  %v10996_v56 = vld [vmem:[#allocation10 + $0x1d0] ss:$12 sps:$4 sm:$0xff]  }
0x1296   : > { %v10994_v41 = vld [vmem:[#allocation10 + $0x1cc] ss:$12 sps:$4 sm:$0xff]  }
0x1297   : > { %4772 = vadd.xlane.f32.xlu0 %v12673_v58  ;;  %v12677_v12 = vadd.f32 %v4761_v37, %v12652_v11  ;;  %v10999_v37 = vld [vmem:[#allocation10 + $0x1e8] ss:$12 sps:$4 sm:$0xff]  }
0x1299   : > { %4774 = vadd.xlane.f32.xlu1 %v12677_v12 }
0x1324   : > { %v4773_v1 = vpop.xlane.xlu0 %4772 }
0x1325   : > { %v4776_v11 = vmul.f32 0.0078125, %v4773_v1  ;;  %v11008_v1 = vld [vmem:[#allocation10 + $0x230] ss:$12 sps:$4 sm:$0xff]  }
0x1326   : > { %v4775_v10 = vpop.xlane.xlu1 %4774 }
0x1327   : > { %v4778_v30 = vsub.f32 %v12673_v58, %v4776_v11  ;;  %v4777_v46 = vmul.f32 0.0078125, %v4775_v10  ;;  %v4768_v11 = vmul.f32 %v4766_v61, %v12086_v19  ;;  %v4767_v10 = vld [vmem:[#allocation7 + $0x40] ss:$0 sm:$0xff] }
0x1329   : > { %v4779_v5 = vsub.f32 %v12677_v12, %v4777_v46  ;;  %v4780_v9 = vmul.f32 %v4778_v30, %v4778_v30  ;;  %v4769_v46 = vadd.f32 %v4768_v11, %v4767_v10 }
0x132b   : > { %4782 = vadd.xlane.f32.xlu0 %v4780_v9  ;;  %v4781_v2 = vmul.f32 %v4779_v5, %v4779_v5 }
0x132d   : > { %4784 = vadd.xlane.f32.xlu1 %v4781_v2 }
0x13b8   : > { %v4783_v38 = vpop.xlane.xlu0 %4782 }
0x13b9   : > { %v4786_v13 = vmul.f32 0.0078125, %v4783_v38 }
0x13ba   : > { %v4785_v25 = vpop.xlane.xlu1 %4784 }
0x13bb   : > { %v4788_v62 = vadd.f32 1e-05, %v4786_v13  ;;  %v4787_v31 = vmul.f32 0.0078125, %v4785_v25 }
0x13bd   : > { %11303 = vrsqrt.f32 %v4788_v62  ;;  %v4789_v47 = vadd.f32 1e-05, %v4787_v31 }
0x13bf   : > { %11305 = vrsqrt.f32 %v4789_v47 }
0x13c7   : > { %v11304_v8 = vpop.eup %11303 }
0x13c8   : > { %v4792_v34 = vmul.f32 %v11304_v8, %v4778_v30  ;;  %v11006_v30 = vld [vmem:[#allocation10 + $0x22c] ss:$12 sps:$4 sm:$0xff]  }
0x13c9   : > { %v11306_v3 = vpop.eup %11305 }
0x13ca   : > { %v4793_v49 = vmul.f32 %v11306_v3, %v4779_v5  ;;  %v4794_v16 = vmul.f32 %v4792_v34, %v4770_v40  ;;  %v5059_v5 = vpack.c.bf16 %v4769_v46, %v4769_v46 }
0x13cc   : > { %v4795_v45 = vmul.f32 %v4793_v49, %v4770_v40  ;;  %v4796_v42 = vadd.f32 %v4794_v16, %v4771_v44 }
0x13ce   : > { %v4797_v29 = vadd.f32 %v4795_v45, %v4771_v44 }
0x13d0   : > { %v4846_v54 = vpack.c.bf16 %v4797_v29, %v4796_v42 }
0x13d2   : > { %5008 = vmatmul.mubr.bf16.vlgmr.msra.gmra.mrb[84].mxu1 %v4846_v54  ;;  %10004 = vmatmul.mubr.bf16.vlgmr.msra.gmra.mrb[76].mxu0 %v4846_v54 }
0x13d3   : > { %5141 = vmatpush1.bf16.msra.mxu1 %v10985_v53  ;;  %5172 = vmatprep.mubr.bf16.mxu1 %v11703_v23 }
0x13d4   : > { %5142 = vmatprep.subr.bf16.mxu1 %v10990_v48  ;;  %10009 = vmatprep.mubr.msk.bf16.mxu0 %vm11702_vm0, %v11701_v0 }
0x13d7   : > { %5143 = vmatpush1.bf16.msra.mxu1 %v10988_v35 }
0x13d8   : > { %5144 = vmatprep.subr.bf16.mxu1 %v10993_v50 }
0x13db   : > { %5145 = vmatpush1.bf16.msra.mxu1 %v10991_v52 }
0x13dc   : > { %5146 = vmatprep.subr.bf16.mxu1 %v10996_v56 }
0x13df   : > { %5147 = vmatpush1.bf16.msra.mxu1 %v10994_v41 }
0x13e0   : > { %5148 = vmatprep.subr.bf16.mxu1 %v10999_v37 }
0x13e3   : > { %5149 = vmatpush1.bf16.msra.mxu1 %v10997_v43 }
0x13e4   : > { %5150 = vmatprep.subr.bf16.mxu1 %v11002_v59 }
0x13e7   : > { %5151 = vmatpush1.bf16.msra.mxu1 %v11000_v26 }
0x13e8   : > { %5152 = vmatprep.subr.bf16.mxu1 %v11005_v20 }
0x13eb   : > { %5153 = vmatpush1.bf16.msra.mxu1 %v11003_v63 }
0x13ec   : > { %5154 = vmatprep.subr.bf16.mxu1 %v11008_v1 }
0x13ef   : > { %5155 = vmatpush1.bf16.msra.mxu1 %v11006_v30 }
0x13f0   : > { %10013 = vmatprep.subr.bf16.mxu1 %v11701_v0 }
0x13f2   : > { %5173 = vmatmul.mubr.bf16.vlgmr.msra.gmra.mrb[88].mxu1 %v5059_v5 }
0x13f3   : > { %10015 = vmatprep.mubr.msk.bf16.mxu1 %vm11702_vm0, %v11701_v0 }
0x14a5   : > { %v5009_v9 = vpop.f32.mrb[84].mxu1  ;;  %v12697_v2 = vpop.f32.mrb[76].mxu0 }
0x14a6   : > { %v5011_v51 = vpop.f32.mrb[85].mxu1  ;;  %v10005_v15 = vpop.f32.mrb[77].mxu0 }
0x14a7   : > { %v5013_v17 = vpop.f32.mrb[86].mxu1  ;;  %v12699_v19 = vpop.f32.mrb[78].mxu0 }
0x14a8   : > { %v10579_v4 = vpack.i.bf16 %v5013_v17, %v5009_v9  ;;  %v12701_v7 = vpack.c.bf16 %v5013_v17, %v5009_v9  ;;  %v12705_v21 = vpack.i.bf16 %v12699_v19, %v12697_v2  ;;  %v10006_v22 = vpop.f32.mrb[79].mxu0  ;;  %5185 = vrot.lane.b32.xlu1 %v5013_v17, %s11704_s19  ;;  %v5015_v27 = vpop.f32.mrb[87].mxu1  ;;  %v5249_v28 = vpack.c.bf16 %v12699_v19, %v12697_v2 }
0x14a9   : > { %v10594_v57 = vpack.i.bf16 %v5015_v27, %v5011_v51  ;;  %v5225_v6 = vpack.c.bf16 %v5015_v27, %v5011_v51 }
0x14ab   : > { %v5470_v35 = vsel %vm1443_vm1, %v5225_v6, 0 }
0x14c5   : > { %v5174_v18 = vpop.f32.mrb[88].mxu1 }
0x14c6   : > { %v10574_v32 = vpack.i.bf16 %v5009_v9, %v5174_v18  ;;  %v12710_v24 = vpop.f32.mrb[89].mxu1  ;;  %v5263_v33 = vpack.c.bf16 %v5174_v18, %v5174_v18 }
0x14c7   : > { %v5178_v60 = vpop.f32.mrb[90].mxu1 }
0x14c8   : > { %10575 = vrot.lane.b32.xlu1 %v10574_v32, %s11705_s3  ;;  %10570 = vrot.lane.b32.xlu0 %v10574_v32, %s11704_s19  ;;  %v5179_v55 = vpop.f32.mrb[91].mxu1  ;;  %v5285_v14 = vsel %vm1443_vm1, %v5263_v33, 0 }
0x14c9   : > { %10008 = vmatpush3.bf16.xpose.msra.mxu0 %v5285_v14 }
0x14ca   : > { %10019 = vmatprep.subr.bf16.mxu0 %v11701_v0 }
0x14cc   : > { %5260 = vrot.lane.b32.xlu1 %v5174_v18, %s11706_s10  ;;  %5191 = vrot.lane.b32.xlu0 %v5013_v17, %s11705_s3 }
0x14d0   : > { %10580 = vrot.lane.b32.xlu1 %v10579_v4, %s11706_s10  ;;  %10585 = vrot.lane.b32.xlu0 %v10594_v57, %s11704_s19 }
0x14d1   : > { %10010 = vmatmul.mubr.msk.bf16.vlgmr.msra.gmra.mrb[80].mxu0 %vm1443_vm1, %v12701_v7 }
0x14d2   : > { %10021 = vmatprep.mubr.msk.bf16.mxu0 %vm11702_vm0, %v11701_v0 }
0x14d4   : > { %10590 = vrot.lane.b32.xlu1 %v10594_v57, %s11705_s3  ;;  %10595 = vrot.lane.b32.xlu0 %v10594_v57, %s11706_s10 }
0x14d8   : > { %10600 = vrot.lane.b32.xlu1 %v12705_v21, %s11704_s19 }
0x151a   : > { %v5186_v36 = vpop.permute.xlu1 %5185 }
0x153a   : > { %v10576_v38 = vpop.permute.xlu1 %10575  ;;  %v10571_v13 = vpop.permute.xlu0 %10570 }
0x153b   : > { %v10577_v25 = vunpack.i.l.bf16 %v10576_v38  ;;  %v10572_v62 = vunpack.i.l.bf16 %v10571_v13  ;;  %v10573_v49 = vunpack.i.h.bf16 %v10571_v13  ;;  %v10578_v45 = vunpack.i.h.bf16 %v10576_v38 }
0x153d   : > { %v5265_v31 = vpack.c.bf16 %v10577_v25, %v10577_v25  ;;  %v5264_v47 = vpack.c.bf16 %v10572_v62, %v10572_v62  ;;  %v5202_v29 = vpack.c.bf16 %v5186_v36, %v10573_v49 }
0x153e   : > { %v5261_v8 = vpop.permute.xlu1 %5260  ;;  %v5192_v40 = vpop.permute.xlu0 %5191 }
0x153f   : > { %v5332_v34 = vsel %vm1443_vm1, %v5264_v47, 0  ;;  %v5379_v3 = vsel %vm1443_vm1, %v5265_v31, 0  ;;  %v5266_v16 = vpack.c.bf16 %v5261_v8, %v5261_v8  ;;  %v5203_v53 = vpack.c.bf16 %v5192_v40, %v10578_v45 }
0x1540   : > { %10014 = vmatpush3.bf16.xpose.msra.mxu1 %v5332_v34  ;;  %10020 = vmatpush3.bf16.xpose.msra.mxu0 %v5379_v3 }
0x1541   : > { %10025 = vmatprep.subr.bf16.mxu1 %v11701_v0  ;;  %10031 = vmatprep.subr.bf16.mxu0 %v11701_v0  ;;  %v5426_v48 = vsel %vm1443_vm1, %v5266_v16, 0 }
0x1542   : > { %v10581_v44 = vpop.permute.xlu1 %10580  ;;  %v10586_v42 = vpop.permute.xlu0 %10585 }
0x1543   : > { %v10588_v50 = vunpack.i.h.bf16 %v10586_v42  ;;  %v10587_v52 = vunpack.i.l.bf16 %v10586_v42  ;;  %v10583_v37 = vunpack.i.h.bf16 %v10581_v44  ;;  %v10582_v43 = vunpack.i.l.bf16 %v10581_v44 }
0x1545   : > { %v5226_v59 = vpack.c.bf16 %v10588_v50, %v10587_v52  ;;  %v5204_v61 = vpack.c.bf16 %v10583_v37, %v10582_v43 }
0x1546   : > { %v10591_v54 = vpop.permute.xlu1 %10590  ;;  %v10596_v20 = vpop.permute.xlu0 %10595 }
0x1547   : > { %v10593_v56 = vunpack.i.h.bf16 %v10591_v54  ;;  %v10592_v41 = vunpack.i.l.bf16 %v10591_v54  ;;  %10016 = vmatmul.mubr.msk.bf16.vlgmr.msra.gmra.mrb[92].mxu1 %vm1443_vm1, %v5202_v29  ;;  %10022 = vmatmul.mubr.msk.bf16.vlgmr.msra.gmra.mrb[84].mxu0 %vm1443_vm1, %v5203_v53  ;;  %v10598_v63 = vunpack.i.h.bf16 %v10596_v20  ;;  %v10597_v1 = vunpack.i.l.bf16 %v10596_v20 }
0x1548   : > { %10026 = vmatpush3.bf16.xpose.msra.mxu1 %v5426_v48  ;;  %10032 = vmatpush3.bf16.xpose.msra.mxu0 %v5470_v35  ;;  %v5514_v11 = vsel %vm1443_vm1, %v5226_v59, 0 }
0x1549   : > { %10027 = vmatprep.mubr.msk.bf16.mxu1 %vm11702_vm0, %v11701_v0  ;;  %10033 = vmatprep.mubr.msk.bf16.mxu0 %vm11702_vm0, %v11701_v0  ;;  %v5227_v26 = vpack.c.bf16 %v10593_v56, %v10592_v41  ;;  %v5228_v30 = vpack.c.bf16 %v10598_v63, %v10597_v1 }
0x154a   : > { %10037 = vmatprep.subr.bf16.mxu1 %v11701_v0  ;;  %10043 = vmatprep.subr.bf16.mxu0 %v11701_v0  ;;  %v10601_v46 = vpop.permute.xlu1 %10600 }
0x154b   : > { %v5558_v10 = vsel %vm1443_vm1, %v5227_v26, 0  ;;  %v5602_v5 = vsel %vm1443_vm1, %v5228_v30, 0  ;;  %v10603_v9 = vunpack.i.h.bf16 %v10601_v46  ;;  %v10602_v51 = vunpack.i.l.bf16 %v10601_v46 }
0x154d   : > { %v5250_v15 = vpack.c.bf16 %v10603_v9, %v10602_v51 }
0x154f   : > { %10028 = vmatmul.mubr.msk.bf16.vlgmr.msra.gmra.mrb[96].mxu1 %vm1443_vm1, %v5204_v61  ;;  %10034 = vmatmul.mubr.msk.bf16.vlgmr.msra.gmra.mrb[88].mxu0 %vm1443_vm1, %v12701_v7 }
0x1550   : > { %10038 = vmatpush3.bf16.xpose.msra.mxu1 %v5514_v11  ;;  %10044 = vmatpush3.bf16.xpose.msra.mxu0 %v5558_v10 }
0x1551   : > { %10039 = vmatprep.mubr.msk.bf16.mxu1 %vm11702_vm0, %v11701_v0  ;;  %10045 = vmatprep.mubr.msk.bf16.mxu0 %vm11702_vm0, %v11701_v0 }
0x1552   : > { %10049 = vmatprep.subr.bf16.mxu1 %v11701_v0  ;;  %10055 = vmatprep.subr.bf16.mxu0 %v11701_v0 }
0x1557   : > { %10040 = vmatmul.mubr.msk.bf16.vlgmr.msra.gmra.mrb[100].mxu1 %vm1443_vm1, %v5202_v29  ;;  %10046 = vmatmul.mubr.msk.bf16.vlgmr.msra.gmra.mrb[92].mxu0 %vm1443_vm1, %v5203_v53 }
0x1558   : > { %10050 = vmatpush3.bf16.xpose.msra.mxu1 %v5602_v5  ;;  %10056 = vmatpush3.bf16.msra.mxu0 %v5249_v28 }
0x1559   : > { %10051 = vmatprep.mubr.msk.bf16.mxu1 %vm11702_vm0, %v11701_v0  ;;  %10061 = vmatprep.subr.bf16.mxu1 %v11701_v0 }
0x155a   : > { %10057 = vmatprep.mubr.msk.bf16.mxu0 %vm11702_vm0, %v11701_v0  ;;  %10067 = vmatprep.subr.bf16.mxu0 %v11701_v0 }
0x155f   : > { %10052 = vmatmul.mubr.msk.bf16.vlgmr.msra.gmra.mrb[104].mxu1 %vm1443_vm1, %v5204_v61 }
0x1560   : > { %10062 = vmatpush3.bf16.msra.mxu1 %v5250_v15  ;;  %10063 = vmatprep.mubr.msk.bf16.mxu1 %vm11702_vm0, %v11701_v0 }
0x1561   : > { %10073 = vmatprep.subr.bf16.mxu1 %v11701_v0 }
0x15a4   : > { %v12769_v2 = vpop.f32.mrb[80].mxu0 }
0x15a5   : > { %v10011_v17 = vpop.f32.mrb[81].mxu0  ;;  %v5645_v19 = vsel %vm1808_vm3, %v12769_v2, -inf }
0x15a6   : > { %5646 = vmax.xlane.f32.xlu1 %v5645_v19  ;;  %v12773_v4 = vpop.f32.mrb[82].mxu0 }
0x15a7   : > { %v10012_v7 = vpop.f32.mrb[83].mxu0  ;;  %v5648_v22 = vsel %vm1808_vm3, %v12773_v4, -inf }
0x15a8   : > { %5649 = vmax.xlane.f32.xlu0 %v5648_v22 }
0x161a   : > { %v12777_v27 = vpop.f32.mrb[92].mxu1  ;;  %v12779_v28 = vpop.f32.mrb[84].mxu0 }
0x161b   : > { %v10017_v57 = vpop.f32.mrb[93].mxu1  ;;  %v10023_v6 = vpop.f32.mrb[85].mxu0  ;;  %v5651_v18 = vsel %vm1808_vm3, %v12777_v27, -inf  ;;  %v5657_v36 = vsel %vm1808_vm3, %v12779_v28, -inf }
0x161c   : > { %v12783_v32 = vpop.f32.mrb[86].mxu0  ;;  %5652 = vmax.xlane.f32.xlu1 %v5651_v18  ;;  %v12785_v33 = vpop.f32.mrb[94].mxu1 }
0x161d   : > { %v10018_v60 = vpop.f32.mrb[95].mxu1  ;;  %v10024_v55 = vpop.f32.mrb[87].mxu0  ;;  %v5654_v14 = vsel %vm1808_vm3, %v12785_v33, -inf  ;;  %v5660_v38 = vsel %vm1808_vm3, %v12783_v32, -inf }
0x161e   : > { %5655 = vmax.xlane.f32.xlu0 %v5654_v14 }
0x1620   : > { %5658 = vmax.xlane.f32.xlu1 %v5657_v36 }
0x1622   : > { %v5506_v13 = vpop.f32.mrb[88].mxu0  ;;  %5661 = vmax.xlane.f32.xlu0 %v5660_v38  ;;  %v12793_v25 = vpop.f32.mrb[96].mxu1 }
0x1623   : > { %v10029_v62 = vpop.f32.mrb[97].mxu1  ;;  %v10035_v31 = vpop.f32.mrb[89].mxu0  ;;  %v5663_v47 = vsel %vm1808_vm3, %v12793_v25, -inf  ;;  %v5669_v49 = vsel %vm1833_vm2, %v5506_v13, -inf }
0x1624   : > { %v5509_v8 = vpop.f32.mrb[90].mxu0  ;;  %5664 = vmax.xlane.f32.xlu1 %v5663_v47  ;;  %v12797_v40 = vpop.f32.mrb[98].mxu1 }
0x1625   : > { %v10030_v34 = vpop.f32.mrb[99].mxu1  ;;  %v10036_v3 = vpop.f32.mrb[91].mxu0  ;;  %v5672_v16 = vsel %vm1833_vm2, %v5509_v8, -inf  ;;  %v5666_v52 = vsel %vm1808_vm3, %v12797_v40, -inf }
0x1626   : > { %5670 = vmax.xlane.f32.xlu0 %v5669_v49 }
0x162a   : > { %v12801_v44 = vpop.f32.mrb[92].mxu0  ;;  %5673 = vmax.xlane.f32.xlu0 %v5672_v16  ;;  %v5550_v45 = vpop.f32.mrb[100].mxu1 }
0x162b   : > { %v10041_v42 = vpop.f32.mrb[101].mxu1  ;;  %v10047_v29 = vpop.f32.mrb[93].mxu0  ;;  %v5675_v53 = vsel %vm1833_vm2, %v5550_v45, -inf  ;;  %v5681_v56 = vsel %vm1833_vm2, %v12801_v44, -inf }
0x162c   : > { %v12804_v54 = vpop.f32.mrb[94].mxu0  ;;  %5676 = vmax.xlane.f32.xlu1 %v5675_v53  ;;  %v12806_v48 = vpop.f32.mrb[102].mxu1 }
0x162d   : > { %v10042_v35 = vpop.f32.mrb[103].mxu1  ;;  %v10048_v50 = vpop.f32.mrb[95].mxu0  ;;  %v5678_v41 = vsel %vm1833_vm2, %v12806_v48, -inf  ;;  %v5684_v61 = vsel %vm1833_vm2, %v12804_v54, -inf }
0x162e   : > { %5667 = vmax.xlane.f32.xlu0 %v5666_v52 }
0x1630   : > { %5682 = vmax.xlane.f32.xlu1 %v5681_v56 }
0x1632   : > { %5679 = vmax.xlane.f32.xlu0 %v5678_v41  ;;  %v12814_v37 = vpop.f32.mrb[104].mxu1 }
0x1633   : > { %v10053_v43 = vpop.f32.mrb[105].mxu1  ;;  %v5687_v59 = vsel %vm1833_vm2, %v12814_v37, -inf  ;;  %v5647_v1 = vpop.xlane.xlu1 %5646 }
0x1634   : > { %5688 = vmax.xlane.f32.xlu1 %v5687_v59  ;;  %v12818_v26 = vpop.f32.mrb[106].mxu1 }
0x1635   : > { %v10054_v20 = vpop.f32.mrb[107].mxu1  ;;  %v5690_v63 = vsel %vm1833_vm2, %v12818_v26, -inf  ;;  %v5650_v11 = vpop.xlane.xlu0 %5649 }
0x1636   : > { %5685 = vmax.xlane.f32.xlu0 %v5684_v61 }
0x163a   : > { %5691 = vmax.xlane.f32.xlu0 %v5690_v63 }
0x1645   : > { %10610 = vrot.lane.b32.xlu1 %v12705_v21, %s11706_s10 }
0x1649   : > { %5268 = vrot.lane.b32.xlu1 %v12710_v24, %s11704_s19 }
0x164d   : > { %5271 = vrot.lane.b32.xlu1 %v12710_v24, %s11705_s3 }
0x1650   : > { %10605 = vrot.lane.b32.xlu0 %v12705_v21, %s11705_s3 }
0x1654   : > { %5274 = vrot.lane.b32.xlu0 %v12710_v24, %s11706_s10 }
0x16a9   : > { %v5653_v10 = vpop.xlane.xlu1 %5652 }
0x16ab   : > { %v5656_v30 = vpop.xlane.xlu0 %5655 }
0x16ad   : > { %v5659_v46 = vpop.xlane.xlu1 %5658 }
0x16af   : > { %v5662_v5 = vpop.xlane.xlu0 %5661 }
0x16b1   : > { %v5665_v15 = vpop.xlane.xlu1 %5664 }
0x16b3   : > { %v5671_v9 = vpop.xlane.xlu0 %5670 }
0x16b4   : > { %v5693_v51 = vmax.f32 %v5647_v1, %v5671_v9 }
0x16b6   : > { %v5701_v17 = vsub.f32 %v12769_v2, %v5693_v51  ;;  %v5725_v19 = vsub.f32 %v5506_v13, %v5693_v51 }
0x16b7   : > { %v5674_v7 = vpop.xlane.xlu0 %5673 }
0x16b8   : > { %v5709_v22 = vmul.f32 1.442695, %v5701_v17  ;;  %v5694_v57 = vmax.f32 %v5650_v11, %v5674_v7  ;;  %v5733_v6 = vmul.f32 1.442695, %v5725_v19 }
0x16b9   : > { %v5677_v21 = vpop.xlane.xlu1 %5676 }
0x16ba   : > { %v5702_v18 = vsub.f32 %v12773_v4, %v5694_v57  ;;  %v5726_v60 = vsub.f32 %v5509_v8, %v5694_v57  ;;  %v5695_v55 = vmax.f32 %v5653_v10, %v5677_v21  ;;  %11307 = vpow2.f32 %v5709_v22 }
0x16bb   : > { %v5668_v14 = vpop.xlane.xlu0 %5667  ;;  %11309 = vpow2.f32 %v5733_v6 }
0x16bc   : > { %v5711_v36 = vmul.f32 1.442695, %v5702_v18  ;;  %v5735_v38 = vmul.f32 1.442695, %v5726_v60  ;;  %v5703_v62 = vsub.f32 %v12777_v27, %v5695_v55  ;;  %v5727_v31 = vsub.f32 %v5550_v45, %v5695_v55 }
0x16bd   : > { %v5683_v47 = vpop.xlane.xlu1 %5682 }
0x16be   : > { %11311 = vpow2.f32 %v5711_v36  ;;  %v5713_v2 = vmul.f32 1.442695, %v5703_v62  ;;  %v5737_v13 = vmul.f32 1.442695, %v5727_v31  ;;  %v5697_v34 = vmax.f32 %v5659_v46, %v5683_v47 }
0x16bf   : > { %11313 = vpow2.f32 %v5735_v38  ;;  %v5680_v3 = vpop.xlane.xlu0 %5679 }
0x16c0   : > { %11315 = vpow2.f32 %v5713_v2  ;;  %v5705_v4 = vsub.f32 %v12779_v28, %v5697_v34  ;;  %v5729_v8 = vsub.f32 %v12801_v44, %v5697_v34  ;;  %v5696_v49 = vmax.f32 %v5656_v30, %v5680_v3 }
0x16c1   : > { %11317 = vpow2.f32 %v5737_v13  ;;  %v5689_v16 = vpop.xlane.xlu1 %5688 }
0x16c2   : > { %v5717_v42 = vmul.f32 1.442695, %v5705_v4  ;;  %v5741_v29 = vmul.f32 1.442695, %v5729_v8  ;;  %v5704_v27 = vsub.f32 %v12785_v33, %v5696_v49  ;;  %v5728_v45 = vsub.f32 %v12806_v48, %v5696_v49 }
0x16c3   : > { %v5699_v53 = vmax.f32 %v5665_v15, %v5689_v16  ;;  %v5686_v35 = vpop.xlane.xlu0 %5685  ;;  %v5277_v4 = vpack.c.bf16 %v12710_v24, %v12710_v24 }
0x16c4   : > { %11319 = vpow2.f32 %v5717_v42  ;;  %v5715_v50 = vmul.f32 1.442695, %v5704_v27  ;;  %v5739_v52 = vmul.f32 1.442695, %v5728_v45  ;;  %v5698_v56 = vmax.f32 %v5662_v5, %v5686_v35  ;;  %v12841_v41 = vpop.eup %11307 }
0x16c5   : > { %11321 = vpow2.f32 %v5741_v29  ;;  %v5707_v28 = vsub.f32 %v12793_v25, %v5699_v53  ;;  %v5731_v44 = vsub.f32 %v12814_v37, %v5699_v53  ;;  %v12847_v59 = vpop.eup %11309  ;;  %v10611_v5 = vpop.permute.xlu1 %10610  ;;  %v6001_v24 = vsel %vm2165_vm4, %v5277_v4, 0 }
0x16c6   : > { %11323 = vpow2.f32 %v5715_v50  ;;  %v5706_v43 = vsub.f32 %v12783_v32, %v5698_v56  ;;  %v5730_v33 = vsub.f32 %v12804_v54, %v5698_v56  ;;  %v10613_v57 = vunpack.i.h.bf16 %v10611_v5 }
0x16c7   : > { %11325 = vpow2.f32 %v5739_v52  ;;  %v5721_v48 = vmul.f32 1.442695, %v5707_v28  ;;  %v5692_v20 = vpop.xlane.xlu0 %5691  ;;  %v5745_v25 = vmul.f32 1.442695, %v5731_v44  ;;  %v10612_v21 = vunpack.i.l.bf16 %v10611_v5  ;;  %v11013_v5 = vld [vmem:[#allocation8 + $0x1e0] sm:$0xff]  }
0x16c8   : > { %v12849_v61 = vpop.eup %11311  ;;  %v5719_v63 = vmul.f32 1.442695, %v5706_v43  ;;  %v5743_v1 = vmul.f32 1.442695, %v5730_v33  ;;  %v5700_v11 = vmax.f32 %v5668_v14, %v5692_v20  ;;  %v5749_v20 = vsel %vm1808_vm3, %v12841_v41, 0.0 }
0x16c9   : > { %v12851_v10 = vpop.eup %11313  ;;  %v5813_v37 = vpack.c.bf16 %v12849_v61, %v12841_v41  ;;  %11327 = vpow2.f32 %v5721_v48  ;;  %v5252_v31 = vpack.c.bf16 %v10613_v57, %v10612_v21  ;;  %v5269_v13 = vpop.permute.xlu1 %5268 }
0x16ca   : > { %v12855_v30 = vpop.eup %11315  ;;  %v5708_v32 = vsub.f32 %v12797_v40, %v5700_v11  ;;  %v5732_v54 = vsub.f32 %v12818_v26, %v5700_v11  ;;  %11329 = vpow2.f32 %v5719_v63  ;;  %v5817_v9 = vpack.c.bf16 %v12851_v10, %v12847_v59 }
0x16cb   : > { %v11318_v46 = vpop.eup %11317  ;;  %v10606_v51 = vpop.permute.xlu0 %10605  ;;  %v5755_v15 = vsel %vm1808_vm3, %v12855_v30, 0.0  ;;  %11331 = vpow2.f32 %v5743_v1  ;;  %v5278_v45 = vpack.c.bf16 %v5269_v13, %v5269_v13 }
0x16cc   : > { %v5723_v17 = vmul.f32 1.442695, %v5708_v32  ;;  %v5747_v19 = vmul.f32 1.442695, %v5732_v54  ;;  %5756 = vadd.xlane.f32.xlu1 %v5755_v15  ;;  %11333 = vpow2.f32 %v5745_v25  ;;  %10058 = vmatmul.mubr.msk.bf16.vlgmr.msra.gmra.mrb[96].mxu0 %vm1833_vm2, %v5817_v9  ;;  %v10608_v40 = vunpack.i.h.bf16 %v10606_v51  ;;  %v11009_v32 = vld [vmem:[#allocation8 + $0x1c0] sm:$0xff]   ;;  %v11010_v54 = vld [vmem:[#allocation8 + $0x1c8] sm:$0xff]  }
0x16cd   : > { %v10607_v7 = vunpack.i.l.bf16 %v10606_v51  ;;  %v5779_v26 = vsel %vm1833_vm2, %v11318_v46, 0.0  ;;  %10069 = vmatprep.mubr.msk.bf16.mxu0 %vm11702_vm0, %v11701_v0  ;;  %v5272_v52 = vpop.permute.xlu1 %5271  ;;  %v6048_v44 = vsel %vm2165_vm4, %v5278_v45, 0  ;;  %v5773_v25 = vsel %vm1833_vm2, %v12847_v59, 0.0 }
0x16ce   : > { %v12865_v22 = vpop.eup %11319  ;;  %11335 = vpow2.f32 %v5723_v17  ;;  %5780 = vadd.xlane.f32.xlu0 %v5779_v26  ;;  %v5279_v43 = vpack.c.bf16 %v5272_v52, %v5272_v52  ;;  %v5752_v59 = vsel %vm1808_vm3, %v12849_v61, 0.0  ;;  %v11012_v61 = vld [vmem:[#allocation8 + $0x1d8] sm:$0xff]  }
0x16cf   : > { %v11322_v6 = vpop.eup %11321  ;;  %11337 = vpow2.f32 %v5747_v19  ;;  %v5251_v18 = vpack.c.bf16 %v10608_v40, %v10607_v7  ;;  %v5761_v60 = vsel %vm1808_vm3, %v12865_v22, 0.0  ;;  %v5275_v33 = vpop.permute.xlu0 %5274 }
0x16d0   : > { %v12871_v55 = vpop.eup %11323  ;;  %5762 = vadd.xlane.f32.xlu1 %v5761_v60  ;;  %v5785_v47 = vsel %vm1833_vm2, %v11322_v6, 0.0  ;;  %v5280_v63 = vpack.c.bf16 %v5275_v33, %v5275_v33  ;;  %v6095_v1 = vsel %vm2165_vm4, %v5279_v43, 0 }
0x16d1   : > { %v11326_v14 = vpop.eup %11325  ;;  %10068 = vmatpush3.bf16.msra.mxu0 %v5251_v18  ;;  %v5758_v36 = vsel %vm1808_vm3, %v12871_v55, 0.0  ;;  %v5814_v38 = vpack.c.bf16 %v12871_v55, %v12855_v30 }
0x16d2   : > { %5759 = vadd.xlane.f32.xlu0 %v5758_v36  ;;  %v5818_v62 = vpack.c.bf16 %v11326_v14, %v11318_v46  ;;  %10079 = vmatprep.subr.bf16.mxu0 %v11701_v0  ;;  %v5782_v3 = vsel %vm1833_vm2, %v11326_v14, 0.0  ;;  %v6142_v30 = vsel %vm2165_vm4, %v5280_v63, 0  ;;  %v11011_v46 = vld [vmem:[#allocation8 + $0x1d0] sm:$0xff]  }
0x16d3   : > { %v12879_v2 = vpop.eup %11327 }
0x16d4   : > { %10064 = vmatmul.mubr.msk.bf16.vlgmr.msra.gmra.mrb[108].mxu1 %vm1833_vm2, %v5818_v62  ;;  %5786 = vadd.xlane.f32.xlu1 %v5785_v47  ;;  %v11330_v34 = vpop.eup %11329  ;;  %v5767_v29 = vsel %vm1808_vm3, %v12879_v2, 0.0 }
0x16d5   : > { %10074 = vmatpush3.bf16.msra.mxu1 %v5252_v31  ;;  %10075 = vmatprep.mubr.msk.bf16.mxu1 %vm11702_vm0, %v11701_v0  ;;  %v11332_v8 = vpop.eup %11331  ;;  %v5815_v49 = vpack.c.bf16 %v11330_v34, %v12865_v22  ;;  %v5764_v35 = vsel %vm1808_vm3, %v11330_v34, 0.0  ;;  %v11015_v34 = vld [vmem:[#allocation8 + $0x1f0] sm:$0xff]  }
0x16d6   : > { %5783 = vadd.xlane.f32.xlu0 %v5782_v3  ;;  %10085 = vmatprep.subr.bf16.mxu1 %v11701_v0  ;;  %v11334_v16 = vpop.eup %11333  ;;  %v5819_v42 = vpack.c.bf16 %v11332_v8, %v11322_v6  ;;  %v5788_v48 = vsel %vm1833_vm2, %v11332_v8, 0.0 }
0x16d7   : > { %v5791_v28 = vsel %vm1833_vm2, %v11334_v16, 0.0 }
0x16d8   : > { %v11336_v27 = vpop.eup %11335  ;;  %5768 = vadd.xlane.f32.xlu1 %v5767_v29  ;;  %10070 = vmatmul.mubr.msk.bf16.vlgmr.msra.gmra.mrb[100].mxu0 %vm1833_vm2, %v5819_v42 }
0x16d9   : > { %v11338_v53 = vpop.eup %11337  ;;  %v5816_v50 = vpack.c.bf16 %v11336_v27, %v12879_v2  ;;  %10080 = vmatpush3.bf16.msra.mxu0 %v6001_v24  ;;  %10081 = vmatprep.mubr.msk.bf16.mxu0 %vm11702_vm0, %v11701_v0  ;;  %v5770_v11 = vsel %vm1808_vm3, %v11336_v27, 0.0  ;;  %v11016_v27 = vld [vmem:[#allocation8 + $0x1f8] sm:$0xff]  }
0x16da   : > { %5765 = vadd.xlane.f32.xlu0 %v5764_v35  ;;  %v5820_v56 = vpack.c.bf16 %v11338_v53, %v11334_v16  ;;  %10091 = vmatprep.subr.bf16.mxu0 %v11701_v0  ;;  %v5794_v41 = vsel %vm1833_vm2, %v11338_v53, 0.0 }
0x16dc   : > { %10076 = vmatmul.mubr.msk.bf16.vlgmr.msra.gmra.mrb[112].mxu1 %vm1833_vm2, %v5820_v56  ;;  %5792 = vadd.xlane.f32.xlu1 %v5791_v28 }
0x16dd   : > { %10086 = vmatpush3.bf16.msra.mxu1 %v6048_v44  ;;  %10087 = vmatprep.mubr.msk.bf16.mxu1 %vm11702_vm0, %v11701_v0 }
0x16de   : > { %5789 = vadd.xlane.f32.xlu0 %v5788_v48  ;;  %10097 = vmatprep.subr.bf16.mxu1 %v11701_v0 }
0x16e0   : > { %5750 = vadd.xlane.f32.xlu1 %v5749_v20  ;;  %10082 = vmatmul.mubr.msk.bf16.vlgmr.msra.gmra.mrb[96].mxu0 %vm1808_vm3, %v5813_v37  ;;  %v5776_v37 = vsel %vm1833_vm2, %v12851_v10, 0.0 }
0x16e1   : > { %10092 = vmatpush3.bf16.msra.mxu0 %v6095_v1  ;;  %10093 = vmatprep.mubr.msk.bf16.mxu0 %vm11702_vm0, %v11701_v0 }
0x16e2   : > { %5771 = vadd.xlane.f32.xlu0 %v5770_v11  ;;  %10103 = vmatprep.subr.bf16.mxu0 %v11701_v0 }
0x16e4   : > { %10088 = vmatmul.mubr.msk.bf16.vlgmr.msra.gmra.mrb[108].mxu1 %vm1808_vm3, %v5814_v38  ;;  %5774 = vadd.xlane.f32.xlu1 %v5773_v25  ;;  %v11014_v38 = vld [vmem:[#allocation8 + $0x1e8] sm:$0xff]  }
0x16e5   : > { %10098 = vmatpush3.bf16.msra.mxu1 %v6142_v30  ;;  %10099 = vmatprep.mubr.msk.bf16.mxu1 %vm11702_vm0, %v11701_v0 }
0x16e6   : > { %5795 = vadd.xlane.f32.xlu0 %v5794_v41 }
0x16e8   : > { %10094 = vmatmul.mubr.msk.bf16.vlgmr.msra.gmra.mrb[100].mxu0 %vm1808_vm3, %v5815_v49 }
0x16e9   : > { %10119 = vmatprep.mubr.msk.bf16.mxu0 %vm11702_vm0, %v11701_v0  ;;  %10104 = vmatpush3.bf16.msra.mxu0 %v11009_v32 }
0x16ea   : > { %5753 = vadd.xlane.f32.xlu0 %v5752_v59  ;;  %10105 = vmatprep.subr.bf16.mxu0 %v11701_v0 }
0x16ec   : > { %10100 = vmatmul.mubr.msk.bf16.vlgmr.msra.gmra.mrb[112].mxu1 %vm1808_vm3, %v5816_v50 }
0x16ed   : > { %6572 = vmatprep.mubr.bf16.mxu1 %v11703_v23  ;;  %10106 = vmatpush3.bf16.msra.mxu0 %v11010_v54 }
0x16ee   : > { %5777 = vadd.xlane.f32.xlu0 %v5776_v37  ;;  %10107 = vmatprep.subr.bf16.mxu0 %v11701_v0 }
0x16f1   : > { %10108 = vmatpush3.bf16.msra.mxu0 %v11011_v46 }
0x16f2   : > { %10109 = vmatprep.subr.bf16.mxu0 %v11701_v0 }
0x16f5   : > { %10110 = vmatpush3.bf16.msra.mxu0 %v11012_v61 }
0x16f6   : > { %10111 = vmatprep.subr.bf16.mxu0 %v11701_v0 }
0x16f9   : > { %10112 = vmatpush3.bf16.msra.mxu0 %v11013_v5 }
0x16fa   : > { %10113 = vmatprep.subr.bf16.mxu0 %v11701_v0 }
0x16fd   : > { %10114 = vmatpush3.bf16.msra.mxu0 %v11014_v38 }
0x16fe   : > { %10115 = vmatprep.subr.bf16.mxu0 %v11701_v0 }
0x1701   : > { %10116 = vmatpush3.bf16.msra.mxu0 %v11015_v34 }
0x1702   : > { %10117 = vmatprep.subr.bf16.mxu0 %v11701_v0 }
0x1705   : > { %10118 = vmatpush3.bf16.msra.mxu0 %v11016_v27 }
0x1706   : > { %10123 = vmatprep.subr.bf16.mxu0 %v11701_v0 }
0x1759   : > { %v5757_v51 = vpop.xlane.xlu1 %5756 }
0x175b   : > { %v5781_v10 = vpop.xlane.xlu0 %5780 }
0x175c   : > { %v5799_v22 = vadd.f32 %v5781_v10, %v5757_v51 }
0x175d   : > { %v5763_v17 = vpop.xlane.xlu1 %5762 }
0x175e   : > { %11339 = vrcp.f32 %v5799_v22 }
0x175f   : > { %v5760_v9 = vpop.xlane.xlu0 %5759 }
0x1761   : > { %v5787_v40 = vpop.xlane.xlu1 %5786 }
0x1762   : > { %v5801_v21 = vadd.f32 %v5787_v40, %v5763_v17 }
0x1763   : > { %v5784_v15 = vpop.xlane.xlu0 %5783 }
0x1764   : > { %v5800_v6 = vadd.f32 %v5784_v15, %v5760_v9 }
0x1765   : > { %v5769_v26 = vpop.xlane.xlu1 %5768 }
0x1766   : > { %11341 = vrcp.f32 %v5800_v6 }
0x1767   : > { %v5766_v19 = vpop.xlane.xlu0 %5765  ;;  %11343 = vrcp.f32 %v5801_v21 }
0x1768   : > { %v11340_v3 = vpop.eup %11339 }
0x1769   : > { %v5793_v18 = vpop.xlane.xlu1 %5792 }
0x176a   : > { %v5803_v14 = vadd.f32 %v5793_v18, %v5769_v26 }
0x176b   : > { %v5790_v7 = vpop.xlane.xlu0 %5789 }
0x176c   : > { %v5802_v60 = vadd.f32 %v5790_v7, %v5766_v19 }
0x176d   : > { %v5751_v59 = vpop.xlane.xlu1 %5750 }
0x176e   : > { %11345 = vrcp.f32 %v5802_v60 }
0x176f   : > { %v5772_v57 = vpop.xlane.xlu0 %5771  ;;  %11347 = vrcp.f32 %v5803_v14 }
0x1770   : > { %v11342_v8 = vpop.eup %11341 }
0x1771   : > { %v11344_v24 = vpop.eup %11343  ;;  %v5775_v32 = vpop.xlane.xlu1 %5774 }
0x1772   : > { %v5797_v46 = vadd.f32 %v5775_v32, %v5751_v59  ;;  %v11047_v59 = vld [vmem:[#allocation10 + $0x2ec] ss:$12 sps:$4 sm:$0xff]   ;;  %v11048_v32 = vld [vmem:[#allocation10 + $0x2f0] ss:$12 sps:$4 sm:$0xff]  }
0x1773   : > { %v5796_v55 = vpop.xlane.xlu0 %5795 }
0x1774   : > { %v5804_v36 = vadd.f32 %v5796_v55, %v5772_v57 }
0x1776   : > { %11349 = vrcp.f32 %v5804_v36 }
0x1777   : > { %v5754_v37 = vpop.xlane.xlu0 %5753  ;;  %11351 = vrcp.f32 %v5797_v46 }
0x1778   : > { %v11346_v50 = vpop.eup %11345 }
0x1779   : > { %v11348_v33 = vpop.eup %11347 }
0x177b   : > { %v5778_v54 = vpop.xlane.xlu0 %5777 }
0x177c   : > { %v5798_v61 = vadd.f32 %v5778_v54, %v5754_v37  ;;  %v11045_v37 = vld [vmem:[#allocation10 + $0x2e8] ss:$12 sps:$4 sm:$0xff]  }
0x177d   : > { %v11051_v54 = vld [vmem:[#allocation10 + $0x248] ss:$12 sps:$4 sm:$0xff]  }
0x177e   : > { %11353 = vrcp.f32 %v5798_v61 }
0x1780   : > { %v11350_v20 = vpop.eup %11349 }
0x1781   : > { %v11352_v10 = vpop.eup %11351 }
0x1788   : > { %v11354_v17 = vpop.eup %11353 }
0x17b3   : > { %v6037_v62 = vpop.f32.mrb[96].mxu0 }
0x17b4   : > { %v10083_v31 = vpop.f32.mrb[97].mxu0  ;;  %v6185_v7 = vmul.f32 %v11352_v10, %v6037_v62 }
0x17b5   : > { %v6040_v47 = vpop.f32.mrb[98].mxu0 }
0x17b6   : > { %v10084_v2 = vpop.f32.mrb[99].mxu0  ;;  %v6186_v26 = vmul.f32 %v11354_v17, %v6040_v47  ;;  %v6335_v17 = vld [vmem:[#allocation7 + $0x45] ss:$0 sm:$0xff] }
0x17b7   : > { %v6084_v13 = vpop.f32.mrb[108].mxu1 }
0x17b8   : > { %v10089_v4 = vpop.f32.mrb[109].mxu1  ;;  %v6187_v16 = vmul.f32 %v11340_v3, %v6084_v13  ;;  %v11017_v3 = vld [vmem:[#allocation10 + $0x240] ss:$12 sps:$4 sm:$0xff]  }
0x17b9   : > { %v6087_v49 = vpop.f32.mrb[110].mxu1  ;;  %v11019_v4 = vld [vmem:[#allocation10 + $0x244] ss:$12 sps:$4 sm:$0xff]  }
0x17ba   : > { %v6188_v42 = vmul.f32 %v11342_v8, %v6087_v49  ;;  %v10090_v29 = vpop.f32.mrb[111].mxu1  ;;  %v11020_v8 = vld [vmem:[#allocation10 + $0x248] ss:$12 sps:$4 sm:$0xff]   ;;  %6540 = vmatprep.subr.bf16.mxu1 %v11019_v4 }
0x17bb   : > { %v6131_v53 = vpop.f32.mrb[100].mxu0  ;;  %v11023_v49 = vld [vmem:[#allocation10 + $0x25c] ss:$12 sps:$4 sm:$0xff]   ;;  %6541 = vmatpush1.bf16.msra.mxu1 %v11017_v3  ;;  %v11066_v3 = vld [vmem:[#allocation10 + $0x2c0] ss:$12 sps:$4 sm:$0xff]  }
0x17bc   : > { %v10614_v45 = vpack.i.bf16 %v6188_v42, %v6187_v16  ;;  %v10095_v35 = vpop.f32.mrb[101].mxu0  ;;  %v6189_v56 = vmul.f32 %v11344_v24, %v6131_v53  ;;  %v11024_v16 = vld [vmem:[#allocation10 + $0x260] ss:$12 sps:$4 sm:$0xff]   ;;  %6542 = vmatprep.subr.bf16.mxu1 %v11023_v49  ;;  %v11064_v4 = vld [vmem:[#allocation10 + $0x2bc] ss:$12 sps:$4 sm:$0xff]  }
0x17bd   : > { %v6134_v52 = vpop.f32.mrb[102].mxu0  ;;  %v6331_v49 = vld [vmem:[#allocation7 + $0x43] ss:$0 sm:$0xff] }
0x17be   : > { %10615 = vrot.lane.b32.xlu1 %v10614_v45, %s11706_s10  ;;  %v6190_v28 = vmul.f32 %v11346_v50, %v6134_v52  ;;  %v10096_v44 = vpop.f32.mrb[103].mxu0  ;;  %v11027_v50 = vld [vmem:[#allocation10 + $0x274] ss:$12 sps:$4 sm:$0xff]   ;;  %v11025_v52 = vld [vmem:[#allocation10 + $0x270] ss:$12 sps:$4 sm:$0xff]  }
0x17bf   : > { %v6178_v43 = vpop.f32.mrb[112].mxu1  ;;  %v11029_v44 = vld [vmem:[#allocation10 + $0x288] ss:$12 sps:$4 sm:$0xff]  }
0x17c0   : > { %v10101_v48 = vpop.f32.mrb[113].mxu1  ;;  %v10619_v63 = vpack.i.bf16 %v6190_v28, %v6189_v56  ;;  %v6191_v11 = vmul.f32 %v11348_v33, %v6178_v43  ;;  %v11028_v56 = vld [vmem:[#allocation10 + $0x278] ss:$12 sps:$4 sm:$0xff]   ;;  %v11032_v43 = vld [vmem:[#allocation10 + $0x290] ss:$12 sps:$4 sm:$0xff]  }
0x17c1   : > { %v6181_v1 = vpop.f32.mrb[114].mxu1  ;;  %v11031_v28 = vld [vmem:[#allocation10 + $0x28c] ss:$12 sps:$4 sm:$0xff]   ;;  %v11035_v33 = vld [vmem:[#allocation10 + $0x2a4] ss:$12 sps:$4 sm:$0xff]  }
0x17c2   : > { %v6192_v25 = vmul.f32 %v11350_v20, %v6181_v1  ;;  %v10102_v30 = vpop.f32.mrb[115].mxu1  ;;  %10620 = vrot.lane.b32.xlu0 %v10619_v63, %s11705_s3  ;;  %v11033_v48 = vld [vmem:[#allocation10 + $0x2a0] ss:$12 sps:$4 sm:$0xff]   ;;  %v11036_v20 = vld [vmem:[#allocation10 + $0x2a8] ss:$12 sps:$4 sm:$0xff]  }
0x17c3   : > { %v11039_v63 = vld [vmem:[#allocation10 + $0x2bc] ss:$12 sps:$4 sm:$0xff]   ;;  %v11037_v1 = vld [vmem:[#allocation10 + $0x2b8] ss:$12 sps:$4 sm:$0xff]  }
0x17c4   : > { %v10624_v41 = vpack.i.bf16 %v6192_v25, %v6191_v11  ;;  %v11040_v11 = vld [vmem:[#allocation10 + $0x2c0] ss:$12 sps:$4 sm:$0xff]   ;;  %v11041_v30 = vld [vmem:[#allocation10 + $0x2d0] ss:$12 sps:$4 sm:$0xff]  }
0x17c5   : > { %v11043_v25 = vld [vmem:[#allocation10 + $0x2d4] ss:$12 sps:$4 sm:$0xff]  }
0x17c6   : > { %10625 = vrot.lane.b32.xlu1 %v10624_v41, %s11704_s19  ;;  %v11044_v41 = vld [vmem:[#allocation10 + $0x2d8] ss:$12 sps:$4 sm:$0xff]  }
0x1830   : > { %v10616_v5 = vpop.permute.xlu1 %10615 }
0x1831   : > { %v10618_v9 = vunpack.i.h.bf16 %v10616_v5  ;;  %v10617_v51 = vunpack.i.l.bf16 %v10616_v5 }
0x1833   : > { %v6218_v57 = vsel %vm1443_vm1, %v6186_v26, %v10618_v9  ;;  %v6217_v6 = vsel %vm1443_vm1, %v6185_v7, %v10617_v51 }
0x1834   : > { %v10621_v15 = vpop.permute.xlu0 %10620 }
0x1835   : > { %v10623_v19 = vunpack.i.h.bf16 %v10621_v15  ;;  %v10622_v40 = vunpack.i.l.bf16 %v10621_v15 }
0x1837   : > { %v6219_v60 = vsel %vm2385_vm5, %v6217_v6, %v10622_v40  ;;  %v6220_v55 = vsel %vm2385_vm5, %v6218_v57, %v10623_v19 }
0x1838   : > { %v10626_v22 = vpop.permute.xlu1 %10625 }
0x1839   : > { %v10628_v21 = vunpack.i.h.bf16 %v10626_v22  ;;  %v10627_v18 = vunpack.i.l.bf16 %v10626_v22  ;;  %v6336_v22 = vld [vmem:[#allocation7 + $0x46] ss:$0 sm:$0xff] }
0x183b   : > { %v6222_v14 = vsel %vm2388_vm6, %v6220_v55, %v10628_v21  ;;  %v6221_v36 = vsel %vm2388_vm6, %v6219_v60, %v10627_v18  ;;  %v11049_v18 = vld [vmem:[#allocation10 + $0x244] ss:$12 sps:$4 sm:$0xff]   ;;  %v11054_v55 = vld [vmem:[#allocation10 + $0x260] ss:$12 sps:$4 sm:$0xff]  }
0x183c   : > { %v6239_v38 = vpack.c.bf16 %v6222_v14, %v6221_v36  ;;  %v11052_v14 = vld [vmem:[#allocation10 + $0x25c] ss:$12 sps:$4 sm:$0xff]   ;;  %v11057_v36 = vld [vmem:[#allocation10 + $0x278] ss:$12 sps:$4 sm:$0xff]  }
0x183e   : > { %10120 = vmatmul.mubr.bf16.vlgmr.msra.gmra.mrb[104].mxu0 %v6239_v38  ;;  %v11055_v38 = vld [vmem:[#allocation10 + $0x274] ss:$12 sps:$4 sm:$0xff]  }
0x183f   : > { %10139 = vmatprep.mubr.msk.bf16.mxu0 %vm11702_vm0, %v11701_v0  ;;  %10124 = vmatpush3.bf16.msra.mxu0 %v11020_v8  ;;  %v11069_v8 = vld [vmem:[#allocation10 + $0x2d8] ss:$12 sps:$4 sm:$0xff]  }
0x1840   : > { %10125 = vmatprep.subr.bf16.mxu0 %v11701_v0 }
0x1843   : > { %10126 = vmatpush3.bf16.msra.mxu0 %v11024_v16  ;;  %v11067_v16 = vld [vmem:[#allocation10 + $0x2d4] ss:$12 sps:$4 sm:$0xff]  }
0x1844   : > { %10127 = vmatprep.subr.bf16.mxu0 %v11701_v0 }
0x1847   : > { %10128 = vmatpush3.bf16.msra.mxu0 %v11028_v56 }
0x1848   : > { %10129 = vmatprep.subr.bf16.mxu0 %v11701_v0 }
0x184b   : > { %10130 = vmatpush3.bf16.msra.mxu0 %v11032_v43 }
0x184c   : > { %10131 = vmatprep.subr.bf16.mxu0 %v11701_v0 }
0x184f   : > { %10132 = vmatpush3.bf16.msra.mxu0 %v11036_v20 }
0x1850   : > { %10133 = vmatprep.subr.bf16.mxu0 %v11701_v0 }
0x1853   : > { %10134 = vmatpush3.bf16.msra.mxu0 %v11040_v11 }
0x1854   : > { %10135 = vmatprep.subr.bf16.mxu0 %v11701_v0 }
0x1857   : > { %10136 = vmatpush3.bf16.msra.mxu0 %v11044_v41 }
0x1858   : > { %10137 = vmatprep.subr.bf16.mxu0 %v11701_v0 }
0x185b   : > { %10138 = vmatpush3.bf16.msra.mxu0 %v11048_v32 }
0x185c   : > { %10143 = vmatprep.subr.bf16.mxu0 %v11701_v0 }
0x1911   : > { %v6322_v62 = vpop.f32.mrb[104].mxu0 }
0x1912   : > { %v12952_v31 = vadd.f32 %v6322_v62, %v12673_v58  ;;  %v10121_v47 = vpop.f32.mrb[105].mxu0  ;;  %v11021_v58 = vld [vmem:[#allocation10 + $0x258] ss:$12 sps:$4 sm:$0xff]   ;;  %v11060_v62 = vld [vmem:[#allocation10 + $0x290] ss:$12 sps:$4 sm:$0xff]  }
0x1913   : > { %v6325_v2 = vpop.f32.mrb[106].mxu0  ;;  %6543 = vmatpush1.bf16.msra.mxu1 %v11021_v58  ;;  %v11058_v47 = vld [vmem:[#allocation10 + $0x28c] ss:$12 sps:$4 sm:$0xff]   ;;  %v11072_v58 = vld [vmem:[#allocation10 + $0x2f0] ss:$12 sps:$4 sm:$0xff]  }
0x1914   : > { %v12955_v13 = vadd.f32 %v6325_v2, %v12677_v12  ;;  %6337 = vadd.xlane.f32.xlu1 %v12952_v31  ;;  %v10122_v34 = vpop.f32.mrb[107].mxu0  ;;  %6544 = vmatprep.subr.bf16.mxu1 %v11027_v50  ;;  %v11063_v2 = vld [vmem:[#allocation10 + $0x2a8] ss:$12 sps:$4 sm:$0xff]  }
0x1915   : > { %v11061_v34 = vld [vmem:[#allocation10 + $0x2a4] ss:$12 sps:$4 sm:$0xff]  }
0x1916   : > { %6339 = vadd.xlane.f32.xlu0 %v12955_v13 }
0x1917   : > { %6545 = vmatpush1.bf16.msra.mxu1 %v11025_v52 }
0x1918   : > { %6546 = vmatprep.subr.bf16.mxu1 %v11031_v28 }
0x191b   : > { %6547 = vmatpush1.bf16.msra.mxu1 %v11029_v44 }
0x191c   : > { %6548 = vmatprep.subr.bf16.mxu1 %v11035_v33 }
0x191f   : > { %6549 = vmatpush1.bf16.msra.mxu1 %v11033_v48 }
0x1920   : > { %6550 = vmatprep.subr.bf16.mxu1 %v11039_v63 }
0x1923   : > { %6551 = vmatpush1.bf16.msra.mxu1 %v11037_v1 }
0x1924   : > { %6552 = vmatprep.subr.bf16.mxu1 %v11043_v25 }
0x1927   : > { %6553 = vmatpush1.bf16.msra.mxu1 %v11041_v30 }
0x1928   : > { %6554 = vmatprep.subr.bf16.mxu1 %v11047_v59 }
0x192b   : > { %6555 = vmatpush1.bf16.msra.mxu1 %v11045_v37 }
0x192c   : > { %6705 = vmatprep.subr.bf16.mxu1 %v11051_v54 }
0x19a1   : > { %v6338_v12 = vpop.xlane.xlu1 %6337 }
0x19a2   : > { %v6341_v42 = vmul.f32 0.0078125, %v6338_v12  ;;  %v6333_v12 = vmul.f32 %v6331_v49, %v12390_v39 }
0x19a3   : > { %v6340_v29 = vpop.xlane.xlu0 %6339 }
0x19a4   : > { %v6343_v27 = vsub.f32 %v12952_v31, %v6341_v42  ;;  %v6342_v45 = vmul.f32 0.0078125, %v6340_v29  ;;  %v6332_v42 = vld [vmem:[#allocation7 + $0x44] ss:$0 sm:$0xff]  ;;  %v11070_v29 = vld [vmem:[#allocation10 + $0x2ec] ss:$12 sps:$4 sm:$0xff]  }
0x19a6   : > { %v6344_v53 = vsub.f32 %v12955_v13, %v6342_v45  ;;  %v6345_v24 = vmul.f32 %v6343_v27, %v6343_v27 }
0x19a8   : > { %6347 = vadd.xlane.f32.xlu0 %v6345_v24  ;;  %v6346_v35 = vmul.f32 %v6344_v53, %v6344_v53 }
0x19aa   : > { %6349 = vadd.xlane.f32.xlu1 %v6346_v35 }
0x1a35   : > { %v6348_v46 = vpop.xlane.xlu0 %6347 }
0x1a36   : > { %v6351_v61 = vmul.f32 0.0078125, %v6348_v46 }
0x1a37   : > { %v6350_v5 = vpop.xlane.xlu1 %6349 }
0x1a38   : > { %v6353_v10 = vadd.f32 1e-05, %v6351_v61  ;;  %v6352_v9 = vmul.f32 0.0078125, %v6350_v5 }
0x1a3a   : > { %11355 = vrsqrt.f32 %v6353_v10  ;;  %v6354_v51 = vadd.f32 1e-05, %v6352_v9 }
0x1a3c   : > { %11357 = vrsqrt.f32 %v6354_v51 }
0x1a44   : > { %v11356_v15 = vpop.eup %11355 }
0x1a45   : > { %v6357_v19 = vmul.f32 %v11356_v15, %v6343_v27  ;;  %v6334_v27 = vadd.f32 %v6333_v12, %v6332_v42 }
0x1a46   : > { %v11358_v40 = vpop.eup %11357 }
0x1a47   : > { %v6358_v7 = vmul.f32 %v11358_v40, %v6344_v53  ;;  %v6359_v26 = vmul.f32 %v6357_v19, %v6335_v17  ;;  %v6624_v45 = vpack.c.bf16 %v6334_v27, %v6334_v27 }
0x1a49   : > { %v6360_v57 = vmul.f32 %v6358_v7, %v6335_v17  ;;  %v6361_v6 = vadd.f32 %v6359_v26, %v6336_v22 }
0x1a4b   : > { %v6362_v21 = vadd.f32 %v6360_v57, %v6336_v22 }
0x1a4d   : > { %v6411_v60 = vpack.c.bf16 %v6362_v21, %v6361_v6 }
0x1a4f   : > { %6573 = vmatmul.mubr.bf16.vlgmr.msra.gmra.mrb[116].mxu1 %v6411_v60  ;;  %10140 = vmatmul.mubr.bf16.vlgmr.msra.gmra.mrb[108].mxu0 %v6411_v60 }
0x1a50   : > { %6706 = vmatpush1.bf16.msra.mxu1 %v11049_v18  ;;  %6737 = vmatprep.mubr.bf16.mxu1 %v11703_v23 }
0x1a51   : > { %6707 = vmatprep.subr.bf16.mxu1 %v11054_v55  ;;  %10145 = vmatprep.mubr.msk.bf16.mxu0 %vm11702_vm0, %v11701_v0 }
0x1a54   : > { %6708 = vmatpush1.bf16.msra.mxu1 %v11052_v14 }
0x1a55   : > { %6709 = vmatprep.subr.bf16.mxu1 %v11057_v36 }
0x1a58   : > { %6710 = vmatpush1.bf16.msra.mxu1 %v11055_v38 }
0x1a59   : > { %6711 = vmatprep.subr.bf16.mxu1 %v11060_v62 }
0x1a5c   : > { %6712 = vmatpush1.bf16.msra.mxu1 %v11058_v47 }
0x1a5d   : > { %6713 = vmatprep.subr.bf16.mxu1 %v11063_v2 }
0x1a60   : > { %6714 = vmatpush1.bf16.msra.mxu1 %v11061_v34 }
0x1a61   : > { %6715 = vmatprep.subr.bf16.mxu1 %v11066_v3 }
0x1a64   : > { %6716 = vmatpush1.bf16.msra.mxu1 %v11064_v4 }
0x1a65   : > { %6717 = vmatprep.subr.bf16.mxu1 %v11069_v8 }
0x1a68   : > { %6718 = vmatpush1.bf16.msra.mxu1 %v11067_v16 }
0x1a69   : > { %6719 = vmatprep.subr.bf16.mxu1 %v11072_v58 }
0x1a6c   : > { %6720 = vmatpush1.bf16.msra.mxu1 %v11070_v29 }
0x1a6d   : > { %10149 = vmatprep.subr.bf16.mxu1 %v11701_v0 }
0x1a6f   : > { %6738 = vmatmul.mubr.bf16.vlgmr.msra.gmra.mrb[120].mxu1 %v6624_v45 }
0x1a70   : > { %10151 = vmatprep.mubr.msk.bf16.mxu1 %vm11702_vm0, %v11701_v0 }
0x1b22   : > { %v6574_v53 = vpop.f32.mrb[116].mxu1  ;;  %v12976_v24 = vpop.f32.mrb[108].mxu0 }
0x1b23   : > { %v6576_v35 = vpop.f32.mrb[117].mxu1  ;;  %v10141_v50 = vpop.f32.mrb[109].mxu0 }
0x1b24   : > { %v6578_v52 = vpop.f32.mrb[118].mxu1  ;;  %v12978_v39 = vpop.f32.mrb[110].mxu0 }
0x1b25   : > { %v10639_v56 = vpack.i.bf16 %v6578_v52, %v6574_v53  ;;  %v12980_v28 = vpack.c.bf16 %v6578_v52, %v6574_v53  ;;  %v12984_v44 = vpack.i.bf16 %v12978_v39, %v12976_v24  ;;  %v10142_v43 = vpop.f32.mrb[111].mxu0  ;;  %6750 = vrot.lane.b32.xlu1 %v6578_v52, %s11704_s19  ;;  %v6580_v33 = vpop.f32.mrb[119].mxu1  ;;  %v6814_v48 = vpack.c.bf16 %v12978_v39, %v12976_v24 }
0x1b26   : > { %v10654_v20 = vpack.i.bf16 %v6580_v33, %v6576_v35  ;;  %v6790_v63 = vpack.c.bf16 %v6580_v33, %v6576_v35 }
0x1b28   : > { %v7035_v55 = vsel %vm1443_vm1, %v6790_v63, 0 }
0x1b42   : > { %v6739_v1 = vpop.f32.mrb[120].mxu1 }
0x1b43   : > { %v10634_v11 = vpack.i.bf16 %v6574_v53, %v6739_v1  ;;  %v12989_v25 = vpop.f32.mrb[121].mxu1  ;;  %v6828_v30 = vpack.c.bf16 %v6739_v1, %v6739_v1 }
0x1b44   : > { %v6743_v41 = vpop.f32.mrb[122].mxu1 }
0x1b45   : > { %10635 = vrot.lane.b32.xlu1 %v10634_v11, %s11705_s3  ;;  %10630 = vrot.lane.b32.xlu0 %v10634_v11, %s11704_s19  ;;  %v6744_v59 = vpop.f32.mrb[123].mxu1  ;;  %v6850_v37 = vsel %vm1443_vm1, %v6828_v30, 0 }
0x1b46   : > { %10144 = vmatpush3.bf16.xpose.msra.mxu0 %v6850_v37 }
0x1b47   : > { %10155 = vmatprep.subr.bf16.mxu0 %v11701_v0 }
0x1b49   : > { %6825 = vrot.lane.b32.xlu1 %v6739_v1, %s11706_s10  ;;  %6756 = vrot.lane.b32.xlu0 %v6578_v52, %s11705_s3 }
0x1b4d   : > { %10640 = vrot.lane.b32.xlu1 %v10639_v56, %s11706_s10  ;;  %10645 = vrot.lane.b32.xlu0 %v10654_v20, %s11704_s19 }
0x1b4e   : > { %10146 = vmatmul.mubr.msk.bf16.vlgmr.msra.gmra.mrb[112].mxu0 %vm1443_vm1, %v12980_v28 }
0x1b4f   : > { %10157 = vmatprep.mubr.msk.bf16.mxu0 %vm11702_vm0, %v11701_v0 }
0x1b51   : > { %10650 = vrot.lane.b32.xlu1 %v10654_v20, %s11705_s3  ;;  %10655 = vrot.lane.b32.xlu0 %v10654_v20, %s11706_s10 }
0x1b55   : > { %10660 = vrot.lane.b32.xlu1 %v12984_v44, %s11704_s19 }
0x1b97   : > { %v6751_v32 = vpop.permute.xlu1 %6750 }
0x1bb7   : > { %v10636_v54 = vpop.permute.xlu1 %10635  ;;  %v10631_v46 = vpop.permute.xlu0 %10630 }
0x1bb8   : > { %v10637_v61 = vunpack.i.l.bf16 %v10636_v54  ;;  %v10632_v5 = vunpack.i.l.bf16 %v10631_v46  ;;  %v10633_v40 = vunpack.i.h.bf16 %v10631_v46  ;;  %v10638_v22 = vunpack.i.h.bf16 %v10636_v54 }
0x1bba   : > { %v6830_v10 = vpack.c.bf16 %v10637_v61, %v10637_v61  ;;  %v6829_v9 = vpack.c.bf16 %v10632_v5, %v10632_v5  ;;  %v6767_v6 = vpack.c.bf16 %v6751_v32, %v10633_v40 }
0x1bbb   : > { %v6826_v51 = vpop.permute.xlu1 %6825  ;;  %v6757_v15 = vpop.permute.xlu0 %6756 }
0x1bbc   : > { %v6897_v17 = vsel %vm1443_vm1, %v6829_v9, 0  ;;  %v6944_v19 = vsel %vm1443_vm1, %v6830_v10, 0  ;;  %v6831_v7 = vpack.c.bf16 %v6826_v51, %v6826_v51  ;;  %v6768_v21 = vpack.c.bf16 %v6757_v15, %v10638_v22 }
0x1bbd   : > { %10150 = vmatpush3.bf16.xpose.msra.mxu1 %v6897_v17  ;;  %10156 = vmatpush3.bf16.xpose.msra.mxu0 %v6944_v19 }
0x1bbe   : > { %10161 = vmatprep.subr.bf16.mxu1 %v11701_v0  ;;  %10167 = vmatprep.subr.bf16.mxu0 %v11701_v0  ;;  %v6991_v18 = vsel %vm1443_vm1, %v6831_v7, 0 }
0x1bbf   : > { %v10641_v26 = vpop.permute.xlu1 %10640  ;;  %v10646_v57 = vpop.permute.xlu0 %10645 }
0x1bc0   : > { %v10648_v14 = vunpack.i.h.bf16 %v10646_v57  ;;  %v10647_v36 = vunpack.i.l.bf16 %v10646_v57  ;;  %v10643_v47 = vunpack.i.h.bf16 %v10641_v26  ;;  %v10642_v2 = vunpack.i.l.bf16 %v10641_v26 }
0x1bc2   : > { %v6791_v34 = vpack.c.bf16 %v10648_v14, %v10647_v36  ;;  %v6769_v8 = vpack.c.bf16 %v10643_v47, %v10642_v2 }
0x1bc3   : > { %v10651_v60 = vpop.permute.xlu1 %10650  ;;  %v10656_v4 = vpop.permute.xlu0 %10655 }
0x1bc4   : > { %v10653_v38 = vunpack.i.h.bf16 %v10651_v60  ;;  %v10652_v62 = vunpack.i.l.bf16 %v10651_v60  ;;  %10152 = vmatmul.mubr.msk.bf16.vlgmr.msra.gmra.mrb[124].mxu1 %vm1443_vm1, %v6767_v6  ;;  %10158 = vmatmul.mubr.msk.bf16.vlgmr.msra.gmra.mrb[116].mxu0 %vm1443_vm1, %v6768_v21  ;;  %v10658_v49 = vunpack.i.h.bf16 %v10656_v4  ;;  %v10657_v16 = vunpack.i.l.bf16 %v10656_v4 }
0x1bc5   : > { %10162 = vmatpush3.bf16.xpose.msra.mxu1 %v6991_v18  ;;  %10168 = vmatpush3.bf16.xpose.msra.mxu0 %v7035_v55  ;;  %v7079_v58 = vsel %vm1443_vm1, %v6791_v34, 0 }
0x1bc6   : > { %10163 = vmatprep.mubr.msk.bf16.mxu1 %vm11702_vm0, %v11701_v0  ;;  %10169 = vmatprep.mubr.msk.bf16.mxu0 %vm11702_vm0, %v11701_v0  ;;  %v6792_v3 = vpack.c.bf16 %v10653_v38, %v10652_v62  ;;  %v6793_v42 = vpack.c.bf16 %v10658_v49, %v10657_v16 }
0x1bc7   : > { %10173 = vmatprep.subr.bf16.mxu1 %v11701_v0  ;;  %10179 = vmatprep.subr.bf16.mxu0 %v11701_v0  ;;  %v10661_v29 = vpop.permute.xlu1 %10660 }
0x1bc8   : > { %v7123_v12 = vsel %vm1443_vm1, %v6792_v3, 0  ;;  %v7167_v27 = vsel %vm1443_vm1, %v6793_v42, 0  ;;  %v10663_v45 = vunpack.i.h.bf16 %v10661_v29  ;;  %v10662_v53 = vunpack.i.l.bf16 %v10661_v29 }
0x1bca   : > { %v6815_v35 = vpack.c.bf16 %v10663_v45, %v10662_v53 }
0x1bcc   : > { %10164 = vmatmul.mubr.msk.bf16.vlgmr.msra.gmra.mrb[128].mxu1 %vm1443_vm1, %v6769_v8  ;;  %10170 = vmatmul.mubr.msk.bf16.vlgmr.msra.gmra.mrb[120].mxu0 %vm1443_vm1, %v12980_v28 }
0x1bcd   : > { %10174 = vmatpush3.bf16.xpose.msra.mxu1 %v7079_v58  ;;  %10180 = vmatpush3.bf16.xpose.msra.mxu0 %v7123_v12 }
0x1bce   : > { %10175 = vmatprep.mubr.msk.bf16.mxu1 %vm11702_vm0, %v11701_v0  ;;  %10181 = vmatprep.mubr.msk.bf16.mxu0 %vm11702_vm0, %v11701_v0 }
0x1bcf   : > { %10185 = vmatprep.subr.bf16.mxu1 %v11701_v0  ;;  %10191 = vmatprep.subr.bf16.mxu0 %v11701_v0 }
0x1bd4   : > { %10176 = vmatmul.mubr.msk.bf16.vlgmr.msra.gmra.mrb[132].mxu1 %vm1443_vm1, %v6767_v6  ;;  %10182 = vmatmul.mubr.msk.bf16.vlgmr.msra.gmra.mrb[124].mxu0 %vm1443_vm1, %v6768_v21 }
0x1bd5   : > { %10186 = vmatpush3.bf16.xpose.msra.mxu1 %v7167_v27  ;;  %10192 = vmatpush3.bf16.msra.mxu0 %v6814_v48 }
0x1bd6   : > { %10187 = vmatprep.mubr.msk.bf16.mxu1 %vm11702_vm0, %v11701_v0  ;;  %10197 = vmatprep.subr.bf16.mxu1 %v11701_v0 }
0x1bd7   : > { %10193 = vmatprep.mubr.msk.bf16.mxu0 %vm11702_vm0, %v11701_v0  ;;  %10203 = vmatprep.subr.bf16.mxu0 %v11701_v0 }
0x1bdc   : > { %10188 = vmatmul.mubr.msk.bf16.vlgmr.msra.gmra.mrb[136].mxu1 %vm1443_vm1, %v6769_v8 }
0x1bdd   : > { %10198 = vmatpush3.bf16.msra.mxu1 %v6815_v35  ;;  %10199 = vmatprep.mubr.msk.bf16.mxu1 %vm11702_vm0, %v11701_v0 }
0x1bde   : > { %10209 = vmatprep.subr.bf16.mxu1 %v11701_v0 }
0x1c21   : > { %v13048_v24 = vpop.f32.mrb[112].mxu0 }
0x1c22   : > { %v10147_v50 = vpop.f32.mrb[113].mxu0  ;;  %v7210_v52 = vsel %vm1808_vm3, %v13048_v24, -inf }
0x1c23   : > { %7211 = vmax.xlane.f32.xlu1 %v7210_v52  ;;  %v13052_v39 = vpop.f32.mrb[114].mxu0 }
0x1c24   : > { %v10148_v56 = vpop.f32.mrb[115].mxu0  ;;  %v7213_v28 = vsel %vm1808_vm3, %v13052_v39, -inf }
0x1c25   : > { %7214 = vmax.xlane.f32.xlu0 %v7213_v28 }
0x1c97   : > { %v13056_v43 = vpop.f32.mrb[124].mxu1  ;;  %v13058_v33 = vpop.f32.mrb[116].mxu0 }
0x1c98   : > { %v10153_v48 = vpop.f32.mrb[125].mxu1  ;;  %v10159_v20 = vpop.f32.mrb[117].mxu0  ;;  %v7216_v63 = vsel %vm1808_vm3, %v13056_v43, -inf  ;;  %v7222_v37 = vsel %vm1808_vm3, %v13058_v33, -inf }
0x1c99   : > { %v13062_v1 = vpop.f32.mrb[118].mxu0  ;;  %7217 = vmax.xlane.f32.xlu1 %v7216_v63  ;;  %v13064_v11 = vpop.f32.mrb[126].mxu1 }
0x1c9a   : > { %v10154_v30 = vpop.f32.mrb[127].mxu1  ;;  %v10160_v41 = vpop.f32.mrb[119].mxu0  ;;  %v7219_v59 = vsel %vm1808_vm3, %v13064_v11, -inf  ;;  %v7225_v32 = vsel %vm1808_vm3, %v13062_v1, -inf }
0x1c9b   : > { %7220 = vmax.xlane.f32.xlu0 %v7219_v59 }
0x1c9d   : > { %7223 = vmax.xlane.f32.xlu1 %v7222_v37 }
0x1c9f   : > { %v7071_v54 = vpop.f32.mrb[120].mxu0  ;;  %7226 = vmax.xlane.f32.xlu0 %v7225_v32  ;;  %v13072_v46 = vpop.f32.mrb[128].mxu1 }
0x1ca0   : > { %v10165_v61 = vpop.f32.mrb[129].mxu1  ;;  %v10171_v5 = vpop.f32.mrb[121].mxu0  ;;  %v7228_v10 = vsel %vm1808_vm3, %v13072_v46, -inf  ;;  %v7234_v19 = vsel %vm1833_vm2, %v7071_v54, -inf }
0x1ca1   : > { %v7074_v9 = vpop.f32.mrb[122].mxu0  ;;  %7229 = vmax.xlane.f32.xlu1 %v7228_v10  ;;  %v13076_v51 = vpop.f32.mrb[130].mxu1 }
0x1ca2   : > { %v10166_v15 = vpop.f32.mrb[131].mxu1  ;;  %v10172_v17 = vpop.f32.mrb[123].mxu0  ;;  %v7237_v40 = vsel %vm1833_vm2, %v7074_v9, -inf  ;;  %v7231_v14 = vsel %vm1808_vm3, %v13076_v51, -inf }
0x1ca3   : > { %7235 = vmax.xlane.f32.xlu0 %v7234_v19 }
0x1ca7   : > { %v13080_v7 = vpop.f32.mrb[124].mxu0  ;;  %7238 = vmax.xlane.f32.xlu0 %v7237_v40  ;;  %v7115_v26 = vpop.f32.mrb[132].mxu1 }
0x1ca8   : > { %v10177_v22 = vpop.f32.mrb[133].mxu1  ;;  %v10183_v57 = vpop.f32.mrb[125].mxu0  ;;  %v7240_v6 = vsel %vm1833_vm2, %v7115_v26, -inf  ;;  %v7246_v36 = vsel %vm1833_vm2, %v13080_v7, -inf }
0x1ca9   : > { %v13083_v21 = vpop.f32.mrb[126].mxu0  ;;  %7241 = vmax.xlane.f32.xlu1 %v7240_v6  ;;  %v13085_v18 = vpop.f32.mrb[134].mxu1 }
0x1caa   : > { %v10178_v60 = vpop.f32.mrb[135].mxu1  ;;  %v10184_v55 = vpop.f32.mrb[127].mxu0  ;;  %v7243_v38 = vsel %vm1833_vm2, %v13085_v18, -inf  ;;  %v7249_v4 = vsel %vm1833_vm2, %v13083_v21, -inf }
0x1cab   : > { %7232 = vmax.xlane.f32.xlu0 %v7231_v14 }
0x1cad   : > { %7247 = vmax.xlane.f32.xlu1 %v7246_v36 }
0x1caf   : > { %7244 = vmax.xlane.f32.xlu0 %v7243_v38  ;;  %v13093_v62 = vpop.f32.mrb[136].mxu1 }
0x1cb0   : > { %v10189_v47 = vpop.f32.mrb[137].mxu1  ;;  %v7252_v2 = vsel %vm1833_vm2, %v13093_v62, -inf  ;;  %v7212_v49 = vpop.xlane.xlu1 %7211 }
0x1cb1   : > { %7253 = vmax.xlane.f32.xlu1 %v7252_v2  ;;  %v13097_v34 = vpop.f32.mrb[138].mxu1 }
0x1cb2   : > { %v10190_v3 = vpop.f32.mrb[139].mxu1  ;;  %v7255_v8 = vsel %vm1833_vm2, %v13097_v34, -inf  ;;  %v7215_v16 = vpop.xlane.xlu0 %7214 }
0x1cb3   : > { %7250 = vmax.xlane.f32.xlu0 %v7249_v4 }
0x1cb7   : > { %7256 = vmax.xlane.f32.xlu0 %v7255_v8 }
0x1cc2   : > { %10670 = vrot.lane.b32.xlu1 %v12984_v44, %s11706_s10 }
0x1cc6   : > { %6833 = vrot.lane.b32.xlu1 %v12989_v25, %s11704_s19 }
0x1cca   : > { %6836 = vrot.lane.b32.xlu1 %v12989_v25, %s11705_s3 }
0x1ccd   : > { %10665 = vrot.lane.b32.xlu0 %v12984_v44, %s11705_s3 }
0x1cd1   : > { %6839 = vrot.lane.b32.xlu0 %v12989_v25, %s11706_s10 }
0x1d26   : > { %v7218_v58 = vpop.xlane.xlu1 %7217 }
0x1d28   : > { %v7221_v12 = vpop.xlane.xlu0 %7220 }
0x1d2a   : > { %v7224_v42 = vpop.xlane.xlu1 %7223 }
0x1d2c   : > { %v7227_v29 = vpop.xlane.xlu0 %7226 }
0x1d2e   : > { %v7230_v53 = vpop.xlane.xlu1 %7229 }
0x1d30   : > { %v7236_v27 = vpop.xlane.xlu0 %7235 }
0x1d31   : > { %v7258_v45 = vmax.f32 %v7212_v49, %v7236_v27 }
0x1d33   : > { %v7266_v35 = vsub.f32 %v13048_v24, %v7258_v45  ;;  %v7290_v50 = vsub.f32 %v7071_v54, %v7258_v45 }
0x1d34   : > { %v7239_v52 = vpop.xlane.xlu0 %7238 }
0x1d35   : > { %v7274_v56 = vmul.f32 1.442695, %v7266_v35  ;;  %v7259_v28 = vmax.f32 %v7215_v16, %v7239_v52  ;;  %v7298_v48 = vmul.f32 1.442695, %v7290_v50 }
0x1d36   : > { %v7242_v44 = vpop.xlane.xlu1 %7241 }
0x1d37   : > { %v7267_v20 = vsub.f32 %v13052_v39, %v7259_v28  ;;  %v7291_v63 = vsub.f32 %v7074_v9, %v7259_v28  ;;  %v7260_v30 = vmax.f32 %v7218_v58, %v7242_v44  ;;  %11359 = vpow2.f32 %v7274_v56 }
0x1d38   : > { %v7233_v41 = vpop.xlane.xlu0 %7232  ;;  %11361 = vpow2.f32 %v7298_v48 }
0x1d39   : > { %v7276_v59 = vmul.f32 1.442695, %v7267_v20  ;;  %v7300_v37 = vmul.f32 1.442695, %v7291_v63  ;;  %v7268_v32 = vsub.f32 %v13056_v43, %v7260_v30  ;;  %v7292_v61 = vsub.f32 %v7115_v26, %v7260_v30 }
0x1d3a   : > { %v7248_v5 = vpop.xlane.xlu1 %7247 }
0x1d3b   : > { %11363 = vpow2.f32 %v7276_v59  ;;  %v7278_v24 = vmul.f32 1.442695, %v7268_v32  ;;  %v7302_v54 = vmul.f32 1.442695, %v7292_v61  ;;  %v7262_v10 = vmax.f32 %v7224_v42, %v7248_v5 }
0x1d3c   : > { %11365 = vpow2.f32 %v7300_v37  ;;  %v7245_v15 = vpop.xlane.xlu0 %7244 }
0x1d3d   : > { %11367 = vpow2.f32 %v7278_v24  ;;  %v7270_v39 = vsub.f32 %v13058_v33, %v7262_v10  ;;  %v7294_v9 = vsub.f32 %v13080_v7, %v7262_v10  ;;  %v7261_v17 = vmax.f32 %v7221_v12, %v7245_v15 }
0x1d3e   : > { %11369 = vpow2.f32 %v7302_v54  ;;  %v7254_v19 = vpop.xlane.xlu1 %7253  ;;  %v6842_v15 = vpack.c.bf16 %v12989_v25, %v12989_v25 }
0x1d3f   : > { %v7282_v40 = vmul.f32 1.442695, %v7270_v39  ;;  %v7306_v22 = vmul.f32 1.442695, %v7294_v9  ;;  %v7269_v43 = vsub.f32 %v13064_v11, %v7261_v17  ;;  %v7293_v26 = vsub.f32 %v13085_v18, %v7261_v17 }
0x1d40   : > { %v7264_v57 = vmax.f32 %v7230_v53, %v7254_v19  ;;  %v7251_v6 = vpop.xlane.xlu0 %7250  ;;  %v7566_v25 = vsel %vm2165_vm4, %v6842_v15, 0 }
0x1d41   : > { %11371 = vpow2.f32 %v7282_v40  ;;  %v7280_v60 = vmul.f32 1.442695, %v7269_v43  ;;  %v7304_v55 = vmul.f32 1.442695, %v7293_v26  ;;  %v7263_v14 = vmax.f32 %v7227_v29, %v7251_v6  ;;  %v13120_v36 = vpop.eup %11359 }
0x1d42   : > { %11373 = vpow2.f32 %v7306_v22  ;;  %v7272_v33 = vsub.f32 %v13072_v46, %v7264_v57  ;;  %v7296_v7 = vsub.f32 %v13093_v62, %v7264_v57  ;;  %v13126_v47 = vpop.eup %11361  ;;  %v10671_v42 = vpop.permute.xlu1 %10670 }
0x1d43   : > { %11375 = vpow2.f32 %v7280_v60  ;;  %v7271_v38 = vsub.f32 %v13062_v1, %v7263_v14  ;;  %v7295_v11 = vsub.f32 %v13083_v21, %v7263_v14  ;;  %v10673_v56 = vunpack.i.h.bf16 %v10671_v42 }
0x1d44   : > { %11377 = vpow2.f32 %v7304_v55  ;;  %v7286_v18 = vmul.f32 1.442695, %v7272_v33  ;;  %v7257_v2 = vpop.xlane.xlu0 %7256  ;;  %v7310_v46 = vmul.f32 1.442695, %v7296_v7  ;;  %v10672_v48 = vunpack.i.l.bf16 %v10671_v42 }
0x1d45   : > { %v13128_v3 = vpop.eup %11363  ;;  %v7284_v4 = vmul.f32 1.442695, %v7271_v38  ;;  %v7308_v8 = vmul.f32 1.442695, %v7295_v11  ;;  %v7265_v49 = vmax.f32 %v7233_v41, %v7257_v2 }
0x1d46   : > { %v13130_v16 = vpop.eup %11365  ;;  %v7378_v62 = vpack.c.bf16 %v13128_v3, %v13120_v36  ;;  %11379 = vpow2.f32 %v7286_v18  ;;  %v6817_v32 = vpack.c.bf16 %v10673_v56, %v10672_v48  ;;  %v6834_v24 = vpop.permute.xlu1 %6833  ;;  %v7314_v18 = vsel %vm1808_vm3, %v13120_v36, 0.0 }
0x1d47   : > { %v13134_v58 = vpop.eup %11367  ;;  %v7273_v1 = vsub.f32 %v13076_v51, %v7265_v49  ;;  %v7297_v21 = vsub.f32 %v13097_v34, %v7265_v49  ;;  %11381 = vpow2.f32 %v7284_v4  ;;  %v7382_v29 = vpack.c.bf16 %v13130_v16, %v13126_v47 }
0x1d48   : > { %v11370_v12 = vpop.eup %11369  ;;  %v10666_v27 = vpop.permute.xlu0 %10665  ;;  %v7320_v45 = vsel %vm1808_vm3, %v13134_v58, 0.0  ;;  %11383 = vpow2.f32 %v7308_v8  ;;  %v6843_v43 = vpack.c.bf16 %v6834_v24, %v6834_v24  ;;  %v7338_v49 = vsel %vm1833_vm2, %v13126_v47, 0.0  ;;  %v11079_v24 = vld [vmem:[#allocation8 + $0x230] sm:$0xff]  }
0x1d49   : > { %v7288_v53 = vmul.f32 1.442695, %v7273_v1  ;;  %v7312_v35 = vmul.f32 1.442695, %v7297_v21  ;;  %7321 = vadd.xlane.f32.xlu1 %v7320_v45  ;;  %11385 = vpow2.f32 %v7310_v46  ;;  %10194 = vmatmul.mubr.msk.bf16.vlgmr.msra.gmra.mrb[128].mxu0 %vm1833_vm2, %v7382_v29  ;;  %v10668_v51 = vunpack.i.h.bf16 %v10666_v27  ;;  %v11074_v1 = vld [vmem:[#allocation8 + $0x208] sm:$0xff]   ;;  %v11075_v21 = vld [vmem:[#allocation8 + $0x210] sm:$0xff]  }
0x1d4a   : > { %v10667_v50 = vunpack.i.l.bf16 %v10666_v27  ;;  %v7344_v34 = vsel %vm1833_vm2, %v11370_v12, 0.0  ;;  %10205 = vmatprep.mubr.msk.bf16.mxu0 %vm11702_vm0, %v11701_v0  ;;  %v6837_v60 = vpop.permute.xlu1 %6836  ;;  %v7613_v33 = vsel %vm2165_vm4, %v6843_v43, 0  ;;  %v7317_v47 = vsel %vm1808_vm3, %v13128_v3, 0.0  ;;  %v11076_v3 = vld [vmem:[#allocation8 + $0x218] sm:$0xff]  }
0x1d4b   : > { %v13144_v52 = vpop.eup %11371  ;;  %11387 = vpow2.f32 %v7288_v53  ;;  %7345 = vadd.xlane.f32.xlu0 %v7344_v34  ;;  %v6844_v7 = vpack.c.bf16 %v6837_v60, %v6837_v60 }
0x1d4c   : > { %v11374_v28 = vpop.eup %11373  ;;  %11389 = vpow2.f32 %v7312_v35  ;;  %v6816_v44 = vpack.c.bf16 %v10668_v51, %v10667_v50  ;;  %v7326_v20 = vsel %vm1808_vm3, %v13144_v52, 0.0  ;;  %v6840_v38 = vpop.permute.xlu0 %6839 }
0x1d4d   : > { %v13150_v63 = vpop.eup %11375  ;;  %7327 = vadd.xlane.f32.xlu1 %v7326_v20  ;;  %v7350_v61 = vsel %vm1833_vm2, %v11374_v28, 0.0  ;;  %v6845_v2 = vpack.c.bf16 %v6840_v38, %v6840_v38  ;;  %v7660_v4 = vsel %vm2165_vm4, %v6844_v7, 0 }
0x1d4e   : > { %v11378_v30 = vpop.eup %11377  ;;  %10204 = vmatpush3.bf16.msra.mxu0 %v6816_v44  ;;  %v7323_v41 = vsel %vm1808_vm3, %v13150_v63, 0.0  ;;  %v7379_v59 = vpack.c.bf16 %v13150_v63, %v13134_v58  ;;  %v11073_v58 = vld [vmem:[#allocation8 + $0x200] sm:$0xff]  }
0x1d4f   : > { %7324 = vadd.xlane.f32.xlu0 %v7323_v41  ;;  %v7383_v37 = vpack.c.bf16 %v11378_v30, %v11370_v12  ;;  %10215 = vmatprep.subr.bf16.mxu0 %v11701_v0  ;;  %v7347_v10 = vsel %vm1833_vm2, %v11378_v30, 0.0  ;;  %v7707_v46 = vsel %vm2165_vm4, %v6845_v2, 0  ;;  %v11077_v12 = vld [vmem:[#allocation8 + $0x220] sm:$0xff]   ;;  %v11078_v41 = vld [vmem:[#allocation8 + $0x228] sm:$0xff]  }
0x1d50   : > { %v13158_v5 = vpop.eup %11379 }
0x1d51   : > { %10200 = vmatmul.mubr.msk.bf16.vlgmr.msra.gmra.mrb[140].mxu1 %vm1833_vm2, %v7383_v37  ;;  %7351 = vadd.xlane.f32.xlu1 %v7350_v61  ;;  %v11382_v54 = vpop.eup %11381  ;;  %v7332_v40 = vsel %vm1808_vm3, %v13158_v5, 0.0 }
0x1d52   : > { %10210 = vmatpush3.bf16.msra.mxu1 %v6817_v32  ;;  %10211 = vmatprep.mubr.msk.bf16.mxu1 %vm11702_vm0, %v11701_v0  ;;  %v11384_v39 = vpop.eup %11383  ;;  %v7380_v9 = vpack.c.bf16 %v11382_v54, %v13144_v52  ;;  %v7329_v57 = vsel %vm1808_vm3, %v11382_v54, 0.0 }
0x1d53   : > { %7348 = vadd.xlane.f32.xlu0 %v7347_v10  ;;  %10221 = vmatprep.subr.bf16.mxu1 %v11701_v0  ;;  %v11386_v17 = vpop.eup %11385  ;;  %v7384_v19 = vpack.c.bf16 %v11384_v39, %v11374_v28  ;;  %v7353_v11 = vsel %vm1833_vm2, %v11384_v39, 0.0 }
0x1d54   : > { %v7356_v14 = vsel %vm1833_vm2, %v11386_v17, 0.0 }
0x1d55   : > { %v11388_v22 = vpop.eup %11387  ;;  %7333 = vadd.xlane.f32.xlu1 %v7332_v40  ;;  %10206 = vmatmul.mubr.msk.bf16.vlgmr.msra.gmra.mrb[132].mxu0 %vm1833_vm2, %v7384_v19  ;;  %v11080_v40 = vld [vmem:[#allocation8 + $0x238] sm:$0xff]  }
0x1d56   : > { %v11390_v26 = vpop.eup %11389  ;;  %v7381_v6 = vpack.c.bf16 %v11388_v22, %v13158_v5  ;;  %10216 = vmatpush3.bf16.msra.mxu0 %v7566_v25  ;;  %10217 = vmatprep.mubr.msk.bf16.mxu0 %vm11702_vm0, %v11701_v0  ;;  %v7335_v8 = vsel %vm1808_vm3, %v11388_v22, 0.0 }
0x1d57   : > { %7330 = vadd.xlane.f32.xlu0 %v7329_v57  ;;  %v7385_v55 = vpack.c.bf16 %v11390_v26, %v11386_v17  ;;  %10227 = vmatprep.subr.bf16.mxu0 %v11701_v0  ;;  %v7359_v36 = vsel %vm1833_vm2, %v11390_v26, 0.0 }
0x1d59   : > { %10212 = vmatmul.mubr.msk.bf16.vlgmr.msra.gmra.mrb[144].mxu1 %vm1833_vm2, %v7385_v55  ;;  %7357 = vadd.xlane.f32.xlu1 %v7356_v14 }
0x1d5a   : > { %10222 = vmatpush3.bf16.msra.mxu1 %v7613_v33  ;;  %10223 = vmatprep.mubr.msk.bf16.mxu1 %vm11702_vm0, %v11701_v0 }
0x1d5b   : > { %7354 = vadd.xlane.f32.xlu0 %v7353_v11  ;;  %10233 = vmatprep.subr.bf16.mxu1 %v11701_v0 }
0x1d5d   : > { %7315 = vadd.xlane.f32.xlu1 %v7314_v18  ;;  %10218 = vmatmul.mubr.msk.bf16.vlgmr.msra.gmra.mrb[128].mxu0 %vm1808_vm3, %v7378_v62  ;;  %v7341_v62 = vsel %vm1833_vm2, %v13130_v16, 0.0 }
0x1d5e   : > { %10228 = vmatpush3.bf16.msra.mxu0 %v7660_v4  ;;  %10229 = vmatprep.mubr.msk.bf16.mxu0 %vm11702_vm0, %v11701_v0 }
0x1d5f   : > { %7336 = vadd.xlane.f32.xlu0 %v7335_v8  ;;  %10239 = vmatprep.subr.bf16.mxu0 %v11701_v0 }
0x1d61   : > { %10224 = vmatmul.mubr.msk.bf16.vlgmr.msra.gmra.mrb[140].mxu1 %vm1808_vm3, %v7379_v59  ;;  %7339 = vadd.xlane.f32.xlu1 %v7338_v49 }
0x1d62   : > { %10234 = vmatpush3.bf16.msra.mxu1 %v7707_v46  ;;  %10235 = vmatprep.mubr.msk.bf16.mxu1 %vm11702_vm0, %v11701_v0 }
0x1d63   : > { %7360 = vadd.xlane.f32.xlu0 %v7359_v36 }
0x1d65   : > { %10230 = vmatmul.mubr.msk.bf16.vlgmr.msra.gmra.mrb[132].mxu0 %vm1808_vm3, %v7380_v9 }
0x1d66   : > { %10255 = vmatprep.mubr.msk.bf16.mxu0 %vm11702_vm0, %v11701_v0  ;;  %10240 = vmatpush3.bf16.msra.mxu0 %v11073_v58 }
0x1d67   : > { %7318 = vadd.xlane.f32.xlu0 %v7317_v47  ;;  %10241 = vmatprep.subr.bf16.mxu0 %v11701_v0 }
0x1d69   : > { %10236 = vmatmul.mubr.msk.bf16.vlgmr.msra.gmra.mrb[144].mxu1 %vm1808_vm3, %v7381_v6 }
0x1d6a   : > { %8150 = vmatprep.mubr.bf16.mxu1 %v11703_v23  ;;  %10242 = vmatpush3.bf16.msra.mxu0 %v11074_v1 }
0x1d6b   : > { %7342 = vadd.xlane.f32.xlu0 %v7341_v62  ;;  %10243 = vmatprep.subr.bf16.mxu0 %v11701_v0 }
0x1d6e   : > { %10244 = vmatpush3.bf16.msra.mxu0 %v11075_v21 }
0x1d6f   : > { %10245 = vmatprep.subr.bf16.mxu0 %v11701_v0 }
0x1d72   : > { %10246 = vmatpush3.bf16.msra.mxu0 %v11076_v3 }
0x1d73   : > { %10247 = vmatprep.subr.bf16.mxu0 %v11701_v0 }
0x1d76   : > { %10248 = vmatpush3.bf16.msra.mxu0 %v11077_v12 }
0x1d77   : > { %10249 = vmatprep.subr.bf16.mxu0 %v11701_v0 }
0x1d7a   : > { %10250 = vmatpush3.bf16.msra.mxu0 %v11078_v41 }
0x1d7b   : > { %10251 = vmatprep.subr.bf16.mxu0 %v11701_v0 }
0x1d7e   : > { %10252 = vmatpush3.bf16.msra.mxu0 %v11079_v24  ;;  %v11081_v24 = vld [vmem:[#allocation11 + $0x100] ss:$16 sps:$4 sm:$0xff]  }
0x1d7f   : > { %10253 = vmatprep.subr.bf16.mxu0 %v11701_v0 }
0x1d82   : > { %10254 = vmatpush3.bf16.msra.mxu0 %v11080_v40 }
0x1dd6   : > { %v7322_v29 = vpop.xlane.xlu1 %7321 }
0x1dd8   : > { %v7346_v16 = vpop.xlane.xlu0 %7345 }
0x1dd9   : > { %v7364_v34 = vadd.f32 %v7346_v16, %v7322_v29 }
0x1dda   : > { %v7328_v45 = vpop.xlane.xlu1 %7327 }
0x1ddb   : > { %11391 = vrcp.f32 %v7364_v34 }
0x1ddc   : > { %v7325_v42 = vpop.xlane.xlu0 %7324 }
0x1dde   : > { %v7352_v35 = vpop.xlane.xlu1 %7351 }
0x1ddf   : > { %v7366_v28 = vadd.f32 %v7352_v35, %v7328_v45 }
0x1de0   : > { %v7349_v27 = vpop.xlane.xlu0 %7348 }
0x1de1   : > { %v7365_v56 = vadd.f32 %v7349_v27, %v7325_v42 }
0x1de2   : > { %v7334_v50 = vpop.xlane.xlu1 %7333 }
0x1de3   : > { %11393 = vrcp.f32 %v7365_v56 }
0x1de4   : > { %v7331_v53 = vpop.xlane.xlu0 %7330  ;;  %11395 = vrcp.f32 %v7366_v28 }
0x1de5   : > { %v11392_v54 = vpop.eup %11391 }
0x1de6   : > { %v7358_v48 = vpop.xlane.xlu1 %7357 }
0x1de7   : > { %v7368_v63 = vadd.f32 %v7358_v48, %v7334_v50 }
0x1de8   : > { %v7355_v51 = vpop.xlane.xlu0 %7354 }
0x1de9   : > { %v7367_v44 = vadd.f32 %v7355_v51, %v7331_v53 }
0x1dea   : > { %v7316_v36 = vpop.xlane.xlu1 %7315 }
0x1deb   : > { %11397 = vrcp.f32 %v7367_v44 }
0x1dec   : > { %v7337_v52 = vpop.xlane.xlu0 %7336  ;;  %11399 = vrcp.f32 %v7368_v63 }
0x1ded   : > { %v11394_v15 = vpop.eup %11393 }
0x1dee   : > { %v11396_v26 = vpop.eup %11395  ;;  %v7340_v62 = vpop.xlane.xlu1 %7339 }
0x1def   : > { %v7362_v1 = vadd.f32 %v7340_v62, %v7316_v36  ;;  %v11114_v36 = vld [vmem:[#allocation11 + $0x1a8] ss:$16 sps:$4 sm:$0xff]   ;;  %v11119_v62 = vld [vmem:[#allocation11 + $0x1c4] ss:$16 sps:$4 sm:$0xff]  }
0x1df0   : > { %v7361_v20 = vpop.xlane.xlu0 %7360 }
0x1df1   : > { %v7369_v30 = vadd.f32 %v7361_v20, %v7337_v52 }
0x1df3   : > { %11401 = vrcp.f32 %v7369_v30 }
0x1df4   : > { %v7319_v47 = vpop.xlane.xlu0 %7318  ;;  %11403 = vrcp.f32 %v7362_v1  ;;  %v11122_v1 = vld [vmem:[#allocation11 + $0x1cc] ss:$16 sps:$4 sm:$0xff]  }
0x1df5   : > { %v11398_v57 = vpop.eup %11397 }
0x1df6   : > { %v11400_v7 = vpop.eup %11399 }
0x1df8   : > { %v7343_v58 = vpop.xlane.xlu0 %7342 }
0x1df9   : > { %v7363_v21 = vadd.f32 %v7343_v58, %v7319_v47  ;;  %v11117_v47 = vld [vmem:[#allocation11 + $0x1c0] ss:$16 sps:$4 sm:$0xff]   ;;  %v11120_v58 = vld [vmem:[#allocation11 + $0x1c8] ss:$16 sps:$4 sm:$0xff]  }
0x1dfb   : > { %11405 = vrcp.f32 %v7363_v21  ;;  %v11125_v21 = vld [vmem:[#allocation11 + $0x1e4] ss:$16 sps:$4 sm:$0xff]  }
0x1dfd   : > { %v11402_v11 = vpop.eup %11401 }
0x1dfe   : > { %v11404_v12 = vpop.eup %11403 }
0x1e05   : > { %v11406_v27 = vpop.eup %11405 }
0x1e30   : > { %v7602_v59 = vpop.f32.mrb[128].mxu0 }
0x1e31   : > { %v10219_v37 = vpop.f32.mrb[129].mxu0  ;;  %v7750_v35 = vmul.f32 %v11404_v12, %v7602_v59  ;;  %v11123_v12 = vld [vmem:[#allocation11 + $0x1e0] ss:$16 sps:$4 sm:$0xff]  }
0x1e32   : > { %v7605_v32 = vpop.f32.mrb[130].mxu0 }
0x1e33   : > { %v10220_v61 = vpop.f32.mrb[131].mxu0  ;;  %v7751_v51 = vmul.f32 %v11406_v27, %v7605_v32 }
0x1e34   : > { %v7649_v5 = vpop.f32.mrb[140].mxu1 }
0x1e35   : > { %v10225_v10 = vpop.f32.mrb[141].mxu1  ;;  %v7752_v9 = vmul.f32 %v11392_v54, %v7649_v5  ;;  %v11083_v54 = vld [vmem:[#allocation11 + $0x104] ss:$16 sps:$4 sm:$0xff]  }
0x1e36   : > { %v7652_v39 = vpop.f32.mrb[142].mxu1  ;;  %v11084_v10 = vld [vmem:[#allocation11 + $0x108] ss:$16 sps:$4 sm:$0xff]   ;;  %8118 = vmatprep.subr.bf16.mxu1 %v11083_v54 }
0x1e37   : > { %v7753_v17 = vmul.f32 %v11394_v15, %v7652_v39  ;;  %v10226_v19 = vpop.f32.mrb[143].mxu1  ;;  %v11086_v15 = vld [vmem:[#allocation11 + $0x10c] ss:$16 sps:$4 sm:$0xff]   ;;  %v11089_v39 = vld [vmem:[#allocation11 + $0x124] ss:$16 sps:$4 sm:$0xff]   ;;  %8119 = vmatpush1.bf16.msra.mxu1 %v11081_v24 }
0x1e38   : > { %v7696_v43 = vpop.f32.mrb[132].mxu0  ;;  %8161 = vmatprep.subr.bf16.mxu0 %v11086_v15  ;;  %8120 = vmatprep.subr.bf16.mxu1 %v11089_v39  ;;  %v11133_v24 = vld [vmem:[#allocation8 + $0x388] sm:$0xff]   ;;  %v11137_v39 = vld [vmem:[#allocation8 + $0x390] sm:$0xff]  }
0x1e39   : > { %v10674_v22 = vpack.i.bf16 %v7753_v17, %v7752_v9  ;;  %v10231_v25 = vpop.f32.mrb[133].mxu0  ;;  %v7754_v60 = vmul.f32 %v11396_v26, %v7696_v43  ;;  %v11090_v9 = vld [vmem:[#allocation11 + $0x128] ss:$16 sps:$4 sm:$0xff]  }
0x1e3a   : > { %v7699_v6 = vpop.f32.mrb[134].mxu0  ;;  %v11134_v54 = vld [vmem:[#allocation8 + $0x408] sm:$0xff]  }
0x1e3b   : > { %10675 = vrot.lane.b32.xlu1 %v10674_v22, %s11706_s10  ;;  %v7755_v55 = vmul.f32 %v11398_v57, %v7699_v6  ;;  %v10232_v14 = vpop.f32.mrb[135].mxu0  ;;  %v11095_v57 = vld [vmem:[#allocation11 + $0x144] ss:$16 sps:$4 sm:$0xff]   ;;  %v11098_v6 = vld [vmem:[#allocation11 + $0x14c] ss:$16 sps:$4 sm:$0xff]  }
0x1e3c   : > { %v7743_v33 = vpop.f32.mrb[144].mxu1  ;;  %v11101_v14 = vld [vmem:[#allocation11 + $0x164] ss:$16 sps:$4 sm:$0xff]   ;;  %v11136_v15 = vld [vmem:[#allocation8 + $0x3c8] sm:$0xff]  }
0x1e3d   : > { %v10237_v38 = vpop.f32.mrb[145].mxu1  ;;  %v10679_v18 = vpack.i.bf16 %v7755_v55, %v7754_v60  ;;  %v7756_v4 = vmul.f32 %v11400_v7, %v7743_v33  ;;  %v11093_v60 = vld [vmem:[#allocation11 + $0x140] ss:$16 sps:$4 sm:$0xff]   ;;  %v11096_v55 = vld [vmem:[#allocation11 + $0x148] ss:$16 sps:$4 sm:$0xff]  }
0x1e3e   : > { %v7746_v2 = vpop.f32.mrb[146].mxu1  ;;  %v11104_v33 = vld [vmem:[#allocation11 + $0x16c] ss:$16 sps:$4 sm:$0xff]   ;;  %v11099_v7 = vld [vmem:[#allocation11 + $0x160] ss:$16 sps:$4 sm:$0xff]  }
0x1e3f   : > { %v7757_v8 = vmul.f32 %v11402_v11, %v7746_v2  ;;  %v10238_v49 = vpop.f32.mrb[147].mxu1  ;;  %10680 = vrot.lane.b32.xlu0 %v10679_v18, %s11705_s3  ;;  %v11102_v38 = vld [vmem:[#allocation11 + $0x168] ss:$16 sps:$4 sm:$0xff]   ;;  %v11107_v11 = vld [vmem:[#allocation11 + $0x184] ss:$16 sps:$4 sm:$0xff]  }
0x1e40   : > { %v11110_v18 = vld [vmem:[#allocation11 + $0x18c] ss:$16 sps:$4 sm:$0xff]   ;;  %v11105_v2 = vld [vmem:[#allocation11 + $0x180] ss:$16 sps:$4 sm:$0xff]  }
0x1e41   : > { %v10684_v46 = vpack.i.bf16 %v7757_v8, %v7756_v4  ;;  %v11108_v4 = vld [vmem:[#allocation11 + $0x188] ss:$16 sps:$4 sm:$0xff]   ;;  %v11113_v8 = vld [vmem:[#allocation11 + $0x1a4] ss:$16 sps:$4 sm:$0xff]   ;;  %v11116_v49 = vld [vmem:[#allocation11 + $0x1ac] ss:$16 sps:$4 sm:$0xff]  }
0x1e43   : > { %10685 = vrot.lane.b32.xlu1 %v10684_v46, %s11704_s19  ;;  %v11111_v46 = vld [vmem:[#allocation11 + $0x1a0] ss:$16 sps:$4 sm:$0xff]  }
0x1ead   : > { %v10676_v3 = vpop.permute.xlu1 %10675 }
0x1eae   : > { %v10678_v16 = vunpack.i.h.bf16 %v10676_v3  ;;  %v10677_v42 = vunpack.i.l.bf16 %v10676_v3  ;;  %v11128_v3 = vld [vmem:[#allocation11 + $0x1ec] ss:$16 sps:$4 sm:$0xff]  }
0x1eb0   : > { %v7783_v34 = vsel %vm1443_vm1, %v7751_v51, %v10678_v16  ;;  %v7782_v52 = vsel %vm1443_vm1, %v7750_v35, %v10677_v42  ;;  %v11126_v16 = vld [vmem:[#allocation11 + $0x1e8] ss:$16 sps:$4 sm:$0xff]   ;;  %v11129_v42 = vld [vmem:[#allocation8 + $0x380] sm:$0xff]  }
0x1eb1   : > { %v10681_v29 = vpop.permute.xlu0 %10680 }
0x1eb2   : > { %v10683_v45 = vunpack.i.h.bf16 %v10681_v29  ;;  %v10682_v53 = vunpack.i.l.bf16 %v10681_v29  ;;  %v11130_v29 = vld [vmem:[#allocation8 + $0x400] sm:$0xff]  }
0x1eb4   : > { %v7784_v48 = vsel %vm2385_vm5, %v7782_v52, %v10682_v53  ;;  %v7785_v44 = vsel %vm2385_vm5, %v7783_v34, %v10683_v45  ;;  %v7896_v52 = vld [vmem:[#allocation7 + $0x51] ss:$0 sm:$0xff] }
0x1eb5   : > { %v10686_v50 = vpop.permute.xlu1 %10685 }
0x1eb6   : > { %v10688_v56 = vunpack.i.h.bf16 %v10686_v50  ;;  %v10687_v28 = vunpack.i.l.bf16 %v10686_v50 }
0x1eb8   : > { %v7787_v20 = vsel %vm2388_vm6, %v7785_v44, %v10688_v56  ;;  %v7786_v63 = vsel %vm2388_vm6, %v7784_v48, %v10687_v28 }
0x1eb9   : > { %v7804_v30 = vpack.c.bf16 %v7787_v20, %v7786_v63  ;;  %v7897_v20 = vld [vmem:[#allocation7 + $0x52] ss:$0 sm:$0xff] }
0x1ebb   : > { %10256 = vmatmul.mubr.bf16.vlgmr.msra.gmra.mrb[136].mxu0 %v7804_v30 }
0x1ebc   : > { %8193 = vmatprep.mubr.bf16.mxu0 %v11703_v23  ;;  %v11092_v23 = vld [vmem:[#allocation11 + $0x12c] ss:$16 sps:$4 sm:$0xff]   ;;  %8162 = vmatpush1.bf16.msra.mxu0 %v11084_v10 }
0x1ebd   : > { %8163 = vmatprep.subr.bf16.mxu0 %v11092_v23  ;;  %v11135_v10 = vld [vmem:[#allocation8 + $0x348] sm:$0xff]   ;;  %v11138_v23 = vld [vmem:[#allocation8 + $0x410] sm:$0xff]  }
0x1ec0   : > { %8164 = vmatpush1.bf16.msra.mxu0 %v11090_v9  ;;  %v11140_v9 = vld [vmem:[#allocation8 + $0x3d0] sm:$0xff]  }
0x1ec1   : > { %8165 = vmatprep.subr.bf16.mxu0 %v11098_v6  ;;  %v11150_v6 = vld [vmem:[#allocation8 + $0x428] sm:$0xff]  }
0x1ec4   : > { %8166 = vmatpush1.bf16.msra.mxu0 %v11096_v55  ;;  %v11152_v55 = vld [vmem:[#allocation8 + $0x3e8] sm:$0xff]  }
0x1ec5   : > { %8167 = vmatprep.subr.bf16.mxu0 %v11104_v33  ;;  %v11154_v33 = vld [vmem:[#allocation8 + $0x430] sm:$0xff]  }
0x1ec8   : > { %8168 = vmatpush1.bf16.msra.mxu0 %v11102_v38  ;;  %v11156_v38 = vld [vmem:[#allocation8 + $0x3f0] sm:$0xff]  }
0x1ec9   : > { %8169 = vmatprep.subr.bf16.mxu0 %v11110_v18  ;;  %v11158_v18 = vld [vmem:[#allocation8 + $0x438] sm:$0xff]  }
0x1ecc   : > { %8170 = vmatpush1.bf16.msra.mxu0 %v11108_v4  ;;  %v11160_v4 = vld [vmem:[#allocation8 + $0x3f8] sm:$0xff]  }
0x1ecd   : > { %8171 = vmatprep.subr.bf16.mxu0 %v11116_v49 }
0x1ed0   : > { %8172 = vmatpush1.bf16.msra.mxu0 %v11114_v36 }
0x1ed1   : > { %8173 = vmatprep.subr.bf16.mxu0 %v11122_v1 }
0x1ed4   : > { %8174 = vmatpush1.bf16.msra.mxu0 %v11120_v58 }
0x1ed5   : > { %8175 = vmatprep.subr.bf16.mxu0 %v11128_v3 }
0x1ed8   : > { %8176 = vmatpush1.bf16.msra.mxu0 %v11126_v16 }
0x1ed9   : > { %9644 = vmatprep.subr.bf16.mxu0 %v11130_v29 }
0x1f8e   : > { %v7887_v41 = vpop.f32.mrb[136].mxu0 }
0x1f8f   : > { %v13229_v59 = vadd.f32 %v7887_v41, %v12952_v31  ;;  %v10257_v37 = vpop.f32.mrb[137].mxu0  ;;  %v11087_v31 = vld [vmem:[#allocation11 + $0x120] ss:$16 sps:$4 sm:$0xff]  }
0x1f90   : > { %v7890_v32 = vpop.f32.mrb[138].mxu0  ;;  %8121 = vmatpush1.bf16.msra.mxu1 %v11087_v31  ;;  %v11131_v37 = vld [vmem:[#allocation8 + $0x340] sm:$0xff]   ;;  %v11139_v31 = vld [vmem:[#allocation8 + $0x350] sm:$0xff]  }
0x1f91   : > { %v13232_v61 = vadd.f32 %v7890_v32, %v12955_v13  ;;  %7898 = vadd.xlane.f32.xlu1 %v13229_v59  ;;  %v10258_v5 = vpop.f32.mrb[139].mxu0  ;;  %8122 = vmatprep.subr.bf16.mxu1 %v11095_v57  ;;  %v11132_v32 = vld [vmem:[#allocation8 + $0x3c0] sm:$0xff]   ;;  %v11149_v57 = vld [vmem:[#allocation8 + $0x3a8] sm:$0xff]  }
0x1f93   : > { %7900 = vadd.xlane.f32.xlu0 %v13232_v61 }
0x1f94   : > { %8123 = vmatpush1.bf16.msra.mxu1 %v11093_v60  ;;  %v11151_v60 = vld [vmem:[#allocation8 + $0x368] sm:$0xff]  }
0x1f95   : > { %8124 = vmatprep.subr.bf16.mxu1 %v11101_v14  ;;  %v11153_v14 = vld [vmem:[#allocation8 + $0x3b0] sm:$0xff]  }
0x1f98   : > { %8125 = vmatpush1.bf16.msra.mxu1 %v11099_v7  ;;  %v11155_v7 = vld [vmem:[#allocation8 + $0x370] sm:$0xff]  }
0x1f99   : > { %8126 = vmatprep.subr.bf16.mxu1 %v11107_v11  ;;  %v11157_v11 = vld [vmem:[#allocation8 + $0x3b8] sm:$0xff]  }
0x1f9c   : > { %8127 = vmatpush1.bf16.msra.mxu1 %v11105_v2  ;;  %v11159_v2 = vld [vmem:[#allocation8 + $0x378] sm:$0xff]  }
0x1f9d   : > { %8128 = vmatprep.subr.bf16.mxu1 %v11113_v8 }
0x1fa0   : > { %8129 = vmatpush1.bf16.msra.mxu1 %v11111_v46 }
0x1fa1   : > { %8130 = vmatprep.subr.bf16.mxu1 %v11119_v62 }
0x1fa4   : > { %8131 = vmatpush1.bf16.msra.mxu1 %v11117_v47 }
0x1fa5   : > { %8132 = vmatprep.subr.bf16.mxu1 %v11125_v21 }
0x1fa8   : > { %8133 = vmatpush1.bf16.msra.mxu1 %v11123_v12 }
0x1fa9   : > { %9622 = vmatprep.subr.bf16.mxu1 %v11129_v42 }
0x201e   : > { %v7899_v13 = vpop.xlane.xlu1 %7898 }
0x201f   : > { %v7902_v17 = vmul.f32 0.0078125, %v7899_v13  ;;  %v11141_v13 = vld [vmem:[#allocation8 + $0x398] sm:$0xff]  }
0x2020   : > { %v7901_v19 = vpop.xlane.xlu0 %7900 }
0x2021   : > { %v13237_v40 = vsub.f32 %v13229_v59, %v7902_v17  ;;  %v7903_v22 = vmul.f32 0.0078125, %v7901_v19  ;;  %v11142_v17 = vld [vmem:[#allocation8 + $0x418] sm:$0xff]  }
0x2022   : > { %v11143_v19 = vld [vmem:[#allocation8 + $0x358] sm:$0xff]  }
0x2023   : > { %v13240_v43 = vsub.f32 %v13232_v61, %v7903_v22  ;;  %v7906_v26 = vmul.f32 %v13237_v40, %v13237_v40  ;;  %v11145_v22 = vld [vmem:[#allocation8 + $0x3a0] sm:$0xff]  }
0x2025   : > { %7908 = vadd.xlane.f32.xlu0 %v7906_v26  ;;  %v7907_v25 = vmul.f32 %v13240_v43, %v13240_v43  ;;  %v11147_v26 = vld [vmem:[#allocation8 + $0x360] sm:$0xff]  }
0x2027   : > { %7910 = vadd.xlane.f32.xlu1 %v7907_v25  ;;  %v11148_v25 = vld [vmem:[#allocation8 + $0x3e0] sm:$0xff]  }
0x20b2   : > { %v7909_v27 = vpop.xlane.xlu0 %7908 }
0x20b3   : > { %v7912_v45 = vmul.f32 0.0078125, %v7909_v27 }
0x20b4   : > { %v7911_v53 = vpop.xlane.xlu1 %7910 }
0x20b5   : > { %v7914_v35 = vadd.f32 1e-05, %v7912_v45  ;;  %v7913_v51 = vmul.f32 0.0078125, %v7911_v53 }
0x20b7   : > { %11407 = vrsqrt.f32 %v7914_v35  ;;  %v7915_v50 = vadd.f32 1e-05, %v7913_v51 }
0x20b9   : > { %11409 = vrsqrt.f32 %v7915_v50 }
0x20c1   : > { %v11408_v34 = vpop.eup %11407 }
0x20c2   : > { %v7918_v56 = vmul.f32 %v11408_v34, %v13237_v40  ;;  %v11144_v40 = vld [vmem:[#allocation8 + $0x3d8] sm:$0xff]  }
0x20c3   : > { %v11410_v28 = vpop.eup %11409 }
0x20c4   : > { %v7919_v48 = vmul.f32 %v11410_v28, %v13240_v43  ;;  %v7920_v44 = vmul.f32 %v7918_v56, %v7896_v52  ;;  %v11146_v43 = vld [vmem:[#allocation8 + $0x420] sm:$0xff]  }
0x20c6   : > { %v7921_v63 = vmul.f32 %v7919_v48, %v7896_v52  ;;  %v7922_v30 = vadd.f32 %v7920_v44, %v7897_v20 }
0x20c8   : > { %v7923_v41 = vadd.f32 %v7921_v63, %v7897_v20 }
0x20ca   : > { %v7957_v5 = vpack.c.bf16 %v7923_v41, %v7922_v30 }
0x20cc   : > { %8151 = vmatmul.mubr.bf16.vlgmr.msra.gmra.mrb[148].mxu1 %v7957_v5  ;;  %8194 = vmatmul.mubr.bf16.vlgmr.msra.gmra.mrb[140].mxu0 %v7957_v5 }
0x20cd   : > { %9623 = vmatpush3.bf16.msra.mxu1 %v11131_v37  ;;  %9645 = vmatpush3.bf16.msra.mxu0 %v11132_v32 }
0x20ce   : > { %9624 = vmatprep.subr.bf16.mxu1 %v11133_v24  ;;  %9646 = vmatprep.subr.bf16.mxu0 %v11134_v54 }
0x20d1   : > { %9625 = vmatpush3.bf16.msra.mxu1 %v11135_v10  ;;  %9647 = vmatpush3.bf16.msra.mxu0 %v11136_v15 }
0x20d2   : > { %9626 = vmatprep.subr.bf16.mxu1 %v11137_v39  ;;  %9648 = vmatprep.subr.bf16.mxu0 %v11138_v23 }
0x20d5   : > { %9627 = vmatpush3.bf16.msra.mxu1 %v11139_v31  ;;  %9649 = vmatpush3.bf16.msra.mxu0 %v11140_v9 }
0x20d6   : > { %9628 = vmatprep.subr.bf16.mxu1 %v11141_v13  ;;  %9650 = vmatprep.subr.bf16.mxu0 %v11142_v17 }
0x20d9   : > { %9629 = vmatpush3.bf16.msra.mxu1 %v11143_v19  ;;  %9651 = vmatpush3.bf16.msra.mxu0 %v11144_v40 }
0x20da   : > { %9630 = vmatprep.subr.bf16.mxu1 %v11145_v22  ;;  %9652 = vmatprep.subr.bf16.mxu0 %v11146_v43 }
0x20dd   : > { %9631 = vmatpush3.bf16.msra.mxu1 %v11147_v26  ;;  %9653 = vmatpush3.bf16.msra.mxu0 %v11148_v25 }
0x20de   : > { %9632 = vmatprep.subr.bf16.mxu1 %v11149_v57  ;;  %9654 = vmatprep.subr.bf16.mxu0 %v11150_v6 }
0x20e1   : > { %9633 = vmatpush3.bf16.msra.mxu1 %v11151_v60  ;;  %9655 = vmatpush3.bf16.msra.mxu0 %v11152_v55  ;;  %v11161_v60 = vld [vmem:[#allocation8 + $0x100] sm:$0xff]  }
0x20e2   : > { %9634 = vmatprep.subr.bf16.mxu1 %v11153_v14  ;;  %9656 = vmatprep.subr.bf16.mxu0 %v11154_v33  ;;  %v11162_v14 = vld [vmem:[#allocation8 + $0x108] sm:$0xff]   ;;  %v11163_v33 = vld [vmem:[#allocation8 + $0x110] sm:$0xff]  }
0x20e5   : > { %9635 = vmatpush3.bf16.msra.mxu1 %v11155_v7  ;;  %9657 = vmatpush3.bf16.msra.mxu0 %v11156_v38  ;;  %v11164_v7 = vld [vmem:[#allocation8 + $0x118] sm:$0xff]   ;;  %v11165_v38 = vld [vmem:[#allocation8 + $0x120] sm:$0xff]  }
0x20e6   : > { %9636 = vmatprep.subr.bf16.mxu1 %v11157_v11  ;;  %9658 = vmatprep.subr.bf16.mxu0 %v11158_v18  ;;  %v11166_v11 = vld [vmem:[#allocation8 + $0x128] sm:$0xff]   ;;  %v11167_v18 = vld [vmem:[#allocation8 + $0x130] sm:$0xff]  }
0x20e9   : > { %9637 = vmatpush3.bf16.msra.mxu1 %v11159_v2  ;;  %9659 = vmatpush3.bf16.msra.mxu0 %v11160_v4  ;;  %v11168_v2 = vld [vmem:[#allocation8 + $0x138] sm:$0xff]  }
0x20ea   : > { %10259 = vmatprep.subr.bf16.mxu1 %v11701_v0 }
0x219f   : > { %v8152_v8 = vpop.f32.mrb[148].mxu1  ;;  %v8195_v49 = vpop.f32.mrb[140].mxu0 }
0x21a0   : > { %v8212_v46 = vmul.f32 0.70710677, %v8152_v8  ;;  %v8214_v36 = vmul.f32 0.70710677, %v8195_v49  ;;  %v8154_v47 = vpop.f32.mrb[149].mxu1  ;;  %v8197_v62 = vpop.f32.mrb[141].mxu0 }
0x21a1   : > { %v8213_v58 = vmul.f32 0.70710677, %v8154_v47  ;;  %v8156_v1 = vpop.f32.mrb[150].mxu1  ;;  %v8199_v21 = vpop.f32.mrb[142].mxu0  ;;  %v8215_v3 = vmul.f32 0.70710677, %v8197_v62 }
0x21a2   : > { %11411 = verf.f32 %v8212_v46  ;;  %v8216_v12 = vmul.f32 0.70710677, %v8156_v1  ;;  %v8158_v16 = vpop.f32.mrb[151].mxu1  ;;  %v8218_v42 = vmul.f32 0.70710677, %v8199_v21  ;;  %v8201_v29 = vpop.f32.mrb[143].mxu0 }
0x21a3   : > { %11413 = verf.f32 %v8214_v36  ;;  %v8217_v27 = vmul.f32 0.70710677, %v8158_v16  ;;  %v8219_v45 = vmul.f32 0.70710677, %v8201_v29  ;;  %v8204_v56 = vmul.f32 0.5, %v8152_v8 }
0x21a4   : > { %11415 = verf.f32 %v8213_v58  ;;  %v8206_v28 = vmul.f32 0.5, %v8195_v49  ;;  %v8205_v20 = vmul.f32 0.5, %v8154_v47  ;;  %v8208_v30 = vmul.f32 0.5, %v8156_v1 }
0x21a5   : > { %11417 = verf.f32 %v8215_v3  ;;  %v8207_v32 = vmul.f32 0.5, %v8197_v62  ;;  %v8210_v24 = vmul.f32 0.5, %v8199_v21  ;;  %v8209_v23 = vmul.f32 0.5, %v8158_v16 }
0x21a6   : > { %11419 = verf.f32 %v8216_v12  ;;  %v8211_v17 = vmul.f32 0.5, %v8201_v29 }
0x21a7   : > { %11421 = verf.f32 %v8218_v42 }
0x21a8   : > { %11423 = verf.f32 %v8217_v27 }
0x21a9   : > { %11425 = verf.f32 %v8219_v45  ;;  %v8605_v45 = vld [vmem:[#allocation7 + $0x24] ss:$0 sm:$0xff] }
0x21ac   : > { %v11412_v53 = vpop.eup %11411 }
0x21ad   : > { %v11414_v35 = vpop.eup %11413  ;;  %v8228_v34 = vadd.f32 1.0, %v11412_v53 }
0x21ae   : > { %v11416_v51 = vpop.eup %11415  ;;  %v8230_v48 = vadd.f32 1.0, %v11414_v35 }
0x21af   : > { %v11418_v50 = vpop.eup %11417  ;;  %v8229_v63 = vadd.f32 1.0, %v11416_v51  ;;  %v8236_v15 = vmul.f32 %v8228_v34, %v8204_v56 }
0x21b0   : > { %v11420_v52 = vpop.eup %11419  ;;  %v8231_v5 = vadd.f32 1.0, %v11418_v50  ;;  %v8238_v9 = vmul.f32 %v8230_v48, %v8206_v28 }
0x21b1   : > { %v11422_v44 = vpop.eup %11421  ;;  %v8232_v41 = vadd.f32 1.0, %v11420_v52  ;;  %v8237_v40 = vmul.f32 %v8229_v63, %v8205_v20 }
0x21b2   : > { %v11424_v37 = vpop.eup %11423  ;;  %v8234_v54 = vadd.f32 1.0, %v11422_v44  ;;  %v8239_v26 = vmul.f32 %v8231_v5, %v8207_v32 }
0x21b3   : > { %v11426_v10 = vpop.eup %11425  ;;  %v8240_v39 = vmul.f32 %v8232_v41, %v8208_v30  ;;  %v8233_v31 = vadd.f32 1.0, %v11424_v37 }
0x21b4   : > { %v8242_v13 = vmul.f32 %v8234_v54, %v8210_v24  ;;  %v8235_v19 = vadd.f32 1.0, %v11426_v10  ;;  %v8695_v10 = vld [vmem:[#allocation7 + $0x25] ss:$0 sm:$0xff] }
0x21b5   : > { %v8308_v22 = vpack.c.bf16 %v8240_v39, %v8236_v15  ;;  %v8241_v43 = vmul.f32 %v8233_v31, %v8209_v23  ;;  %v8696_v23 = vld [vmem:[#allocation7 + $0x26] ss:$0 sm:$0xff] }
0x21b6   : > { %v8310_v25 = vpack.c.bf16 %v8242_v13, %v8238_v9  ;;  %v8243_v57 = vmul.f32 %v8235_v19, %v8211_v17 }
0x21b7   : > { %v8309_v6 = vpack.c.bf16 %v8241_v43, %v8237_v40 }
0x21b8   : > { %v8311_v55 = vpack.c.bf16 %v8243_v57, %v8239_v26 }
0x21b9   : > { %8536 = vmatprep.mubr.bf16.mxu1 %v8309_v6 }
0x21ba   : > { %8577 = vmatprep.mubr.bf16.mxu0 %v8311_v55  ;;  %8537 = vmatmul.mubr.bf16.vlgmr.msra.gmra.mrb[152].mxu1 %v8308_v22 }
0x21bb   : > { %8578 = vmatmul.mubr.bf16.vlgmr.msra.gmra.mrb[144].mxu0 %v8310_v25  ;;  %10260 = vmatpush3.bf16.msra.mxu1 %v11161_v60 }
0x21bc   : > { %10261 = vmatprep.subr.bf16.mxu1 %v11701_v0  ;;  %10275 = vmatprep.mubr.msk.bf16.mxu1 %vm11702_vm0, %v11701_v0 }
0x21bf   : > { %10262 = vmatpush3.bf16.msra.mxu1 %v11162_v14 }
0x21c0   : > { %10263 = vmatprep.subr.bf16.mxu1 %v11701_v0 }
0x21c3   : > { %10264 = vmatpush3.bf16.msra.mxu1 %v11163_v33 }
0x21c4   : > { %10265 = vmatprep.subr.bf16.mxu1 %v11701_v0 }
0x21c7   : > { %10266 = vmatpush3.bf16.msra.mxu1 %v11164_v7 }
0x21c8   : > { %10267 = vmatprep.subr.bf16.mxu1 %v11701_v0 }
0x21cb   : > { %10268 = vmatpush3.bf16.msra.mxu1 %v11165_v38 }
0x21cc   : > { %10269 = vmatprep.subr.bf16.mxu1 %v11701_v0 }
0x21cf   : > { %10270 = vmatpush3.bf16.msra.mxu1 %v11166_v11 }
0x21d0   : > { %10271 = vmatprep.subr.bf16.mxu1 %v11701_v0 }
0x21d3   : > { %10272 = vmatpush3.bf16.msra.mxu1 %v11167_v18 }
0x21d4   : > { %10273 = vmatprep.subr.bf16.mxu1 %v11701_v0 }
0x21d7   : > { %10274 = vmatpush3.bf16.msra.mxu1 %v11168_v2 }
0x228d   : > { %v9638_v4 = vpop.f32.mrb[152].mxu1 }
0x228e   : > { %v9660_v8 = vpop.f32.mrb[144].mxu0  ;;  %v9639_v49 = vpop.f32.mrb[153].mxu1 }
0x228f   : > { %v9640_v46 = vadd.f32 %v9639_v49, %v9638_v4  ;;  %v9661_v36 = vpop.f32.mrb[145].mxu0  ;;  %v9641_v47 = vpop.f32.mrb[154].mxu1 }
0x2290   : > { %v9662_v62 = vadd.f32 %v9661_v36, %v9660_v8  ;;  %v9663_v58 = vpop.f32.mrb[146].mxu0  ;;  %v9642_v1 = vpop.f32.mrb[155].mxu1 }
0x2291   : > { %v9643_v21 = vadd.f32 %v9642_v1, %v9641_v47  ;;  %v9664_v3 = vpop.f32.mrb[147].mxu0 }
0x2292   : > { %v8580_v12 = vadd.f32 %v9662_v62, %v9640_v46  ;;  %v9665_v16 = vadd.f32 %v9664_v3, %v9663_v58 }
0x2294   : > { %v8583_v42 = vadd.f32 %v9665_v16, %v9643_v21  ;;  %v8586_v29 = vadd.f32 %v8580_v12, %v13229_v59 }
0x2296   : > { %v8587_v0 = vadd.f32 %v8583_v42, %v13232_v61 }
0x2298   : > { %v8604_v27 = vpack.c.bf16 %v8587_v0, %v8586_v29 }
0x229a   : > { %10276 = vmatmul.mubr.bf16.vlgmr.msra.gmra.mrb[156].mxu1 %v8604_v27 }
0x236d   : > { %v8688_v53 = vpop.f32.mrb[156].mxu1 }
0x236e   : > { %v8689_v35 = vadd.f32 %v8688_v53, %v8605_v45  ;;  %v10277_v51 = vpop.f32.mrb[157].mxu1 }
0x236f   : > { %v8691_v50 = vpop.f32.mrb[158].mxu1 }
0x2370   : > { %v8692_v34 = vadd.f32 %v8691_v50, %v8605_v45  ;;  %8697 = vadd.xlane.f32.xlu0 %v8689_v35  ;;  %v10278_v52 = vpop.f32.mrb[159].mxu1 }
0x2372   : > { %8699 = vadd.xlane.f32.xlu1 %v8692_v34 }
0x23fd   : > { %v8698_v56 = vpop.xlane.xlu0 %8697 }
0x23fe   : > { %v8701_v28 = vmul.f32 0.0078125, %v8698_v56 }
0x23ff   : > { %v8700_v48 = vpop.xlane.xlu1 %8699 }
0x2400   : > { %v8703_v44 = vsub.f32 %v8689_v35, %v8701_v28  ;;  %v8702_v20 = vmul.f32 0.0078125, %v8700_v48 }
0x2402   : > { %v8704_v59 = vsub.f32 %v8692_v34, %v8702_v20  ;;  %v8705_v63 = vmul.f32 %v8703_v44, %v8703_v44 }
0x2404   : > { %8707 = vadd.xlane.f32.xlu0 %v8705_v63  ;;  %v8706_v61 = vmul.f32 %v8704_v59, %v8704_v59 }
0x2406   : > { %8709 = vadd.xlane.f32.xlu1 %v8706_v61 }
0x2491   : > { %v8708_v30 = vpop.xlane.xlu0 %8707 }
0x2492   : > { %v8711_v41 = vmul.f32 0.0078125, %v8708_v30 }
0x2493   : > { %v8710_v37 = vpop.xlane.xlu1 %8709 }
0x2494   : > { %v8713_v32 = vadd.f32 1e-05, %v8711_v41  ;;  %v8712_v5 = vmul.f32 0.0078125, %v8710_v37 }
0x2496   : > { %11427 = vrsqrt.f32 %v8713_v32  ;;  %v8714_v24 = vadd.f32 1e-05, %v8712_v5 }
0x2498   : > { %11429 = vrsqrt.f32 %v8714_v24 }
0x24a0   : > { %v11428_v54 = vpop.eup %11427 }
0x24a1   : > { %v8717_v15 = vmul.f32 %v11428_v54, %v8703_v44 }
0x24a2   : > { %v11430_v39 = vpop.eup %11429 }
0x24a3   : > { %v8719_v31 = vmul.f32 %v8717_v15, %v8695_v10  ;;  %v8718_v9 = vmul.f32 %v11430_v39, %v8704_v59 }
0x24a5   : > { %v8721_v13 = vadd.f32 %v8719_v31, %v8696_v23  ;;  %v8720_v17 = vmul.f32 %v8718_v9, %v8695_v10 }
0x24a7   : > { %v8722_v19 = vadd.f32 %v8720_v17, %v8696_v23  ;;  %8723 = vst [vmem:[%s361_s18] sm:$0xff] %v8721_v13 }
0x24a9   : > { %8724 = vst [vmem:[%s361_s18 + $0x8] sm:$0xff] %v8722_v19 }
0x24aa   : > { %11618 = shalt.err (!%p11615_p6)
}
0x24ab   : > { %s11619_s17 = scalar_lea.hbm %s13265_s30, 256  ;;  %s11623_s19 = scalar_lea.hbm %s13317_s6, 512 }
0x24ac   : > { %p11620_p4 = scmp.ne.s32.totalorder %s13265_s30, %s11619_s17  ;;  %p11624_p10 = scmp.lt.u32.totalorder %s13265_s30, %s13317_s6 }
0x24ad   : > { %p11625_p1 = scmp.lt.u32.totalorder %s11623_s19, %s11619_s17  ;;  %p11627_p12 = scmp.lt.u32.totalorder %s11619_s17, %s13265_s30 }
0x24ae   : > { %p11621_p8 = pnand %p11620_p4, %p13345_p13 }
0x24af   : > { %p11626_p11 = por %p11625_p1, %p11624_p10 }
0x24b0   : > { %p11622_p5 = pneg %p11621_p8 }
0x24b1   : > { %p11628_p7 = por %p11627_p12, %p11626_p11 }
0x24b3   : > { %p11629_p9 = pnand %p11628_p7, %p11622_p5 }
0x24b5   : > { %11632 = shalt.err (!%p11629_p9)
}
0x24b6   : > { %s11708_s20 = smov 128   ;;  %s11709_s13 = smov 8  }
0x24b7   : > { %10363 = dma.vmem_to_hbm [thread:$0]  (%p13345_p13), %s13267_s4, 256, %s13265_s30, %s8726_s14, %s11708_s20, %s11708_s20, %s11709_s13  }
0x24b8 PF: > { %s8754_s18 = sand.u32 1, %s11675_s21   ;;  %p13346_p0 = scmp.ne.s32.totalorder %s13335_s11, 0 }
0x24b9   : > { %p13347_p2 = scmp.ge.s32.totalorder %s11687_s24, 2  ;;  %s8755_s12 = scalar_lea.sflag [#allocation4], %s8754_s18 }
0x24bb   : > { %p10386_p3 = pnand %p13347_p2, %p13346_p0 }
0x24bd   : > { %11670 = dma.done.wait (!%p10386_p3), %s8755_s12, 256  }
0x24be   : > { %11672 = vsyncadd (!%p10386_p3), %s8755_s12, 4294967040  ;;  %p24_p6 = scmp.ge.s32.totalorder %s11887_s15, 4   ;;  %s13348_s21 = smov %s11679_s22 }
0x24bf   : > { %s13349_s22 = smov %s11683_s23  ;;  %s13350_s23 = smov %s11898_s29 }
0x24c0   : > { %s13351_s24 = smov %s11887_s15  ;;  %26 = sbr.rel (!%p24_p6) target bundleno = 13 (0xd), region = 120 }
0x24c7   :  { %8760 = vsyncpa [#allocation3], 1 }
0x24c8   :  { %8762 = vsyncpa [#allocation3 + $0x1], 1 }
0x24c9   :  { %8763 = vsyncpa [#allocation6], 1 }
0x24ca   :  { %8765 = vsyncpa [#allocation6 + $0x1], 1 }
0x24cb   :  { %8766 = vsyncpa [#allocation9], 1 }
0x24cc   :  { %8767 = vsyncpa [#allocation12], 1 }
0x24cd   :  { %8768 = vsyncpa [#allocation4], 1 }
0x24ce   :  { %8770 = vsyncpa [#allocation4 + $0x1], 1 }

</bundles_post_ra>
